<compile_context>
chip_gen: v6e
topology: v6e:2x2x1
jax: 0.10.0
libtpu: 0.0.40
codegen_flags: <defaults>
</compile_context>

<pallas_src>
import jax
import jax.numpy as jnp
from jax.experimental import pallas as pl
from jax.experimental.pallas import tpu as pltpu


def _safe_log_kernel(x_ref, o_ref, *, eps):
    # Cast is a no-op for the float path; for integer inputs it fuses the
    # int->float32 conversion into the (HBM-bound) kernel.
    x = x_ref[...].astype(o_ref.dtype)
    o_ref[...] = jnp.log(jnp.maximum(x, jnp.asarray(eps, dtype=o_ref.dtype)))


def _round_up(a: int, b: int) -> int:
    return ((a + b - 1) // b) * b


def _sublane_tile(dtype) -> int:
    # Packed sublane tile: 32-bit -> 8, 16-bit -> 16, 8-bit -> 32.
    return {4: 8, 2: 16, 1: 32}.get(jnp.dtype(dtype).itemsize, 8)


def _chip_config():
    """(total in+out double-buffered VMEM budget in bytes, multi_tensorcore)."""
    try:
        kind = jax.devices()[0].device_kind.lower()
    except Exception:
        kind = ""
    if "v5" in kind:
        return 12 * (1 << 20), False   # 16 MiB scoped-VMEM default -> stay small
    if "v6" in kind:
        return 24 * (1 << 20), False   # 32 MiB scoped default, 1 TC
    if "7" in kind:
        return 24 * (1 << 20), True    # 32 MiB scoped of 64 MiB physical, 2 TCs
    return 12 * (1 << 20), False       # unknown: conservative


_MIN_PALLAS_ELEMS = 64 * 1024  # below this, launch overhead dominates -> use XLA

_SUPPORTED_FLOATS = (jnp.dtype(jnp.float32), jnp.dtype(jnp.bfloat16),
                     jnp.dtype(jnp.float16))
_SUPPORTED_INTS = (jnp.dtype(jnp.int8), jnp.dtype(jnp.uint8),
                   jnp.dtype(jnp.int16), jnp.dtype(jnp.uint16),
                   jnp.dtype(jnp.int32), jnp.dtype(jnp.uint32))


def _safe_log_xla(x: jax.Array, eps: float, out_dtype) -> jax.Array:
    x = x.astype(out_dtype)
    return jnp.log(jnp.maximum(x, jnp.asarray(eps, dtype=out_dtype)))


def safe_log(x: jax.Array, eps: float = 1e-08) -> jax.Array:
    """Pallas implementation of torch.log(torch.clamp(x, min=eps))."""
    orig_shape = x.shape
    in_dtype = jnp.dtype(x.dtype)

    if in_dtype in _SUPPORTED_FLOATS:
        out_dtype = in_dtype
    elif in_dtype in _SUPPORTED_INTS:
        out_dtype = jnp.dtype(jnp.float32)   # torch.log on ints returns float
    else:
        # f64 / int64 / bool etc.: Mosaic has no vector path -> plain XLA.
        fb_dtype = in_dtype if jnp.issubdtype(in_dtype, jnp.floating) \
            else jnp.dtype(jnp.float32)
        return _safe_log_xla(x, eps, fb_dtype)

    n = x.size
    if n < _MIN_PALLAS_ELEMS or n % 128 != 0:
        # Tiny or awkwardly-sized inputs: XLA's fused elementwise wins.
        return _safe_log_xla(x, eps, out_dtype)

    # Widest lane dim that divides n -> lane-dense, unmasked wide stores.
    for lanes in (1024, 512, 256, 128):
        if n % lanes == 0:
            break
    rows = n // lanes

    in_size = in_dtype.itemsize
    out_size = out_dtype.itemsize
    sublane = max(_sublane_tile(in_dtype), _sublane_tile(out_dtype))

    if rows < sublane:
        # Single mostly-masked block: not worth a kernel launch.
        return _safe_log_xla(x, eps, out_dtype)

    vmem_budget, multi_core = _chip_config()

    # Double-buffered in + out: 2 * tile_rows * lanes * (in_size + out_size).
    tile_rows = vmem_budget // (2 * lanes * (in_size + out_size))
    tile_rows = max(sublane, (tile_rows // sublane) * sublane)
    # Don't allocate a block bigger than the (row-rounded) input.
    tile_rows = min(tile_rows, _round_up(rows, sublane))

    if multi_core and rows >= 2 * sublane:
        # v7x: guarantee >= 2 grid steps so both TensorCores get work.
        tile_rows = min(tile_rows, _round_up(pl.cdiv(rows, 2), sublane))
        steps = pl.cdiv(rows, tile_rows)
        if steps > 2 and steps % 2 == 1:
            # Prefer an even step count for load balance (best effort).
            alt = _round_up(pl.cdiv(rows, steps + 1), sublane)
            if alt >= sublane and pl.cdiv(rows, alt) % 2 == 0:
                tile_rows = alt

    slab = x.reshape(rows, lanes)       # contiguous reshape: no extra HBM copy
    grid = (pl.cdiv(rows, tile_rows),)  # ragged last block masked by Pallas

    out = pl.pallas_call(
        lambda x_ref, o_ref: _safe_log_kernel(x_ref, o_ref, eps=eps),
        out_shape=jax.ShapeDtypeStruct((rows, lanes), out_dtype),
        grid_spec=pltpu.PrefetchScalarGridSpec(
            num_scalar_prefetch=0,
            grid=grid,
            in_specs=[pl.BlockSpec((tile_rows, lanes), lambda i: (i, 0))],
            out_specs=pl.BlockSpec((tile_rows, lanes), lambda i: (i, 0)),
        ),
        compiler_params=pltpu.CompilerParams(
            dimension_semantics=("parallel",)),
        cost_estimate=pl.CostEstimate(
            flops=n, transcendentals=n,
            bytes_accessed=n * (in_size + out_size)),
    )(slab)

    return out.reshape(orig_shape)      # contiguous reshape: no slice copy


class SafeLog:
    """JAX/Pallas mirror of the PyTorch SafeLog module (no parameters)."""

    def __init__(self, eps: float = 1e-08):
        self.eps = eps

    def __call__(self, x: jax.Array) -> jax.Array:
        return safe_log(x, self.eps)


if __name__ == "__main__":
    key = jax.random.PRNGKey(0)
    # NCHW input, small shapes: batch=2, channels=4, spatial=16x16
    x = jax.random.uniform(key, (2, 4, 16, 16), dtype=jnp.float32,
                           minval=-0.5, maxval=2.0)  # includes values < eps

    mod = SafeLog(eps=1e-08)
    y = mod(x)
    jax.block_until_ready(y)
    y_ref = jnp.log(jnp.maximum(x, 1e-08))
    assert y.shape == x.shape and y.dtype == x.dtype
    assert jnp.allclose(y, y_ref, atol=1e-6, rtol=1e-6), "mismatch vs reference"

    # Exercise the tiled Pallas path (f32, >=64K elements, multi-block grid).
    x2 = jax.random.uniform(jax.random.PRNGKey(1), (8, 16, 96, 96),
                            dtype=jnp.float32, minval=-0.5, maxval=2.0)
    y2 = safe_log(x2)
    jax.block_until_ready(y2)
    y2_ref = jnp.log(jnp.maximum(x2, 1e-08))
    assert jnp.allclose(y2, y2_ref, atol=1e-6, rtol=1e-6), "mismatch (large f32)"

    # Exercise the bf16 path (16-sublane packed tile).
    x3 = jax.random.uniform(jax.random.PRNGKey(2), (4, 8, 128, 128),
                            dtype=jnp.float32, minval=-0.5,
                            maxval=2.0).astype(jnp.bfloat16)
    y3 = safe_log(x3)
    jax.block_until_ready(y3)
    y3_ref = jnp.log(jnp.maximum(x3, jnp.asarray(1e-08, jnp.bfloat16)))
    assert y3.dtype == jnp.bfloat16
    assert jnp.allclose(y3.astype(jnp.float32), y3_ref.astype(jnp.float32),
                        atol=2e-2, rtol=2e-2), "mismatch (bf16)"

    print("KERNEL_OK")
</pallas_src>

<mosaic_0001>
module attributes {stable_mosaic.version = 11 : i64} {
  func.func @_lambda_(%arg0: i32, %arg1: memref<768x1024xf32, #tpu.memory_space<vmem>>, %arg2: memref<768x1024xf32, #tpu.memory_space<vmem>>) attributes {dimension_semantics = [#tpu.dimension_semantics<parallel>], iteration_bounds = array<i64: 2>, scalar_prefetch = 0 : i64, scratch_operands = 0 : i64, tpu.core_type = #tpu.core_type<tc>, window_params = [{transform_indices = @transform_0, window_bounds = array<i64: 768, 1024>}, {transform_indices = @transform_1, window_bounds = array<i64: 768, 1024>}]} {
    %c0 = arith.constant 0 : index
    %c0_0 = arith.constant 0 : index
    %0 = vector.load %arg1[%c0, %c0_0] : memref<768x1024xf32, #tpu.memory_space<vmem>>, vector<768x1024xf32>
    %cst = arith.constant 9.99999993E-9 : f32
    %1 = vector.broadcast %cst : f32 to vector<768x1024xf32>
    %2 = arith.maximumf %0, %1 : vector<768x1024xf32>
    %3 = math.log %2 : vector<768x1024xf32>
    %c0_1 = arith.constant 0 : index
    %c0_2 = arith.constant 0 : index
    %4 = vector.load %arg2[%c0_1, %c0_2] : memref<768x1024xf32, #tpu.memory_space<vmem>>, vector<768x1024xf32>
    tpu.vector_store %arg2[%c0_1, %c0_2], %3 {strides = array<i32>} : memref<768x1024xf32, #tpu.memory_space<vmem>>, vector<768x1024xf32>,
    return
  }
  func.func @transform_0(%arg0: i32) -> (i32, i32) {
    %c0_i32 = arith.constant 0 : i32
    %c0_i32_0 = arith.constant 0 : i32
    return %arg0, %c0_i32 : i32, i32
  }
  func.func @transform_1(%arg0: i32) -> (i32, i32) {
    %c0_i32 = arith.constant 0 : i32
    %c0_i32_0 = arith.constant 0 : i32
    return %arg0, %c0_i32 : i32, i32
  }
}

</mosaic_0001>

<bundles_post_ra>
// kernel: tpu_custom_call.1
= control target key start
LH: loop header
LB: loop body
LE: loop exit
PB: predicated region body
PF: predicated region fallthrough
CT: control target
= control target key end

     0   :  { %6 = vsyncpa [#allocation3], 0  ;;  %s7520_s0 = inlined_call_operand.hbm [shape: f32[1152,1024], index: 0, kind: input, shape index: {}]   ;;  %s7521_s1 = inlined_call_operand.hbm [shape: f32[1152,1024], index: 1, kind: output, shape index: {}]  }
   0x1   :  { %8 = vsyncpa [#allocation3 + $0x1], 0 }
   0x2   :  { %9 = vsyncpa [#allocation4], 0 }
   0x3   :  { %11 = vsyncpa [#allocation4 + $0x1], 0  ;;  %s5807_s6 = smov 0   ;;  %s5809_s7 = smov 0  }
   0x4   :  { %s5811_s8 = smov 0   ;;  %s5813_s9 = smov 0  }
   0x5 LB: > { %s5828_s10 = sadd.s32 4294967295, %s5789_s9   ;;  %s4090_s11 = sadd.s32 4294967294, %s5789_s9   ;;  %s5789_s9 = sphi %s5813_s9, %s7531_s9   ;;  %s5785_s8 = sphi %s5811_s8, %s7530_s8   ;;  %s5781_s7 = sphi %s5809_s7, %s7529_s7   ;;  %s5777_s6 = sphi %s5807_s6, %s7528_s6  }
   0x6   : > { %s5832_s12 = sadd.s32 1, %s5789_s9   ;;  %s24_s13 = sadd.s32 1, %s5785_s8 }
   0x7   : > { %s21_s14 = ssub.s32 %s5789_s9, %s5832_s12  ;;  %p31_p0 = scmp.ne.s32.totalorder %s5785_s8, %s5781_s7 }
   0x8   : > { %p22_p1 = scmp.eq.s32.totalorder %s21_s14, 0  ;;  %p32_p2 = scmp.eq.s32.totalorder %s5789_s9, 0 }
   0x9   : > { %p37_p3 = scmp.ne.s32.totalorder %s5781_s7, %s5777_s6  ;;  %p38_p4 = scmp.eq.s32.totalorder %s5828_s10, 0 }
   0xa   : > { %s5844_s15 = scalar_select %p22_p1, %s5785_s8, %s24_s13  }
   0xb   : > { %p33_p5 = por %p32_p2, %p31_p0  ;;  %p5846_p6 = por %p38_p4, %p37_p3 }
   0xc   : > { %p61_p7 = scmp.eq.s32.totalorder %s5828_s10, 1  ;;  %p67_p8 = scmp.eq.s32.totalorder %s4090_s11, 1 }
   0xd   : > { %p7522_p11 = scmp.ge.s32.totalorder %s5789_s9, 2 }
   0xe   : > { %p5851_p9 = por %p61_p7, %p31_p0  ;;  %p5855_p10 = por %p67_p8, %p37_p3 }
   0xf   : > { %83 = sbr.rel (%p7522_p11) target bundleno = 54 (0x36), region = 16 }
  0x10   : > { %s7525_s18 = scalar_select %p5855_p10, 1, 0 }
  0x14   : > { %86 = sbr.rel (!%p33_p5) target bundleno = 54 (0x36), region = 20  ;;  %s87_s19 = sand.u32 (%p33_p5), 1, %s5785_s8  }
  0x15   : > { %s92_s20 = smul.u32 (%p33_p5), 96, %s5789_s9  ;;  %s5867_s25 = scalar_lea.sflag (%p33_p5), [#allocation3], %s87_s19 }
  0x16   : > { %s4118_s21 = smul.u32 (%p33_p5), 6144, %s87_s19 }
  0x17   : > { %s93_s22 = ssub.s32 (%p33_p5), 144, %s92_s20 }
  0x18   : > { %p94_p12 = scmp.lt.s32.totalorder (%p33_p5), %s93_s22, 96  ;;  %s91_s26 = scalar_lea.vmem (%p33_p5), [#allocation2], %s4118_s21 }
  0x1a   : > { %s7533_s22 = smov (!%p94_p12, %s93_s22), 96 }
  0x1b   : > { %s5864_s23 = sshll.u32 %s7533_s22, 10 }
  0x1c   : > { %s99_s24 = ssub.s32 98304, %s5864_s23 }
  0x1d   : > { %100 = vsyncadd %s5867_s25, %s99_s24  ;;  %p4095_p13 = scmp.ne.s32.totalorder %s5864_s23, 0  ;;  %s4116_s27 = smul.u32 98304, %s5789_s9 }
  0x1e   : > { %s106_s28 = sshll.u32 %s91_s26, 4  ;;  %s5703_s11 = scalar_lea.hbm %s7520_s0, 147456  ;;  %s5877_s28 = int_to_ptr.vmem [resolvable:$true] %s106_s28 }
  0x1f   : > { %s5875_s2 = scalar_lea.hbm %s7520_s0, %s4116_s27 }
  0x20   : > { %s5699_s3 = scalar_lea.hbm %s5875_s2, %s5864_s23  ;;  %p5704_p3 = scmp.lt.s32.totalorder %s5875_s2, %s7520_s0 }
  0x21   : > { %p5700_p0 = scmp.ne.s32.totalorder %s5875_s2, %s5699_s3  ;;  %p5705_p4 = scmp.lt.s32.totalorder %s5703_s11, %s5699_s3 }
  0x23   : > { %p5701_p1 = pnand %p5700_p0, %p4095_p13  ;;  %p5706_p5 = por %p5705_p4, %p5704_p3 }
  0x25   : > { %p5702_p2 = pneg %p5701_p1 }
  0x27   : > { %p5707_p7 = pnand %p5706_p5, %p5702_p2 }
  0x29   : > { %5710 = shalt.err (!%p5707_p7)
}
  0x2a   : > { %s5711_s19 = scalar_lea.vmem %s5877_s28, %s5864_s23  ;;  %s5791_s20 = smov [#allocation2]  }
  0x2b   : > { %p5712_p8 = scmp.ne.s32.totalorder %s5877_s28, %s5711_s19  ;;  %s5715_s21 = sshll.u32 %s5791_s20, 4  ;;  %s5716_s21 = int_to_ptr.vmem [resolvable:$false] %s5715_s21 }
  0x2c   : > { %s5717_s22 = scalar_lea.vmem %s5716_s21, 196608  ;;  %p5718_p1 = scmp.lt.s32.totalorder %s5877_s28, %s5716_s21 }
  0x2d   : > { %p5713_p12 = pnand %p5712_p8, %p4095_p13  ;;  %p5719_p11 = scmp.lt.s32.totalorder %s5717_s22, %s5711_s19 }
  0x2f   : > { %p5714_p0 = pneg %p5713_p12  ;;  %p5720_p10 = por %p5719_p11, %p5718_p1 }
  0x31   : > { %p5721_p3 = pnand %p5720_p10, %p5714_p0 }
  0x33   : > { %5724 = shalt.err (!%p5721_p3)
}
  0x34   : > { %s5792_s24 = smov 1024   ;;  %s5793_s26 = smov 64  }
  0x35   : > { %112 = dma.hbm_to_vmem [thread:$0]  (%p4095_p13), %s5875_s2, %s5864_s23, %s5877_s28, %s5867_s25, %s5792_s24, %s5792_s24, %s5793_s26  }
  0x36 PF: > { %p4100_p2 = scmp.ge.s32.totalorder %s5789_s9, 1  ;;  %p114_p4 = scmp.lt.s32.totalorder %s5789_s9, 3 }
  0x38   : > { %p115_p5 = pnand %p4100_p2, %p114_p4 }
  0x39   : > { %s5906_s27 = sand.u32 (!%p115_p5), 1, %s5781_s7  }
  0x3a   : > { %118 = sbr.rel (%p115_p5) target bundleno = 878 (0x36e), region = 24  ;;  %s121_s30 = scalar_lea.sflag (!%p115_p5), [#allocation3], %s5906_s27 }
  0x3b   : > { %s4119_s29 = smul.u32 (!%p115_p5), 6144, %s5906_s27 }
  0x3d   : > { %s5912_s3 = scalar_lea.vmem (!%p115_p5), [#allocation2], %s4119_s29 }
  0x3f   : > { %5768 = dma.done.wait (%p5846_p6), %s121_s30, 98304  }
  0x40   : > { %5770 = vsyncadd (%p5846_p6), %s121_s30, 4294868992  ;;  %v155_v0 = vld [vmem:[%s5912_s3] sm:$0xff]  ;;  %v156_v1 = vld [vmem:[%s5912_s3 + $0x8] sm:$0xff]  ;;  %s5943_s16 = scalar_lea.vmem [#allocation5], %s4119_s29  ;;  %s3996_s23 = scalar_lea.sflag [#allocation4], %s5906_s27 }
  0x41   : > { %v157_v2 = vld [vmem:[%s5912_s3 + $0x10] sm:$0xff]  ;;  %v923_v3 = vmax.f32 %v155_v0, 1e-08  ;;  %v924_v4 = vmax.f32 %v156_v1, 1e-08  ;;  %v158_v6 = vld [vmem:[%s5912_s3 + $0x18] sm:$0xff] }
  0x42   : > { %v925_v5 = vmax.f32 %v157_v2, 1e-08  ;;  %v159_v7 = vld [vmem:[%s5912_s3 + $0x20] sm:$0xff]  ;;  %v160_v8 = vld [vmem:[%s5912_s3 + $0x28] sm:$0xff]  ;;  %v926_v9 = vmax.f32 %v158_v6, 1e-08 }
  0x43   : > { %4163 = vlog2.f32 %v923_v3  ;;  %v927_v10 = vmax.f32 %v159_v7, 1e-08  ;;  %v928_v11 = vmax.f32 %v160_v8, 1e-08  ;;  %v161_v12 = vld [vmem:[%s5912_s3 + $0x30] sm:$0xff]  ;;  %v162_v13 = vld [vmem:[%s5912_s3 + $0x38] sm:$0xff] }
  0x44   : > { %4165 = vlog2.f32 %v924_v4  ;;  %v163_v14 = vld [vmem:[%s5912_s3 + $0x40] sm:$0xff]  ;;  %v929_v15 = vmax.f32 %v161_v12, 1e-08  ;;  %v930_v16 = vmax.f32 %v162_v13, 1e-08  ;;  %v164_v17 = vld [vmem:[%s5912_s3 + $0x48] sm:$0xff] }
  0x45   : > { %4167 = vlog2.f32 %v925_v5  ;;  %v165_v18 = vld [vmem:[%s5912_s3 + $0x50] sm:$0xff]  ;;  %v931_v19 = vmax.f32 %v163_v14, 1e-08  ;;  %v166_v20 = vld [vmem:[%s5912_s3 + $0x58] sm:$0xff]  ;;  %v932_v21 = vmax.f32 %v164_v17, 1e-08 }
  0x46   : > { %4169 = vlog2.f32 %v926_v9  ;;  %v167_v22 = vld [vmem:[%s5912_s3 + $0x60] sm:$0xff]  ;;  %v933_v23 = vmax.f32 %v165_v18, 1e-08  ;;  %v168_v24 = vld [vmem:[%s5912_s3 + $0x68] sm:$0xff]  ;;  %v934_v25 = vmax.f32 %v166_v20, 1e-08 }
  0x47   : > { %4171 = vlog2.f32 %v927_v10  ;;  %v169_v26 = vld [vmem:[%s5912_s3 + $0x70] sm:$0xff]  ;;  %v935_v27 = vmax.f32 %v167_v22, 1e-08  ;;  %v170_v28 = vld [vmem:[%s5912_s3 + $0x78] sm:$0xff]  ;;  %v936_v29 = vmax.f32 %v168_v24, 1e-08 }
  0x48   : > { %4173 = vlog2.f32 %v928_v11  ;;  %v171_v30 = vld [vmem:[%s5912_s3 + $0x80] sm:$0xff]  ;;  %v937_v31 = vmax.f32 %v169_v26, 1e-08  ;;  %v172_v32 = vld [vmem:[%s5912_s3 + $0x88] sm:$0xff]  ;;  %v938_v33 = vmax.f32 %v170_v28, 1e-08 }
  0x49   : > { %4175 = vlog2.f32 %v929_v15  ;;  %v173_v34 = vld [vmem:[%s5912_s3 + $0x90] sm:$0xff]  ;;  %v939_v35 = vmax.f32 %v171_v30, 1e-08  ;;  %v174_v36 = vld [vmem:[%s5912_s3 + $0x98] sm:$0xff]  ;;  %v940_v38 = vmax.f32 %v172_v32, 1e-08 }
  0x4a   : > { %4177 = vlog2.f32 %v930_v16  ;;  %v175_v39 = vld [vmem:[%s5912_s3 + $0xa0] sm:$0xff]  ;;  %v941_v42 = vmax.f32 %v173_v34, 1e-08  ;;  %v176_v43 = vld [vmem:[%s5912_s3 + $0xa8] sm:$0xff]  ;;  %v942_v46 = vmax.f32 %v174_v36, 1e-08 }
  0x4b   : > { %4179 = vlog2.f32 %v931_v19  ;;  %v177_v47 = vld [vmem:[%s5912_s3 + $0xb0] sm:$0xff]  ;;  %v943_v50 = vmax.f32 %v175_v39, 1e-08  ;;  %v178_v51 = vld [vmem:[%s5912_s3 + $0xb8] sm:$0xff]  ;;  %v944_v54 = vmax.f32 %v176_v43, 1e-08 }
  0x4c   : > { %4181 = vlog2.f32 %v932_v21  ;;  %v179_v55 = vld [vmem:[%s5912_s3 + $0xc0] sm:$0xff]  ;;  %v945_v58 = vmax.f32 %v177_v47, 1e-08  ;;  %v180_v59 = vld [vmem:[%s5912_s3 + $0xc8] sm:$0xff]  ;;  %v946_v62 = vmax.f32 %v178_v51, 1e-08 }
  0x4d   : > { %4183 = vlog2.f32 %v933_v23  ;;  %v181_v63 = vld [vmem:[%s5912_s3 + $0xd0] sm:$0xff]  ;;  %v947_v2 = vmax.f32 %v179_v55, 1e-08  ;;  %v182_v3 = vld [vmem:[%s5912_s3 + $0xd8] sm:$0xff]  ;;  %v948_v6 = vmax.f32 %v180_v59, 1e-08 }
  0x4e   : > { %4185 = vlog2.f32 %v934_v25  ;;  %v183_v7 = vld [vmem:[%s5912_s3 + $0xe0] sm:$0xff]  ;;  %v949_v10 = vmax.f32 %v181_v63, 1e-08  ;;  %v184_v11 = vld [vmem:[%s5912_s3 + $0xe8] sm:$0xff]  ;;  %v950_v14 = vmax.f32 %v182_v3, 1e-08 }
  0x4f   : > { %4187 = vlog2.f32 %v935_v27  ;;  %v185_v15 = vld [vmem:[%s5912_s3 + $0xf0] sm:$0xff]  ;;  %v951_v18 = vmax.f32 %v183_v7, 1e-08  ;;  %v186_v19 = vld [vmem:[%s5912_s3 + $0xf8] sm:$0xff]  ;;  %v952_v22 = vmax.f32 %v184_v11, 1e-08 }
  0x50   : > { %v4164_v37 = vpop.eup %4163  ;;  %4189 = vlog2.f32 %v936_v29  ;;  %v187_v23 = vld [vmem:[%s5912_s3 + $0x100] sm:$0xff]  ;;  %v953_v26 = vmax.f32 %v185_v15, 1e-08  ;;  %v188_v27 = vld [vmem:[%s5912_s3 + $0x108] sm:$0xff]  ;;  %v954_v30 = vmax.f32 %v186_v19, 1e-08 }
  0x51   : > { %v4166_v40 = vpop.eup %4165  ;;  %v1692_v41 = vmul.f32 0.6931472, %v4164_v37  ;;  %4191 = vlog2.f32 %v937_v31  ;;  %v189_v31 = vld [vmem:[%s5912_s3 + $0x110] sm:$0xff]  ;;  %v955_v34 = vmax.f32 %v187_v23, 1e-08  ;;  %v191_v39 = vld [vmem:[%s5912_s3 + $0x120] sm:$0xff] }
  0x52   : > { %v4168_v44 = vpop.eup %4167  ;;  %v1694_v45 = vmul.f32 0.6931472, %v4166_v40  ;;  %4193 = vlog2.f32 %v938_v33  ;;  %v192_v43 = vld [vmem:[%s5912_s3 + $0x128] sm:$0xff]  ;;  %v193_v47 = vld [vmem:[%s5912_s3 + $0x130] sm:$0xff]  ;;  %v194_v51 = vld [vmem:[%s5912_s3 + $0x138] sm:$0xff]  ;;  %s4003_s25 = smul.u32 (%p5851_p9), 96, %s5828_s10 }
  0x53   : > { %v4170_v48 = vpop.eup %4169  ;;  %3227 = vst [vmem:[%s5943_s16] sm:$0xff] %v1692_v41  ;;  %v1696_v49 = vmul.f32 0.6931472, %v4168_v44  ;;  %4195 = vlog2.f32 %v939_v35  ;;  %v190_v35 = vld [vmem:[%s5912_s3 + $0x118] sm:$0xff]  ;;  %v195_v55 = vld [vmem:[%s5912_s3 + $0x140] sm:$0xff]  ;;  %v196_v59 = vld [vmem:[%s5912_s3 + $0x148] sm:$0xff] }
  0x54   : > { %v4172_v52 = vpop.eup %4171  ;;  %3228 = vst [vmem:[%s5943_s16 + $0x8] sm:$0xff] %v1694_v45  ;;  %v1698_v53 = vmul.f32 0.6931472, %v4170_v48  ;;  %4197 = vlog2.f32 %v940_v38  ;;  %v956_v38 = vmax.f32 %v188_v27, 1e-08  ;;  %v197_v63 = vld [vmem:[%s5912_s3 + $0x150] sm:$0xff] }
  0x55   : > { %v4174_v56 = vpop.eup %4173  ;;  %3229 = vst [vmem:[%s5943_s16 + $0x10] sm:$0xff] %v1696_v49  ;;  %v1700_v57 = vmul.f32 0.6931472, %v4172_v52  ;;  %4199 = vlog2.f32 %v941_v42  ;;  %v957_v42 = vmax.f32 %v189_v31, 1e-08  ;;  %v198_v3 = vld [vmem:[%s5912_s3 + $0x158] sm:$0xff] }
  0x56   : > { %v4176_v60 = vpop.eup %4175  ;;  %3230 = vst [vmem:[%s5943_s16 + $0x18] sm:$0xff] %v1698_v53  ;;  %v1702_v61 = vmul.f32 0.6931472, %v4174_v56  ;;  %4201 = vlog2.f32 %v942_v46  ;;  %v958_v46 = vmax.f32 %v190_v35, 1e-08  ;;  %v199_v7 = vld [vmem:[%s5912_s3 + $0x160] sm:$0xff] }
  0x57   : > { %v4178_v0 = vpop.eup %4177  ;;  %3231 = vst [vmem:[%s5943_s16 + $0x20] sm:$0xff] %v1700_v57  ;;  %v1704_v1 = vmul.f32 0.6931472, %v4176_v60  ;;  %4203 = vlog2.f32 %v943_v50  ;;  %v959_v50 = vmax.f32 %v191_v39, 1e-08  ;;  %v200_v11 = vld [vmem:[%s5912_s3 + $0x168] sm:$0xff] }
  0x58   : > { %v4180_v4 = vpop.eup %4179  ;;  %3232 = vst [vmem:[%s5943_s16 + $0x28] sm:$0xff] %v1702_v61  ;;  %v1706_v5 = vmul.f32 0.6931472, %v4178_v0  ;;  %4205 = vlog2.f32 %v944_v54  ;;  %v960_v54 = vmax.f32 %v192_v43, 1e-08  ;;  %v201_v15 = vld [vmem:[%s5912_s3 + $0x170] sm:$0xff] }
  0x59   : > { %v4182_v8 = vpop.eup %4181  ;;  %3233 = vst [vmem:[%s5943_s16 + $0x30] sm:$0xff] %v1704_v1  ;;  %v1708_v9 = vmul.f32 0.6931472, %v4180_v4  ;;  %4207 = vlog2.f32 %v945_v58  ;;  %v961_v58 = vmax.f32 %v193_v47, 1e-08  ;;  %v202_v19 = vld [vmem:[%s5912_s3 + $0x178] sm:$0xff] }
  0x5a   : > { %v4184_v12 = vpop.eup %4183  ;;  %3234 = vst [vmem:[%s5943_s16 + $0x38] sm:$0xff] %v1706_v5  ;;  %v1710_v13 = vmul.f32 0.6931472, %v4182_v8  ;;  %4209 = vlog2.f32 %v946_v62  ;;  %v962_v62 = vmax.f32 %v194_v51, 1e-08  ;;  %v203_v23 = vld [vmem:[%s5912_s3 + $0x180] sm:$0xff] }
  0x5b   : > { %v4186_v16 = vpop.eup %4185  ;;  %3235 = vst [vmem:[%s5943_s16 + $0x40] sm:$0xff] %v1708_v9  ;;  %v1712_v17 = vmul.f32 0.6931472, %v4184_v12  ;;  %4211 = vlog2.f32 %v947_v2  ;;  %v963_v2 = vmax.f32 %v195_v55, 1e-08  ;;  %v204_v27 = vld [vmem:[%s5912_s3 + $0x188] sm:$0xff] }
  0x5c   : > { %v4188_v20 = vpop.eup %4187  ;;  %3236 = vst [vmem:[%s5943_s16 + $0x48] sm:$0xff] %v1710_v13  ;;  %v1714_v21 = vmul.f32 0.6931472, %v4186_v16  ;;  %4213 = vlog2.f32 %v948_v6  ;;  %v964_v6 = vmax.f32 %v196_v59, 1e-08  ;;  %v205_v31 = vld [vmem:[%s5912_s3 + $0x190] sm:$0xff] }
  0x5d   : > { %v4190_v24 = vpop.eup %4189  ;;  %3237 = vst [vmem:[%s5943_s16 + $0x50] sm:$0xff] %v1712_v17  ;;  %v1716_v25 = vmul.f32 0.6931472, %v4188_v20  ;;  %4215 = vlog2.f32 %v949_v10  ;;  %v965_v10 = vmax.f32 %v197_v63, 1e-08  ;;  %v206_v35 = vld [vmem:[%s5912_s3 + $0x198] sm:$0xff] }
  0x5e   : > { %v4192_v28 = vpop.eup %4191  ;;  %3238 = vst [vmem:[%s5943_s16 + $0x58] sm:$0xff] %v1714_v21  ;;  %v1718_v29 = vmul.f32 0.6931472, %v4190_v24  ;;  %4217 = vlog2.f32 %v950_v14  ;;  %v966_v14 = vmax.f32 %v198_v3, 1e-08  ;;  %v207_v39 = vld [vmem:[%s5912_s3 + $0x1a0] sm:$0xff] }
  0x5f   : > { %v4194_v32 = vpop.eup %4193  ;;  %3239 = vst [vmem:[%s5943_s16 + $0x60] sm:$0xff] %v1716_v25  ;;  %v1720_v33 = vmul.f32 0.6931472, %v4192_v28  ;;  %4219 = vlog2.f32 %v951_v18  ;;  %v967_v18 = vmax.f32 %v199_v7, 1e-08  ;;  %v208_v43 = vld [vmem:[%s5912_s3 + $0x1a8] sm:$0xff] }
  0x60   : > { %v4196_v36 = vpop.eup %4195  ;;  %3240 = vst [vmem:[%s5943_s16 + $0x68] sm:$0xff] %v1718_v29  ;;  %v1722_v37 = vmul.f32 0.6931472, %v4194_v32  ;;  %4221 = vlog2.f32 %v952_v22  ;;  %v968_v22 = vmax.f32 %v200_v11, 1e-08  ;;  %v209_v47 = vld [vmem:[%s5912_s3 + $0x1b0] sm:$0xff] }
  0x61   : > { %v4198_v40 = vpop.eup %4197  ;;  %3241 = vst [vmem:[%s5943_s16 + $0x70] sm:$0xff] %v1720_v33  ;;  %v1724_v41 = vmul.f32 0.6931472, %v4196_v36  ;;  %4223 = vlog2.f32 %v953_v26  ;;  %v969_v26 = vmax.f32 %v201_v15, 1e-08  ;;  %v210_v51 = vld [vmem:[%s5912_s3 + $0x1b8] sm:$0xff] }
  0x62   : > { %v4200_v44 = vpop.eup %4199  ;;  %3242 = vst [vmem:[%s5943_s16 + $0x78] sm:$0xff] %v1722_v37  ;;  %v1726_v45 = vmul.f32 0.6931472, %v4198_v40  ;;  %4225 = vlog2.f32 %v954_v30  ;;  %v970_v30 = vmax.f32 %v202_v19, 1e-08  ;;  %v211_v55 = vld [vmem:[%s5912_s3 + $0x1c0] sm:$0xff] }
  0x63   : > { %v4202_v48 = vpop.eup %4201  ;;  %3243 = vst [vmem:[%s5943_s16 + $0x80] sm:$0xff] %v1724_v41  ;;  %v1728_v49 = vmul.f32 0.6931472, %v4200_v44  ;;  %4227 = vlog2.f32 %v955_v34  ;;  %v971_v34 = vmax.f32 %v203_v23, 1e-08  ;;  %v212_v59 = vld [vmem:[%s5912_s3 + $0x1c8] sm:$0xff] }
  0x64   : > { %v4204_v52 = vpop.eup %4203  ;;  %3244 = vst [vmem:[%s5943_s16 + $0x88] sm:$0xff] %v1726_v45  ;;  %v1730_v53 = vmul.f32 0.6931472, %v4202_v48  ;;  %4229 = vlog2.f32 %v956_v38  ;;  %v972_v38 = vmax.f32 %v204_v27, 1e-08  ;;  %v213_v63 = vld [vmem:[%s5912_s3 + $0x1d0] sm:$0xff] }
  0x65   : > { %v4206_v56 = vpop.eup %4205  ;;  %3245 = vst [vmem:[%s5943_s16 + $0x90] sm:$0xff] %v1728_v49  ;;  %v1732_v57 = vmul.f32 0.6931472, %v4204_v52  ;;  %4231 = vlog2.f32 %v957_v42  ;;  %v973_v42 = vmax.f32 %v205_v31, 1e-08  ;;  %v214_v3 = vld [vmem:[%s5912_s3 + $0x1d8] sm:$0xff] }
  0x66   : > { %v4208_v60 = vpop.eup %4207  ;;  %3246 = vst [vmem:[%s5943_s16 + $0x98] sm:$0xff] %v1730_v53  ;;  %v1734_v61 = vmul.f32 0.6931472, %v4206_v56  ;;  %4233 = vlog2.f32 %v958_v46  ;;  %v974_v46 = vmax.f32 %v206_v35, 1e-08  ;;  %v215_v7 = vld [vmem:[%s5912_s3 + $0x1e0] sm:$0xff] }
  0x67   : > { %v4210_v0 = vpop.eup %4209  ;;  %3247 = vst [vmem:[%s5943_s16 + $0xa0] sm:$0xff] %v1732_v57  ;;  %v1736_v1 = vmul.f32 0.6931472, %v4208_v60  ;;  %4235 = vlog2.f32 %v959_v50  ;;  %v975_v50 = vmax.f32 %v207_v39, 1e-08  ;;  %v216_v11 = vld [vmem:[%s5912_s3 + $0x1e8] sm:$0xff] }
  0x68   : > { %v4212_v4 = vpop.eup %4211  ;;  %3248 = vst [vmem:[%s5943_s16 + $0xa8] sm:$0xff] %v1734_v61  ;;  %v1738_v5 = vmul.f32 0.6931472, %v4210_v0  ;;  %4237 = vlog2.f32 %v960_v54  ;;  %v976_v54 = vmax.f32 %v208_v43, 1e-08  ;;  %v217_v15 = vld [vmem:[%s5912_s3 + $0x1f0] sm:$0xff] }
  0x69   : > { %v4214_v8 = vpop.eup %4213  ;;  %3249 = vst [vmem:[%s5943_s16 + $0xb0] sm:$0xff] %v1736_v1  ;;  %v1740_v9 = vmul.f32 0.6931472, %v4212_v4  ;;  %4239 = vlog2.f32 %v961_v58  ;;  %v977_v58 = vmax.f32 %v209_v47, 1e-08  ;;  %v218_v19 = vld [vmem:[%s5912_s3 + $0x1f8] sm:$0xff] }
  0x6a   : > { %v4216_v12 = vpop.eup %4215  ;;  %3250 = vst [vmem:[%s5943_s16 + $0xb8] sm:$0xff] %v1738_v5  ;;  %v1742_v13 = vmul.f32 0.6931472, %v4214_v8  ;;  %4241 = vlog2.f32 %v962_v62  ;;  %v978_v62 = vmax.f32 %v210_v51, 1e-08  ;;  %v219_v23 = vld [vmem:[%s5912_s3 + $0x200] sm:$0xff] }
  0x6b   : > { %v4218_v16 = vpop.eup %4217  ;;  %3251 = vst [vmem:[%s5943_s16 + $0xc0] sm:$0xff] %v1740_v9  ;;  %v1744_v17 = vmul.f32 0.6931472, %v4216_v12  ;;  %4243 = vlog2.f32 %v963_v2  ;;  %v979_v2 = vmax.f32 %v211_v55, 1e-08  ;;  %v220_v27 = vld [vmem:[%s5912_s3 + $0x208] sm:$0xff] }
  0x6c   : > { %v4220_v20 = vpop.eup %4219  ;;  %3252 = vst [vmem:[%s5943_s16 + $0xc8] sm:$0xff] %v1742_v13  ;;  %v1746_v21 = vmul.f32 0.6931472, %v4218_v16  ;;  %4245 = vlog2.f32 %v964_v6  ;;  %v980_v6 = vmax.f32 %v212_v59, 1e-08  ;;  %v221_v31 = vld [vmem:[%s5912_s3 + $0x210] sm:$0xff] }
  0x6d   : > { %v4222_v24 = vpop.eup %4221  ;;  %3253 = vst [vmem:[%s5943_s16 + $0xd0] sm:$0xff] %v1744_v17  ;;  %v1748_v25 = vmul.f32 0.6931472, %v4220_v20  ;;  %4247 = vlog2.f32 %v965_v10  ;;  %v981_v10 = vmax.f32 %v213_v63, 1e-08  ;;  %v222_v35 = vld [vmem:[%s5912_s3 + $0x218] sm:$0xff] }
  0x6e   : > { %v4224_v28 = vpop.eup %4223  ;;  %3254 = vst [vmem:[%s5943_s16 + $0xd8] sm:$0xff] %v1746_v21  ;;  %v1750_v29 = vmul.f32 0.6931472, %v4222_v24  ;;  %4249 = vlog2.f32 %v966_v14  ;;  %v982_v14 = vmax.f32 %v214_v3, 1e-08  ;;  %v223_v39 = vld [vmem:[%s5912_s3 + $0x220] sm:$0xff] }
  0x6f   : > { %v4226_v32 = vpop.eup %4225  ;;  %3255 = vst [vmem:[%s5943_s16 + $0xe0] sm:$0xff] %v1748_v25  ;;  %v1752_v33 = vmul.f32 0.6931472, %v4224_v28  ;;  %4251 = vlog2.f32 %v967_v18  ;;  %v983_v18 = vmax.f32 %v215_v7, 1e-08  ;;  %v224_v43 = vld [vmem:[%s5912_s3 + $0x228] sm:$0xff] }
  0x70   : > { %v4228_v36 = vpop.eup %4227  ;;  %3256 = vst [vmem:[%s5943_s16 + $0xe8] sm:$0xff] %v1750_v29  ;;  %v1754_v37 = vmul.f32 0.6931472, %v4226_v32  ;;  %4253 = vlog2.f32 %v968_v22  ;;  %v984_v22 = vmax.f32 %v216_v11, 1e-08  ;;  %v225_v47 = vld [vmem:[%s5912_s3 + $0x230] sm:$0xff] }
  0x71   : > { %v4230_v40 = vpop.eup %4229  ;;  %3257 = vst [vmem:[%s5943_s16 + $0xf0] sm:$0xff] %v1752_v33  ;;  %v1756_v41 = vmul.f32 0.6931472, %v4228_v36  ;;  %4255 = vlog2.f32 %v969_v26  ;;  %v985_v26 = vmax.f32 %v217_v15, 1e-08  ;;  %v226_v51 = vld [vmem:[%s5912_s3 + $0x238] sm:$0xff] }
  0x72   : > { %v4232_v44 = vpop.eup %4231  ;;  %3258 = vst [vmem:[%s5943_s16 + $0xf8] sm:$0xff] %v1754_v37  ;;  %v1758_v45 = vmul.f32 0.6931472, %v4230_v40  ;;  %4257 = vlog2.f32 %v970_v30  ;;  %v986_v30 = vmax.f32 %v218_v19, 1e-08  ;;  %v227_v55 = vld [vmem:[%s5912_s3 + $0x240] sm:$0xff] }
  0x73   : > { %v4234_v48 = vpop.eup %4233  ;;  %3259 = vst [vmem:[%s5943_s16 + $0x100] sm:$0xff] %v1756_v41  ;;  %v1760_v49 = vmul.f32 0.6931472, %v4232_v44  ;;  %4259 = vlog2.f32 %v971_v34  ;;  %v987_v34 = vmax.f32 %v219_v23, 1e-08  ;;  %v228_v59 = vld [vmem:[%s5912_s3 + $0x248] sm:$0xff] }
  0x74   : > { %v4236_v52 = vpop.eup %4235  ;;  %3260 = vst [vmem:[%s5943_s16 + $0x108] sm:$0xff] %v1758_v45  ;;  %v1762_v53 = vmul.f32 0.6931472, %v4234_v48  ;;  %4261 = vlog2.f32 %v972_v38  ;;  %v988_v38 = vmax.f32 %v220_v27, 1e-08  ;;  %v229_v63 = vld [vmem:[%s5912_s3 + $0x250] sm:$0xff] }
  0x75   : > { %v4238_v56 = vpop.eup %4237  ;;  %3261 = vst [vmem:[%s5943_s16 + $0x110] sm:$0xff] %v1760_v49  ;;  %v1764_v57 = vmul.f32 0.6931472, %v4236_v52  ;;  %4263 = vlog2.f32 %v973_v42  ;;  %v989_v42 = vmax.f32 %v221_v31, 1e-08  ;;  %v230_v3 = vld [vmem:[%s5912_s3 + $0x258] sm:$0xff] }
  0x76   : > { %v4240_v60 = vpop.eup %4239  ;;  %3262 = vst [vmem:[%s5943_s16 + $0x118] sm:$0xff] %v1762_v53  ;;  %v1766_v61 = vmul.f32 0.6931472, %v4238_v56  ;;  %4265 = vlog2.f32 %v974_v46  ;;  %v990_v46 = vmax.f32 %v222_v35, 1e-08  ;;  %v231_v7 = vld [vmem:[%s5912_s3 + $0x260] sm:$0xff] }
  0x77   : > { %v4242_v0 = vpop.eup %4241  ;;  %3263 = vst [vmem:[%s5943_s16 + $0x120] sm:$0xff] %v1764_v57  ;;  %v1768_v1 = vmul.f32 0.6931472, %v4240_v60  ;;  %4267 = vlog2.f32 %v975_v50  ;;  %v991_v50 = vmax.f32 %v223_v39, 1e-08  ;;  %v232_v11 = vld [vmem:[%s5912_s3 + $0x268] sm:$0xff] }
  0x78   : > { %v4244_v4 = vpop.eup %4243  ;;  %3264 = vst [vmem:[%s5943_s16 + $0x128] sm:$0xff] %v1766_v61  ;;  %v1770_v5 = vmul.f32 0.6931472, %v4242_v0  ;;  %4269 = vlog2.f32 %v976_v54  ;;  %v992_v54 = vmax.f32 %v224_v43, 1e-08  ;;  %v233_v15 = vld [vmem:[%s5912_s3 + $0x270] sm:$0xff] }
  0x79   : > { %v4246_v8 = vpop.eup %4245  ;;  %3265 = vst [vmem:[%s5943_s16 + $0x130] sm:$0xff] %v1768_v1  ;;  %v1772_v9 = vmul.f32 0.6931472, %v4244_v4  ;;  %4271 = vlog2.f32 %v977_v58  ;;  %v993_v58 = vmax.f32 %v225_v47, 1e-08  ;;  %v234_v19 = vld [vmem:[%s5912_s3 + $0x278] sm:$0xff] }
  0x7a   : > { %v4248_v12 = vpop.eup %4247  ;;  %3266 = vst [vmem:[%s5943_s16 + $0x138] sm:$0xff] %v1770_v5  ;;  %v1774_v13 = vmul.f32 0.6931472, %v4246_v8  ;;  %4273 = vlog2.f32 %v978_v62  ;;  %v994_v62 = vmax.f32 %v226_v51, 1e-08  ;;  %v235_v23 = vld [vmem:[%s5912_s3 + $0x280] sm:$0xff] }
  0x7b   : > { %v4250_v16 = vpop.eup %4249  ;;  %3267 = vst [vmem:[%s5943_s16 + $0x140] sm:$0xff] %v1772_v9  ;;  %v1776_v17 = vmul.f32 0.6931472, %v4248_v12  ;;  %4275 = vlog2.f32 %v979_v2  ;;  %v995_v2 = vmax.f32 %v227_v55, 1e-08  ;;  %v236_v27 = vld [vmem:[%s5912_s3 + $0x288] sm:$0xff] }
  0x7c   : > { %v4252_v20 = vpop.eup %4251  ;;  %3268 = vst [vmem:[%s5943_s16 + $0x148] sm:$0xff] %v1774_v13  ;;  %v1778_v21 = vmul.f32 0.6931472, %v4250_v16  ;;  %4277 = vlog2.f32 %v980_v6  ;;  %v996_v6 = vmax.f32 %v228_v59, 1e-08  ;;  %v237_v31 = vld [vmem:[%s5912_s3 + $0x290] sm:$0xff] }
  0x7d   : > { %v4254_v24 = vpop.eup %4253  ;;  %3269 = vst [vmem:[%s5943_s16 + $0x150] sm:$0xff] %v1776_v17  ;;  %v1780_v25 = vmul.f32 0.6931472, %v4252_v20  ;;  %4279 = vlog2.f32 %v981_v10  ;;  %v997_v10 = vmax.f32 %v229_v63, 1e-08  ;;  %v238_v35 = vld [vmem:[%s5912_s3 + $0x298] sm:$0xff] }
  0x7e   : > { %v4256_v28 = vpop.eup %4255  ;;  %3270 = vst [vmem:[%s5943_s16 + $0x158] sm:$0xff] %v1778_v21  ;;  %v1782_v29 = vmul.f32 0.6931472, %v4254_v24  ;;  %4281 = vlog2.f32 %v982_v14  ;;  %v998_v14 = vmax.f32 %v230_v3, 1e-08  ;;  %v239_v39 = vld [vmem:[%s5912_s3 + $0x2a0] sm:$0xff] }
  0x7f   : > { %v4258_v32 = vpop.eup %4257  ;;  %3271 = vst [vmem:[%s5943_s16 + $0x160] sm:$0xff] %v1780_v25  ;;  %v1784_v33 = vmul.f32 0.6931472, %v4256_v28  ;;  %4283 = vlog2.f32 %v983_v18  ;;  %v999_v18 = vmax.f32 %v231_v7, 1e-08  ;;  %v240_v43 = vld [vmem:[%s5912_s3 + $0x2a8] sm:$0xff] }
  0x80   : > { %v4260_v36 = vpop.eup %4259  ;;  %3272 = vst [vmem:[%s5943_s16 + $0x168] sm:$0xff] %v1782_v29  ;;  %v1786_v37 = vmul.f32 0.6931472, %v4258_v32  ;;  %4285 = vlog2.f32 %v984_v22  ;;  %v1000_v22 = vmax.f32 %v232_v11, 1e-08  ;;  %v241_v47 = vld [vmem:[%s5912_s3 + $0x2b0] sm:$0xff] }
  0x81   : > { %v4262_v40 = vpop.eup %4261  ;;  %3273 = vst [vmem:[%s5943_s16 + $0x170] sm:$0xff] %v1784_v33  ;;  %v1788_v41 = vmul.f32 0.6931472, %v4260_v36  ;;  %4287 = vlog2.f32 %v985_v26  ;;  %v1001_v26 = vmax.f32 %v233_v15, 1e-08  ;;  %v242_v51 = vld [vmem:[%s5912_s3 + $0x2b8] sm:$0xff] }
  0x82   : > { %v4264_v44 = vpop.eup %4263  ;;  %3274 = vst [vmem:[%s5943_s16 + $0x178] sm:$0xff] %v1786_v37  ;;  %v1790_v45 = vmul.f32 0.6931472, %v4262_v40  ;;  %4289 = vlog2.f32 %v986_v30  ;;  %v1002_v30 = vmax.f32 %v234_v19, 1e-08  ;;  %v243_v55 = vld [vmem:[%s5912_s3 + $0x2c0] sm:$0xff] }
  0x83   : > { %v4266_v48 = vpop.eup %4265  ;;  %3275 = vst [vmem:[%s5943_s16 + $0x180] sm:$0xff] %v1788_v41  ;;  %v1792_v49 = vmul.f32 0.6931472, %v4264_v44  ;;  %4291 = vlog2.f32 %v987_v34  ;;  %v1003_v34 = vmax.f32 %v235_v23, 1e-08  ;;  %v244_v59 = vld [vmem:[%s5912_s3 + $0x2c8] sm:$0xff] }
  0x84   : > { %v4268_v52 = vpop.eup %4267  ;;  %3276 = vst [vmem:[%s5943_s16 + $0x188] sm:$0xff] %v1790_v45  ;;  %v1794_v53 = vmul.f32 0.6931472, %v4266_v48  ;;  %4293 = vlog2.f32 %v988_v38  ;;  %v1004_v38 = vmax.f32 %v236_v27, 1e-08  ;;  %v245_v63 = vld [vmem:[%s5912_s3 + $0x2d0] sm:$0xff] }
  0x85   : > { %v4270_v56 = vpop.eup %4269  ;;  %3277 = vst [vmem:[%s5943_s16 + $0x190] sm:$0xff] %v1792_v49  ;;  %v1796_v57 = vmul.f32 0.6931472, %v4268_v52  ;;  %4295 = vlog2.f32 %v989_v42  ;;  %v1005_v42 = vmax.f32 %v237_v31, 1e-08  ;;  %v246_v3 = vld [vmem:[%s5912_s3 + $0x2d8] sm:$0xff] }
  0x86   : > { %v4272_v60 = vpop.eup %4271  ;;  %3278 = vst [vmem:[%s5943_s16 + $0x198] sm:$0xff] %v1794_v53  ;;  %v1798_v61 = vmul.f32 0.6931472, %v4270_v56  ;;  %4297 = vlog2.f32 %v990_v46  ;;  %v1006_v46 = vmax.f32 %v238_v35, 1e-08  ;;  %v247_v7 = vld [vmem:[%s5912_s3 + $0x2e0] sm:$0xff] }
  0x87   : > { %v4274_v0 = vpop.eup %4273  ;;  %3279 = vst [vmem:[%s5943_s16 + $0x1a0] sm:$0xff] %v1796_v57  ;;  %v1800_v1 = vmul.f32 0.6931472, %v4272_v60  ;;  %4299 = vlog2.f32 %v991_v50  ;;  %v1007_v50 = vmax.f32 %v239_v39, 1e-08  ;;  %v248_v11 = vld [vmem:[%s5912_s3 + $0x2e8] sm:$0xff] }
  0x88   : > { %v4276_v4 = vpop.eup %4275  ;;  %3280 = vst [vmem:[%s5943_s16 + $0x1a8] sm:$0xff] %v1798_v61  ;;  %v1802_v5 = vmul.f32 0.6931472, %v4274_v0  ;;  %4301 = vlog2.f32 %v992_v54  ;;  %v1008_v54 = vmax.f32 %v240_v43, 1e-08  ;;  %v249_v15 = vld [vmem:[%s5912_s3 + $0x2f0] sm:$0xff] }
  0x89   : > { %v4278_v8 = vpop.eup %4277  ;;  %3281 = vst [vmem:[%s5943_s16 + $0x1b0] sm:$0xff] %v1800_v1  ;;  %v1804_v9 = vmul.f32 0.6931472, %v4276_v4  ;;  %4303 = vlog2.f32 %v993_v58  ;;  %v1009_v58 = vmax.f32 %v241_v47, 1e-08  ;;  %v250_v19 = vld [vmem:[%s5912_s3 + $0x2f8] sm:$0xff] }
  0x8a   : > { %v4280_v12 = vpop.eup %4279  ;;  %3282 = vst [vmem:[%s5943_s16 + $0x1b8] sm:$0xff] %v1802_v5  ;;  %v1806_v13 = vmul.f32 0.6931472, %v4278_v8  ;;  %4305 = vlog2.f32 %v994_v62  ;;  %v1010_v62 = vmax.f32 %v242_v51, 1e-08  ;;  %v251_v23 = vld [vmem:[%s5912_s3 + $0x300] sm:$0xff] }
  0x8b   : > { %v4282_v16 = vpop.eup %4281  ;;  %3283 = vst [vmem:[%s5943_s16 + $0x1c0] sm:$0xff] %v1804_v9  ;;  %v1808_v17 = vmul.f32 0.6931472, %v4280_v12  ;;  %4307 = vlog2.f32 %v995_v2  ;;  %v1011_v2 = vmax.f32 %v243_v55, 1e-08  ;;  %v252_v27 = vld [vmem:[%s5912_s3 + $0x308] sm:$0xff] }
  0x8c   : > { %v4284_v20 = vpop.eup %4283  ;;  %3284 = vst [vmem:[%s5943_s16 + $0x1c8] sm:$0xff] %v1806_v13  ;;  %v1810_v21 = vmul.f32 0.6931472, %v4282_v16  ;;  %4309 = vlog2.f32 %v996_v6  ;;  %v1012_v6 = vmax.f32 %v244_v59, 1e-08  ;;  %v253_v31 = vld [vmem:[%s5912_s3 + $0x310] sm:$0xff] }
  0x8d   : > { %v4286_v24 = vpop.eup %4285  ;;  %3285 = vst [vmem:[%s5943_s16 + $0x1d0] sm:$0xff] %v1808_v17  ;;  %v1812_v25 = vmul.f32 0.6931472, %v4284_v20  ;;  %4311 = vlog2.f32 %v997_v10  ;;  %v1013_v10 = vmax.f32 %v245_v63, 1e-08  ;;  %v254_v35 = vld [vmem:[%s5912_s3 + $0x318] sm:$0xff] }
  0x8e   : > { %v4288_v28 = vpop.eup %4287  ;;  %3286 = vst [vmem:[%s5943_s16 + $0x1d8] sm:$0xff] %v1810_v21  ;;  %v1814_v29 = vmul.f32 0.6931472, %v4286_v24  ;;  %4313 = vlog2.f32 %v998_v14  ;;  %v1014_v14 = vmax.f32 %v246_v3, 1e-08  ;;  %v255_v39 = vld [vmem:[%s5912_s3 + $0x320] sm:$0xff] }
  0x8f   : > { %v4290_v32 = vpop.eup %4289  ;;  %3287 = vst [vmem:[%s5943_s16 + $0x1e0] sm:$0xff] %v1812_v25  ;;  %v1816_v33 = vmul.f32 0.6931472, %v4288_v28  ;;  %4315 = vlog2.f32 %v999_v18  ;;  %v1015_v18 = vmax.f32 %v247_v7, 1e-08  ;;  %v256_v43 = vld [vmem:[%s5912_s3 + $0x328] sm:$0xff] }
  0x90   : > { %v4292_v36 = vpop.eup %4291  ;;  %3288 = vst [vmem:[%s5943_s16 + $0x1e8] sm:$0xff] %v1814_v29  ;;  %v1818_v37 = vmul.f32 0.6931472, %v4290_v32  ;;  %4317 = vlog2.f32 %v1000_v22  ;;  %v1016_v22 = vmax.f32 %v248_v11, 1e-08  ;;  %v257_v47 = vld [vmem:[%s5912_s3 + $0x330] sm:$0xff] }
  0x91   : > { %v4294_v40 = vpop.eup %4293  ;;  %3289 = vst [vmem:[%s5943_s16 + $0x1f0] sm:$0xff] %v1816_v33  ;;  %v1820_v41 = vmul.f32 0.6931472, %v4292_v36  ;;  %4319 = vlog2.f32 %v1001_v26  ;;  %v1017_v26 = vmax.f32 %v249_v15, 1e-08  ;;  %v258_v51 = vld [vmem:[%s5912_s3 + $0x338] sm:$0xff] }
  0x92   : > { %v4296_v44 = vpop.eup %4295  ;;  %3290 = vst [vmem:[%s5943_s16 + $0x1f8] sm:$0xff] %v1818_v37  ;;  %v1822_v45 = vmul.f32 0.6931472, %v4294_v40  ;;  %4321 = vlog2.f32 %v1002_v30  ;;  %v1018_v30 = vmax.f32 %v250_v19, 1e-08  ;;  %v259_v55 = vld [vmem:[%s5912_s3 + $0x340] sm:$0xff] }
  0x93   : > { %v4298_v48 = vpop.eup %4297  ;;  %3291 = vst [vmem:[%s5943_s16 + $0x200] sm:$0xff] %v1820_v41  ;;  %v1824_v49 = vmul.f32 0.6931472, %v4296_v44  ;;  %4323 = vlog2.f32 %v1003_v34  ;;  %v1019_v34 = vmax.f32 %v251_v23, 1e-08  ;;  %v260_v59 = vld [vmem:[%s5912_s3 + $0x348] sm:$0xff] }
  0x94   : > { %v4300_v52 = vpop.eup %4299  ;;  %3292 = vst [vmem:[%s5943_s16 + $0x208] sm:$0xff] %v1822_v45  ;;  %v1826_v53 = vmul.f32 0.6931472, %v4298_v48  ;;  %4325 = vlog2.f32 %v1004_v38  ;;  %v1020_v38 = vmax.f32 %v252_v27, 1e-08  ;;  %v261_v63 = vld [vmem:[%s5912_s3 + $0x350] sm:$0xff] }
  0x95   : > { %v4302_v56 = vpop.eup %4301  ;;  %3293 = vst [vmem:[%s5943_s16 + $0x210] sm:$0xff] %v1824_v49  ;;  %v1828_v57 = vmul.f32 0.6931472, %v4300_v52  ;;  %4327 = vlog2.f32 %v1005_v42  ;;  %v1021_v42 = vmax.f32 %v253_v31, 1e-08  ;;  %v262_v3 = vld [vmem:[%s5912_s3 + $0x358] sm:$0xff] }
  0x96   : > { %v4304_v60 = vpop.eup %4303  ;;  %3294 = vst [vmem:[%s5943_s16 + $0x218] sm:$0xff] %v1826_v53  ;;  %v1830_v61 = vmul.f32 0.6931472, %v4302_v56  ;;  %4329 = vlog2.f32 %v1006_v46  ;;  %v1022_v46 = vmax.f32 %v254_v35, 1e-08  ;;  %v263_v7 = vld [vmem:[%s5912_s3 + $0x360] sm:$0xff] }
  0x97   : > { %v4306_v0 = vpop.eup %4305  ;;  %3295 = vst [vmem:[%s5943_s16 + $0x220] sm:$0xff] %v1828_v57  ;;  %v1832_v1 = vmul.f32 0.6931472, %v4304_v60  ;;  %4331 = vlog2.f32 %v1007_v50  ;;  %v1023_v50 = vmax.f32 %v255_v39, 1e-08  ;;  %v264_v11 = vld [vmem:[%s5912_s3 + $0x368] sm:$0xff] }
  0x98   : > { %v4308_v4 = vpop.eup %4307  ;;  %3296 = vst [vmem:[%s5943_s16 + $0x228] sm:$0xff] %v1830_v61  ;;  %v1834_v5 = vmul.f32 0.6931472, %v4306_v0  ;;  %4333 = vlog2.f32 %v1008_v54  ;;  %v1024_v54 = vmax.f32 %v256_v43, 1e-08  ;;  %v265_v15 = vld [vmem:[%s5912_s3 + $0x370] sm:$0xff] }
  0x99   : > { %v4310_v8 = vpop.eup %4309  ;;  %3297 = vst [vmem:[%s5943_s16 + $0x230] sm:$0xff] %v1832_v1  ;;  %v1836_v9 = vmul.f32 0.6931472, %v4308_v4  ;;  %4335 = vlog2.f32 %v1009_v58  ;;  %v1025_v58 = vmax.f32 %v257_v47, 1e-08  ;;  %v266_v19 = vld [vmem:[%s5912_s3 + $0x378] sm:$0xff] }
  0x9a   : > { %v4312_v12 = vpop.eup %4311  ;;  %3298 = vst [vmem:[%s5943_s16 + $0x238] sm:$0xff] %v1834_v5  ;;  %v1838_v13 = vmul.f32 0.6931472, %v4310_v8  ;;  %4337 = vlog2.f32 %v1010_v62  ;;  %v1026_v62 = vmax.f32 %v258_v51, 1e-08  ;;  %v267_v23 = vld [vmem:[%s5912_s3 + $0x380] sm:$0xff] }
  0x9b   : > { %v4314_v16 = vpop.eup %4313  ;;  %3299 = vst [vmem:[%s5943_s16 + $0x240] sm:$0xff] %v1836_v9  ;;  %v1840_v17 = vmul.f32 0.6931472, %v4312_v12  ;;  %4339 = vlog2.f32 %v1011_v2  ;;  %v1027_v2 = vmax.f32 %v259_v55, 1e-08  ;;  %v268_v27 = vld [vmem:[%s5912_s3 + $0x388] sm:$0xff] }
  0x9c   : > { %v4316_v20 = vpop.eup %4315  ;;  %3300 = vst [vmem:[%s5943_s16 + $0x248] sm:$0xff] %v1838_v13  ;;  %v1842_v21 = vmul.f32 0.6931472, %v4314_v16  ;;  %4341 = vlog2.f32 %v1012_v6  ;;  %v1028_v6 = vmax.f32 %v260_v59, 1e-08  ;;  %v269_v31 = vld [vmem:[%s5912_s3 + $0x390] sm:$0xff] }
  0x9d   : > { %v4318_v24 = vpop.eup %4317  ;;  %3301 = vst [vmem:[%s5943_s16 + $0x250] sm:$0xff] %v1840_v17  ;;  %v1844_v25 = vmul.f32 0.6931472, %v4316_v20  ;;  %4343 = vlog2.f32 %v1013_v10  ;;  %v1029_v10 = vmax.f32 %v261_v63, 1e-08  ;;  %v270_v35 = vld [vmem:[%s5912_s3 + $0x398] sm:$0xff] }
  0x9e   : > { %v4320_v28 = vpop.eup %4319  ;;  %3302 = vst [vmem:[%s5943_s16 + $0x258] sm:$0xff] %v1842_v21  ;;  %v1846_v29 = vmul.f32 0.6931472, %v4318_v24  ;;  %4345 = vlog2.f32 %v1014_v14  ;;  %v1030_v14 = vmax.f32 %v262_v3, 1e-08  ;;  %v271_v39 = vld [vmem:[%s5912_s3 + $0x3a0] sm:$0xff] }
  0x9f   : > { %v4322_v32 = vpop.eup %4321  ;;  %3303 = vst [vmem:[%s5943_s16 + $0x260] sm:$0xff] %v1844_v25  ;;  %v1848_v33 = vmul.f32 0.6931472, %v4320_v28  ;;  %4347 = vlog2.f32 %v1015_v18  ;;  %v1031_v18 = vmax.f32 %v263_v7, 1e-08  ;;  %v272_v43 = vld [vmem:[%s5912_s3 + $0x3a8] sm:$0xff] }
  0xa0   : > { %v4324_v36 = vpop.eup %4323  ;;  %3304 = vst [vmem:[%s5943_s16 + $0x268] sm:$0xff] %v1846_v29  ;;  %v1850_v37 = vmul.f32 0.6931472, %v4322_v32  ;;  %4349 = vlog2.f32 %v1016_v22  ;;  %v1032_v22 = vmax.f32 %v264_v11, 1e-08  ;;  %v273_v47 = vld [vmem:[%s5912_s3 + $0x3b0] sm:$0xff] }
  0xa1   : > { %v4326_v40 = vpop.eup %4325  ;;  %3305 = vst [vmem:[%s5943_s16 + $0x270] sm:$0xff] %v1848_v33  ;;  %v1852_v41 = vmul.f32 0.6931472, %v4324_v36  ;;  %4351 = vlog2.f32 %v1017_v26  ;;  %v1033_v26 = vmax.f32 %v265_v15, 1e-08  ;;  %v274_v51 = vld [vmem:[%s5912_s3 + $0x3b8] sm:$0xff] }
  0xa2   : > { %v4328_v44 = vpop.eup %4327  ;;  %3306 = vst [vmem:[%s5943_s16 + $0x278] sm:$0xff] %v1850_v37  ;;  %v1854_v45 = vmul.f32 0.6931472, %v4326_v40  ;;  %4353 = vlog2.f32 %v1018_v30  ;;  %v1034_v30 = vmax.f32 %v266_v19, 1e-08  ;;  %v275_v55 = vld [vmem:[%s5912_s3 + $0x3c0] sm:$0xff] }
  0xa3   : > { %v4330_v48 = vpop.eup %4329  ;;  %3307 = vst [vmem:[%s5943_s16 + $0x280] sm:$0xff] %v1852_v41  ;;  %v1856_v49 = vmul.f32 0.6931472, %v4328_v44  ;;  %4355 = vlog2.f32 %v1019_v34  ;;  %v1035_v34 = vmax.f32 %v267_v23, 1e-08  ;;  %v276_v59 = vld [vmem:[%s5912_s3 + $0x3c8] sm:$0xff] }
  0xa4   : > { %v4332_v52 = vpop.eup %4331  ;;  %3308 = vst [vmem:[%s5943_s16 + $0x288] sm:$0xff] %v1854_v45  ;;  %v1858_v53 = vmul.f32 0.6931472, %v4330_v48  ;;  %4357 = vlog2.f32 %v1020_v38  ;;  %v1036_v38 = vmax.f32 %v268_v27, 1e-08  ;;  %v277_v63 = vld [vmem:[%s5912_s3 + $0x3d0] sm:$0xff] }
  0xa5   : > { %v4334_v56 = vpop.eup %4333  ;;  %3309 = vst [vmem:[%s5943_s16 + $0x290] sm:$0xff] %v1856_v49  ;;  %v1860_v57 = vmul.f32 0.6931472, %v4332_v52  ;;  %4359 = vlog2.f32 %v1021_v42  ;;  %v1037_v42 = vmax.f32 %v269_v31, 1e-08  ;;  %v278_v3 = vld [vmem:[%s5912_s3 + $0x3d8] sm:$0xff] }
  0xa6   : > { %v4336_v60 = vpop.eup %4335  ;;  %3310 = vst [vmem:[%s5943_s16 + $0x298] sm:$0xff] %v1858_v53  ;;  %v1862_v61 = vmul.f32 0.6931472, %v4334_v56  ;;  %4361 = vlog2.f32 %v1022_v46  ;;  %v1038_v46 = vmax.f32 %v270_v35, 1e-08  ;;  %v279_v7 = vld [vmem:[%s5912_s3 + $0x3e0] sm:$0xff] }
  0xa7   : > { %v4338_v0 = vpop.eup %4337  ;;  %3311 = vst [vmem:[%s5943_s16 + $0x2a0] sm:$0xff] %v1860_v57  ;;  %v1864_v1 = vmul.f32 0.6931472, %v4336_v60  ;;  %4363 = vlog2.f32 %v1023_v50  ;;  %v1039_v50 = vmax.f32 %v271_v39, 1e-08  ;;  %v280_v11 = vld [vmem:[%s5912_s3 + $0x3e8] sm:$0xff] }
  0xa8   : > { %v4340_v4 = vpop.eup %4339  ;;  %3312 = vst [vmem:[%s5943_s16 + $0x2a8] sm:$0xff] %v1862_v61  ;;  %v1866_v5 = vmul.f32 0.6931472, %v4338_v0  ;;  %4365 = vlog2.f32 %v1024_v54  ;;  %v1040_v54 = vmax.f32 %v272_v43, 1e-08  ;;  %v281_v15 = vld [vmem:[%s5912_s3 + $0x3f0] sm:$0xff] }
  0xa9   : > { %v4342_v8 = vpop.eup %4341  ;;  %3313 = vst [vmem:[%s5943_s16 + $0x2b0] sm:$0xff] %v1864_v1  ;;  %v1868_v9 = vmul.f32 0.6931472, %v4340_v4  ;;  %4367 = vlog2.f32 %v1025_v58  ;;  %v1041_v58 = vmax.f32 %v273_v47, 1e-08  ;;  %v282_v19 = vld [vmem:[%s5912_s3 + $0x3f8] sm:$0xff] }
  0xaa   : > { %v4344_v12 = vpop.eup %4343  ;;  %3314 = vst [vmem:[%s5943_s16 + $0x2b8] sm:$0xff] %v1866_v5  ;;  %v1870_v13 = vmul.f32 0.6931472, %v4342_v8  ;;  %4369 = vlog2.f32 %v1026_v62  ;;  %v1042_v62 = vmax.f32 %v274_v51, 1e-08  ;;  %v283_v23 = vld [vmem:[%s5912_s3 + $0x400] sm:$0xff] }
  0xab   : > { %v4346_v16 = vpop.eup %4345  ;;  %3315 = vst [vmem:[%s5943_s16 + $0x2c0] sm:$0xff] %v1868_v9  ;;  %v1872_v17 = vmul.f32 0.6931472, %v4344_v12  ;;  %4371 = vlog2.f32 %v1027_v2  ;;  %v1043_v2 = vmax.f32 %v275_v55, 1e-08  ;;  %v284_v27 = vld [vmem:[%s5912_s3 + $0x408] sm:$0xff] }
  0xac   : > { %v4348_v20 = vpop.eup %4347  ;;  %3316 = vst [vmem:[%s5943_s16 + $0x2c8] sm:$0xff] %v1870_v13  ;;  %v1874_v21 = vmul.f32 0.6931472, %v4346_v16  ;;  %4373 = vlog2.f32 %v1028_v6  ;;  %v1044_v6 = vmax.f32 %v276_v59, 1e-08  ;;  %v285_v31 = vld [vmem:[%s5912_s3 + $0x410] sm:$0xff] }
  0xad   : > { %v4350_v24 = vpop.eup %4349  ;;  %3317 = vst [vmem:[%s5943_s16 + $0x2d0] sm:$0xff] %v1872_v17  ;;  %v1876_v25 = vmul.f32 0.6931472, %v4348_v20  ;;  %4375 = vlog2.f32 %v1029_v10  ;;  %v1045_v10 = vmax.f32 %v277_v63, 1e-08  ;;  %v286_v35 = vld [vmem:[%s5912_s3 + $0x418] sm:$0xff] }
  0xae   : > { %v4352_v28 = vpop.eup %4351  ;;  %3318 = vst [vmem:[%s5943_s16 + $0x2d8] sm:$0xff] %v1874_v21  ;;  %v1878_v29 = vmul.f32 0.6931472, %v4350_v24  ;;  %4377 = vlog2.f32 %v1030_v14  ;;  %v1046_v14 = vmax.f32 %v278_v3, 1e-08  ;;  %v287_v39 = vld [vmem:[%s5912_s3 + $0x420] sm:$0xff] }
  0xaf   : > { %v4354_v32 = vpop.eup %4353  ;;  %3319 = vst [vmem:[%s5943_s16 + $0x2e0] sm:$0xff] %v1876_v25  ;;  %v1880_v33 = vmul.f32 0.6931472, %v4352_v28  ;;  %4379 = vlog2.f32 %v1031_v18  ;;  %v1047_v18 = vmax.f32 %v279_v7, 1e-08  ;;  %v288_v43 = vld [vmem:[%s5912_s3 + $0x428] sm:$0xff] }
  0xb0   : > { %v4356_v36 = vpop.eup %4355  ;;  %3320 = vst [vmem:[%s5943_s16 + $0x2e8] sm:$0xff] %v1878_v29  ;;  %v1882_v37 = vmul.f32 0.6931472, %v4354_v32  ;;  %4381 = vlog2.f32 %v1032_v22  ;;  %v1048_v22 = vmax.f32 %v280_v11, 1e-08  ;;  %v289_v47 = vld [vmem:[%s5912_s3 + $0x430] sm:$0xff] }
  0xb1   : > { %v4358_v40 = vpop.eup %4357  ;;  %3321 = vst [vmem:[%s5943_s16 + $0x2f0] sm:$0xff] %v1880_v33  ;;  %v1884_v41 = vmul.f32 0.6931472, %v4356_v36  ;;  %4383 = vlog2.f32 %v1033_v26  ;;  %v1049_v26 = vmax.f32 %v281_v15, 1e-08  ;;  %v290_v51 = vld [vmem:[%s5912_s3 + $0x438] sm:$0xff] }
  0xb2   : > { %v4360_v44 = vpop.eup %4359  ;;  %3322 = vst [vmem:[%s5943_s16 + $0x2f8] sm:$0xff] %v1882_v37  ;;  %v1886_v45 = vmul.f32 0.6931472, %v4358_v40  ;;  %4385 = vlog2.f32 %v1034_v30  ;;  %v1050_v30 = vmax.f32 %v282_v19, 1e-08  ;;  %v291_v55 = vld [vmem:[%s5912_s3 + $0x440] sm:$0xff] }
  0xb3   : > { %v4362_v48 = vpop.eup %4361  ;;  %3323 = vst [vmem:[%s5943_s16 + $0x300] sm:$0xff] %v1884_v41  ;;  %v1888_v49 = vmul.f32 0.6931472, %v4360_v44  ;;  %4387 = vlog2.f32 %v1035_v34  ;;  %v1051_v34 = vmax.f32 %v283_v23, 1e-08  ;;  %v292_v59 = vld [vmem:[%s5912_s3 + $0x448] sm:$0xff] }
  0xb4   : > { %v4364_v52 = vpop.eup %4363  ;;  %3324 = vst [vmem:[%s5943_s16 + $0x308] sm:$0xff] %v1886_v45  ;;  %v1890_v53 = vmul.f32 0.6931472, %v4362_v48  ;;  %4389 = vlog2.f32 %v1036_v38  ;;  %v1052_v38 = vmax.f32 %v284_v27, 1e-08  ;;  %v293_v63 = vld [vmem:[%s5912_s3 + $0x450] sm:$0xff] }
  0xb5   : > { %v4366_v56 = vpop.eup %4365  ;;  %3325 = vst [vmem:[%s5943_s16 + $0x310] sm:$0xff] %v1888_v49  ;;  %v1892_v57 = vmul.f32 0.6931472, %v4364_v52  ;;  %4391 = vlog2.f32 %v1037_v42  ;;  %v1053_v42 = vmax.f32 %v285_v31, 1e-08  ;;  %v294_v3 = vld [vmem:[%s5912_s3 + $0x458] sm:$0xff] }
  0xb6   : > { %v4368_v60 = vpop.eup %4367  ;;  %3326 = vst [vmem:[%s5943_s16 + $0x318] sm:$0xff] %v1890_v53  ;;  %v1894_v61 = vmul.f32 0.6931472, %v4366_v56  ;;  %4393 = vlog2.f32 %v1038_v46  ;;  %v1054_v46 = vmax.f32 %v286_v35, 1e-08  ;;  %v295_v7 = vld [vmem:[%s5912_s3 + $0x460] sm:$0xff] }
  0xb7   : > { %v4370_v0 = vpop.eup %4369  ;;  %3327 = vst [vmem:[%s5943_s16 + $0x320] sm:$0xff] %v1892_v57  ;;  %v1896_v1 = vmul.f32 0.6931472, %v4368_v60  ;;  %4395 = vlog2.f32 %v1039_v50  ;;  %v1055_v50 = vmax.f32 %v287_v39, 1e-08  ;;  %v296_v11 = vld [vmem:[%s5912_s3 + $0x468] sm:$0xff] }
  0xb8   : > { %v4372_v4 = vpop.eup %4371  ;;  %3328 = vst [vmem:[%s5943_s16 + $0x328] sm:$0xff] %v1894_v61  ;;  %v1898_v5 = vmul.f32 0.6931472, %v4370_v0  ;;  %4397 = vlog2.f32 %v1040_v54  ;;  %v1056_v54 = vmax.f32 %v288_v43, 1e-08  ;;  %v297_v15 = vld [vmem:[%s5912_s3 + $0x470] sm:$0xff] }
  0xb9   : > { %v4374_v8 = vpop.eup %4373  ;;  %3329 = vst [vmem:[%s5943_s16 + $0x330] sm:$0xff] %v1896_v1  ;;  %v1900_v9 = vmul.f32 0.6931472, %v4372_v4  ;;  %4399 = vlog2.f32 %v1041_v58  ;;  %v1057_v58 = vmax.f32 %v289_v47, 1e-08  ;;  %v298_v19 = vld [vmem:[%s5912_s3 + $0x478] sm:$0xff] }
  0xba   : > { %v4376_v12 = vpop.eup %4375  ;;  %3330 = vst [vmem:[%s5943_s16 + $0x338] sm:$0xff] %v1898_v5  ;;  %v1902_v13 = vmul.f32 0.6931472, %v4374_v8  ;;  %4401 = vlog2.f32 %v1042_v62  ;;  %v1058_v62 = vmax.f32 %v290_v51, 1e-08  ;;  %v299_v23 = vld [vmem:[%s5912_s3 + $0x480] sm:$0xff] }
  0xbb   : > { %v4378_v16 = vpop.eup %4377  ;;  %3331 = vst [vmem:[%s5943_s16 + $0x340] sm:$0xff] %v1900_v9  ;;  %v1904_v17 = vmul.f32 0.6931472, %v4376_v12  ;;  %4403 = vlog2.f32 %v1043_v2  ;;  %v1059_v2 = vmax.f32 %v291_v55, 1e-08  ;;  %v300_v27 = vld [vmem:[%s5912_s3 + $0x488] sm:$0xff] }
  0xbc   : > { %v4380_v20 = vpop.eup %4379  ;;  %3332 = vst [vmem:[%s5943_s16 + $0x348] sm:$0xff] %v1902_v13  ;;  %v1906_v21 = vmul.f32 0.6931472, %v4378_v16  ;;  %4405 = vlog2.f32 %v1044_v6  ;;  %v1060_v6 = vmax.f32 %v292_v59, 1e-08  ;;  %v301_v31 = vld [vmem:[%s5912_s3 + $0x490] sm:$0xff] }
  0xbd   : > { %v4382_v24 = vpop.eup %4381  ;;  %3333 = vst [vmem:[%s5943_s16 + $0x350] sm:$0xff] %v1904_v17  ;;  %v1908_v25 = vmul.f32 0.6931472, %v4380_v20  ;;  %4407 = vlog2.f32 %v1045_v10  ;;  %v1061_v10 = vmax.f32 %v293_v63, 1e-08  ;;  %v302_v35 = vld [vmem:[%s5912_s3 + $0x498] sm:$0xff] }
  0xbe   : > { %v4384_v28 = vpop.eup %4383  ;;  %3334 = vst [vmem:[%s5943_s16 + $0x358] sm:$0xff] %v1906_v21  ;;  %v1910_v29 = vmul.f32 0.6931472, %v4382_v24  ;;  %4409 = vlog2.f32 %v1046_v14  ;;  %v1062_v14 = vmax.f32 %v294_v3, 1e-08  ;;  %v303_v39 = vld [vmem:[%s5912_s3 + $0x4a0] sm:$0xff] }
  0xbf   : > { %v4386_v32 = vpop.eup %4385  ;;  %3335 = vst [vmem:[%s5943_s16 + $0x360] sm:$0xff] %v1908_v25  ;;  %v1912_v33 = vmul.f32 0.6931472, %v4384_v28  ;;  %4411 = vlog2.f32 %v1047_v18  ;;  %v1063_v18 = vmax.f32 %v295_v7, 1e-08  ;;  %v304_v43 = vld [vmem:[%s5912_s3 + $0x4a8] sm:$0xff] }
  0xc0   : > { %v4388_v36 = vpop.eup %4387  ;;  %3336 = vst [vmem:[%s5943_s16 + $0x368] sm:$0xff] %v1910_v29  ;;  %v1914_v37 = vmul.f32 0.6931472, %v4386_v32  ;;  %4413 = vlog2.f32 %v1048_v22  ;;  %v1064_v22 = vmax.f32 %v296_v11, 1e-08  ;;  %v305_v47 = vld [vmem:[%s5912_s3 + $0x4b0] sm:$0xff] }
  0xc1   : > { %v4390_v40 = vpop.eup %4389  ;;  %3337 = vst [vmem:[%s5943_s16 + $0x370] sm:$0xff] %v1912_v33  ;;  %v1916_v41 = vmul.f32 0.6931472, %v4388_v36  ;;  %4415 = vlog2.f32 %v1049_v26  ;;  %v1065_v26 = vmax.f32 %v297_v15, 1e-08  ;;  %v306_v51 = vld [vmem:[%s5912_s3 + $0x4b8] sm:$0xff] }
  0xc2   : > { %v4392_v44 = vpop.eup %4391  ;;  %3338 = vst [vmem:[%s5943_s16 + $0x378] sm:$0xff] %v1914_v37  ;;  %v1918_v45 = vmul.f32 0.6931472, %v4390_v40  ;;  %4417 = vlog2.f32 %v1050_v30  ;;  %v1066_v30 = vmax.f32 %v298_v19, 1e-08  ;;  %v307_v55 = vld [vmem:[%s5912_s3 + $0x4c0] sm:$0xff] }
  0xc3   : > { %v4394_v48 = vpop.eup %4393  ;;  %3339 = vst [vmem:[%s5943_s16 + $0x380] sm:$0xff] %v1916_v41  ;;  %v1920_v49 = vmul.f32 0.6931472, %v4392_v44  ;;  %4419 = vlog2.f32 %v1051_v34  ;;  %v1067_v34 = vmax.f32 %v299_v23, 1e-08  ;;  %v308_v59 = vld [vmem:[%s5912_s3 + $0x4c8] sm:$0xff] }
  0xc4   : > { %v4396_v52 = vpop.eup %4395  ;;  %3340 = vst [vmem:[%s5943_s16 + $0x388] sm:$0xff] %v1918_v45  ;;  %v1922_v53 = vmul.f32 0.6931472, %v4394_v48  ;;  %4421 = vlog2.f32 %v1052_v38  ;;  %v1068_v38 = vmax.f32 %v300_v27, 1e-08  ;;  %v309_v63 = vld [vmem:[%s5912_s3 + $0x4d0] sm:$0xff] }
  0xc5   : > { %v4398_v56 = vpop.eup %4397  ;;  %3341 = vst [vmem:[%s5943_s16 + $0x390] sm:$0xff] %v1920_v49  ;;  %v1924_v57 = vmul.f32 0.6931472, %v4396_v52  ;;  %4423 = vlog2.f32 %v1053_v42  ;;  %v1069_v42 = vmax.f32 %v301_v31, 1e-08  ;;  %v310_v3 = vld [vmem:[%s5912_s3 + $0x4d8] sm:$0xff] }
  0xc6   : > { %v4400_v60 = vpop.eup %4399  ;;  %3342 = vst [vmem:[%s5943_s16 + $0x398] sm:$0xff] %v1922_v53  ;;  %v1926_v61 = vmul.f32 0.6931472, %v4398_v56  ;;  %4425 = vlog2.f32 %v1054_v46  ;;  %v1070_v46 = vmax.f32 %v302_v35, 1e-08  ;;  %v311_v7 = vld [vmem:[%s5912_s3 + $0x4e0] sm:$0xff] }
  0xc7   : > { %v4402_v0 = vpop.eup %4401  ;;  %3343 = vst [vmem:[%s5943_s16 + $0x3a0] sm:$0xff] %v1924_v57  ;;  %v1928_v1 = vmul.f32 0.6931472, %v4400_v60  ;;  %4427 = vlog2.f32 %v1055_v50  ;;  %v1071_v50 = vmax.f32 %v303_v39, 1e-08  ;;  %v312_v11 = vld [vmem:[%s5912_s3 + $0x4e8] sm:$0xff] }
  0xc8   : > { %v4404_v4 = vpop.eup %4403  ;;  %3344 = vst [vmem:[%s5943_s16 + $0x3a8] sm:$0xff] %v1926_v61  ;;  %v1930_v5 = vmul.f32 0.6931472, %v4402_v0  ;;  %4429 = vlog2.f32 %v1056_v54  ;;  %v1072_v54 = vmax.f32 %v304_v43, 1e-08  ;;  %v313_v15 = vld [vmem:[%s5912_s3 + $0x4f0] sm:$0xff] }
  0xc9   : > { %v4406_v8 = vpop.eup %4405  ;;  %3345 = vst [vmem:[%s5943_s16 + $0x3b0] sm:$0xff] %v1928_v1  ;;  %v1932_v9 = vmul.f32 0.6931472, %v4404_v4  ;;  %4431 = vlog2.f32 %v1057_v58  ;;  %v1073_v58 = vmax.f32 %v305_v47, 1e-08  ;;  %v314_v19 = vld [vmem:[%s5912_s3 + $0x4f8] sm:$0xff] }
  0xca   : > { %v4408_v12 = vpop.eup %4407  ;;  %3346 = vst [vmem:[%s5943_s16 + $0x3b8] sm:$0xff] %v1930_v5  ;;  %v1934_v13 = vmul.f32 0.6931472, %v4406_v8  ;;  %4433 = vlog2.f32 %v1058_v62  ;;  %v1074_v62 = vmax.f32 %v306_v51, 1e-08  ;;  %v315_v23 = vld [vmem:[%s5912_s3 + $0x500] sm:$0xff] }
  0xcb   : > { %v4410_v16 = vpop.eup %4409  ;;  %3347 = vst [vmem:[%s5943_s16 + $0x3c0] sm:$0xff] %v1932_v9  ;;  %v1936_v17 = vmul.f32 0.6931472, %v4408_v12  ;;  %4435 = vlog2.f32 %v1059_v2  ;;  %v1075_v2 = vmax.f32 %v307_v55, 1e-08  ;;  %v316_v27 = vld [vmem:[%s5912_s3 + $0x508] sm:$0xff] }
  0xcc   : > { %v4412_v20 = vpop.eup %4411  ;;  %3348 = vst [vmem:[%s5943_s16 + $0x3c8] sm:$0xff] %v1934_v13  ;;  %v1938_v21 = vmul.f32 0.6931472, %v4410_v16  ;;  %4437 = vlog2.f32 %v1060_v6  ;;  %v1076_v6 = vmax.f32 %v308_v59, 1e-08  ;;  %v317_v31 = vld [vmem:[%s5912_s3 + $0x510] sm:$0xff] }
  0xcd   : > { %v4414_v24 = vpop.eup %4413  ;;  %3349 = vst [vmem:[%s5943_s16 + $0x3d0] sm:$0xff] %v1936_v17  ;;  %v1940_v25 = vmul.f32 0.6931472, %v4412_v20  ;;  %4439 = vlog2.f32 %v1061_v10  ;;  %v1077_v10 = vmax.f32 %v309_v63, 1e-08  ;;  %v318_v35 = vld [vmem:[%s5912_s3 + $0x518] sm:$0xff] }
  0xce   : > { %v4416_v28 = vpop.eup %4415  ;;  %3350 = vst [vmem:[%s5943_s16 + $0x3d8] sm:$0xff] %v1938_v21  ;;  %v1942_v29 = vmul.f32 0.6931472, %v4414_v24  ;;  %4441 = vlog2.f32 %v1062_v14  ;;  %v1078_v14 = vmax.f32 %v310_v3, 1e-08  ;;  %v319_v39 = vld [vmem:[%s5912_s3 + $0x520] sm:$0xff] }
  0xcf   : > { %v4418_v32 = vpop.eup %4417  ;;  %3351 = vst [vmem:[%s5943_s16 + $0x3e0] sm:$0xff] %v1940_v25  ;;  %v1944_v33 = vmul.f32 0.6931472, %v4416_v28  ;;  %4443 = vlog2.f32 %v1063_v18  ;;  %v1079_v18 = vmax.f32 %v311_v7, 1e-08  ;;  %v320_v43 = vld [vmem:[%s5912_s3 + $0x528] sm:$0xff] }
  0xd0   : > { %v4420_v36 = vpop.eup %4419  ;;  %3352 = vst [vmem:[%s5943_s16 + $0x3e8] sm:$0xff] %v1942_v29  ;;  %v1946_v37 = vmul.f32 0.6931472, %v4418_v32  ;;  %4445 = vlog2.f32 %v1064_v22  ;;  %v1080_v22 = vmax.f32 %v312_v11, 1e-08  ;;  %v321_v47 = vld [vmem:[%s5912_s3 + $0x530] sm:$0xff] }
  0xd1   : > { %v4422_v40 = vpop.eup %4421  ;;  %3353 = vst [vmem:[%s5943_s16 + $0x3f0] sm:$0xff] %v1944_v33  ;;  %v1948_v41 = vmul.f32 0.6931472, %v4420_v36  ;;  %4447 = vlog2.f32 %v1065_v26  ;;  %v1081_v26 = vmax.f32 %v313_v15, 1e-08  ;;  %v322_v51 = vld [vmem:[%s5912_s3 + $0x538] sm:$0xff] }
  0xd2   : > { %v4424_v44 = vpop.eup %4423  ;;  %3354 = vst [vmem:[%s5943_s16 + $0x3f8] sm:$0xff] %v1946_v37  ;;  %v1950_v45 = vmul.f32 0.6931472, %v4422_v40  ;;  %4449 = vlog2.f32 %v1066_v30  ;;  %v1082_v30 = vmax.f32 %v314_v19, 1e-08  ;;  %v323_v55 = vld [vmem:[%s5912_s3 + $0x540] sm:$0xff] }
  0xd3   : > { %v4426_v48 = vpop.eup %4425  ;;  %3355 = vst [vmem:[%s5943_s16 + $0x400] sm:$0xff] %v1948_v41  ;;  %v1952_v49 = vmul.f32 0.6931472, %v4424_v44  ;;  %4451 = vlog2.f32 %v1067_v34  ;;  %v1083_v34 = vmax.f32 %v315_v23, 1e-08  ;;  %v324_v59 = vld [vmem:[%s5912_s3 + $0x548] sm:$0xff] }
  0xd4   : > { %v4428_v52 = vpop.eup %4427  ;;  %3356 = vst [vmem:[%s5943_s16 + $0x408] sm:$0xff] %v1950_v45  ;;  %v1954_v53 = vmul.f32 0.6931472, %v4426_v48  ;;  %4453 = vlog2.f32 %v1068_v38  ;;  %v1084_v38 = vmax.f32 %v316_v27, 1e-08  ;;  %v325_v63 = vld [vmem:[%s5912_s3 + $0x550] sm:$0xff] }
  0xd5   : > { %v4430_v56 = vpop.eup %4429  ;;  %3357 = vst [vmem:[%s5943_s16 + $0x410] sm:$0xff] %v1952_v49  ;;  %v1956_v57 = vmul.f32 0.6931472, %v4428_v52  ;;  %4455 = vlog2.f32 %v1069_v42  ;;  %v1085_v42 = vmax.f32 %v317_v31, 1e-08  ;;  %v326_v3 = vld [vmem:[%s5912_s3 + $0x558] sm:$0xff] }
  0xd6   : > { %v4432_v60 = vpop.eup %4431  ;;  %3358 = vst [vmem:[%s5943_s16 + $0x418] sm:$0xff] %v1954_v53  ;;  %v1958_v61 = vmul.f32 0.6931472, %v4430_v56  ;;  %4457 = vlog2.f32 %v1070_v46  ;;  %v1086_v46 = vmax.f32 %v318_v35, 1e-08  ;;  %v327_v7 = vld [vmem:[%s5912_s3 + $0x560] sm:$0xff] }
  0xd7   : > { %v4434_v0 = vpop.eup %4433  ;;  %3359 = vst [vmem:[%s5943_s16 + $0x420] sm:$0xff] %v1956_v57  ;;  %v1960_v1 = vmul.f32 0.6931472, %v4432_v60  ;;  %4459 = vlog2.f32 %v1071_v50  ;;  %v1087_v50 = vmax.f32 %v319_v39, 1e-08  ;;  %v328_v11 = vld [vmem:[%s5912_s3 + $0x568] sm:$0xff] }
  0xd8   : > { %v4436_v4 = vpop.eup %4435  ;;  %3360 = vst [vmem:[%s5943_s16 + $0x428] sm:$0xff] %v1958_v61  ;;  %v1962_v5 = vmul.f32 0.6931472, %v4434_v0  ;;  %4461 = vlog2.f32 %v1072_v54  ;;  %v1088_v54 = vmax.f32 %v320_v43, 1e-08  ;;  %v329_v15 = vld [vmem:[%s5912_s3 + $0x570] sm:$0xff] }
  0xd9   : > { %v4438_v8 = vpop.eup %4437  ;;  %3361 = vst [vmem:[%s5943_s16 + $0x430] sm:$0xff] %v1960_v1  ;;  %v1964_v9 = vmul.f32 0.6931472, %v4436_v4  ;;  %4463 = vlog2.f32 %v1073_v58  ;;  %v1089_v58 = vmax.f32 %v321_v47, 1e-08  ;;  %v330_v19 = vld [vmem:[%s5912_s3 + $0x578] sm:$0xff] }
  0xda   : > { %v4440_v12 = vpop.eup %4439  ;;  %3362 = vst [vmem:[%s5943_s16 + $0x438] sm:$0xff] %v1962_v5  ;;  %v1966_v13 = vmul.f32 0.6931472, %v4438_v8  ;;  %4465 = vlog2.f32 %v1074_v62  ;;  %v1090_v62 = vmax.f32 %v322_v51, 1e-08  ;;  %v331_v23 = vld [vmem:[%s5912_s3 + $0x580] sm:$0xff] }
  0xdb   : > { %v4442_v16 = vpop.eup %4441  ;;  %3363 = vst [vmem:[%s5943_s16 + $0x440] sm:$0xff] %v1964_v9  ;;  %v1968_v17 = vmul.f32 0.6931472, %v4440_v12  ;;  %4467 = vlog2.f32 %v1075_v2  ;;  %v1091_v2 = vmax.f32 %v323_v55, 1e-08  ;;  %v332_v27 = vld [vmem:[%s5912_s3 + $0x588] sm:$0xff] }
  0xdc   : > { %v4444_v20 = vpop.eup %4443  ;;  %3364 = vst [vmem:[%s5943_s16 + $0x448] sm:$0xff] %v1966_v13  ;;  %v1970_v21 = vmul.f32 0.6931472, %v4442_v16  ;;  %4469 = vlog2.f32 %v1076_v6  ;;  %v1092_v6 = vmax.f32 %v324_v59, 1e-08  ;;  %v333_v31 = vld [vmem:[%s5912_s3 + $0x590] sm:$0xff] }
  0xdd   : > { %v4446_v24 = vpop.eup %4445  ;;  %3365 = vst [vmem:[%s5943_s16 + $0x450] sm:$0xff] %v1968_v17  ;;  %v1972_v25 = vmul.f32 0.6931472, %v4444_v20  ;;  %4471 = vlog2.f32 %v1077_v10  ;;  %v1093_v10 = vmax.f32 %v325_v63, 1e-08  ;;  %v334_v35 = vld [vmem:[%s5912_s3 + $0x598] sm:$0xff] }
  0xde   : > { %v4448_v28 = vpop.eup %4447  ;;  %3366 = vst [vmem:[%s5943_s16 + $0x458] sm:$0xff] %v1970_v21  ;;  %v1974_v29 = vmul.f32 0.6931472, %v4446_v24  ;;  %4473 = vlog2.f32 %v1078_v14  ;;  %v1094_v14 = vmax.f32 %v326_v3, 1e-08  ;;  %v335_v39 = vld [vmem:[%s5912_s3 + $0x5a0] sm:$0xff] }
  0xdf   : > { %v4450_v32 = vpop.eup %4449  ;;  %3367 = vst [vmem:[%s5943_s16 + $0x460] sm:$0xff] %v1972_v25  ;;  %v1976_v33 = vmul.f32 0.6931472, %v4448_v28  ;;  %4475 = vlog2.f32 %v1079_v18  ;;  %v1095_v18 = vmax.f32 %v327_v7, 1e-08  ;;  %v336_v43 = vld [vmem:[%s5912_s3 + $0x5a8] sm:$0xff] }
  0xe0   : > { %v4452_v36 = vpop.eup %4451  ;;  %3368 = vst [vmem:[%s5943_s16 + $0x468] sm:$0xff] %v1974_v29  ;;  %v1978_v37 = vmul.f32 0.6931472, %v4450_v32  ;;  %4477 = vlog2.f32 %v1080_v22  ;;  %v1096_v22 = vmax.f32 %v328_v11, 1e-08  ;;  %v337_v47 = vld [vmem:[%s5912_s3 + $0x5b0] sm:$0xff] }
  0xe1   : > { %v4454_v40 = vpop.eup %4453  ;;  %3369 = vst [vmem:[%s5943_s16 + $0x470] sm:$0xff] %v1976_v33  ;;  %v1980_v41 = vmul.f32 0.6931472, %v4452_v36  ;;  %4479 = vlog2.f32 %v1081_v26  ;;  %v1097_v26 = vmax.f32 %v329_v15, 1e-08  ;;  %v338_v51 = vld [vmem:[%s5912_s3 + $0x5b8] sm:$0xff] }
  0xe2   : > { %v4456_v44 = vpop.eup %4455  ;;  %3370 = vst [vmem:[%s5943_s16 + $0x478] sm:$0xff] %v1978_v37  ;;  %v1982_v45 = vmul.f32 0.6931472, %v4454_v40  ;;  %4481 = vlog2.f32 %v1082_v30  ;;  %v1098_v30 = vmax.f32 %v330_v19, 1e-08  ;;  %v339_v55 = vld [vmem:[%s5912_s3 + $0x5c0] sm:$0xff] }
  0xe3   : > { %v4458_v48 = vpop.eup %4457  ;;  %3371 = vst [vmem:[%s5943_s16 + $0x480] sm:$0xff] %v1980_v41  ;;  %v1984_v49 = vmul.f32 0.6931472, %v4456_v44  ;;  %4483 = vlog2.f32 %v1083_v34  ;;  %v1099_v34 = vmax.f32 %v331_v23, 1e-08  ;;  %v340_v59 = vld [vmem:[%s5912_s3 + $0x5c8] sm:$0xff] }
  0xe4   : > { %v4460_v52 = vpop.eup %4459  ;;  %3372 = vst [vmem:[%s5943_s16 + $0x488] sm:$0xff] %v1982_v45  ;;  %v1986_v53 = vmul.f32 0.6931472, %v4458_v48  ;;  %4485 = vlog2.f32 %v1084_v38  ;;  %v1100_v38 = vmax.f32 %v332_v27, 1e-08  ;;  %v341_v63 = vld [vmem:[%s5912_s3 + $0x5d0] sm:$0xff] }
  0xe5   : > { %v4462_v56 = vpop.eup %4461  ;;  %3373 = vst [vmem:[%s5943_s16 + $0x490] sm:$0xff] %v1984_v49  ;;  %v1988_v57 = vmul.f32 0.6931472, %v4460_v52  ;;  %4487 = vlog2.f32 %v1085_v42  ;;  %v1101_v42 = vmax.f32 %v333_v31, 1e-08  ;;  %v342_v3 = vld [vmem:[%s5912_s3 + $0x5d8] sm:$0xff] }
  0xe6   : > { %v4464_v60 = vpop.eup %4463  ;;  %3374 = vst [vmem:[%s5943_s16 + $0x498] sm:$0xff] %v1986_v53  ;;  %v1990_v61 = vmul.f32 0.6931472, %v4462_v56  ;;  %4489 = vlog2.f32 %v1086_v46  ;;  %v1102_v46 = vmax.f32 %v334_v35, 1e-08  ;;  %v343_v7 = vld [vmem:[%s5912_s3 + $0x5e0] sm:$0xff] }
  0xe7   : > { %v4466_v0 = vpop.eup %4465  ;;  %3375 = vst [vmem:[%s5943_s16 + $0x4a0] sm:$0xff] %v1988_v57  ;;  %v1992_v1 = vmul.f32 0.6931472, %v4464_v60  ;;  %4491 = vlog2.f32 %v1087_v50  ;;  %v1103_v50 = vmax.f32 %v335_v39, 1e-08  ;;  %v344_v11 = vld [vmem:[%s5912_s3 + $0x5e8] sm:$0xff] }
  0xe8   : > { %v4468_v4 = vpop.eup %4467  ;;  %3376 = vst [vmem:[%s5943_s16 + $0x4a8] sm:$0xff] %v1990_v61  ;;  %v1994_v5 = vmul.f32 0.6931472, %v4466_v0  ;;  %4493 = vlog2.f32 %v1088_v54  ;;  %v1104_v54 = vmax.f32 %v336_v43, 1e-08  ;;  %v345_v15 = vld [vmem:[%s5912_s3 + $0x5f0] sm:$0xff] }
  0xe9   : > { %v4470_v8 = vpop.eup %4469  ;;  %3377 = vst [vmem:[%s5943_s16 + $0x4b0] sm:$0xff] %v1992_v1  ;;  %v1996_v9 = vmul.f32 0.6931472, %v4468_v4  ;;  %4495 = vlog2.f32 %v1089_v58  ;;  %v1105_v58 = vmax.f32 %v337_v47, 1e-08  ;;  %v346_v19 = vld [vmem:[%s5912_s3 + $0x5f8] sm:$0xff] }
  0xea   : > { %v4472_v12 = vpop.eup %4471  ;;  %3378 = vst [vmem:[%s5943_s16 + $0x4b8] sm:$0xff] %v1994_v5  ;;  %v1998_v13 = vmul.f32 0.6931472, %v4470_v8  ;;  %4497 = vlog2.f32 %v1090_v62  ;;  %v1106_v62 = vmax.f32 %v338_v51, 1e-08  ;;  %v347_v23 = vld [vmem:[%s5912_s3 + $0x600] sm:$0xff] }
  0xeb   : > { %v4474_v16 = vpop.eup %4473  ;;  %3379 = vst [vmem:[%s5943_s16 + $0x4c0] sm:$0xff] %v1996_v9  ;;  %v2000_v17 = vmul.f32 0.6931472, %v4472_v12  ;;  %4499 = vlog2.f32 %v1091_v2  ;;  %v1107_v2 = vmax.f32 %v339_v55, 1e-08  ;;  %v348_v27 = vld [vmem:[%s5912_s3 + $0x608] sm:$0xff] }
  0xec   : > { %v4476_v20 = vpop.eup %4475  ;;  %3380 = vst [vmem:[%s5943_s16 + $0x4c8] sm:$0xff] %v1998_v13  ;;  %v2002_v21 = vmul.f32 0.6931472, %v4474_v16  ;;  %4501 = vlog2.f32 %v1092_v6  ;;  %v1108_v6 = vmax.f32 %v340_v59, 1e-08  ;;  %v349_v31 = vld [vmem:[%s5912_s3 + $0x610] sm:$0xff] }
  0xed   : > { %v4478_v24 = vpop.eup %4477  ;;  %3381 = vst [vmem:[%s5943_s16 + $0x4d0] sm:$0xff] %v2000_v17  ;;  %v2004_v25 = vmul.f32 0.6931472, %v4476_v20  ;;  %4503 = vlog2.f32 %v1093_v10  ;;  %v1109_v10 = vmax.f32 %v341_v63, 1e-08  ;;  %v350_v35 = vld [vmem:[%s5912_s3 + $0x618] sm:$0xff] }
  0xee   : > { %v4480_v28 = vpop.eup %4479  ;;  %3382 = vst [vmem:[%s5943_s16 + $0x4d8] sm:$0xff] %v2002_v21  ;;  %v2006_v29 = vmul.f32 0.6931472, %v4478_v24  ;;  %4505 = vlog2.f32 %v1094_v14  ;;  %v1110_v14 = vmax.f32 %v342_v3, 1e-08  ;;  %v351_v39 = vld [vmem:[%s5912_s3 + $0x620] sm:$0xff] }
  0xef   : > { %v4482_v32 = vpop.eup %4481  ;;  %3383 = vst [vmem:[%s5943_s16 + $0x4e0] sm:$0xff] %v2004_v25  ;;  %v2008_v33 = vmul.f32 0.6931472, %v4480_v28  ;;  %4507 = vlog2.f32 %v1095_v18  ;;  %v1111_v18 = vmax.f32 %v343_v7, 1e-08  ;;  %v352_v43 = vld [vmem:[%s5912_s3 + $0x628] sm:$0xff] }
  0xf0   : > { %v4484_v36 = vpop.eup %4483  ;;  %3384 = vst [vmem:[%s5943_s16 + $0x4e8] sm:$0xff] %v2006_v29  ;;  %v2010_v37 = vmul.f32 0.6931472, %v4482_v32  ;;  %4509 = vlog2.f32 %v1096_v22  ;;  %v1112_v22 = vmax.f32 %v344_v11, 1e-08  ;;  %v353_v47 = vld [vmem:[%s5912_s3 + $0x630] sm:$0xff] }
  0xf1   : > { %v4486_v40 = vpop.eup %4485  ;;  %3385 = vst [vmem:[%s5943_s16 + $0x4f0] sm:$0xff] %v2008_v33  ;;  %v2012_v41 = vmul.f32 0.6931472, %v4484_v36  ;;  %4511 = vlog2.f32 %v1097_v26  ;;  %v1113_v26 = vmax.f32 %v345_v15, 1e-08  ;;  %v354_v51 = vld [vmem:[%s5912_s3 + $0x638] sm:$0xff] }
  0xf2   : > { %v4488_v44 = vpop.eup %4487  ;;  %3386 = vst [vmem:[%s5943_s16 + $0x4f8] sm:$0xff] %v2010_v37  ;;  %v2014_v45 = vmul.f32 0.6931472, %v4486_v40  ;;  %4513 = vlog2.f32 %v1098_v30  ;;  %v1114_v30 = vmax.f32 %v346_v19, 1e-08  ;;  %v355_v55 = vld [vmem:[%s5912_s3 + $0x640] sm:$0xff] }
  0xf3   : > { %v4490_v48 = vpop.eup %4489  ;;  %3387 = vst [vmem:[%s5943_s16 + $0x500] sm:$0xff] %v2012_v41  ;;  %v2016_v49 = vmul.f32 0.6931472, %v4488_v44  ;;  %4515 = vlog2.f32 %v1099_v34  ;;  %v1115_v34 = vmax.f32 %v347_v23, 1e-08  ;;  %v356_v59 = vld [vmem:[%s5912_s3 + $0x648] sm:$0xff] }
  0xf4   : > { %v4492_v52 = vpop.eup %4491  ;;  %3388 = vst [vmem:[%s5943_s16 + $0x508] sm:$0xff] %v2014_v45  ;;  %v2018_v53 = vmul.f32 0.6931472, %v4490_v48  ;;  %4517 = vlog2.f32 %v1100_v38  ;;  %v1116_v38 = vmax.f32 %v348_v27, 1e-08  ;;  %v357_v63 = vld [vmem:[%s5912_s3 + $0x650] sm:$0xff] }
  0xf5   : > { %v4494_v56 = vpop.eup %4493  ;;  %3389 = vst [vmem:[%s5943_s16 + $0x510] sm:$0xff] %v2016_v49  ;;  %v2020_v57 = vmul.f32 0.6931472, %v4492_v52  ;;  %4519 = vlog2.f32 %v1101_v42  ;;  %v1117_v42 = vmax.f32 %v349_v31, 1e-08  ;;  %v358_v3 = vld [vmem:[%s5912_s3 + $0x658] sm:$0xff] }
  0xf6   : > { %v4496_v60 = vpop.eup %4495  ;;  %3390 = vst [vmem:[%s5943_s16 + $0x518] sm:$0xff] %v2018_v53  ;;  %v2022_v61 = vmul.f32 0.6931472, %v4494_v56  ;;  %4521 = vlog2.f32 %v1102_v46  ;;  %v1118_v46 = vmax.f32 %v350_v35, 1e-08  ;;  %v359_v7 = vld [vmem:[%s5912_s3 + $0x660] sm:$0xff] }
  0xf7   : > { %v4498_v0 = vpop.eup %4497  ;;  %3391 = vst [vmem:[%s5943_s16 + $0x520] sm:$0xff] %v2020_v57  ;;  %v2024_v1 = vmul.f32 0.6931472, %v4496_v60  ;;  %4523 = vlog2.f32 %v1103_v50  ;;  %v1119_v50 = vmax.f32 %v351_v39, 1e-08  ;;  %v360_v11 = vld [vmem:[%s5912_s3 + $0x668] sm:$0xff] }
  0xf8   : > { %v4500_v4 = vpop.eup %4499  ;;  %3392 = vst [vmem:[%s5943_s16 + $0x528] sm:$0xff] %v2022_v61  ;;  %v2026_v5 = vmul.f32 0.6931472, %v4498_v0  ;;  %4525 = vlog2.f32 %v1104_v54  ;;  %v1120_v54 = vmax.f32 %v352_v43, 1e-08  ;;  %v361_v15 = vld [vmem:[%s5912_s3 + $0x670] sm:$0xff] }
  0xf9   : > { %v4502_v8 = vpop.eup %4501  ;;  %3393 = vst [vmem:[%s5943_s16 + $0x530] sm:$0xff] %v2024_v1  ;;  %v2028_v9 = vmul.f32 0.6931472, %v4500_v4  ;;  %4527 = vlog2.f32 %v1105_v58  ;;  %v1121_v58 = vmax.f32 %v353_v47, 1e-08  ;;  %v362_v19 = vld [vmem:[%s5912_s3 + $0x678] sm:$0xff] }
  0xfa   : > { %v4504_v12 = vpop.eup %4503  ;;  %3394 = vst [vmem:[%s5943_s16 + $0x538] sm:$0xff] %v2026_v5  ;;  %v2030_v13 = vmul.f32 0.6931472, %v4502_v8  ;;  %4529 = vlog2.f32 %v1106_v62  ;;  %v1122_v62 = vmax.f32 %v354_v51, 1e-08  ;;  %v363_v23 = vld [vmem:[%s5912_s3 + $0x680] sm:$0xff] }
  0xfb   : > { %v4506_v16 = vpop.eup %4505  ;;  %3395 = vst [vmem:[%s5943_s16 + $0x540] sm:$0xff] %v2028_v9  ;;  %v2032_v17 = vmul.f32 0.6931472, %v4504_v12  ;;  %4531 = vlog2.f32 %v1107_v2  ;;  %v1123_v2 = vmax.f32 %v355_v55, 1e-08  ;;  %v364_v27 = vld [vmem:[%s5912_s3 + $0x688] sm:$0xff] }
  0xfc   : > { %v4508_v20 = vpop.eup %4507  ;;  %3396 = vst [vmem:[%s5943_s16 + $0x548] sm:$0xff] %v2030_v13  ;;  %v2034_v21 = vmul.f32 0.6931472, %v4506_v16  ;;  %4533 = vlog2.f32 %v1108_v6  ;;  %v1124_v6 = vmax.f32 %v356_v59, 1e-08  ;;  %v365_v31 = vld [vmem:[%s5912_s3 + $0x690] sm:$0xff] }
  0xfd   : > { %v4510_v24 = vpop.eup %4509  ;;  %3397 = vst [vmem:[%s5943_s16 + $0x550] sm:$0xff] %v2032_v17  ;;  %v2036_v25 = vmul.f32 0.6931472, %v4508_v20  ;;  %4535 = vlog2.f32 %v1109_v10  ;;  %v1125_v10 = vmax.f32 %v357_v63, 1e-08  ;;  %v366_v35 = vld [vmem:[%s5912_s3 + $0x698] sm:$0xff] }
  0xfe   : > { %v4512_v28 = vpop.eup %4511  ;;  %3398 = vst [vmem:[%s5943_s16 + $0x558] sm:$0xff] %v2034_v21  ;;  %v2038_v29 = vmul.f32 0.6931472, %v4510_v24  ;;  %4537 = vlog2.f32 %v1110_v14  ;;  %v1126_v14 = vmax.f32 %v358_v3, 1e-08  ;;  %v367_v39 = vld [vmem:[%s5912_s3 + $0x6a0] sm:$0xff] }
  0xff   : > { %v4514_v32 = vpop.eup %4513  ;;  %3399 = vst [vmem:[%s5943_s16 + $0x560] sm:$0xff] %v2036_v25  ;;  %v2040_v33 = vmul.f32 0.6931472, %v4512_v28  ;;  %4539 = vlog2.f32 %v1111_v18  ;;  %v1127_v18 = vmax.f32 %v359_v7, 1e-08  ;;  %v368_v43 = vld [vmem:[%s5912_s3 + $0x6a8] sm:$0xff] }
 0x100   : > { %v4516_v36 = vpop.eup %4515  ;;  %3400 = vst [vmem:[%s5943_s16 + $0x568] sm:$0xff] %v2038_v29  ;;  %v2042_v37 = vmul.f32 0.6931472, %v4514_v32  ;;  %4541 = vlog2.f32 %v1112_v22  ;;  %v1128_v22 = vmax.f32 %v360_v11, 1e-08  ;;  %v369_v47 = vld [vmem:[%s5912_s3 + $0x6b0] sm:$0xff] }
 0x101   : > { %v4518_v40 = vpop.eup %4517  ;;  %3401 = vst [vmem:[%s5943_s16 + $0x570] sm:$0xff] %v2040_v33  ;;  %v2044_v41 = vmul.f32 0.6931472, %v4516_v36  ;;  %4543 = vlog2.f32 %v1113_v26  ;;  %v1129_v26 = vmax.f32 %v361_v15, 1e-08  ;;  %v370_v51 = vld [vmem:[%s5912_s3 + $0x6b8] sm:$0xff] }
 0x102   : > { %v4520_v44 = vpop.eup %4519  ;;  %3402 = vst [vmem:[%s5943_s16 + $0x578] sm:$0xff] %v2042_v37  ;;  %v2046_v45 = vmul.f32 0.6931472, %v4518_v40  ;;  %4545 = vlog2.f32 %v1114_v30  ;;  %v1130_v30 = vmax.f32 %v362_v19, 1e-08  ;;  %v371_v55 = vld [vmem:[%s5912_s3 + $0x6c0] sm:$0xff] }
 0x103   : > { %v4522_v48 = vpop.eup %4521  ;;  %3403 = vst [vmem:[%s5943_s16 + $0x580] sm:$0xff] %v2044_v41  ;;  %v2048_v49 = vmul.f32 0.6931472, %v4520_v44  ;;  %4547 = vlog2.f32 %v1115_v34  ;;  %v1131_v34 = vmax.f32 %v363_v23, 1e-08  ;;  %v372_v59 = vld [vmem:[%s5912_s3 + $0x6c8] sm:$0xff] }
 0x104   : > { %v4524_v52 = vpop.eup %4523  ;;  %3404 = vst [vmem:[%s5943_s16 + $0x588] sm:$0xff] %v2046_v45  ;;  %v2050_v53 = vmul.f32 0.6931472, %v4522_v48  ;;  %4549 = vlog2.f32 %v1116_v38  ;;  %v1132_v38 = vmax.f32 %v364_v27, 1e-08  ;;  %v373_v63 = vld [vmem:[%s5912_s3 + $0x6d0] sm:$0xff] }
 0x105   : > { %v4526_v56 = vpop.eup %4525  ;;  %3405 = vst [vmem:[%s5943_s16 + $0x590] sm:$0xff] %v2048_v49  ;;  %v2052_v57 = vmul.f32 0.6931472, %v4524_v52  ;;  %4551 = vlog2.f32 %v1117_v42  ;;  %v1133_v42 = vmax.f32 %v365_v31, 1e-08  ;;  %v374_v3 = vld [vmem:[%s5912_s3 + $0x6d8] sm:$0xff] }
 0x106   : > { %v4528_v60 = vpop.eup %4527  ;;  %3406 = vst [vmem:[%s5943_s16 + $0x598] sm:$0xff] %v2050_v53  ;;  %v2054_v61 = vmul.f32 0.6931472, %v4526_v56  ;;  %4553 = vlog2.f32 %v1118_v46  ;;  %v1134_v46 = vmax.f32 %v366_v35, 1e-08  ;;  %v375_v7 = vld [vmem:[%s5912_s3 + $0x6e0] sm:$0xff] }
 0x107   : > { %v4530_v0 = vpop.eup %4529  ;;  %3407 = vst [vmem:[%s5943_s16 + $0x5a0] sm:$0xff] %v2052_v57  ;;  %v2056_v1 = vmul.f32 0.6931472, %v4528_v60  ;;  %4555 = vlog2.f32 %v1119_v50  ;;  %v1135_v50 = vmax.f32 %v367_v39, 1e-08  ;;  %v376_v11 = vld [vmem:[%s5912_s3 + $0x6e8] sm:$0xff] }
 0x108   : > { %v4532_v4 = vpop.eup %4531  ;;  %3408 = vst [vmem:[%s5943_s16 + $0x5a8] sm:$0xff] %v2054_v61  ;;  %v2058_v5 = vmul.f32 0.6931472, %v4530_v0  ;;  %4557 = vlog2.f32 %v1120_v54  ;;  %v1136_v54 = vmax.f32 %v368_v43, 1e-08  ;;  %v377_v15 = vld [vmem:[%s5912_s3 + $0x6f0] sm:$0xff] }
 0x109   : > { %v4534_v8 = vpop.eup %4533  ;;  %3409 = vst [vmem:[%s5943_s16 + $0x5b0] sm:$0xff] %v2056_v1  ;;  %v2060_v9 = vmul.f32 0.6931472, %v4532_v4  ;;  %4559 = vlog2.f32 %v1121_v58  ;;  %v1137_v58 = vmax.f32 %v369_v47, 1e-08  ;;  %v378_v19 = vld [vmem:[%s5912_s3 + $0x6f8] sm:$0xff] }
 0x10a   : > { %v4536_v12 = vpop.eup %4535  ;;  %3410 = vst [vmem:[%s5943_s16 + $0x5b8] sm:$0xff] %v2058_v5  ;;  %v2062_v13 = vmul.f32 0.6931472, %v4534_v8  ;;  %4561 = vlog2.f32 %v1122_v62  ;;  %v1138_v62 = vmax.f32 %v370_v51, 1e-08  ;;  %v379_v23 = vld [vmem:[%s5912_s3 + $0x700] sm:$0xff] }
 0x10b   : > { %v4538_v16 = vpop.eup %4537  ;;  %3411 = vst [vmem:[%s5943_s16 + $0x5c0] sm:$0xff] %v2060_v9  ;;  %v2064_v17 = vmul.f32 0.6931472, %v4536_v12  ;;  %4563 = vlog2.f32 %v1123_v2  ;;  %v1139_v2 = vmax.f32 %v371_v55, 1e-08  ;;  %v380_v27 = vld [vmem:[%s5912_s3 + $0x708] sm:$0xff] }
 0x10c   : > { %v4540_v20 = vpop.eup %4539  ;;  %3412 = vst [vmem:[%s5943_s16 + $0x5c8] sm:$0xff] %v2062_v13  ;;  %v2066_v21 = vmul.f32 0.6931472, %v4538_v16  ;;  %4565 = vlog2.f32 %v1124_v6  ;;  %v1140_v6 = vmax.f32 %v372_v59, 1e-08  ;;  %v381_v31 = vld [vmem:[%s5912_s3 + $0x710] sm:$0xff] }
 0x10d   : > { %v4542_v24 = vpop.eup %4541  ;;  %3413 = vst [vmem:[%s5943_s16 + $0x5d0] sm:$0xff] %v2064_v17  ;;  %v2068_v25 = vmul.f32 0.6931472, %v4540_v20  ;;  %4567 = vlog2.f32 %v1125_v10  ;;  %v1141_v10 = vmax.f32 %v373_v63, 1e-08  ;;  %v382_v35 = vld [vmem:[%s5912_s3 + $0x718] sm:$0xff] }
 0x10e   : > { %v4544_v28 = vpop.eup %4543  ;;  %3414 = vst [vmem:[%s5943_s16 + $0x5d8] sm:$0xff] %v2066_v21  ;;  %v2070_v29 = vmul.f32 0.6931472, %v4542_v24  ;;  %4569 = vlog2.f32 %v1126_v14  ;;  %v1142_v14 = vmax.f32 %v374_v3, 1e-08  ;;  %v383_v39 = vld [vmem:[%s5912_s3 + $0x720] sm:$0xff] }
 0x10f   : > { %v4546_v32 = vpop.eup %4545  ;;  %3415 = vst [vmem:[%s5943_s16 + $0x5e0] sm:$0xff] %v2068_v25  ;;  %v2072_v33 = vmul.f32 0.6931472, %v4544_v28  ;;  %4571 = vlog2.f32 %v1127_v18  ;;  %v1143_v18 = vmax.f32 %v375_v7, 1e-08  ;;  %v384_v43 = vld [vmem:[%s5912_s3 + $0x728] sm:$0xff] }
 0x110   : > { %v4548_v36 = vpop.eup %4547  ;;  %3416 = vst [vmem:[%s5943_s16 + $0x5e8] sm:$0xff] %v2070_v29  ;;  %v2074_v37 = vmul.f32 0.6931472, %v4546_v32  ;;  %4573 = vlog2.f32 %v1128_v22  ;;  %v1144_v22 = vmax.f32 %v376_v11, 1e-08  ;;  %v385_v47 = vld [vmem:[%s5912_s3 + $0x730] sm:$0xff] }
 0x111   : > { %v4550_v40 = vpop.eup %4549  ;;  %3417 = vst [vmem:[%s5943_s16 + $0x5f0] sm:$0xff] %v2072_v33  ;;  %v2076_v41 = vmul.f32 0.6931472, %v4548_v36  ;;  %4575 = vlog2.f32 %v1129_v26  ;;  %v1145_v26 = vmax.f32 %v377_v15, 1e-08  ;;  %v386_v51 = vld [vmem:[%s5912_s3 + $0x738] sm:$0xff] }
 0x112   : > { %v4552_v44 = vpop.eup %4551  ;;  %3418 = vst [vmem:[%s5943_s16 + $0x5f8] sm:$0xff] %v2074_v37  ;;  %v2078_v45 = vmul.f32 0.6931472, %v4550_v40  ;;  %4577 = vlog2.f32 %v1130_v30  ;;  %v1146_v30 = vmax.f32 %v378_v19, 1e-08  ;;  %v387_v55 = vld [vmem:[%s5912_s3 + $0x740] sm:$0xff] }
 0x113   : > { %v4554_v48 = vpop.eup %4553  ;;  %3419 = vst [vmem:[%s5943_s16 + $0x600] sm:$0xff] %v2076_v41  ;;  %v2080_v49 = vmul.f32 0.6931472, %v4552_v44  ;;  %4579 = vlog2.f32 %v1131_v34  ;;  %v1147_v34 = vmax.f32 %v379_v23, 1e-08  ;;  %v388_v59 = vld [vmem:[%s5912_s3 + $0x748] sm:$0xff] }
 0x114   : > { %v4556_v52 = vpop.eup %4555  ;;  %3420 = vst [vmem:[%s5943_s16 + $0x608] sm:$0xff] %v2078_v45  ;;  %v2082_v53 = vmul.f32 0.6931472, %v4554_v48  ;;  %4581 = vlog2.f32 %v1132_v38  ;;  %v1148_v38 = vmax.f32 %v380_v27, 1e-08  ;;  %v389_v63 = vld [vmem:[%s5912_s3 + $0x750] sm:$0xff] }
 0x115   : > { %v4558_v56 = vpop.eup %4557  ;;  %3421 = vst [vmem:[%s5943_s16 + $0x610] sm:$0xff] %v2080_v49  ;;  %v2084_v57 = vmul.f32 0.6931472, %v4556_v52  ;;  %4583 = vlog2.f32 %v1133_v42  ;;  %v1149_v42 = vmax.f32 %v381_v31, 1e-08  ;;  %v390_v3 = vld [vmem:[%s5912_s3 + $0x758] sm:$0xff] }
 0x116   : > { %v4560_v60 = vpop.eup %4559  ;;  %3422 = vst [vmem:[%s5943_s16 + $0x618] sm:$0xff] %v2082_v53  ;;  %v2086_v61 = vmul.f32 0.6931472, %v4558_v56  ;;  %4585 = vlog2.f32 %v1134_v46  ;;  %v1150_v46 = vmax.f32 %v382_v35, 1e-08  ;;  %v391_v7 = vld [vmem:[%s5912_s3 + $0x760] sm:$0xff] }
 0x117   : > { %v4562_v0 = vpop.eup %4561  ;;  %3423 = vst [vmem:[%s5943_s16 + $0x620] sm:$0xff] %v2084_v57  ;;  %v2088_v1 = vmul.f32 0.6931472, %v4560_v60  ;;  %4587 = vlog2.f32 %v1135_v50  ;;  %v1151_v50 = vmax.f32 %v383_v39, 1e-08  ;;  %v392_v11 = vld [vmem:[%s5912_s3 + $0x768] sm:$0xff] }
 0x118   : > { %v4564_v4 = vpop.eup %4563  ;;  %3424 = vst [vmem:[%s5943_s16 + $0x628] sm:$0xff] %v2086_v61  ;;  %v2090_v5 = vmul.f32 0.6931472, %v4562_v0  ;;  %4589 = vlog2.f32 %v1136_v54  ;;  %v1152_v54 = vmax.f32 %v384_v43, 1e-08  ;;  %v393_v15 = vld [vmem:[%s5912_s3 + $0x770] sm:$0xff] }
 0x119   : > { %v4566_v8 = vpop.eup %4565  ;;  %3425 = vst [vmem:[%s5943_s16 + $0x630] sm:$0xff] %v2088_v1  ;;  %v2092_v9 = vmul.f32 0.6931472, %v4564_v4  ;;  %4591 = vlog2.f32 %v1137_v58  ;;  %v1153_v58 = vmax.f32 %v385_v47, 1e-08  ;;  %v394_v19 = vld [vmem:[%s5912_s3 + $0x778] sm:$0xff] }
 0x11a   : > { %v4568_v12 = vpop.eup %4567  ;;  %3426 = vst [vmem:[%s5943_s16 + $0x638] sm:$0xff] %v2090_v5  ;;  %v2094_v13 = vmul.f32 0.6931472, %v4566_v8  ;;  %4593 = vlog2.f32 %v1138_v62  ;;  %v1154_v62 = vmax.f32 %v386_v51, 1e-08  ;;  %v395_v23 = vld [vmem:[%s5912_s3 + $0x780] sm:$0xff] }
 0x11b   : > { %v4570_v16 = vpop.eup %4569  ;;  %3427 = vst [vmem:[%s5943_s16 + $0x640] sm:$0xff] %v2092_v9  ;;  %v2096_v17 = vmul.f32 0.6931472, %v4568_v12  ;;  %4595 = vlog2.f32 %v1139_v2  ;;  %v1155_v2 = vmax.f32 %v387_v55, 1e-08  ;;  %v396_v27 = vld [vmem:[%s5912_s3 + $0x788] sm:$0xff] }
 0x11c   : > { %v4572_v20 = vpop.eup %4571  ;;  %3428 = vst [vmem:[%s5943_s16 + $0x648] sm:$0xff] %v2094_v13  ;;  %v2098_v21 = vmul.f32 0.6931472, %v4570_v16  ;;  %4597 = vlog2.f32 %v1140_v6  ;;  %v1156_v6 = vmax.f32 %v388_v59, 1e-08  ;;  %v397_v31 = vld [vmem:[%s5912_s3 + $0x790] sm:$0xff] }
 0x11d   : > { %v4574_v24 = vpop.eup %4573  ;;  %3429 = vst [vmem:[%s5943_s16 + $0x650] sm:$0xff] %v2096_v17  ;;  %v2100_v25 = vmul.f32 0.6931472, %v4572_v20  ;;  %4599 = vlog2.f32 %v1141_v10  ;;  %v1157_v10 = vmax.f32 %v389_v63, 1e-08  ;;  %v398_v35 = vld [vmem:[%s5912_s3 + $0x798] sm:$0xff] }
 0x11e   : > { %v4576_v28 = vpop.eup %4575  ;;  %3430 = vst [vmem:[%s5943_s16 + $0x658] sm:$0xff] %v2098_v21  ;;  %v2102_v29 = vmul.f32 0.6931472, %v4574_v24  ;;  %4601 = vlog2.f32 %v1142_v14  ;;  %v1158_v14 = vmax.f32 %v390_v3, 1e-08  ;;  %v399_v39 = vld [vmem:[%s5912_s3 + $0x7a0] sm:$0xff] }
 0x11f   : > { %v4578_v32 = vpop.eup %4577  ;;  %3431 = vst [vmem:[%s5943_s16 + $0x660] sm:$0xff] %v2100_v25  ;;  %v2104_v33 = vmul.f32 0.6931472, %v4576_v28  ;;  %4603 = vlog2.f32 %v1143_v18  ;;  %v1159_v18 = vmax.f32 %v391_v7, 1e-08  ;;  %v400_v43 = vld [vmem:[%s5912_s3 + $0x7a8] sm:$0xff] }
 0x120   : > { %v4580_v36 = vpop.eup %4579  ;;  %3432 = vst [vmem:[%s5943_s16 + $0x668] sm:$0xff] %v2102_v29  ;;  %v2106_v37 = vmul.f32 0.6931472, %v4578_v32  ;;  %4605 = vlog2.f32 %v1144_v22  ;;  %v1160_v22 = vmax.f32 %v392_v11, 1e-08  ;;  %v401_v47 = vld [vmem:[%s5912_s3 + $0x7b0] sm:$0xff] }
 0x121   : > { %v4582_v40 = vpop.eup %4581  ;;  %3433 = vst [vmem:[%s5943_s16 + $0x670] sm:$0xff] %v2104_v33  ;;  %v2108_v41 = vmul.f32 0.6931472, %v4580_v36  ;;  %4607 = vlog2.f32 %v1145_v26  ;;  %v1161_v26 = vmax.f32 %v393_v15, 1e-08  ;;  %v402_v51 = vld [vmem:[%s5912_s3 + $0x7b8] sm:$0xff] }
 0x122   : > { %v4584_v44 = vpop.eup %4583  ;;  %3434 = vst [vmem:[%s5943_s16 + $0x678] sm:$0xff] %v2106_v37  ;;  %v2110_v45 = vmul.f32 0.6931472, %v4582_v40  ;;  %4609 = vlog2.f32 %v1146_v30  ;;  %v1162_v30 = vmax.f32 %v394_v19, 1e-08  ;;  %v403_v55 = vld [vmem:[%s5912_s3 + $0x7c0] sm:$0xff] }
 0x123   : > { %v4586_v48 = vpop.eup %4585  ;;  %3435 = vst [vmem:[%s5943_s16 + $0x680] sm:$0xff] %v2108_v41  ;;  %v2112_v49 = vmul.f32 0.6931472, %v4584_v44  ;;  %4611 = vlog2.f32 %v1147_v34  ;;  %v1163_v34 = vmax.f32 %v395_v23, 1e-08  ;;  %v404_v59 = vld [vmem:[%s5912_s3 + $0x7c8] sm:$0xff] }
 0x124   : > { %v4588_v52 = vpop.eup %4587  ;;  %3436 = vst [vmem:[%s5943_s16 + $0x688] sm:$0xff] %v2110_v45  ;;  %v2114_v53 = vmul.f32 0.6931472, %v4586_v48  ;;  %4613 = vlog2.f32 %v1148_v38  ;;  %v1164_v38 = vmax.f32 %v396_v27, 1e-08  ;;  %v405_v63 = vld [vmem:[%s5912_s3 + $0x7d0] sm:$0xff] }
 0x125   : > { %v4590_v56 = vpop.eup %4589  ;;  %3437 = vst [vmem:[%s5943_s16 + $0x690] sm:$0xff] %v2112_v49  ;;  %v2116_v57 = vmul.f32 0.6931472, %v4588_v52  ;;  %4615 = vlog2.f32 %v1149_v42  ;;  %v1165_v42 = vmax.f32 %v397_v31, 1e-08  ;;  %v406_v3 = vld [vmem:[%s5912_s3 + $0x7d8] sm:$0xff] }
 0x126   : > { %v4592_v60 = vpop.eup %4591  ;;  %3438 = vst [vmem:[%s5943_s16 + $0x698] sm:$0xff] %v2114_v53  ;;  %v2118_v61 = vmul.f32 0.6931472, %v4590_v56  ;;  %4617 = vlog2.f32 %v1150_v46  ;;  %v1166_v46 = vmax.f32 %v398_v35, 1e-08  ;;  %v407_v7 = vld [vmem:[%s5912_s3 + $0x7e0] sm:$0xff] }
 0x127   : > { %v4594_v0 = vpop.eup %4593  ;;  %3439 = vst [vmem:[%s5943_s16 + $0x6a0] sm:$0xff] %v2116_v57  ;;  %v2120_v1 = vmul.f32 0.6931472, %v4592_v60  ;;  %4619 = vlog2.f32 %v1151_v50  ;;  %v1167_v50 = vmax.f32 %v399_v39, 1e-08  ;;  %v408_v11 = vld [vmem:[%s5912_s3 + $0x7e8] sm:$0xff] }
 0x128   : > { %v4596_v4 = vpop.eup %4595  ;;  %3440 = vst [vmem:[%s5943_s16 + $0x6a8] sm:$0xff] %v2118_v61  ;;  %v2122_v5 = vmul.f32 0.6931472, %v4594_v0  ;;  %4621 = vlog2.f32 %v1152_v54  ;;  %v1168_v54 = vmax.f32 %v400_v43, 1e-08  ;;  %v409_v15 = vld [vmem:[%s5912_s3 + $0x7f0] sm:$0xff] }
 0x129   : > { %v4598_v8 = vpop.eup %4597  ;;  %3441 = vst [vmem:[%s5943_s16 + $0x6b0] sm:$0xff] %v2120_v1  ;;  %v2124_v9 = vmul.f32 0.6931472, %v4596_v4  ;;  %4623 = vlog2.f32 %v1153_v58  ;;  %v1169_v58 = vmax.f32 %v401_v47, 1e-08  ;;  %v410_v19 = vld [vmem:[%s5912_s3 + $0x7f8] sm:$0xff] }
 0x12a   : > { %v4600_v12 = vpop.eup %4599  ;;  %3442 = vst [vmem:[%s5943_s16 + $0x6b8] sm:$0xff] %v2122_v5  ;;  %v2126_v13 = vmul.f32 0.6931472, %v4598_v8  ;;  %4625 = vlog2.f32 %v1154_v62  ;;  %v1170_v62 = vmax.f32 %v402_v51, 1e-08  ;;  %v411_v23 = vld [vmem:[%s5912_s3 + $0x800] sm:$0xff] }
 0x12b   : > { %v4602_v16 = vpop.eup %4601  ;;  %3443 = vst [vmem:[%s5943_s16 + $0x6c0] sm:$0xff] %v2124_v9  ;;  %v2128_v17 = vmul.f32 0.6931472, %v4600_v12  ;;  %4627 = vlog2.f32 %v1155_v2  ;;  %v1171_v2 = vmax.f32 %v403_v55, 1e-08  ;;  %v412_v27 = vld [vmem:[%s5912_s3 + $0x808] sm:$0xff] }
 0x12c   : > { %v4604_v20 = vpop.eup %4603  ;;  %3444 = vst [vmem:[%s5943_s16 + $0x6c8] sm:$0xff] %v2126_v13  ;;  %v2130_v21 = vmul.f32 0.6931472, %v4602_v16  ;;  %4629 = vlog2.f32 %v1156_v6  ;;  %v1172_v6 = vmax.f32 %v404_v59, 1e-08  ;;  %v413_v31 = vld [vmem:[%s5912_s3 + $0x810] sm:$0xff] }
 0x12d   : > { %v4606_v24 = vpop.eup %4605  ;;  %3445 = vst [vmem:[%s5943_s16 + $0x6d0] sm:$0xff] %v2128_v17  ;;  %v2132_v25 = vmul.f32 0.6931472, %v4604_v20  ;;  %4631 = vlog2.f32 %v1157_v10  ;;  %v1173_v10 = vmax.f32 %v405_v63, 1e-08  ;;  %v414_v35 = vld [vmem:[%s5912_s3 + $0x818] sm:$0xff] }
 0x12e   : > { %v4608_v28 = vpop.eup %4607  ;;  %3446 = vst [vmem:[%s5943_s16 + $0x6d8] sm:$0xff] %v2130_v21  ;;  %v2134_v29 = vmul.f32 0.6931472, %v4606_v24  ;;  %4633 = vlog2.f32 %v1158_v14  ;;  %v1174_v14 = vmax.f32 %v406_v3, 1e-08  ;;  %v415_v39 = vld [vmem:[%s5912_s3 + $0x820] sm:$0xff] }
 0x12f   : > { %v4610_v32 = vpop.eup %4609  ;;  %3447 = vst [vmem:[%s5943_s16 + $0x6e0] sm:$0xff] %v2132_v25  ;;  %v2136_v33 = vmul.f32 0.6931472, %v4608_v28  ;;  %4635 = vlog2.f32 %v1159_v18  ;;  %v1175_v18 = vmax.f32 %v407_v7, 1e-08  ;;  %v416_v43 = vld [vmem:[%s5912_s3 + $0x828] sm:$0xff] }
 0x130   : > { %v4612_v36 = vpop.eup %4611  ;;  %3448 = vst [vmem:[%s5943_s16 + $0x6e8] sm:$0xff] %v2134_v29  ;;  %v2138_v37 = vmul.f32 0.6931472, %v4610_v32  ;;  %4637 = vlog2.f32 %v1160_v22  ;;  %v1176_v22 = vmax.f32 %v408_v11, 1e-08  ;;  %v417_v47 = vld [vmem:[%s5912_s3 + $0x830] sm:$0xff] }
 0x131   : > { %v4614_v40 = vpop.eup %4613  ;;  %3449 = vst [vmem:[%s5943_s16 + $0x6f0] sm:$0xff] %v2136_v33  ;;  %v2140_v41 = vmul.f32 0.6931472, %v4612_v36  ;;  %4639 = vlog2.f32 %v1161_v26  ;;  %v1177_v26 = vmax.f32 %v409_v15, 1e-08  ;;  %v418_v51 = vld [vmem:[%s5912_s3 + $0x838] sm:$0xff] }
 0x132   : > { %v4616_v44 = vpop.eup %4615  ;;  %3450 = vst [vmem:[%s5943_s16 + $0x6f8] sm:$0xff] %v2138_v37  ;;  %v2142_v45 = vmul.f32 0.6931472, %v4614_v40  ;;  %4641 = vlog2.f32 %v1162_v30  ;;  %v1178_v30 = vmax.f32 %v410_v19, 1e-08  ;;  %v419_v55 = vld [vmem:[%s5912_s3 + $0x840] sm:$0xff] }
 0x133   : > { %v4618_v48 = vpop.eup %4617  ;;  %3451 = vst [vmem:[%s5943_s16 + $0x700] sm:$0xff] %v2140_v41  ;;  %v2144_v49 = vmul.f32 0.6931472, %v4616_v44  ;;  %4643 = vlog2.f32 %v1163_v34  ;;  %v1179_v34 = vmax.f32 %v411_v23, 1e-08  ;;  %v420_v59 = vld [vmem:[%s5912_s3 + $0x848] sm:$0xff] }
 0x134   : > { %v4620_v52 = vpop.eup %4619  ;;  %3452 = vst [vmem:[%s5943_s16 + $0x708] sm:$0xff] %v2142_v45  ;;  %v2146_v53 = vmul.f32 0.6931472, %v4618_v48  ;;  %4645 = vlog2.f32 %v1164_v38  ;;  %v1180_v38 = vmax.f32 %v412_v27, 1e-08  ;;  %v421_v63 = vld [vmem:[%s5912_s3 + $0x850] sm:$0xff] }
 0x135   : > { %v4622_v56 = vpop.eup %4621  ;;  %3453 = vst [vmem:[%s5943_s16 + $0x710] sm:$0xff] %v2144_v49  ;;  %v2148_v57 = vmul.f32 0.6931472, %v4620_v52  ;;  %4647 = vlog2.f32 %v1165_v42  ;;  %v1181_v42 = vmax.f32 %v413_v31, 1e-08  ;;  %v422_v3 = vld [vmem:[%s5912_s3 + $0x858] sm:$0xff] }
 0x136   : > { %v4624_v60 = vpop.eup %4623  ;;  %3454 = vst [vmem:[%s5943_s16 + $0x718] sm:$0xff] %v2146_v53  ;;  %v2150_v61 = vmul.f32 0.6931472, %v4622_v56  ;;  %4649 = vlog2.f32 %v1166_v46  ;;  %v1182_v46 = vmax.f32 %v414_v35, 1e-08  ;;  %v423_v7 = vld [vmem:[%s5912_s3 + $0x860] sm:$0xff] }
 0x137   : > { %v4626_v0 = vpop.eup %4625  ;;  %3455 = vst [vmem:[%s5943_s16 + $0x720] sm:$0xff] %v2148_v57  ;;  %v2152_v1 = vmul.f32 0.6931472, %v4624_v60  ;;  %4651 = vlog2.f32 %v1167_v50  ;;  %v1183_v50 = vmax.f32 %v415_v39, 1e-08  ;;  %v424_v11 = vld [vmem:[%s5912_s3 + $0x868] sm:$0xff] }
 0x138   : > { %v4628_v4 = vpop.eup %4627  ;;  %3456 = vst [vmem:[%s5943_s16 + $0x728] sm:$0xff] %v2150_v61  ;;  %v2154_v5 = vmul.f32 0.6931472, %v4626_v0  ;;  %4653 = vlog2.f32 %v1168_v54  ;;  %v1184_v54 = vmax.f32 %v416_v43, 1e-08  ;;  %v425_v15 = vld [vmem:[%s5912_s3 + $0x870] sm:$0xff] }
 0x139   : > { %v4630_v8 = vpop.eup %4629  ;;  %3457 = vst [vmem:[%s5943_s16 + $0x730] sm:$0xff] %v2152_v1  ;;  %v2156_v9 = vmul.f32 0.6931472, %v4628_v4  ;;  %4655 = vlog2.f32 %v1169_v58  ;;  %v1185_v58 = vmax.f32 %v417_v47, 1e-08  ;;  %v426_v19 = vld [vmem:[%s5912_s3 + $0x878] sm:$0xff] }
 0x13a   : > { %v4632_v12 = vpop.eup %4631  ;;  %3458 = vst [vmem:[%s5943_s16 + $0x738] sm:$0xff] %v2154_v5  ;;  %v2158_v13 = vmul.f32 0.6931472, %v4630_v8  ;;  %4657 = vlog2.f32 %v1170_v62  ;;  %v1186_v62 = vmax.f32 %v418_v51, 1e-08  ;;  %v427_v23 = vld [vmem:[%s5912_s3 + $0x880] sm:$0xff] }
 0x13b   : > { %v4634_v16 = vpop.eup %4633  ;;  %3459 = vst [vmem:[%s5943_s16 + $0x740] sm:$0xff] %v2156_v9  ;;  %v2160_v17 = vmul.f32 0.6931472, %v4632_v12  ;;  %4659 = vlog2.f32 %v1171_v2  ;;  %v1187_v2 = vmax.f32 %v419_v55, 1e-08  ;;  %v428_v27 = vld [vmem:[%s5912_s3 + $0x888] sm:$0xff] }
 0x13c   : > { %v4636_v20 = vpop.eup %4635  ;;  %3460 = vst [vmem:[%s5943_s16 + $0x748] sm:$0xff] %v2158_v13  ;;  %v2162_v21 = vmul.f32 0.6931472, %v4634_v16  ;;  %4661 = vlog2.f32 %v1172_v6  ;;  %v1188_v6 = vmax.f32 %v420_v59, 1e-08  ;;  %v429_v31 = vld [vmem:[%s5912_s3 + $0x890] sm:$0xff] }
 0x13d   : > { %v4638_v24 = vpop.eup %4637  ;;  %3461 = vst [vmem:[%s5943_s16 + $0x750] sm:$0xff] %v2160_v17  ;;  %v2164_v25 = vmul.f32 0.6931472, %v4636_v20  ;;  %4663 = vlog2.f32 %v1173_v10  ;;  %v1189_v10 = vmax.f32 %v421_v63, 1e-08  ;;  %v430_v35 = vld [vmem:[%s5912_s3 + $0x898] sm:$0xff] }
 0x13e   : > { %v4640_v28 = vpop.eup %4639  ;;  %3462 = vst [vmem:[%s5943_s16 + $0x758] sm:$0xff] %v2162_v21  ;;  %v2166_v29 = vmul.f32 0.6931472, %v4638_v24  ;;  %4665 = vlog2.f32 %v1174_v14  ;;  %v1190_v14 = vmax.f32 %v422_v3, 1e-08  ;;  %v431_v39 = vld [vmem:[%s5912_s3 + $0x8a0] sm:$0xff] }
 0x13f   : > { %v4642_v32 = vpop.eup %4641  ;;  %3463 = vst [vmem:[%s5943_s16 + $0x760] sm:$0xff] %v2164_v25  ;;  %v2168_v33 = vmul.f32 0.6931472, %v4640_v28  ;;  %4667 = vlog2.f32 %v1175_v18  ;;  %v1191_v18 = vmax.f32 %v423_v7, 1e-08  ;;  %v432_v43 = vld [vmem:[%s5912_s3 + $0x8a8] sm:$0xff] }
 0x140   : > { %v4644_v36 = vpop.eup %4643  ;;  %3464 = vst [vmem:[%s5943_s16 + $0x768] sm:$0xff] %v2166_v29  ;;  %v2170_v37 = vmul.f32 0.6931472, %v4642_v32  ;;  %4669 = vlog2.f32 %v1176_v22  ;;  %v1192_v22 = vmax.f32 %v424_v11, 1e-08  ;;  %v433_v47 = vld [vmem:[%s5912_s3 + $0x8b0] sm:$0xff] }
 0x141   : > { %v4646_v40 = vpop.eup %4645  ;;  %3465 = vst [vmem:[%s5943_s16 + $0x770] sm:$0xff] %v2168_v33  ;;  %v2172_v41 = vmul.f32 0.6931472, %v4644_v36  ;;  %4671 = vlog2.f32 %v1177_v26  ;;  %v1193_v26 = vmax.f32 %v425_v15, 1e-08  ;;  %v434_v51 = vld [vmem:[%s5912_s3 + $0x8b8] sm:$0xff] }
 0x142   : > { %v4648_v44 = vpop.eup %4647  ;;  %3466 = vst [vmem:[%s5943_s16 + $0x778] sm:$0xff] %v2170_v37  ;;  %v2174_v45 = vmul.f32 0.6931472, %v4646_v40  ;;  %4673 = vlog2.f32 %v1178_v30  ;;  %v1194_v30 = vmax.f32 %v426_v19, 1e-08  ;;  %v435_v55 = vld [vmem:[%s5912_s3 + $0x8c0] sm:$0xff] }
 0x143   : > { %v4650_v48 = vpop.eup %4649  ;;  %3467 = vst [vmem:[%s5943_s16 + $0x780] sm:$0xff] %v2172_v41  ;;  %v2176_v49 = vmul.f32 0.6931472, %v4648_v44  ;;  %4675 = vlog2.f32 %v1179_v34  ;;  %v1195_v34 = vmax.f32 %v427_v23, 1e-08  ;;  %v436_v59 = vld [vmem:[%s5912_s3 + $0x8c8] sm:$0xff] }
 0x144   : > { %v4652_v52 = vpop.eup %4651  ;;  %3468 = vst [vmem:[%s5943_s16 + $0x788] sm:$0xff] %v2174_v45  ;;  %v2178_v53 = vmul.f32 0.6931472, %v4650_v48  ;;  %4677 = vlog2.f32 %v1180_v38  ;;  %v1196_v38 = vmax.f32 %v428_v27, 1e-08  ;;  %v437_v63 = vld [vmem:[%s5912_s3 + $0x8d0] sm:$0xff] }
 0x145   : > { %v4654_v56 = vpop.eup %4653  ;;  %3469 = vst [vmem:[%s5943_s16 + $0x790] sm:$0xff] %v2176_v49  ;;  %v2180_v57 = vmul.f32 0.6931472, %v4652_v52  ;;  %4679 = vlog2.f32 %v1181_v42  ;;  %v1197_v42 = vmax.f32 %v429_v31, 1e-08  ;;  %v438_v3 = vld [vmem:[%s5912_s3 + $0x8d8] sm:$0xff] }
 0x146   : > { %v4656_v60 = vpop.eup %4655  ;;  %3470 = vst [vmem:[%s5943_s16 + $0x798] sm:$0xff] %v2178_v53  ;;  %v2182_v61 = vmul.f32 0.6931472, %v4654_v56  ;;  %4681 = vlog2.f32 %v1182_v46  ;;  %v1198_v46 = vmax.f32 %v430_v35, 1e-08  ;;  %v439_v7 = vld [vmem:[%s5912_s3 + $0x8e0] sm:$0xff] }
 0x147   : > { %v4658_v0 = vpop.eup %4657  ;;  %3471 = vst [vmem:[%s5943_s16 + $0x7a0] sm:$0xff] %v2180_v57  ;;  %v2184_v1 = vmul.f32 0.6931472, %v4656_v60  ;;  %4683 = vlog2.f32 %v1183_v50  ;;  %v1199_v50 = vmax.f32 %v431_v39, 1e-08  ;;  %v440_v11 = vld [vmem:[%s5912_s3 + $0x8e8] sm:$0xff] }
 0x148   : > { %v4660_v4 = vpop.eup %4659  ;;  %3472 = vst [vmem:[%s5943_s16 + $0x7a8] sm:$0xff] %v2182_v61  ;;  %v2186_v5 = vmul.f32 0.6931472, %v4658_v0  ;;  %4685 = vlog2.f32 %v1184_v54  ;;  %v1200_v54 = vmax.f32 %v432_v43, 1e-08  ;;  %v441_v15 = vld [vmem:[%s5912_s3 + $0x8f0] sm:$0xff] }
 0x149   : > { %v4662_v8 = vpop.eup %4661  ;;  %3473 = vst [vmem:[%s5943_s16 + $0x7b0] sm:$0xff] %v2184_v1  ;;  %v2188_v9 = vmul.f32 0.6931472, %v4660_v4  ;;  %4687 = vlog2.f32 %v1185_v58  ;;  %v1201_v58 = vmax.f32 %v433_v47, 1e-08  ;;  %v442_v19 = vld [vmem:[%s5912_s3 + $0x8f8] sm:$0xff] }
 0x14a   : > { %v4664_v12 = vpop.eup %4663  ;;  %3474 = vst [vmem:[%s5943_s16 + $0x7b8] sm:$0xff] %v2186_v5  ;;  %v2190_v13 = vmul.f32 0.6931472, %v4662_v8  ;;  %4689 = vlog2.f32 %v1186_v62  ;;  %v1202_v62 = vmax.f32 %v434_v51, 1e-08  ;;  %v443_v23 = vld [vmem:[%s5912_s3 + $0x900] sm:$0xff] }
 0x14b   : > { %v4666_v16 = vpop.eup %4665  ;;  %3475 = vst [vmem:[%s5943_s16 + $0x7c0] sm:$0xff] %v2188_v9  ;;  %v2192_v17 = vmul.f32 0.6931472, %v4664_v12  ;;  %4691 = vlog2.f32 %v1187_v2  ;;  %v1203_v2 = vmax.f32 %v435_v55, 1e-08  ;;  %v444_v27 = vld [vmem:[%s5912_s3 + $0x908] sm:$0xff] }
 0x14c   : > { %v4668_v20 = vpop.eup %4667  ;;  %3476 = vst [vmem:[%s5943_s16 + $0x7c8] sm:$0xff] %v2190_v13  ;;  %v2194_v21 = vmul.f32 0.6931472, %v4666_v16  ;;  %4693 = vlog2.f32 %v1188_v6  ;;  %v1204_v6 = vmax.f32 %v436_v59, 1e-08  ;;  %v445_v31 = vld [vmem:[%s5912_s3 + $0x910] sm:$0xff] }
 0x14d   : > { %v4670_v24 = vpop.eup %4669  ;;  %3477 = vst [vmem:[%s5943_s16 + $0x7d0] sm:$0xff] %v2192_v17  ;;  %v2196_v25 = vmul.f32 0.6931472, %v4668_v20  ;;  %4695 = vlog2.f32 %v1189_v10  ;;  %v1205_v10 = vmax.f32 %v437_v63, 1e-08  ;;  %v446_v35 = vld [vmem:[%s5912_s3 + $0x918] sm:$0xff] }
 0x14e   : > { %v4672_v28 = vpop.eup %4671  ;;  %3478 = vst [vmem:[%s5943_s16 + $0x7d8] sm:$0xff] %v2194_v21  ;;  %v2198_v29 = vmul.f32 0.6931472, %v4670_v24  ;;  %4697 = vlog2.f32 %v1190_v14  ;;  %v1206_v14 = vmax.f32 %v438_v3, 1e-08  ;;  %v447_v39 = vld [vmem:[%s5912_s3 + $0x920] sm:$0xff] }
 0x14f   : > { %v4674_v32 = vpop.eup %4673  ;;  %3479 = vst [vmem:[%s5943_s16 + $0x7e0] sm:$0xff] %v2196_v25  ;;  %v2200_v33 = vmul.f32 0.6931472, %v4672_v28  ;;  %4699 = vlog2.f32 %v1191_v18  ;;  %v1207_v18 = vmax.f32 %v439_v7, 1e-08  ;;  %v448_v43 = vld [vmem:[%s5912_s3 + $0x928] sm:$0xff] }
 0x150   : > { %v4676_v36 = vpop.eup %4675  ;;  %3480 = vst [vmem:[%s5943_s16 + $0x7e8] sm:$0xff] %v2198_v29  ;;  %v2202_v37 = vmul.f32 0.6931472, %v4674_v32  ;;  %4701 = vlog2.f32 %v1192_v22  ;;  %v1208_v22 = vmax.f32 %v440_v11, 1e-08  ;;  %v449_v47 = vld [vmem:[%s5912_s3 + $0x930] sm:$0xff] }
 0x151   : > { %v4678_v40 = vpop.eup %4677  ;;  %3481 = vst [vmem:[%s5943_s16 + $0x7f0] sm:$0xff] %v2200_v33  ;;  %v2204_v41 = vmul.f32 0.6931472, %v4676_v36  ;;  %4703 = vlog2.f32 %v1193_v26  ;;  %v1209_v26 = vmax.f32 %v441_v15, 1e-08  ;;  %v450_v51 = vld [vmem:[%s5912_s3 + $0x938] sm:$0xff] }
 0x152   : > { %v4680_v44 = vpop.eup %4679  ;;  %3482 = vst [vmem:[%s5943_s16 + $0x7f8] sm:$0xff] %v2202_v37  ;;  %v2206_v45 = vmul.f32 0.6931472, %v4678_v40  ;;  %4705 = vlog2.f32 %v1194_v30  ;;  %v1210_v30 = vmax.f32 %v442_v19, 1e-08  ;;  %v451_v55 = vld [vmem:[%s5912_s3 + $0x940] sm:$0xff] }
 0x153   : > { %v4682_v48 = vpop.eup %4681  ;;  %3483 = vst [vmem:[%s5943_s16 + $0x800] sm:$0xff] %v2204_v41  ;;  %v2208_v49 = vmul.f32 0.6931472, %v4680_v44  ;;  %4707 = vlog2.f32 %v1195_v34  ;;  %v1211_v34 = vmax.f32 %v443_v23, 1e-08  ;;  %v452_v59 = vld [vmem:[%s5912_s3 + $0x948] sm:$0xff] }
 0x154   : > { %v4684_v52 = vpop.eup %4683  ;;  %3484 = vst [vmem:[%s5943_s16 + $0x808] sm:$0xff] %v2206_v45  ;;  %v2210_v53 = vmul.f32 0.6931472, %v4682_v48  ;;  %4709 = vlog2.f32 %v1196_v38  ;;  %v1212_v38 = vmax.f32 %v444_v27, 1e-08  ;;  %v453_v63 = vld [vmem:[%s5912_s3 + $0x950] sm:$0xff] }
 0x155   : > { %v4686_v56 = vpop.eup %4685  ;;  %3485 = vst [vmem:[%s5943_s16 + $0x810] sm:$0xff] %v2208_v49  ;;  %v2212_v57 = vmul.f32 0.6931472, %v4684_v52  ;;  %4711 = vlog2.f32 %v1197_v42  ;;  %v1213_v42 = vmax.f32 %v445_v31, 1e-08  ;;  %v454_v3 = vld [vmem:[%s5912_s3 + $0x958] sm:$0xff] }
 0x156   : > { %v4688_v60 = vpop.eup %4687  ;;  %3486 = vst [vmem:[%s5943_s16 + $0x818] sm:$0xff] %v2210_v53  ;;  %v2214_v61 = vmul.f32 0.6931472, %v4686_v56  ;;  %4713 = vlog2.f32 %v1198_v46  ;;  %v1214_v46 = vmax.f32 %v446_v35, 1e-08  ;;  %v455_v7 = vld [vmem:[%s5912_s3 + $0x960] sm:$0xff] }
 0x157   : > { %v4690_v0 = vpop.eup %4689  ;;  %3487 = vst [vmem:[%s5943_s16 + $0x820] sm:$0xff] %v2212_v57  ;;  %v2216_v1 = vmul.f32 0.6931472, %v4688_v60  ;;  %4715 = vlog2.f32 %v1199_v50  ;;  %v1215_v50 = vmax.f32 %v447_v39, 1e-08  ;;  %v456_v11 = vld [vmem:[%s5912_s3 + $0x968] sm:$0xff] }
 0x158   : > { %v4692_v4 = vpop.eup %4691  ;;  %3488 = vst [vmem:[%s5943_s16 + $0x828] sm:$0xff] %v2214_v61  ;;  %v2218_v5 = vmul.f32 0.6931472, %v4690_v0  ;;  %4717 = vlog2.f32 %v1200_v54  ;;  %v1216_v54 = vmax.f32 %v448_v43, 1e-08  ;;  %v457_v15 = vld [vmem:[%s5912_s3 + $0x970] sm:$0xff] }
 0x159   : > { %v4694_v8 = vpop.eup %4693  ;;  %3489 = vst [vmem:[%s5943_s16 + $0x830] sm:$0xff] %v2216_v1  ;;  %v2220_v9 = vmul.f32 0.6931472, %v4692_v4  ;;  %4719 = vlog2.f32 %v1201_v58  ;;  %v1217_v58 = vmax.f32 %v449_v47, 1e-08  ;;  %v458_v19 = vld [vmem:[%s5912_s3 + $0x978] sm:$0xff] }
 0x15a   : > { %v4696_v12 = vpop.eup %4695  ;;  %3490 = vst [vmem:[%s5943_s16 + $0x838] sm:$0xff] %v2218_v5  ;;  %v2222_v13 = vmul.f32 0.6931472, %v4694_v8  ;;  %4721 = vlog2.f32 %v1202_v62  ;;  %v1218_v62 = vmax.f32 %v450_v51, 1e-08  ;;  %v459_v23 = vld [vmem:[%s5912_s3 + $0x980] sm:$0xff] }
 0x15b   : > { %v4698_v16 = vpop.eup %4697  ;;  %3491 = vst [vmem:[%s5943_s16 + $0x840] sm:$0xff] %v2220_v9  ;;  %v2224_v17 = vmul.f32 0.6931472, %v4696_v12  ;;  %4723 = vlog2.f32 %v1203_v2  ;;  %v1219_v2 = vmax.f32 %v451_v55, 1e-08  ;;  %v460_v27 = vld [vmem:[%s5912_s3 + $0x988] sm:$0xff] }
 0x15c   : > { %v4700_v20 = vpop.eup %4699  ;;  %3492 = vst [vmem:[%s5943_s16 + $0x848] sm:$0xff] %v2222_v13  ;;  %v2226_v21 = vmul.f32 0.6931472, %v4698_v16  ;;  %4725 = vlog2.f32 %v1204_v6  ;;  %v1220_v6 = vmax.f32 %v452_v59, 1e-08  ;;  %v461_v31 = vld [vmem:[%s5912_s3 + $0x990] sm:$0xff] }
 0x15d   : > { %v4702_v24 = vpop.eup %4701  ;;  %3493 = vst [vmem:[%s5943_s16 + $0x850] sm:$0xff] %v2224_v17  ;;  %v2228_v25 = vmul.f32 0.6931472, %v4700_v20  ;;  %4727 = vlog2.f32 %v1205_v10  ;;  %v1221_v10 = vmax.f32 %v453_v63, 1e-08  ;;  %v462_v35 = vld [vmem:[%s5912_s3 + $0x998] sm:$0xff] }
 0x15e   : > { %v4704_v28 = vpop.eup %4703  ;;  %3494 = vst [vmem:[%s5943_s16 + $0x858] sm:$0xff] %v2226_v21  ;;  %v2230_v29 = vmul.f32 0.6931472, %v4702_v24  ;;  %4729 = vlog2.f32 %v1206_v14  ;;  %v1222_v14 = vmax.f32 %v454_v3, 1e-08  ;;  %v463_v39 = vld [vmem:[%s5912_s3 + $0x9a0] sm:$0xff] }
 0x15f   : > { %v4706_v32 = vpop.eup %4705  ;;  %3495 = vst [vmem:[%s5943_s16 + $0x860] sm:$0xff] %v2228_v25  ;;  %v2232_v33 = vmul.f32 0.6931472, %v4704_v28  ;;  %4731 = vlog2.f32 %v1207_v18  ;;  %v1223_v18 = vmax.f32 %v455_v7, 1e-08  ;;  %v464_v43 = vld [vmem:[%s5912_s3 + $0x9a8] sm:$0xff] }
 0x160   : > { %v4708_v36 = vpop.eup %4707  ;;  %3496 = vst [vmem:[%s5943_s16 + $0x868] sm:$0xff] %v2230_v29  ;;  %v2234_v37 = vmul.f32 0.6931472, %v4706_v32  ;;  %4733 = vlog2.f32 %v1208_v22  ;;  %v1224_v22 = vmax.f32 %v456_v11, 1e-08  ;;  %v465_v47 = vld [vmem:[%s5912_s3 + $0x9b0] sm:$0xff] }
 0x161   : > { %v4710_v40 = vpop.eup %4709  ;;  %3497 = vst [vmem:[%s5943_s16 + $0x870] sm:$0xff] %v2232_v33  ;;  %v2236_v41 = vmul.f32 0.6931472, %v4708_v36  ;;  %4735 = vlog2.f32 %v1209_v26  ;;  %v1225_v26 = vmax.f32 %v457_v15, 1e-08  ;;  %v466_v51 = vld [vmem:[%s5912_s3 + $0x9b8] sm:$0xff] }
 0x162   : > { %v4712_v44 = vpop.eup %4711  ;;  %3498 = vst [vmem:[%s5943_s16 + $0x878] sm:$0xff] %v2234_v37  ;;  %v2238_v45 = vmul.f32 0.6931472, %v4710_v40  ;;  %4737 = vlog2.f32 %v1210_v30  ;;  %v1226_v30 = vmax.f32 %v458_v19, 1e-08  ;;  %v467_v55 = vld [vmem:[%s5912_s3 + $0x9c0] sm:$0xff] }
 0x163   : > { %v4714_v48 = vpop.eup %4713  ;;  %3499 = vst [vmem:[%s5943_s16 + $0x880] sm:$0xff] %v2236_v41  ;;  %v2240_v49 = vmul.f32 0.6931472, %v4712_v44  ;;  %4739 = vlog2.f32 %v1211_v34  ;;  %v1227_v34 = vmax.f32 %v459_v23, 1e-08  ;;  %v468_v59 = vld [vmem:[%s5912_s3 + $0x9c8] sm:$0xff] }
 0x164   : > { %v4716_v52 = vpop.eup %4715  ;;  %3500 = vst [vmem:[%s5943_s16 + $0x888] sm:$0xff] %v2238_v45  ;;  %v2242_v53 = vmul.f32 0.6931472, %v4714_v48  ;;  %4741 = vlog2.f32 %v1212_v38  ;;  %v1228_v38 = vmax.f32 %v460_v27, 1e-08  ;;  %v469_v63 = vld [vmem:[%s5912_s3 + $0x9d0] sm:$0xff] }
 0x165   : > { %v4718_v56 = vpop.eup %4717  ;;  %3501 = vst [vmem:[%s5943_s16 + $0x890] sm:$0xff] %v2240_v49  ;;  %v2244_v57 = vmul.f32 0.6931472, %v4716_v52  ;;  %4743 = vlog2.f32 %v1213_v42  ;;  %v1229_v42 = vmax.f32 %v461_v31, 1e-08  ;;  %v470_v3 = vld [vmem:[%s5912_s3 + $0x9d8] sm:$0xff] }
 0x166   : > { %v4720_v60 = vpop.eup %4719  ;;  %3502 = vst [vmem:[%s5943_s16 + $0x898] sm:$0xff] %v2242_v53  ;;  %v2246_v61 = vmul.f32 0.6931472, %v4718_v56  ;;  %4745 = vlog2.f32 %v1214_v46  ;;  %v1230_v46 = vmax.f32 %v462_v35, 1e-08  ;;  %v471_v7 = vld [vmem:[%s5912_s3 + $0x9e0] sm:$0xff] }
 0x167   : > { %v4722_v0 = vpop.eup %4721  ;;  %3503 = vst [vmem:[%s5943_s16 + $0x8a0] sm:$0xff] %v2244_v57  ;;  %v2248_v1 = vmul.f32 0.6931472, %v4720_v60  ;;  %4747 = vlog2.f32 %v1215_v50  ;;  %v1231_v50 = vmax.f32 %v463_v39, 1e-08  ;;  %v472_v11 = vld [vmem:[%s5912_s3 + $0x9e8] sm:$0xff] }
 0x168   : > { %v4724_v4 = vpop.eup %4723  ;;  %3504 = vst [vmem:[%s5943_s16 + $0x8a8] sm:$0xff] %v2246_v61  ;;  %v2250_v5 = vmul.f32 0.6931472, %v4722_v0  ;;  %4749 = vlog2.f32 %v1216_v54  ;;  %v1232_v54 = vmax.f32 %v464_v43, 1e-08  ;;  %v473_v15 = vld [vmem:[%s5912_s3 + $0x9f0] sm:$0xff] }
 0x169   : > { %v4726_v8 = vpop.eup %4725  ;;  %3505 = vst [vmem:[%s5943_s16 + $0x8b0] sm:$0xff] %v2248_v1  ;;  %v2252_v9 = vmul.f32 0.6931472, %v4724_v4  ;;  %4751 = vlog2.f32 %v1217_v58  ;;  %v1233_v58 = vmax.f32 %v465_v47, 1e-08  ;;  %v474_v19 = vld [vmem:[%s5912_s3 + $0x9f8] sm:$0xff] }
 0x16a   : > { %v4728_v12 = vpop.eup %4727  ;;  %3506 = vst [vmem:[%s5943_s16 + $0x8b8] sm:$0xff] %v2250_v5  ;;  %v2254_v13 = vmul.f32 0.6931472, %v4726_v8  ;;  %4753 = vlog2.f32 %v1218_v62  ;;  %v1234_v62 = vmax.f32 %v466_v51, 1e-08  ;;  %v475_v23 = vld [vmem:[%s5912_s3 + $0xa00] sm:$0xff] }
 0x16b   : > { %v4730_v16 = vpop.eup %4729  ;;  %3507 = vst [vmem:[%s5943_s16 + $0x8c0] sm:$0xff] %v2252_v9  ;;  %v2256_v17 = vmul.f32 0.6931472, %v4728_v12  ;;  %4755 = vlog2.f32 %v1219_v2  ;;  %v1235_v2 = vmax.f32 %v467_v55, 1e-08  ;;  %v476_v27 = vld [vmem:[%s5912_s3 + $0xa08] sm:$0xff] }
 0x16c   : > { %v4732_v20 = vpop.eup %4731  ;;  %3508 = vst [vmem:[%s5943_s16 + $0x8c8] sm:$0xff] %v2254_v13  ;;  %v2258_v21 = vmul.f32 0.6931472, %v4730_v16  ;;  %4757 = vlog2.f32 %v1220_v6  ;;  %v1236_v6 = vmax.f32 %v468_v59, 1e-08  ;;  %v477_v31 = vld [vmem:[%s5912_s3 + $0xa10] sm:$0xff] }
 0x16d   : > { %v4734_v24 = vpop.eup %4733  ;;  %3509 = vst [vmem:[%s5943_s16 + $0x8d0] sm:$0xff] %v2256_v17  ;;  %v2260_v25 = vmul.f32 0.6931472, %v4732_v20  ;;  %4759 = vlog2.f32 %v1221_v10  ;;  %v1237_v10 = vmax.f32 %v469_v63, 1e-08  ;;  %v478_v35 = vld [vmem:[%s5912_s3 + $0xa18] sm:$0xff] }
 0x16e   : > { %v4736_v28 = vpop.eup %4735  ;;  %3510 = vst [vmem:[%s5943_s16 + $0x8d8] sm:$0xff] %v2258_v21  ;;  %v2262_v29 = vmul.f32 0.6931472, %v4734_v24  ;;  %4761 = vlog2.f32 %v1222_v14  ;;  %v1238_v14 = vmax.f32 %v470_v3, 1e-08  ;;  %v479_v39 = vld [vmem:[%s5912_s3 + $0xa20] sm:$0xff] }
 0x16f   : > { %v4738_v32 = vpop.eup %4737  ;;  %3511 = vst [vmem:[%s5943_s16 + $0x8e0] sm:$0xff] %v2260_v25  ;;  %v2264_v33 = vmul.f32 0.6931472, %v4736_v28  ;;  %4763 = vlog2.f32 %v1223_v18  ;;  %v1239_v18 = vmax.f32 %v471_v7, 1e-08  ;;  %v480_v43 = vld [vmem:[%s5912_s3 + $0xa28] sm:$0xff] }
 0x170   : > { %v4740_v36 = vpop.eup %4739  ;;  %3512 = vst [vmem:[%s5943_s16 + $0x8e8] sm:$0xff] %v2262_v29  ;;  %v2266_v37 = vmul.f32 0.6931472, %v4738_v32  ;;  %4765 = vlog2.f32 %v1224_v22  ;;  %v1240_v22 = vmax.f32 %v472_v11, 1e-08  ;;  %v481_v47 = vld [vmem:[%s5912_s3 + $0xa30] sm:$0xff] }
 0x171   : > { %v4742_v40 = vpop.eup %4741  ;;  %3513 = vst [vmem:[%s5943_s16 + $0x8f0] sm:$0xff] %v2264_v33  ;;  %v2268_v41 = vmul.f32 0.6931472, %v4740_v36  ;;  %4767 = vlog2.f32 %v1225_v26  ;;  %v1241_v26 = vmax.f32 %v473_v15, 1e-08  ;;  %v482_v51 = vld [vmem:[%s5912_s3 + $0xa38] sm:$0xff] }
 0x172   : > { %v4744_v44 = vpop.eup %4743  ;;  %3514 = vst [vmem:[%s5943_s16 + $0x8f8] sm:$0xff] %v2266_v37  ;;  %v2270_v45 = vmul.f32 0.6931472, %v4742_v40  ;;  %4769 = vlog2.f32 %v1226_v30  ;;  %v1242_v30 = vmax.f32 %v474_v19, 1e-08  ;;  %v483_v55 = vld [vmem:[%s5912_s3 + $0xa40] sm:$0xff] }
 0x173   : > { %v4746_v48 = vpop.eup %4745  ;;  %3515 = vst [vmem:[%s5943_s16 + $0x900] sm:$0xff] %v2268_v41  ;;  %v2272_v49 = vmul.f32 0.6931472, %v4744_v44  ;;  %4771 = vlog2.f32 %v1227_v34  ;;  %v1243_v34 = vmax.f32 %v475_v23, 1e-08  ;;  %v484_v59 = vld [vmem:[%s5912_s3 + $0xa48] sm:$0xff] }
 0x174   : > { %v4748_v52 = vpop.eup %4747  ;;  %3516 = vst [vmem:[%s5943_s16 + $0x908] sm:$0xff] %v2270_v45  ;;  %v2274_v53 = vmul.f32 0.6931472, %v4746_v48  ;;  %4773 = vlog2.f32 %v1228_v38  ;;  %v1244_v38 = vmax.f32 %v476_v27, 1e-08  ;;  %v485_v63 = vld [vmem:[%s5912_s3 + $0xa50] sm:$0xff] }
 0x175   : > { %v4750_v56 = vpop.eup %4749  ;;  %3517 = vst [vmem:[%s5943_s16 + $0x910] sm:$0xff] %v2272_v49  ;;  %v2276_v57 = vmul.f32 0.6931472, %v4748_v52  ;;  %4775 = vlog2.f32 %v1229_v42  ;;  %v1245_v42 = vmax.f32 %v477_v31, 1e-08  ;;  %v486_v3 = vld [vmem:[%s5912_s3 + $0xa58] sm:$0xff] }
 0x176   : > { %v4752_v60 = vpop.eup %4751  ;;  %3518 = vst [vmem:[%s5943_s16 + $0x918] sm:$0xff] %v2274_v53  ;;  %v2278_v61 = vmul.f32 0.6931472, %v4750_v56  ;;  %4777 = vlog2.f32 %v1230_v46  ;;  %v1246_v46 = vmax.f32 %v478_v35, 1e-08  ;;  %v487_v7 = vld [vmem:[%s5912_s3 + $0xa60] sm:$0xff] }
 0x177   : > { %v4754_v0 = vpop.eup %4753  ;;  %3519 = vst [vmem:[%s5943_s16 + $0x920] sm:$0xff] %v2276_v57  ;;  %v2280_v1 = vmul.f32 0.6931472, %v4752_v60  ;;  %4779 = vlog2.f32 %v1231_v50  ;;  %v1247_v50 = vmax.f32 %v479_v39, 1e-08  ;;  %v488_v11 = vld [vmem:[%s5912_s3 + $0xa68] sm:$0xff] }
 0x178   : > { %v4756_v4 = vpop.eup %4755  ;;  %3520 = vst [vmem:[%s5943_s16 + $0x928] sm:$0xff] %v2278_v61  ;;  %v2282_v5 = vmul.f32 0.6931472, %v4754_v0  ;;  %4781 = vlog2.f32 %v1232_v54  ;;  %v1248_v54 = vmax.f32 %v480_v43, 1e-08  ;;  %v489_v15 = vld [vmem:[%s5912_s3 + $0xa70] sm:$0xff] }
 0x179   : > { %v4758_v8 = vpop.eup %4757  ;;  %3521 = vst [vmem:[%s5943_s16 + $0x930] sm:$0xff] %v2280_v1  ;;  %v2284_v9 = vmul.f32 0.6931472, %v4756_v4  ;;  %4783 = vlog2.f32 %v1233_v58  ;;  %v1249_v58 = vmax.f32 %v481_v47, 1e-08  ;;  %v490_v19 = vld [vmem:[%s5912_s3 + $0xa78] sm:$0xff] }
 0x17a   : > { %v4760_v12 = vpop.eup %4759  ;;  %3522 = vst [vmem:[%s5943_s16 + $0x938] sm:$0xff] %v2282_v5  ;;  %v2286_v13 = vmul.f32 0.6931472, %v4758_v8  ;;  %4785 = vlog2.f32 %v1234_v62  ;;  %v1250_v62 = vmax.f32 %v482_v51, 1e-08  ;;  %v491_v23 = vld [vmem:[%s5912_s3 + $0xa80] sm:$0xff] }
 0x17b   : > { %v4762_v16 = vpop.eup %4761  ;;  %3523 = vst [vmem:[%s5943_s16 + $0x940] sm:$0xff] %v2284_v9  ;;  %v2288_v17 = vmul.f32 0.6931472, %v4760_v12  ;;  %4787 = vlog2.f32 %v1235_v2  ;;  %v1251_v2 = vmax.f32 %v483_v55, 1e-08  ;;  %v492_v27 = vld [vmem:[%s5912_s3 + $0xa88] sm:$0xff] }
 0x17c   : > { %v4764_v20 = vpop.eup %4763  ;;  %3524 = vst [vmem:[%s5943_s16 + $0x948] sm:$0xff] %v2286_v13  ;;  %v2290_v21 = vmul.f32 0.6931472, %v4762_v16  ;;  %4789 = vlog2.f32 %v1236_v6  ;;  %v1252_v6 = vmax.f32 %v484_v59, 1e-08  ;;  %v493_v31 = vld [vmem:[%s5912_s3 + $0xa90] sm:$0xff] }
 0x17d   : > { %v4766_v24 = vpop.eup %4765  ;;  %3525 = vst [vmem:[%s5943_s16 + $0x950] sm:$0xff] %v2288_v17  ;;  %v2292_v25 = vmul.f32 0.6931472, %v4764_v20  ;;  %4791 = vlog2.f32 %v1237_v10  ;;  %v1253_v10 = vmax.f32 %v485_v63, 1e-08  ;;  %v494_v35 = vld [vmem:[%s5912_s3 + $0xa98] sm:$0xff] }
 0x17e   : > { %v4768_v28 = vpop.eup %4767  ;;  %3526 = vst [vmem:[%s5943_s16 + $0x958] sm:$0xff] %v2290_v21  ;;  %v2294_v29 = vmul.f32 0.6931472, %v4766_v24  ;;  %4793 = vlog2.f32 %v1238_v14  ;;  %v1254_v14 = vmax.f32 %v486_v3, 1e-08  ;;  %v495_v39 = vld [vmem:[%s5912_s3 + $0xaa0] sm:$0xff] }
 0x17f   : > { %v4770_v32 = vpop.eup %4769  ;;  %3527 = vst [vmem:[%s5943_s16 + $0x960] sm:$0xff] %v2292_v25  ;;  %v2296_v33 = vmul.f32 0.6931472, %v4768_v28  ;;  %4795 = vlog2.f32 %v1239_v18  ;;  %v1255_v18 = vmax.f32 %v487_v7, 1e-08  ;;  %v496_v43 = vld [vmem:[%s5912_s3 + $0xaa8] sm:$0xff] }
 0x180   : > { %v4772_v36 = vpop.eup %4771  ;;  %3528 = vst [vmem:[%s5943_s16 + $0x968] sm:$0xff] %v2294_v29  ;;  %v2298_v37 = vmul.f32 0.6931472, %v4770_v32  ;;  %4797 = vlog2.f32 %v1240_v22  ;;  %v1256_v22 = vmax.f32 %v488_v11, 1e-08  ;;  %v497_v47 = vld [vmem:[%s5912_s3 + $0xab0] sm:$0xff] }
 0x181   : > { %v4774_v40 = vpop.eup %4773  ;;  %3529 = vst [vmem:[%s5943_s16 + $0x970] sm:$0xff] %v2296_v33  ;;  %v2300_v41 = vmul.f32 0.6931472, %v4772_v36  ;;  %4799 = vlog2.f32 %v1241_v26  ;;  %v1257_v26 = vmax.f32 %v489_v15, 1e-08  ;;  %v498_v51 = vld [vmem:[%s5912_s3 + $0xab8] sm:$0xff] }
 0x182   : > { %v4776_v44 = vpop.eup %4775  ;;  %3530 = vst [vmem:[%s5943_s16 + $0x978] sm:$0xff] %v2298_v37  ;;  %v2302_v45 = vmul.f32 0.6931472, %v4774_v40  ;;  %4801 = vlog2.f32 %v1242_v30  ;;  %v1258_v30 = vmax.f32 %v490_v19, 1e-08  ;;  %v499_v55 = vld [vmem:[%s5912_s3 + $0xac0] sm:$0xff] }
 0x183   : > { %v4778_v48 = vpop.eup %4777  ;;  %3531 = vst [vmem:[%s5943_s16 + $0x980] sm:$0xff] %v2300_v41  ;;  %v2304_v49 = vmul.f32 0.6931472, %v4776_v44  ;;  %4803 = vlog2.f32 %v1243_v34  ;;  %v1259_v34 = vmax.f32 %v491_v23, 1e-08  ;;  %v500_v59 = vld [vmem:[%s5912_s3 + $0xac8] sm:$0xff] }
 0x184   : > { %v4780_v52 = vpop.eup %4779  ;;  %3532 = vst [vmem:[%s5943_s16 + $0x988] sm:$0xff] %v2302_v45  ;;  %v2306_v53 = vmul.f32 0.6931472, %v4778_v48  ;;  %4805 = vlog2.f32 %v1244_v38  ;;  %v1260_v38 = vmax.f32 %v492_v27, 1e-08  ;;  %v501_v63 = vld [vmem:[%s5912_s3 + $0xad0] sm:$0xff] }
 0x185   : > { %v4782_v56 = vpop.eup %4781  ;;  %3533 = vst [vmem:[%s5943_s16 + $0x990] sm:$0xff] %v2304_v49  ;;  %v2308_v57 = vmul.f32 0.6931472, %v4780_v52  ;;  %4807 = vlog2.f32 %v1245_v42  ;;  %v1261_v42 = vmax.f32 %v493_v31, 1e-08  ;;  %v502_v3 = vld [vmem:[%s5912_s3 + $0xad8] sm:$0xff] }
 0x186   : > { %v4784_v60 = vpop.eup %4783  ;;  %3534 = vst [vmem:[%s5943_s16 + $0x998] sm:$0xff] %v2306_v53  ;;  %v2310_v61 = vmul.f32 0.6931472, %v4782_v56  ;;  %4809 = vlog2.f32 %v1246_v46  ;;  %v1262_v46 = vmax.f32 %v494_v35, 1e-08  ;;  %v503_v7 = vld [vmem:[%s5912_s3 + $0xae0] sm:$0xff] }
 0x187   : > { %v4786_v0 = vpop.eup %4785  ;;  %3535 = vst [vmem:[%s5943_s16 + $0x9a0] sm:$0xff] %v2308_v57  ;;  %v2312_v1 = vmul.f32 0.6931472, %v4784_v60  ;;  %4811 = vlog2.f32 %v1247_v50  ;;  %v1263_v50 = vmax.f32 %v495_v39, 1e-08  ;;  %v504_v11 = vld [vmem:[%s5912_s3 + $0xae8] sm:$0xff] }
 0x188   : > { %v4788_v4 = vpop.eup %4787  ;;  %3536 = vst [vmem:[%s5943_s16 + $0x9a8] sm:$0xff] %v2310_v61  ;;  %v2314_v5 = vmul.f32 0.6931472, %v4786_v0  ;;  %4813 = vlog2.f32 %v1248_v54  ;;  %v1264_v54 = vmax.f32 %v496_v43, 1e-08  ;;  %v505_v15 = vld [vmem:[%s5912_s3 + $0xaf0] sm:$0xff] }
 0x189   : > { %v4790_v8 = vpop.eup %4789  ;;  %3537 = vst [vmem:[%s5943_s16 + $0x9b0] sm:$0xff] %v2312_v1  ;;  %v2316_v9 = vmul.f32 0.6931472, %v4788_v4  ;;  %4815 = vlog2.f32 %v1249_v58  ;;  %v1265_v58 = vmax.f32 %v497_v47, 1e-08  ;;  %v506_v19 = vld [vmem:[%s5912_s3 + $0xaf8] sm:$0xff] }
 0x18a   : > { %v4792_v12 = vpop.eup %4791  ;;  %3538 = vst [vmem:[%s5943_s16 + $0x9b8] sm:$0xff] %v2314_v5  ;;  %v2318_v13 = vmul.f32 0.6931472, %v4790_v8  ;;  %4817 = vlog2.f32 %v1250_v62  ;;  %v1266_v62 = vmax.f32 %v498_v51, 1e-08  ;;  %v507_v23 = vld [vmem:[%s5912_s3 + $0xb00] sm:$0xff] }
 0x18b   : > { %v4794_v16 = vpop.eup %4793  ;;  %3539 = vst [vmem:[%s5943_s16 + $0x9c0] sm:$0xff] %v2316_v9  ;;  %v2320_v17 = vmul.f32 0.6931472, %v4792_v12  ;;  %4819 = vlog2.f32 %v1251_v2  ;;  %v1267_v2 = vmax.f32 %v499_v55, 1e-08  ;;  %v508_v27 = vld [vmem:[%s5912_s3 + $0xb08] sm:$0xff] }
 0x18c   : > { %v4796_v20 = vpop.eup %4795  ;;  %3540 = vst [vmem:[%s5943_s16 + $0x9c8] sm:$0xff] %v2318_v13  ;;  %v2322_v21 = vmul.f32 0.6931472, %v4794_v16  ;;  %4821 = vlog2.f32 %v1252_v6  ;;  %v1268_v6 = vmax.f32 %v500_v59, 1e-08  ;;  %v509_v31 = vld [vmem:[%s5912_s3 + $0xb10] sm:$0xff] }
 0x18d   : > { %v4798_v24 = vpop.eup %4797  ;;  %3541 = vst [vmem:[%s5943_s16 + $0x9d0] sm:$0xff] %v2320_v17  ;;  %v2324_v25 = vmul.f32 0.6931472, %v4796_v20  ;;  %4823 = vlog2.f32 %v1253_v10  ;;  %v1269_v10 = vmax.f32 %v501_v63, 1e-08  ;;  %v510_v35 = vld [vmem:[%s5912_s3 + $0xb18] sm:$0xff] }
 0x18e   : > { %v4800_v28 = vpop.eup %4799  ;;  %3542 = vst [vmem:[%s5943_s16 + $0x9d8] sm:$0xff] %v2322_v21  ;;  %v2326_v29 = vmul.f32 0.6931472, %v4798_v24  ;;  %4825 = vlog2.f32 %v1254_v14  ;;  %v1270_v14 = vmax.f32 %v502_v3, 1e-08  ;;  %v511_v39 = vld [vmem:[%s5912_s3 + $0xb20] sm:$0xff] }
 0x18f   : > { %v4802_v32 = vpop.eup %4801  ;;  %3543 = vst [vmem:[%s5943_s16 + $0x9e0] sm:$0xff] %v2324_v25  ;;  %v2328_v33 = vmul.f32 0.6931472, %v4800_v28  ;;  %4827 = vlog2.f32 %v1255_v18  ;;  %v1271_v18 = vmax.f32 %v503_v7, 1e-08  ;;  %v512_v43 = vld [vmem:[%s5912_s3 + $0xb28] sm:$0xff] }
 0x190   : > { %v4804_v36 = vpop.eup %4803  ;;  %3544 = vst [vmem:[%s5943_s16 + $0x9e8] sm:$0xff] %v2326_v29  ;;  %v2330_v37 = vmul.f32 0.6931472, %v4802_v32  ;;  %4829 = vlog2.f32 %v1256_v22  ;;  %v1272_v22 = vmax.f32 %v504_v11, 1e-08  ;;  %v513_v47 = vld [vmem:[%s5912_s3 + $0xb30] sm:$0xff] }
 0x191   : > { %v4806_v40 = vpop.eup %4805  ;;  %3545 = vst [vmem:[%s5943_s16 + $0x9f0] sm:$0xff] %v2328_v33  ;;  %v2332_v41 = vmul.f32 0.6931472, %v4804_v36  ;;  %4831 = vlog2.f32 %v1257_v26  ;;  %v1273_v26 = vmax.f32 %v505_v15, 1e-08  ;;  %v514_v51 = vld [vmem:[%s5912_s3 + $0xb38] sm:$0xff] }
 0x192   : > { %v4808_v44 = vpop.eup %4807  ;;  %3546 = vst [vmem:[%s5943_s16 + $0x9f8] sm:$0xff] %v2330_v37  ;;  %v2334_v45 = vmul.f32 0.6931472, %v4806_v40  ;;  %4833 = vlog2.f32 %v1258_v30  ;;  %v1274_v30 = vmax.f32 %v506_v19, 1e-08  ;;  %v515_v55 = vld [vmem:[%s5912_s3 + $0xb40] sm:$0xff] }
 0x193   : > { %v4810_v48 = vpop.eup %4809  ;;  %3547 = vst [vmem:[%s5943_s16 + $0xa00] sm:$0xff] %v2332_v41  ;;  %v2336_v49 = vmul.f32 0.6931472, %v4808_v44  ;;  %4835 = vlog2.f32 %v1259_v34  ;;  %v1275_v34 = vmax.f32 %v507_v23, 1e-08  ;;  %v516_v59 = vld [vmem:[%s5912_s3 + $0xb48] sm:$0xff] }
 0x194   : > { %v4812_v52 = vpop.eup %4811  ;;  %3548 = vst [vmem:[%s5943_s16 + $0xa08] sm:$0xff] %v2334_v45  ;;  %v2338_v53 = vmul.f32 0.6931472, %v4810_v48  ;;  %4837 = vlog2.f32 %v1260_v38  ;;  %v1276_v38 = vmax.f32 %v508_v27, 1e-08  ;;  %v517_v63 = vld [vmem:[%s5912_s3 + $0xb50] sm:$0xff] }
 0x195   : > { %v4814_v56 = vpop.eup %4813  ;;  %3549 = vst [vmem:[%s5943_s16 + $0xa10] sm:$0xff] %v2336_v49  ;;  %v2340_v57 = vmul.f32 0.6931472, %v4812_v52  ;;  %4839 = vlog2.f32 %v1261_v42  ;;  %v1277_v42 = vmax.f32 %v509_v31, 1e-08  ;;  %v518_v3 = vld [vmem:[%s5912_s3 + $0xb58] sm:$0xff] }
 0x196   : > { %v4816_v60 = vpop.eup %4815  ;;  %3550 = vst [vmem:[%s5943_s16 + $0xa18] sm:$0xff] %v2338_v53  ;;  %v2342_v61 = vmul.f32 0.6931472, %v4814_v56  ;;  %4841 = vlog2.f32 %v1262_v46  ;;  %v1278_v46 = vmax.f32 %v510_v35, 1e-08  ;;  %v519_v7 = vld [vmem:[%s5912_s3 + $0xb60] sm:$0xff] }
 0x197   : > { %v4818_v0 = vpop.eup %4817  ;;  %3551 = vst [vmem:[%s5943_s16 + $0xa20] sm:$0xff] %v2340_v57  ;;  %v2344_v1 = vmul.f32 0.6931472, %v4816_v60  ;;  %4843 = vlog2.f32 %v1263_v50  ;;  %v1279_v50 = vmax.f32 %v511_v39, 1e-08  ;;  %v520_v11 = vld [vmem:[%s5912_s3 + $0xb68] sm:$0xff] }
 0x198   : > { %v4820_v4 = vpop.eup %4819  ;;  %3552 = vst [vmem:[%s5943_s16 + $0xa28] sm:$0xff] %v2342_v61  ;;  %v2346_v5 = vmul.f32 0.6931472, %v4818_v0  ;;  %4845 = vlog2.f32 %v1264_v54  ;;  %v1280_v54 = vmax.f32 %v512_v43, 1e-08  ;;  %v521_v15 = vld [vmem:[%s5912_s3 + $0xb70] sm:$0xff] }
 0x199   : > { %v4822_v8 = vpop.eup %4821  ;;  %3553 = vst [vmem:[%s5943_s16 + $0xa30] sm:$0xff] %v2344_v1  ;;  %v2348_v9 = vmul.f32 0.6931472, %v4820_v4  ;;  %4847 = vlog2.f32 %v1265_v58  ;;  %v1281_v58 = vmax.f32 %v513_v47, 1e-08  ;;  %v522_v19 = vld [vmem:[%s5912_s3 + $0xb78] sm:$0xff] }
 0x19a   : > { %v4824_v12 = vpop.eup %4823  ;;  %3554 = vst [vmem:[%s5943_s16 + $0xa38] sm:$0xff] %v2346_v5  ;;  %v2350_v13 = vmul.f32 0.6931472, %v4822_v8  ;;  %4849 = vlog2.f32 %v1266_v62  ;;  %v1282_v62 = vmax.f32 %v514_v51, 1e-08  ;;  %v523_v23 = vld [vmem:[%s5912_s3 + $0xb80] sm:$0xff] }
 0x19b   : > { %v4826_v16 = vpop.eup %4825  ;;  %3555 = vst [vmem:[%s5943_s16 + $0xa40] sm:$0xff] %v2348_v9  ;;  %v2352_v17 = vmul.f32 0.6931472, %v4824_v12  ;;  %4851 = vlog2.f32 %v1267_v2  ;;  %v1283_v2 = vmax.f32 %v515_v55, 1e-08  ;;  %v524_v27 = vld [vmem:[%s5912_s3 + $0xb88] sm:$0xff] }
 0x19c   : > { %v4828_v20 = vpop.eup %4827  ;;  %3556 = vst [vmem:[%s5943_s16 + $0xa48] sm:$0xff] %v2350_v13  ;;  %v2354_v21 = vmul.f32 0.6931472, %v4826_v16  ;;  %4853 = vlog2.f32 %v1268_v6  ;;  %v1284_v6 = vmax.f32 %v516_v59, 1e-08  ;;  %v525_v31 = vld [vmem:[%s5912_s3 + $0xb90] sm:$0xff] }
 0x19d   : > { %v4830_v24 = vpop.eup %4829  ;;  %3557 = vst [vmem:[%s5943_s16 + $0xa50] sm:$0xff] %v2352_v17  ;;  %v2356_v25 = vmul.f32 0.6931472, %v4828_v20  ;;  %4855 = vlog2.f32 %v1269_v10  ;;  %v1285_v10 = vmax.f32 %v517_v63, 1e-08  ;;  %v526_v35 = vld [vmem:[%s5912_s3 + $0xb98] sm:$0xff] }
 0x19e   : > { %v4832_v28 = vpop.eup %4831  ;;  %3558 = vst [vmem:[%s5943_s16 + $0xa58] sm:$0xff] %v2354_v21  ;;  %v2358_v29 = vmul.f32 0.6931472, %v4830_v24  ;;  %4857 = vlog2.f32 %v1270_v14  ;;  %v1286_v14 = vmax.f32 %v518_v3, 1e-08  ;;  %v527_v39 = vld [vmem:[%s5912_s3 + $0xba0] sm:$0xff] }
 0x19f   : > { %v4834_v32 = vpop.eup %4833  ;;  %3559 = vst [vmem:[%s5943_s16 + $0xa60] sm:$0xff] %v2356_v25  ;;  %v2360_v33 = vmul.f32 0.6931472, %v4832_v28  ;;  %4859 = vlog2.f32 %v1271_v18  ;;  %v1287_v18 = vmax.f32 %v519_v7, 1e-08  ;;  %v528_v43 = vld [vmem:[%s5912_s3 + $0xba8] sm:$0xff] }
 0x1a0   : > { %v4836_v36 = vpop.eup %4835  ;;  %3560 = vst [vmem:[%s5943_s16 + $0xa68] sm:$0xff] %v2358_v29  ;;  %v2362_v37 = vmul.f32 0.6931472, %v4834_v32  ;;  %4861 = vlog2.f32 %v1272_v22  ;;  %v1288_v22 = vmax.f32 %v520_v11, 1e-08  ;;  %v529_v47 = vld [vmem:[%s5912_s3 + $0xbb0] sm:$0xff] }
 0x1a1   : > { %v4838_v40 = vpop.eup %4837  ;;  %3561 = vst [vmem:[%s5943_s16 + $0xa70] sm:$0xff] %v2360_v33  ;;  %v2364_v41 = vmul.f32 0.6931472, %v4836_v36  ;;  %4863 = vlog2.f32 %v1273_v26  ;;  %v1289_v26 = vmax.f32 %v521_v15, 1e-08  ;;  %v530_v51 = vld [vmem:[%s5912_s3 + $0xbb8] sm:$0xff] }
 0x1a2   : > { %v4840_v44 = vpop.eup %4839  ;;  %3562 = vst [vmem:[%s5943_s16 + $0xa78] sm:$0xff] %v2362_v37  ;;  %v2366_v45 = vmul.f32 0.6931472, %v4838_v40  ;;  %4865 = vlog2.f32 %v1274_v30  ;;  %v1290_v30 = vmax.f32 %v522_v19, 1e-08  ;;  %v531_v55 = vld [vmem:[%s5912_s3 + $0xbc0] sm:$0xff] }
 0x1a3   : > { %v4842_v48 = vpop.eup %4841  ;;  %3563 = vst [vmem:[%s5943_s16 + $0xa80] sm:$0xff] %v2364_v41  ;;  %v2368_v49 = vmul.f32 0.6931472, %v4840_v44  ;;  %4867 = vlog2.f32 %v1275_v34  ;;  %v1291_v34 = vmax.f32 %v523_v23, 1e-08  ;;  %v532_v59 = vld [vmem:[%s5912_s3 + $0xbc8] sm:$0xff] }
 0x1a4   : > { %v4844_v52 = vpop.eup %4843  ;;  %3564 = vst [vmem:[%s5943_s16 + $0xa88] sm:$0xff] %v2366_v45  ;;  %v2370_v53 = vmul.f32 0.6931472, %v4842_v48  ;;  %4869 = vlog2.f32 %v1276_v38  ;;  %v1292_v38 = vmax.f32 %v524_v27, 1e-08  ;;  %v533_v63 = vld [vmem:[%s5912_s3 + $0xbd0] sm:$0xff] }
 0x1a5   : > { %v4846_v56 = vpop.eup %4845  ;;  %3565 = vst [vmem:[%s5943_s16 + $0xa90] sm:$0xff] %v2368_v49  ;;  %v2372_v57 = vmul.f32 0.6931472, %v4844_v52  ;;  %4871 = vlog2.f32 %v1277_v42  ;;  %v1293_v42 = vmax.f32 %v525_v31, 1e-08  ;;  %v534_v3 = vld [vmem:[%s5912_s3 + $0xbd8] sm:$0xff] }
 0x1a6   : > { %v4848_v60 = vpop.eup %4847  ;;  %3566 = vst [vmem:[%s5943_s16 + $0xa98] sm:$0xff] %v2370_v53  ;;  %v2374_v61 = vmul.f32 0.6931472, %v4846_v56  ;;  %4873 = vlog2.f32 %v1278_v46  ;;  %v1294_v46 = vmax.f32 %v526_v35, 1e-08  ;;  %v535_v7 = vld [vmem:[%s5912_s3 + $0xbe0] sm:$0xff] }
 0x1a7   : > { %v4850_v0 = vpop.eup %4849  ;;  %3567 = vst [vmem:[%s5943_s16 + $0xaa0] sm:$0xff] %v2372_v57  ;;  %v2376_v1 = vmul.f32 0.6931472, %v4848_v60  ;;  %4875 = vlog2.f32 %v1279_v50  ;;  %v1295_v50 = vmax.f32 %v527_v39, 1e-08  ;;  %v536_v11 = vld [vmem:[%s5912_s3 + $0xbe8] sm:$0xff] }
 0x1a8   : > { %v4852_v4 = vpop.eup %4851  ;;  %3568 = vst [vmem:[%s5943_s16 + $0xaa8] sm:$0xff] %v2374_v61  ;;  %v2378_v5 = vmul.f32 0.6931472, %v4850_v0  ;;  %4877 = vlog2.f32 %v1280_v54  ;;  %v1296_v54 = vmax.f32 %v528_v43, 1e-08  ;;  %v537_v15 = vld [vmem:[%s5912_s3 + $0xbf0] sm:$0xff] }
 0x1a9   : > { %v4854_v8 = vpop.eup %4853  ;;  %3569 = vst [vmem:[%s5943_s16 + $0xab0] sm:$0xff] %v2376_v1  ;;  %v2380_v9 = vmul.f32 0.6931472, %v4852_v4  ;;  %4879 = vlog2.f32 %v1281_v58  ;;  %v1297_v58 = vmax.f32 %v529_v47, 1e-08  ;;  %v538_v19 = vld [vmem:[%s5912_s3 + $0xbf8] sm:$0xff] }
 0x1aa   : > { %v4856_v12 = vpop.eup %4855  ;;  %3570 = vst [vmem:[%s5943_s16 + $0xab8] sm:$0xff] %v2378_v5  ;;  %v2382_v13 = vmul.f32 0.6931472, %v4854_v8  ;;  %4881 = vlog2.f32 %v1282_v62  ;;  %v1298_v62 = vmax.f32 %v530_v51, 1e-08  ;;  %v539_v23 = vld [vmem:[%s5912_s3 + $0xc00] sm:$0xff] }
 0x1ab   : > { %v4858_v16 = vpop.eup %4857  ;;  %3571 = vst [vmem:[%s5943_s16 + $0xac0] sm:$0xff] %v2380_v9  ;;  %v2384_v17 = vmul.f32 0.6931472, %v4856_v12  ;;  %4883 = vlog2.f32 %v1283_v2  ;;  %v1299_v2 = vmax.f32 %v531_v55, 1e-08  ;;  %v540_v27 = vld [vmem:[%s5912_s3 + $0xc08] sm:$0xff] }
 0x1ac   : > { %v4860_v20 = vpop.eup %4859  ;;  %3572 = vst [vmem:[%s5943_s16 + $0xac8] sm:$0xff] %v2382_v13  ;;  %v2386_v21 = vmul.f32 0.6931472, %v4858_v16  ;;  %4885 = vlog2.f32 %v1284_v6  ;;  %v1300_v6 = vmax.f32 %v532_v59, 1e-08  ;;  %v541_v31 = vld [vmem:[%s5912_s3 + $0xc10] sm:$0xff] }
 0x1ad   : > { %v4862_v24 = vpop.eup %4861  ;;  %3573 = vst [vmem:[%s5943_s16 + $0xad0] sm:$0xff] %v2384_v17  ;;  %v2388_v25 = vmul.f32 0.6931472, %v4860_v20  ;;  %4887 = vlog2.f32 %v1285_v10  ;;  %v1301_v10 = vmax.f32 %v533_v63, 1e-08  ;;  %v542_v35 = vld [vmem:[%s5912_s3 + $0xc18] sm:$0xff] }
 0x1ae   : > { %v4864_v28 = vpop.eup %4863  ;;  %3574 = vst [vmem:[%s5943_s16 + $0xad8] sm:$0xff] %v2386_v21  ;;  %v2390_v29 = vmul.f32 0.6931472, %v4862_v24  ;;  %4889 = vlog2.f32 %v1286_v14  ;;  %v1302_v14 = vmax.f32 %v534_v3, 1e-08  ;;  %v543_v39 = vld [vmem:[%s5912_s3 + $0xc20] sm:$0xff] }
 0x1af   : > { %v4866_v32 = vpop.eup %4865  ;;  %3575 = vst [vmem:[%s5943_s16 + $0xae0] sm:$0xff] %v2388_v25  ;;  %v2392_v33 = vmul.f32 0.6931472, %v4864_v28  ;;  %4891 = vlog2.f32 %v1287_v18  ;;  %v1303_v18 = vmax.f32 %v535_v7, 1e-08  ;;  %v544_v43 = vld [vmem:[%s5912_s3 + $0xc28] sm:$0xff] }
 0x1b0   : > { %v4868_v36 = vpop.eup %4867  ;;  %3576 = vst [vmem:[%s5943_s16 + $0xae8] sm:$0xff] %v2390_v29  ;;  %v2394_v37 = vmul.f32 0.6931472, %v4866_v32  ;;  %4893 = vlog2.f32 %v1288_v22  ;;  %v1304_v22 = vmax.f32 %v536_v11, 1e-08  ;;  %v545_v47 = vld [vmem:[%s5912_s3 + $0xc30] sm:$0xff] }
 0x1b1   : > { %v4870_v40 = vpop.eup %4869  ;;  %3577 = vst [vmem:[%s5943_s16 + $0xaf0] sm:$0xff] %v2392_v33  ;;  %v2396_v41 = vmul.f32 0.6931472, %v4868_v36  ;;  %4895 = vlog2.f32 %v1289_v26  ;;  %v1305_v26 = vmax.f32 %v537_v15, 1e-08  ;;  %v546_v51 = vld [vmem:[%s5912_s3 + $0xc38] sm:$0xff] }
 0x1b2   : > { %v4872_v44 = vpop.eup %4871  ;;  %3578 = vst [vmem:[%s5943_s16 + $0xaf8] sm:$0xff] %v2394_v37  ;;  %v2398_v45 = vmul.f32 0.6931472, %v4870_v40  ;;  %4897 = vlog2.f32 %v1290_v30  ;;  %v1306_v30 = vmax.f32 %v538_v19, 1e-08  ;;  %v547_v55 = vld [vmem:[%s5912_s3 + $0xc40] sm:$0xff] }
 0x1b3   : > { %v4874_v48 = vpop.eup %4873  ;;  %3579 = vst [vmem:[%s5943_s16 + $0xb00] sm:$0xff] %v2396_v41  ;;  %v2400_v49 = vmul.f32 0.6931472, %v4872_v44  ;;  %4899 = vlog2.f32 %v1291_v34  ;;  %v1307_v34 = vmax.f32 %v539_v23, 1e-08  ;;  %v548_v59 = vld [vmem:[%s5912_s3 + $0xc48] sm:$0xff] }
 0x1b4   : > { %v4876_v52 = vpop.eup %4875  ;;  %3580 = vst [vmem:[%s5943_s16 + $0xb08] sm:$0xff] %v2398_v45  ;;  %v2402_v53 = vmul.f32 0.6931472, %v4874_v48  ;;  %4901 = vlog2.f32 %v1292_v38  ;;  %v1308_v38 = vmax.f32 %v540_v27, 1e-08  ;;  %v549_v63 = vld [vmem:[%s5912_s3 + $0xc50] sm:$0xff] }
 0x1b5   : > { %v4878_v56 = vpop.eup %4877  ;;  %3581 = vst [vmem:[%s5943_s16 + $0xb10] sm:$0xff] %v2400_v49  ;;  %v2404_v57 = vmul.f32 0.6931472, %v4876_v52  ;;  %4903 = vlog2.f32 %v1293_v42  ;;  %v1309_v42 = vmax.f32 %v541_v31, 1e-08  ;;  %v550_v3 = vld [vmem:[%s5912_s3 + $0xc58] sm:$0xff] }
 0x1b6   : > { %v4880_v60 = vpop.eup %4879  ;;  %3582 = vst [vmem:[%s5943_s16 + $0xb18] sm:$0xff] %v2402_v53  ;;  %v2406_v61 = vmul.f32 0.6931472, %v4878_v56  ;;  %4905 = vlog2.f32 %v1294_v46  ;;  %v1310_v46 = vmax.f32 %v542_v35, 1e-08  ;;  %v551_v7 = vld [vmem:[%s5912_s3 + $0xc60] sm:$0xff] }
 0x1b7   : > { %v4882_v0 = vpop.eup %4881  ;;  %3583 = vst [vmem:[%s5943_s16 + $0xb20] sm:$0xff] %v2404_v57  ;;  %v2408_v1 = vmul.f32 0.6931472, %v4880_v60  ;;  %4907 = vlog2.f32 %v1295_v50  ;;  %v1311_v50 = vmax.f32 %v543_v39, 1e-08  ;;  %v552_v11 = vld [vmem:[%s5912_s3 + $0xc68] sm:$0xff] }
 0x1b8   : > { %v4884_v4 = vpop.eup %4883  ;;  %3584 = vst [vmem:[%s5943_s16 + $0xb28] sm:$0xff] %v2406_v61  ;;  %v2410_v5 = vmul.f32 0.6931472, %v4882_v0  ;;  %4909 = vlog2.f32 %v1296_v54  ;;  %v1312_v54 = vmax.f32 %v544_v43, 1e-08  ;;  %v553_v15 = vld [vmem:[%s5912_s3 + $0xc70] sm:$0xff] }
 0x1b9   : > { %v4886_v8 = vpop.eup %4885  ;;  %3585 = vst [vmem:[%s5943_s16 + $0xb30] sm:$0xff] %v2408_v1  ;;  %v2412_v9 = vmul.f32 0.6931472, %v4884_v4  ;;  %4911 = vlog2.f32 %v1297_v58  ;;  %v1313_v58 = vmax.f32 %v545_v47, 1e-08  ;;  %v554_v19 = vld [vmem:[%s5912_s3 + $0xc78] sm:$0xff] }
 0x1ba   : > { %v4888_v12 = vpop.eup %4887  ;;  %3586 = vst [vmem:[%s5943_s16 + $0xb38] sm:$0xff] %v2410_v5  ;;  %v2414_v13 = vmul.f32 0.6931472, %v4886_v8  ;;  %4913 = vlog2.f32 %v1298_v62  ;;  %v1314_v62 = vmax.f32 %v546_v51, 1e-08  ;;  %v555_v23 = vld [vmem:[%s5912_s3 + $0xc80] sm:$0xff] }
 0x1bb   : > { %v4890_v16 = vpop.eup %4889  ;;  %3587 = vst [vmem:[%s5943_s16 + $0xb40] sm:$0xff] %v2412_v9  ;;  %v2416_v17 = vmul.f32 0.6931472, %v4888_v12  ;;  %4915 = vlog2.f32 %v1299_v2  ;;  %v1315_v2 = vmax.f32 %v547_v55, 1e-08  ;;  %v556_v27 = vld [vmem:[%s5912_s3 + $0xc88] sm:$0xff] }
 0x1bc   : > { %v4892_v20 = vpop.eup %4891  ;;  %3588 = vst [vmem:[%s5943_s16 + $0xb48] sm:$0xff] %v2414_v13  ;;  %v2418_v21 = vmul.f32 0.6931472, %v4890_v16  ;;  %4917 = vlog2.f32 %v1300_v6  ;;  %v1316_v6 = vmax.f32 %v548_v59, 1e-08  ;;  %v557_v31 = vld [vmem:[%s5912_s3 + $0xc90] sm:$0xff] }
 0x1bd   : > { %v4894_v24 = vpop.eup %4893  ;;  %3589 = vst [vmem:[%s5943_s16 + $0xb50] sm:$0xff] %v2416_v17  ;;  %v2420_v25 = vmul.f32 0.6931472, %v4892_v20  ;;  %4919 = vlog2.f32 %v1301_v10  ;;  %v1317_v10 = vmax.f32 %v549_v63, 1e-08  ;;  %v558_v35 = vld [vmem:[%s5912_s3 + $0xc98] sm:$0xff] }
 0x1be   : > { %v4896_v28 = vpop.eup %4895  ;;  %3590 = vst [vmem:[%s5943_s16 + $0xb58] sm:$0xff] %v2418_v21  ;;  %v2422_v29 = vmul.f32 0.6931472, %v4894_v24  ;;  %4921 = vlog2.f32 %v1302_v14  ;;  %v1318_v14 = vmax.f32 %v550_v3, 1e-08  ;;  %v559_v39 = vld [vmem:[%s5912_s3 + $0xca0] sm:$0xff] }
 0x1bf   : > { %v4898_v32 = vpop.eup %4897  ;;  %3591 = vst [vmem:[%s5943_s16 + $0xb60] sm:$0xff] %v2420_v25  ;;  %v2424_v33 = vmul.f32 0.6931472, %v4896_v28  ;;  %4923 = vlog2.f32 %v1303_v18  ;;  %v1319_v18 = vmax.f32 %v551_v7, 1e-08  ;;  %v560_v43 = vld [vmem:[%s5912_s3 + $0xca8] sm:$0xff] }
 0x1c0   : > { %v4900_v36 = vpop.eup %4899  ;;  %3592 = vst [vmem:[%s5943_s16 + $0xb68] sm:$0xff] %v2422_v29  ;;  %v2426_v37 = vmul.f32 0.6931472, %v4898_v32  ;;  %4925 = vlog2.f32 %v1304_v22  ;;  %v1320_v22 = vmax.f32 %v552_v11, 1e-08  ;;  %v561_v47 = vld [vmem:[%s5912_s3 + $0xcb0] sm:$0xff] }
 0x1c1   : > { %v4902_v40 = vpop.eup %4901  ;;  %3593 = vst [vmem:[%s5943_s16 + $0xb70] sm:$0xff] %v2424_v33  ;;  %v2428_v41 = vmul.f32 0.6931472, %v4900_v36  ;;  %4927 = vlog2.f32 %v1305_v26  ;;  %v1321_v26 = vmax.f32 %v553_v15, 1e-08  ;;  %v562_v51 = vld [vmem:[%s5912_s3 + $0xcb8] sm:$0xff] }
 0x1c2   : > { %v4904_v44 = vpop.eup %4903  ;;  %3594 = vst [vmem:[%s5943_s16 + $0xb78] sm:$0xff] %v2426_v37  ;;  %v2430_v45 = vmul.f32 0.6931472, %v4902_v40  ;;  %4929 = vlog2.f32 %v1306_v30  ;;  %v1322_v30 = vmax.f32 %v554_v19, 1e-08  ;;  %v563_v55 = vld [vmem:[%s5912_s3 + $0xcc0] sm:$0xff] }
 0x1c3   : > { %v4906_v48 = vpop.eup %4905  ;;  %3595 = vst [vmem:[%s5943_s16 + $0xb80] sm:$0xff] %v2428_v41  ;;  %v2432_v49 = vmul.f32 0.6931472, %v4904_v44  ;;  %4931 = vlog2.f32 %v1307_v34  ;;  %v1323_v34 = vmax.f32 %v555_v23, 1e-08  ;;  %v564_v59 = vld [vmem:[%s5912_s3 + $0xcc8] sm:$0xff] }
 0x1c4   : > { %v4908_v52 = vpop.eup %4907  ;;  %3596 = vst [vmem:[%s5943_s16 + $0xb88] sm:$0xff] %v2430_v45  ;;  %v2434_v53 = vmul.f32 0.6931472, %v4906_v48  ;;  %4933 = vlog2.f32 %v1308_v38  ;;  %v1324_v38 = vmax.f32 %v556_v27, 1e-08  ;;  %v565_v63 = vld [vmem:[%s5912_s3 + $0xcd0] sm:$0xff] }
 0x1c5   : > { %v4910_v56 = vpop.eup %4909  ;;  %3597 = vst [vmem:[%s5943_s16 + $0xb90] sm:$0xff] %v2432_v49  ;;  %v2436_v57 = vmul.f32 0.6931472, %v4908_v52  ;;  %4935 = vlog2.f32 %v1309_v42  ;;  %v1325_v42 = vmax.f32 %v557_v31, 1e-08  ;;  %v566_v3 = vld [vmem:[%s5912_s3 + $0xcd8] sm:$0xff] }
 0x1c6   : > { %v4912_v60 = vpop.eup %4911  ;;  %3598 = vst [vmem:[%s5943_s16 + $0xb98] sm:$0xff] %v2434_v53  ;;  %v2438_v61 = vmul.f32 0.6931472, %v4910_v56  ;;  %4937 = vlog2.f32 %v1310_v46  ;;  %v1326_v46 = vmax.f32 %v558_v35, 1e-08  ;;  %v567_v7 = vld [vmem:[%s5912_s3 + $0xce0] sm:$0xff] }
 0x1c7   : > { %v4914_v0 = vpop.eup %4913  ;;  %3599 = vst [vmem:[%s5943_s16 + $0xba0] sm:$0xff] %v2436_v57  ;;  %v2440_v1 = vmul.f32 0.6931472, %v4912_v60  ;;  %4939 = vlog2.f32 %v1311_v50  ;;  %v1327_v50 = vmax.f32 %v559_v39, 1e-08  ;;  %v568_v11 = vld [vmem:[%s5912_s3 + $0xce8] sm:$0xff] }
 0x1c8   : > { %v4916_v4 = vpop.eup %4915  ;;  %3600 = vst [vmem:[%s5943_s16 + $0xba8] sm:$0xff] %v2438_v61  ;;  %v2442_v5 = vmul.f32 0.6931472, %v4914_v0  ;;  %4941 = vlog2.f32 %v1312_v54  ;;  %v1328_v54 = vmax.f32 %v560_v43, 1e-08  ;;  %v569_v15 = vld [vmem:[%s5912_s3 + $0xcf0] sm:$0xff] }
 0x1c9   : > { %v4918_v8 = vpop.eup %4917  ;;  %3601 = vst [vmem:[%s5943_s16 + $0xbb0] sm:$0xff] %v2440_v1  ;;  %v2444_v9 = vmul.f32 0.6931472, %v4916_v4  ;;  %4943 = vlog2.f32 %v1313_v58  ;;  %v1329_v58 = vmax.f32 %v561_v47, 1e-08  ;;  %v570_v19 = vld [vmem:[%s5912_s3 + $0xcf8] sm:$0xff] }
 0x1ca   : > { %v4920_v12 = vpop.eup %4919  ;;  %3602 = vst [vmem:[%s5943_s16 + $0xbb8] sm:$0xff] %v2442_v5  ;;  %v2446_v13 = vmul.f32 0.6931472, %v4918_v8  ;;  %4945 = vlog2.f32 %v1314_v62  ;;  %v1330_v62 = vmax.f32 %v562_v51, 1e-08  ;;  %v571_v23 = vld [vmem:[%s5912_s3 + $0xd00] sm:$0xff] }
 0x1cb   : > { %v4922_v16 = vpop.eup %4921  ;;  %3603 = vst [vmem:[%s5943_s16 + $0xbc0] sm:$0xff] %v2444_v9  ;;  %v2448_v17 = vmul.f32 0.6931472, %v4920_v12  ;;  %4947 = vlog2.f32 %v1315_v2  ;;  %v1331_v2 = vmax.f32 %v563_v55, 1e-08  ;;  %v572_v27 = vld [vmem:[%s5912_s3 + $0xd08] sm:$0xff] }
 0x1cc   : > { %v4924_v20 = vpop.eup %4923  ;;  %3604 = vst [vmem:[%s5943_s16 + $0xbc8] sm:$0xff] %v2446_v13  ;;  %v2450_v21 = vmul.f32 0.6931472, %v4922_v16  ;;  %4949 = vlog2.f32 %v1316_v6  ;;  %v1332_v6 = vmax.f32 %v564_v59, 1e-08  ;;  %v573_v31 = vld [vmem:[%s5912_s3 + $0xd10] sm:$0xff] }
 0x1cd   : > { %v4926_v24 = vpop.eup %4925  ;;  %3605 = vst [vmem:[%s5943_s16 + $0xbd0] sm:$0xff] %v2448_v17  ;;  %v2452_v25 = vmul.f32 0.6931472, %v4924_v20  ;;  %4951 = vlog2.f32 %v1317_v10  ;;  %v1333_v10 = vmax.f32 %v565_v63, 1e-08  ;;  %v574_v35 = vld [vmem:[%s5912_s3 + $0xd18] sm:$0xff] }
 0x1ce   : > { %v4928_v28 = vpop.eup %4927  ;;  %3606 = vst [vmem:[%s5943_s16 + $0xbd8] sm:$0xff] %v2450_v21  ;;  %v2454_v29 = vmul.f32 0.6931472, %v4926_v24  ;;  %4953 = vlog2.f32 %v1318_v14  ;;  %v1334_v14 = vmax.f32 %v566_v3, 1e-08  ;;  %v575_v39 = vld [vmem:[%s5912_s3 + $0xd20] sm:$0xff] }
 0x1cf   : > { %v4930_v32 = vpop.eup %4929  ;;  %3607 = vst [vmem:[%s5943_s16 + $0xbe0] sm:$0xff] %v2452_v25  ;;  %v2456_v33 = vmul.f32 0.6931472, %v4928_v28  ;;  %4955 = vlog2.f32 %v1319_v18  ;;  %v1335_v18 = vmax.f32 %v567_v7, 1e-08  ;;  %v576_v43 = vld [vmem:[%s5912_s3 + $0xd28] sm:$0xff] }
 0x1d0   : > { %v4932_v36 = vpop.eup %4931  ;;  %3608 = vst [vmem:[%s5943_s16 + $0xbe8] sm:$0xff] %v2454_v29  ;;  %v2458_v37 = vmul.f32 0.6931472, %v4930_v32  ;;  %4957 = vlog2.f32 %v1320_v22  ;;  %v1336_v22 = vmax.f32 %v568_v11, 1e-08  ;;  %v577_v47 = vld [vmem:[%s5912_s3 + $0xd30] sm:$0xff] }
 0x1d1   : > { %v4934_v40 = vpop.eup %4933  ;;  %3609 = vst [vmem:[%s5943_s16 + $0xbf0] sm:$0xff] %v2456_v33  ;;  %v2460_v41 = vmul.f32 0.6931472, %v4932_v36  ;;  %4959 = vlog2.f32 %v1321_v26  ;;  %v1337_v26 = vmax.f32 %v569_v15, 1e-08  ;;  %v578_v51 = vld [vmem:[%s5912_s3 + $0xd38] sm:$0xff] }
 0x1d2   : > { %v4936_v44 = vpop.eup %4935  ;;  %3610 = vst [vmem:[%s5943_s16 + $0xbf8] sm:$0xff] %v2458_v37  ;;  %v2462_v45 = vmul.f32 0.6931472, %v4934_v40  ;;  %4961 = vlog2.f32 %v1322_v30  ;;  %v1338_v30 = vmax.f32 %v570_v19, 1e-08  ;;  %v579_v55 = vld [vmem:[%s5912_s3 + $0xd40] sm:$0xff] }
 0x1d3   : > { %v4938_v48 = vpop.eup %4937  ;;  %3611 = vst [vmem:[%s5943_s16 + $0xc00] sm:$0xff] %v2460_v41  ;;  %v2464_v49 = vmul.f32 0.6931472, %v4936_v44  ;;  %4963 = vlog2.f32 %v1323_v34  ;;  %v1339_v34 = vmax.f32 %v571_v23, 1e-08  ;;  %v580_v59 = vld [vmem:[%s5912_s3 + $0xd48] sm:$0xff] }
 0x1d4   : > { %v4940_v52 = vpop.eup %4939  ;;  %3612 = vst [vmem:[%s5943_s16 + $0xc08] sm:$0xff] %v2462_v45  ;;  %v2466_v53 = vmul.f32 0.6931472, %v4938_v48  ;;  %4965 = vlog2.f32 %v1324_v38  ;;  %v1340_v38 = vmax.f32 %v572_v27, 1e-08  ;;  %v581_v63 = vld [vmem:[%s5912_s3 + $0xd50] sm:$0xff] }
 0x1d5   : > { %v4942_v56 = vpop.eup %4941  ;;  %3613 = vst [vmem:[%s5943_s16 + $0xc10] sm:$0xff] %v2464_v49  ;;  %v2468_v57 = vmul.f32 0.6931472, %v4940_v52  ;;  %4967 = vlog2.f32 %v1325_v42  ;;  %v1341_v42 = vmax.f32 %v573_v31, 1e-08  ;;  %v582_v3 = vld [vmem:[%s5912_s3 + $0xd58] sm:$0xff] }
 0x1d6   : > { %v4944_v60 = vpop.eup %4943  ;;  %3614 = vst [vmem:[%s5943_s16 + $0xc18] sm:$0xff] %v2466_v53  ;;  %v2470_v61 = vmul.f32 0.6931472, %v4942_v56  ;;  %4969 = vlog2.f32 %v1326_v46  ;;  %v1342_v46 = vmax.f32 %v574_v35, 1e-08  ;;  %v583_v7 = vld [vmem:[%s5912_s3 + $0xd60] sm:$0xff] }
 0x1d7   : > { %v4946_v0 = vpop.eup %4945  ;;  %3615 = vst [vmem:[%s5943_s16 + $0xc20] sm:$0xff] %v2468_v57  ;;  %v2472_v1 = vmul.f32 0.6931472, %v4944_v60  ;;  %4971 = vlog2.f32 %v1327_v50  ;;  %v1343_v50 = vmax.f32 %v575_v39, 1e-08  ;;  %v584_v11 = vld [vmem:[%s5912_s3 + $0xd68] sm:$0xff] }
 0x1d8   : > { %v4948_v4 = vpop.eup %4947  ;;  %3616 = vst [vmem:[%s5943_s16 + $0xc28] sm:$0xff] %v2470_v61  ;;  %v2474_v5 = vmul.f32 0.6931472, %v4946_v0  ;;  %4973 = vlog2.f32 %v1328_v54  ;;  %v1344_v54 = vmax.f32 %v576_v43, 1e-08  ;;  %v585_v15 = vld [vmem:[%s5912_s3 + $0xd70] sm:$0xff] }
 0x1d9   : > { %v4950_v8 = vpop.eup %4949  ;;  %3617 = vst [vmem:[%s5943_s16 + $0xc30] sm:$0xff] %v2472_v1  ;;  %v2476_v9 = vmul.f32 0.6931472, %v4948_v4  ;;  %4975 = vlog2.f32 %v1329_v58  ;;  %v1345_v58 = vmax.f32 %v577_v47, 1e-08  ;;  %v586_v19 = vld [vmem:[%s5912_s3 + $0xd78] sm:$0xff] }
 0x1da   : > { %v4952_v12 = vpop.eup %4951  ;;  %3618 = vst [vmem:[%s5943_s16 + $0xc38] sm:$0xff] %v2474_v5  ;;  %v2478_v13 = vmul.f32 0.6931472, %v4950_v8  ;;  %4977 = vlog2.f32 %v1330_v62  ;;  %v1346_v62 = vmax.f32 %v578_v51, 1e-08  ;;  %v587_v23 = vld [vmem:[%s5912_s3 + $0xd80] sm:$0xff] }
 0x1db   : > { %v4954_v16 = vpop.eup %4953  ;;  %3619 = vst [vmem:[%s5943_s16 + $0xc40] sm:$0xff] %v2476_v9  ;;  %v2480_v17 = vmul.f32 0.6931472, %v4952_v12  ;;  %4979 = vlog2.f32 %v1331_v2  ;;  %v1347_v2 = vmax.f32 %v579_v55, 1e-08  ;;  %v588_v27 = vld [vmem:[%s5912_s3 + $0xd88] sm:$0xff] }
 0x1dc   : > { %v4956_v20 = vpop.eup %4955  ;;  %3620 = vst [vmem:[%s5943_s16 + $0xc48] sm:$0xff] %v2478_v13  ;;  %v2482_v21 = vmul.f32 0.6931472, %v4954_v16  ;;  %4981 = vlog2.f32 %v1332_v6  ;;  %v1348_v6 = vmax.f32 %v580_v59, 1e-08  ;;  %v589_v31 = vld [vmem:[%s5912_s3 + $0xd90] sm:$0xff] }
 0x1dd   : > { %v4958_v24 = vpop.eup %4957  ;;  %3621 = vst [vmem:[%s5943_s16 + $0xc50] sm:$0xff] %v2480_v17  ;;  %v2484_v25 = vmul.f32 0.6931472, %v4956_v20  ;;  %4983 = vlog2.f32 %v1333_v10  ;;  %v1349_v10 = vmax.f32 %v581_v63, 1e-08  ;;  %v590_v35 = vld [vmem:[%s5912_s3 + $0xd98] sm:$0xff] }
 0x1de   : > { %v4960_v28 = vpop.eup %4959  ;;  %3622 = vst [vmem:[%s5943_s16 + $0xc58] sm:$0xff] %v2482_v21  ;;  %v2486_v29 = vmul.f32 0.6931472, %v4958_v24  ;;  %4985 = vlog2.f32 %v1334_v14  ;;  %v1350_v14 = vmax.f32 %v582_v3, 1e-08  ;;  %v591_v39 = vld [vmem:[%s5912_s3 + $0xda0] sm:$0xff] }
 0x1df   : > { %v4962_v32 = vpop.eup %4961  ;;  %3623 = vst [vmem:[%s5943_s16 + $0xc60] sm:$0xff] %v2484_v25  ;;  %v2488_v33 = vmul.f32 0.6931472, %v4960_v28  ;;  %4987 = vlog2.f32 %v1335_v18  ;;  %v1351_v18 = vmax.f32 %v583_v7, 1e-08  ;;  %v592_v43 = vld [vmem:[%s5912_s3 + $0xda8] sm:$0xff] }
 0x1e0   : > { %v4964_v36 = vpop.eup %4963  ;;  %3624 = vst [vmem:[%s5943_s16 + $0xc68] sm:$0xff] %v2486_v29  ;;  %v2490_v37 = vmul.f32 0.6931472, %v4962_v32  ;;  %4989 = vlog2.f32 %v1336_v22  ;;  %v1352_v22 = vmax.f32 %v584_v11, 1e-08  ;;  %v593_v47 = vld [vmem:[%s5912_s3 + $0xdb0] sm:$0xff] }
 0x1e1   : > { %v4966_v40 = vpop.eup %4965  ;;  %3625 = vst [vmem:[%s5943_s16 + $0xc70] sm:$0xff] %v2488_v33  ;;  %v2492_v41 = vmul.f32 0.6931472, %v4964_v36  ;;  %4991 = vlog2.f32 %v1337_v26  ;;  %v1353_v26 = vmax.f32 %v585_v15, 1e-08  ;;  %v594_v51 = vld [vmem:[%s5912_s3 + $0xdb8] sm:$0xff] }
 0x1e2   : > { %v4968_v44 = vpop.eup %4967  ;;  %3626 = vst [vmem:[%s5943_s16 + $0xc78] sm:$0xff] %v2490_v37  ;;  %v2494_v45 = vmul.f32 0.6931472, %v4966_v40  ;;  %4993 = vlog2.f32 %v1338_v30  ;;  %v1354_v30 = vmax.f32 %v586_v19, 1e-08  ;;  %v595_v55 = vld [vmem:[%s5912_s3 + $0xdc0] sm:$0xff] }
 0x1e3   : > { %v4970_v48 = vpop.eup %4969  ;;  %3627 = vst [vmem:[%s5943_s16 + $0xc80] sm:$0xff] %v2492_v41  ;;  %v2496_v49 = vmul.f32 0.6931472, %v4968_v44  ;;  %4995 = vlog2.f32 %v1339_v34  ;;  %v1355_v34 = vmax.f32 %v587_v23, 1e-08  ;;  %v596_v59 = vld [vmem:[%s5912_s3 + $0xdc8] sm:$0xff] }
 0x1e4   : > { %v4972_v52 = vpop.eup %4971  ;;  %3628 = vst [vmem:[%s5943_s16 + $0xc88] sm:$0xff] %v2494_v45  ;;  %v2498_v53 = vmul.f32 0.6931472, %v4970_v48  ;;  %4997 = vlog2.f32 %v1340_v38  ;;  %v1356_v38 = vmax.f32 %v588_v27, 1e-08  ;;  %v597_v63 = vld [vmem:[%s5912_s3 + $0xdd0] sm:$0xff] }
 0x1e5   : > { %v4974_v56 = vpop.eup %4973  ;;  %3629 = vst [vmem:[%s5943_s16 + $0xc90] sm:$0xff] %v2496_v49  ;;  %v2500_v57 = vmul.f32 0.6931472, %v4972_v52  ;;  %4999 = vlog2.f32 %v1341_v42  ;;  %v1357_v42 = vmax.f32 %v589_v31, 1e-08  ;;  %v598_v3 = vld [vmem:[%s5912_s3 + $0xdd8] sm:$0xff] }
 0x1e6   : > { %v4976_v60 = vpop.eup %4975  ;;  %3630 = vst [vmem:[%s5943_s16 + $0xc98] sm:$0xff] %v2498_v53  ;;  %v2502_v61 = vmul.f32 0.6931472, %v4974_v56  ;;  %5001 = vlog2.f32 %v1342_v46  ;;  %v1358_v46 = vmax.f32 %v590_v35, 1e-08  ;;  %v599_v7 = vld [vmem:[%s5912_s3 + $0xde0] sm:$0xff] }
 0x1e7   : > { %v4978_v0 = vpop.eup %4977  ;;  %3631 = vst [vmem:[%s5943_s16 + $0xca0] sm:$0xff] %v2500_v57  ;;  %v2504_v1 = vmul.f32 0.6931472, %v4976_v60  ;;  %5003 = vlog2.f32 %v1343_v50  ;;  %v1359_v50 = vmax.f32 %v591_v39, 1e-08  ;;  %v600_v11 = vld [vmem:[%s5912_s3 + $0xde8] sm:$0xff] }
 0x1e8   : > { %v4980_v4 = vpop.eup %4979  ;;  %3632 = vst [vmem:[%s5943_s16 + $0xca8] sm:$0xff] %v2502_v61  ;;  %v2506_v5 = vmul.f32 0.6931472, %v4978_v0  ;;  %5005 = vlog2.f32 %v1344_v54  ;;  %v1360_v54 = vmax.f32 %v592_v43, 1e-08  ;;  %v601_v15 = vld [vmem:[%s5912_s3 + $0xdf0] sm:$0xff] }
 0x1e9   : > { %v4982_v8 = vpop.eup %4981  ;;  %3633 = vst [vmem:[%s5943_s16 + $0xcb0] sm:$0xff] %v2504_v1  ;;  %v2508_v9 = vmul.f32 0.6931472, %v4980_v4  ;;  %5007 = vlog2.f32 %v1345_v58  ;;  %v1361_v58 = vmax.f32 %v593_v47, 1e-08  ;;  %v602_v19 = vld [vmem:[%s5912_s3 + $0xdf8] sm:$0xff] }
 0x1ea   : > { %v4984_v12 = vpop.eup %4983  ;;  %3634 = vst [vmem:[%s5943_s16 + $0xcb8] sm:$0xff] %v2506_v5  ;;  %v2510_v13 = vmul.f32 0.6931472, %v4982_v8  ;;  %5009 = vlog2.f32 %v1346_v62  ;;  %v1362_v62 = vmax.f32 %v594_v51, 1e-08  ;;  %v603_v23 = vld [vmem:[%s5912_s3 + $0xe00] sm:$0xff] }
 0x1eb   : > { %v4986_v16 = vpop.eup %4985  ;;  %3635 = vst [vmem:[%s5943_s16 + $0xcc0] sm:$0xff] %v2508_v9  ;;  %v2512_v17 = vmul.f32 0.6931472, %v4984_v12  ;;  %5011 = vlog2.f32 %v1347_v2  ;;  %v1363_v2 = vmax.f32 %v595_v55, 1e-08  ;;  %v604_v27 = vld [vmem:[%s5912_s3 + $0xe08] sm:$0xff] }
 0x1ec   : > { %v4988_v20 = vpop.eup %4987  ;;  %3636 = vst [vmem:[%s5943_s16 + $0xcc8] sm:$0xff] %v2510_v13  ;;  %v2514_v21 = vmul.f32 0.6931472, %v4986_v16  ;;  %5013 = vlog2.f32 %v1348_v6  ;;  %v1364_v6 = vmax.f32 %v596_v59, 1e-08  ;;  %v605_v31 = vld [vmem:[%s5912_s3 + $0xe10] sm:$0xff] }
 0x1ed   : > { %v4990_v24 = vpop.eup %4989  ;;  %3637 = vst [vmem:[%s5943_s16 + $0xcd0] sm:$0xff] %v2512_v17  ;;  %v2516_v25 = vmul.f32 0.6931472, %v4988_v20  ;;  %5015 = vlog2.f32 %v1349_v10  ;;  %v1365_v10 = vmax.f32 %v597_v63, 1e-08  ;;  %v606_v35 = vld [vmem:[%s5912_s3 + $0xe18] sm:$0xff] }
 0x1ee   : > { %v4992_v28 = vpop.eup %4991  ;;  %3638 = vst [vmem:[%s5943_s16 + $0xcd8] sm:$0xff] %v2514_v21  ;;  %v2518_v29 = vmul.f32 0.6931472, %v4990_v24  ;;  %5017 = vlog2.f32 %v1350_v14  ;;  %v1366_v14 = vmax.f32 %v598_v3, 1e-08  ;;  %v607_v39 = vld [vmem:[%s5912_s3 + $0xe20] sm:$0xff] }
 0x1ef   : > { %v4994_v32 = vpop.eup %4993  ;;  %3639 = vst [vmem:[%s5943_s16 + $0xce0] sm:$0xff] %v2516_v25  ;;  %v2520_v33 = vmul.f32 0.6931472, %v4992_v28  ;;  %5019 = vlog2.f32 %v1351_v18  ;;  %v1367_v18 = vmax.f32 %v599_v7, 1e-08  ;;  %v608_v43 = vld [vmem:[%s5912_s3 + $0xe28] sm:$0xff] }
 0x1f0   : > { %v4996_v36 = vpop.eup %4995  ;;  %3640 = vst [vmem:[%s5943_s16 + $0xce8] sm:$0xff] %v2518_v29  ;;  %v2522_v37 = vmul.f32 0.6931472, %v4994_v32  ;;  %5021 = vlog2.f32 %v1352_v22  ;;  %v1368_v22 = vmax.f32 %v600_v11, 1e-08  ;;  %v609_v47 = vld [vmem:[%s5912_s3 + $0xe30] sm:$0xff] }
 0x1f1   : > { %v4998_v40 = vpop.eup %4997  ;;  %3641 = vst [vmem:[%s5943_s16 + $0xcf0] sm:$0xff] %v2520_v33  ;;  %v2524_v41 = vmul.f32 0.6931472, %v4996_v36  ;;  %5023 = vlog2.f32 %v1353_v26  ;;  %v1369_v26 = vmax.f32 %v601_v15, 1e-08  ;;  %v610_v51 = vld [vmem:[%s5912_s3 + $0xe38] sm:$0xff] }
 0x1f2   : > { %v5000_v44 = vpop.eup %4999  ;;  %3642 = vst [vmem:[%s5943_s16 + $0xcf8] sm:$0xff] %v2522_v37  ;;  %v2526_v45 = vmul.f32 0.6931472, %v4998_v40  ;;  %5025 = vlog2.f32 %v1354_v30  ;;  %v1370_v30 = vmax.f32 %v602_v19, 1e-08  ;;  %v611_v55 = vld [vmem:[%s5912_s3 + $0xe40] sm:$0xff] }
 0x1f3   : > { %v5002_v48 = vpop.eup %5001  ;;  %3643 = vst [vmem:[%s5943_s16 + $0xd00] sm:$0xff] %v2524_v41  ;;  %v2528_v49 = vmul.f32 0.6931472, %v5000_v44  ;;  %5027 = vlog2.f32 %v1355_v34  ;;  %v1371_v34 = vmax.f32 %v603_v23, 1e-08  ;;  %v612_v59 = vld [vmem:[%s5912_s3 + $0xe48] sm:$0xff] }
 0x1f4   : > { %v5004_v52 = vpop.eup %5003  ;;  %3644 = vst [vmem:[%s5943_s16 + $0xd08] sm:$0xff] %v2526_v45  ;;  %v2530_v53 = vmul.f32 0.6931472, %v5002_v48  ;;  %5029 = vlog2.f32 %v1356_v38  ;;  %v1372_v38 = vmax.f32 %v604_v27, 1e-08  ;;  %v613_v63 = vld [vmem:[%s5912_s3 + $0xe50] sm:$0xff] }
 0x1f5   : > { %v5006_v56 = vpop.eup %5005  ;;  %3645 = vst [vmem:[%s5943_s16 + $0xd10] sm:$0xff] %v2528_v49  ;;  %v2532_v57 = vmul.f32 0.6931472, %v5004_v52  ;;  %5031 = vlog2.f32 %v1357_v42  ;;  %v1373_v42 = vmax.f32 %v605_v31, 1e-08  ;;  %v614_v3 = vld [vmem:[%s5912_s3 + $0xe58] sm:$0xff] }
 0x1f6   : > { %v5008_v60 = vpop.eup %5007  ;;  %3646 = vst [vmem:[%s5943_s16 + $0xd18] sm:$0xff] %v2530_v53  ;;  %v2534_v61 = vmul.f32 0.6931472, %v5006_v56  ;;  %5033 = vlog2.f32 %v1358_v46  ;;  %v1374_v46 = vmax.f32 %v606_v35, 1e-08  ;;  %v615_v7 = vld [vmem:[%s5912_s3 + $0xe60] sm:$0xff] }
 0x1f7   : > { %v5010_v0 = vpop.eup %5009  ;;  %3647 = vst [vmem:[%s5943_s16 + $0xd20] sm:$0xff] %v2532_v57  ;;  %v2536_v1 = vmul.f32 0.6931472, %v5008_v60  ;;  %5035 = vlog2.f32 %v1359_v50  ;;  %v1375_v50 = vmax.f32 %v607_v39, 1e-08  ;;  %v616_v11 = vld [vmem:[%s5912_s3 + $0xe68] sm:$0xff] }
 0x1f8   : > { %v5012_v4 = vpop.eup %5011  ;;  %3648 = vst [vmem:[%s5943_s16 + $0xd28] sm:$0xff] %v2534_v61  ;;  %v2538_v5 = vmul.f32 0.6931472, %v5010_v0  ;;  %5037 = vlog2.f32 %v1360_v54  ;;  %v1376_v54 = vmax.f32 %v608_v43, 1e-08  ;;  %v617_v15 = vld [vmem:[%s5912_s3 + $0xe70] sm:$0xff] }
 0x1f9   : > { %v5014_v8 = vpop.eup %5013  ;;  %3649 = vst [vmem:[%s5943_s16 + $0xd30] sm:$0xff] %v2536_v1  ;;  %v2540_v9 = vmul.f32 0.6931472, %v5012_v4  ;;  %5039 = vlog2.f32 %v1361_v58  ;;  %v1377_v58 = vmax.f32 %v609_v47, 1e-08  ;;  %v618_v19 = vld [vmem:[%s5912_s3 + $0xe78] sm:$0xff] }
 0x1fa   : > { %v5016_v12 = vpop.eup %5015  ;;  %3650 = vst [vmem:[%s5943_s16 + $0xd38] sm:$0xff] %v2538_v5  ;;  %v2542_v13 = vmul.f32 0.6931472, %v5014_v8  ;;  %5041 = vlog2.f32 %v1362_v62  ;;  %v1378_v62 = vmax.f32 %v610_v51, 1e-08  ;;  %v619_v23 = vld [vmem:[%s5912_s3 + $0xe80] sm:$0xff] }
 0x1fb   : > { %v5018_v16 = vpop.eup %5017  ;;  %3651 = vst [vmem:[%s5943_s16 + $0xd40] sm:$0xff] %v2540_v9  ;;  %v2544_v17 = vmul.f32 0.6931472, %v5016_v12  ;;  %5043 = vlog2.f32 %v1363_v2  ;;  %v1379_v2 = vmax.f32 %v611_v55, 1e-08  ;;  %v620_v27 = vld [vmem:[%s5912_s3 + $0xe88] sm:$0xff] }
 0x1fc   : > { %v5020_v20 = vpop.eup %5019  ;;  %3652 = vst [vmem:[%s5943_s16 + $0xd48] sm:$0xff] %v2542_v13  ;;  %v2546_v21 = vmul.f32 0.6931472, %v5018_v16  ;;  %5045 = vlog2.f32 %v1364_v6  ;;  %v1380_v6 = vmax.f32 %v612_v59, 1e-08  ;;  %v621_v31 = vld [vmem:[%s5912_s3 + $0xe90] sm:$0xff] }
 0x1fd   : > { %v5022_v24 = vpop.eup %5021  ;;  %3653 = vst [vmem:[%s5943_s16 + $0xd50] sm:$0xff] %v2544_v17  ;;  %v2548_v25 = vmul.f32 0.6931472, %v5020_v20  ;;  %5047 = vlog2.f32 %v1365_v10  ;;  %v1381_v10 = vmax.f32 %v613_v63, 1e-08  ;;  %v622_v35 = vld [vmem:[%s5912_s3 + $0xe98] sm:$0xff] }
 0x1fe   : > { %v5024_v28 = vpop.eup %5023  ;;  %3654 = vst [vmem:[%s5943_s16 + $0xd58] sm:$0xff] %v2546_v21  ;;  %v2550_v29 = vmul.f32 0.6931472, %v5022_v24  ;;  %5049 = vlog2.f32 %v1366_v14  ;;  %v1382_v14 = vmax.f32 %v614_v3, 1e-08  ;;  %v623_v39 = vld [vmem:[%s5912_s3 + $0xea0] sm:$0xff] }
 0x1ff   : > { %v5026_v32 = vpop.eup %5025  ;;  %3655 = vst [vmem:[%s5943_s16 + $0xd60] sm:$0xff] %v2548_v25  ;;  %v2552_v33 = vmul.f32 0.6931472, %v5024_v28  ;;  %5051 = vlog2.f32 %v1367_v18  ;;  %v1383_v18 = vmax.f32 %v615_v7, 1e-08  ;;  %v624_v43 = vld [vmem:[%s5912_s3 + $0xea8] sm:$0xff] }
 0x200   : > { %v5028_v36 = vpop.eup %5027  ;;  %3656 = vst [vmem:[%s5943_s16 + $0xd68] sm:$0xff] %v2550_v29  ;;  %v2554_v37 = vmul.f32 0.6931472, %v5026_v32  ;;  %5053 = vlog2.f32 %v1368_v22  ;;  %v1384_v22 = vmax.f32 %v616_v11, 1e-08  ;;  %v625_v47 = vld [vmem:[%s5912_s3 + $0xeb0] sm:$0xff] }
 0x201   : > { %v5030_v40 = vpop.eup %5029  ;;  %3657 = vst [vmem:[%s5943_s16 + $0xd70] sm:$0xff] %v2552_v33  ;;  %v2556_v41 = vmul.f32 0.6931472, %v5028_v36  ;;  %5055 = vlog2.f32 %v1369_v26  ;;  %v1385_v26 = vmax.f32 %v617_v15, 1e-08  ;;  %v626_v51 = vld [vmem:[%s5912_s3 + $0xeb8] sm:$0xff] }
 0x202   : > { %v5032_v44 = vpop.eup %5031  ;;  %3658 = vst [vmem:[%s5943_s16 + $0xd78] sm:$0xff] %v2554_v37  ;;  %v2558_v45 = vmul.f32 0.6931472, %v5030_v40  ;;  %5057 = vlog2.f32 %v1370_v30  ;;  %v1386_v30 = vmax.f32 %v618_v19, 1e-08  ;;  %v627_v55 = vld [vmem:[%s5912_s3 + $0xec0] sm:$0xff] }
 0x203   : > { %v5034_v48 = vpop.eup %5033  ;;  %3659 = vst [vmem:[%s5943_s16 + $0xd80] sm:$0xff] %v2556_v41  ;;  %v2560_v49 = vmul.f32 0.6931472, %v5032_v44  ;;  %5059 = vlog2.f32 %v1371_v34  ;;  %v1387_v34 = vmax.f32 %v619_v23, 1e-08  ;;  %v628_v59 = vld [vmem:[%s5912_s3 + $0xec8] sm:$0xff] }
 0x204   : > { %v5036_v52 = vpop.eup %5035  ;;  %3660 = vst [vmem:[%s5943_s16 + $0xd88] sm:$0xff] %v2558_v45  ;;  %v2562_v53 = vmul.f32 0.6931472, %v5034_v48  ;;  %5061 = vlog2.f32 %v1372_v38  ;;  %v1388_v38 = vmax.f32 %v620_v27, 1e-08  ;;  %v629_v63 = vld [vmem:[%s5912_s3 + $0xed0] sm:$0xff] }
 0x205   : > { %v5038_v56 = vpop.eup %5037  ;;  %3661 = vst [vmem:[%s5943_s16 + $0xd90] sm:$0xff] %v2560_v49  ;;  %v2564_v57 = vmul.f32 0.6931472, %v5036_v52  ;;  %5063 = vlog2.f32 %v1373_v42  ;;  %v1389_v42 = vmax.f32 %v621_v31, 1e-08  ;;  %v630_v3 = vld [vmem:[%s5912_s3 + $0xed8] sm:$0xff] }
 0x206   : > { %v5040_v60 = vpop.eup %5039  ;;  %3662 = vst [vmem:[%s5943_s16 + $0xd98] sm:$0xff] %v2562_v53  ;;  %v2566_v61 = vmul.f32 0.6931472, %v5038_v56  ;;  %5065 = vlog2.f32 %v1374_v46  ;;  %v1390_v46 = vmax.f32 %v622_v35, 1e-08  ;;  %v631_v7 = vld [vmem:[%s5912_s3 + $0xee0] sm:$0xff] }
 0x207   : > { %v5042_v0 = vpop.eup %5041  ;;  %3663 = vst [vmem:[%s5943_s16 + $0xda0] sm:$0xff] %v2564_v57  ;;  %v2568_v1 = vmul.f32 0.6931472, %v5040_v60  ;;  %5067 = vlog2.f32 %v1375_v50  ;;  %v1391_v50 = vmax.f32 %v623_v39, 1e-08  ;;  %v632_v11 = vld [vmem:[%s5912_s3 + $0xee8] sm:$0xff] }
 0x208   : > { %v5044_v4 = vpop.eup %5043  ;;  %3664 = vst [vmem:[%s5943_s16 + $0xda8] sm:$0xff] %v2566_v61  ;;  %v2570_v5 = vmul.f32 0.6931472, %v5042_v0  ;;  %5069 = vlog2.f32 %v1376_v54  ;;  %v1392_v54 = vmax.f32 %v624_v43, 1e-08  ;;  %v633_v15 = vld [vmem:[%s5912_s3 + $0xef0] sm:$0xff] }
 0x209   : > { %v5046_v8 = vpop.eup %5045  ;;  %3665 = vst [vmem:[%s5943_s16 + $0xdb0] sm:$0xff] %v2568_v1  ;;  %v2572_v9 = vmul.f32 0.6931472, %v5044_v4  ;;  %5071 = vlog2.f32 %v1377_v58  ;;  %v1393_v58 = vmax.f32 %v625_v47, 1e-08  ;;  %v634_v19 = vld [vmem:[%s5912_s3 + $0xef8] sm:$0xff] }
 0x20a   : > { %v5048_v12 = vpop.eup %5047  ;;  %3666 = vst [vmem:[%s5943_s16 + $0xdb8] sm:$0xff] %v2570_v5  ;;  %v2574_v13 = vmul.f32 0.6931472, %v5046_v8  ;;  %5073 = vlog2.f32 %v1378_v62  ;;  %v1394_v62 = vmax.f32 %v626_v51, 1e-08  ;;  %v635_v23 = vld [vmem:[%s5912_s3 + $0xf00] sm:$0xff] }
 0x20b   : > { %v5050_v16 = vpop.eup %5049  ;;  %3667 = vst [vmem:[%s5943_s16 + $0xdc0] sm:$0xff] %v2572_v9  ;;  %v2576_v17 = vmul.f32 0.6931472, %v5048_v12  ;;  %5075 = vlog2.f32 %v1379_v2  ;;  %v1395_v2 = vmax.f32 %v627_v55, 1e-08  ;;  %v636_v27 = vld [vmem:[%s5912_s3 + $0xf08] sm:$0xff] }
 0x20c   : > { %v5052_v20 = vpop.eup %5051  ;;  %3668 = vst [vmem:[%s5943_s16 + $0xdc8] sm:$0xff] %v2574_v13  ;;  %v2578_v21 = vmul.f32 0.6931472, %v5050_v16  ;;  %5077 = vlog2.f32 %v1380_v6  ;;  %v1396_v6 = vmax.f32 %v628_v59, 1e-08  ;;  %v637_v31 = vld [vmem:[%s5912_s3 + $0xf10] sm:$0xff] }
 0x20d   : > { %v5054_v24 = vpop.eup %5053  ;;  %3669 = vst [vmem:[%s5943_s16 + $0xdd0] sm:$0xff] %v2576_v17  ;;  %v2580_v25 = vmul.f32 0.6931472, %v5052_v20  ;;  %5079 = vlog2.f32 %v1381_v10  ;;  %v1397_v10 = vmax.f32 %v629_v63, 1e-08  ;;  %v638_v35 = vld [vmem:[%s5912_s3 + $0xf18] sm:$0xff] }
 0x20e   : > { %v5056_v28 = vpop.eup %5055  ;;  %3670 = vst [vmem:[%s5943_s16 + $0xdd8] sm:$0xff] %v2578_v21  ;;  %v2582_v29 = vmul.f32 0.6931472, %v5054_v24  ;;  %5081 = vlog2.f32 %v1382_v14  ;;  %v1398_v14 = vmax.f32 %v630_v3, 1e-08  ;;  %v639_v39 = vld [vmem:[%s5912_s3 + $0xf20] sm:$0xff] }
 0x20f   : > { %v5058_v32 = vpop.eup %5057  ;;  %3671 = vst [vmem:[%s5943_s16 + $0xde0] sm:$0xff] %v2580_v25  ;;  %v2584_v33 = vmul.f32 0.6931472, %v5056_v28  ;;  %5083 = vlog2.f32 %v1383_v18  ;;  %v1399_v18 = vmax.f32 %v631_v7, 1e-08  ;;  %v640_v43 = vld [vmem:[%s5912_s3 + $0xf28] sm:$0xff] }
 0x210   : > { %v5060_v36 = vpop.eup %5059  ;;  %3672 = vst [vmem:[%s5943_s16 + $0xde8] sm:$0xff] %v2582_v29  ;;  %v2586_v37 = vmul.f32 0.6931472, %v5058_v32  ;;  %5085 = vlog2.f32 %v1384_v22  ;;  %v1400_v22 = vmax.f32 %v632_v11, 1e-08  ;;  %v641_v47 = vld [vmem:[%s5912_s3 + $0xf30] sm:$0xff] }
 0x211   : > { %v5062_v40 = vpop.eup %5061  ;;  %3673 = vst [vmem:[%s5943_s16 + $0xdf0] sm:$0xff] %v2584_v33  ;;  %v2588_v41 = vmul.f32 0.6931472, %v5060_v36  ;;  %5087 = vlog2.f32 %v1385_v26  ;;  %v1401_v26 = vmax.f32 %v633_v15, 1e-08  ;;  %v642_v51 = vld [vmem:[%s5912_s3 + $0xf38] sm:$0xff] }
 0x212   : > { %v5064_v44 = vpop.eup %5063  ;;  %3674 = vst [vmem:[%s5943_s16 + $0xdf8] sm:$0xff] %v2586_v37  ;;  %v2590_v45 = vmul.f32 0.6931472, %v5062_v40  ;;  %5089 = vlog2.f32 %v1386_v30  ;;  %v1402_v30 = vmax.f32 %v634_v19, 1e-08  ;;  %v643_v55 = vld [vmem:[%s5912_s3 + $0xf40] sm:$0xff] }
 0x213   : > { %v5066_v48 = vpop.eup %5065  ;;  %3675 = vst [vmem:[%s5943_s16 + $0xe00] sm:$0xff] %v2588_v41  ;;  %v2592_v49 = vmul.f32 0.6931472, %v5064_v44  ;;  %5091 = vlog2.f32 %v1387_v34  ;;  %v1403_v34 = vmax.f32 %v635_v23, 1e-08  ;;  %v644_v59 = vld [vmem:[%s5912_s3 + $0xf48] sm:$0xff] }
 0x214   : > { %v5068_v52 = vpop.eup %5067  ;;  %3676 = vst [vmem:[%s5943_s16 + $0xe08] sm:$0xff] %v2590_v45  ;;  %v2594_v53 = vmul.f32 0.6931472, %v5066_v48  ;;  %5093 = vlog2.f32 %v1388_v38  ;;  %v1404_v38 = vmax.f32 %v636_v27, 1e-08  ;;  %v645_v63 = vld [vmem:[%s5912_s3 + $0xf50] sm:$0xff] }
 0x215   : > { %v5070_v56 = vpop.eup %5069  ;;  %3677 = vst [vmem:[%s5943_s16 + $0xe10] sm:$0xff] %v2592_v49  ;;  %v2596_v57 = vmul.f32 0.6931472, %v5068_v52  ;;  %5095 = vlog2.f32 %v1389_v42  ;;  %v1405_v42 = vmax.f32 %v637_v31, 1e-08  ;;  %v646_v3 = vld [vmem:[%s5912_s3 + $0xf58] sm:$0xff] }
 0x216   : > { %v5072_v60 = vpop.eup %5071  ;;  %3678 = vst [vmem:[%s5943_s16 + $0xe18] sm:$0xff] %v2594_v53  ;;  %v2598_v61 = vmul.f32 0.6931472, %v5070_v56  ;;  %5097 = vlog2.f32 %v1390_v46  ;;  %v1406_v46 = vmax.f32 %v638_v35, 1e-08  ;;  %v647_v7 = vld [vmem:[%s5912_s3 + $0xf60] sm:$0xff] }
 0x217   : > { %v5074_v0 = vpop.eup %5073  ;;  %3679 = vst [vmem:[%s5943_s16 + $0xe20] sm:$0xff] %v2596_v57  ;;  %v2600_v1 = vmul.f32 0.6931472, %v5072_v60  ;;  %5099 = vlog2.f32 %v1391_v50  ;;  %v1407_v50 = vmax.f32 %v639_v39, 1e-08  ;;  %v648_v11 = vld [vmem:[%s5912_s3 + $0xf68] sm:$0xff] }
 0x218   : > { %v5076_v4 = vpop.eup %5075  ;;  %3680 = vst [vmem:[%s5943_s16 + $0xe28] sm:$0xff] %v2598_v61  ;;  %v2602_v5 = vmul.f32 0.6931472, %v5074_v0  ;;  %5101 = vlog2.f32 %v1392_v54  ;;  %v1408_v54 = vmax.f32 %v640_v43, 1e-08  ;;  %v649_v15 = vld [vmem:[%s5912_s3 + $0xf70] sm:$0xff] }
 0x219   : > { %v5078_v8 = vpop.eup %5077  ;;  %3681 = vst [vmem:[%s5943_s16 + $0xe30] sm:$0xff] %v2600_v1  ;;  %v2604_v9 = vmul.f32 0.6931472, %v5076_v4  ;;  %5103 = vlog2.f32 %v1393_v58  ;;  %v1409_v58 = vmax.f32 %v641_v47, 1e-08  ;;  %v650_v19 = vld [vmem:[%s5912_s3 + $0xf78] sm:$0xff] }
 0x21a   : > { %v5080_v12 = vpop.eup %5079  ;;  %3682 = vst [vmem:[%s5943_s16 + $0xe38] sm:$0xff] %v2602_v5  ;;  %v2606_v13 = vmul.f32 0.6931472, %v5078_v8  ;;  %5105 = vlog2.f32 %v1394_v62  ;;  %v1410_v62 = vmax.f32 %v642_v51, 1e-08  ;;  %v651_v23 = vld [vmem:[%s5912_s3 + $0xf80] sm:$0xff] }
 0x21b   : > { %v5082_v16 = vpop.eup %5081  ;;  %3683 = vst [vmem:[%s5943_s16 + $0xe40] sm:$0xff] %v2604_v9  ;;  %v2608_v17 = vmul.f32 0.6931472, %v5080_v12  ;;  %5107 = vlog2.f32 %v1395_v2  ;;  %v1411_v2 = vmax.f32 %v643_v55, 1e-08  ;;  %v652_v27 = vld [vmem:[%s5912_s3 + $0xf88] sm:$0xff] }
 0x21c   : > { %v5084_v20 = vpop.eup %5083  ;;  %3684 = vst [vmem:[%s5943_s16 + $0xe48] sm:$0xff] %v2606_v13  ;;  %v2610_v21 = vmul.f32 0.6931472, %v5082_v16  ;;  %5109 = vlog2.f32 %v1396_v6  ;;  %v1412_v6 = vmax.f32 %v644_v59, 1e-08  ;;  %v653_v31 = vld [vmem:[%s5912_s3 + $0xf90] sm:$0xff] }
 0x21d   : > { %v5086_v24 = vpop.eup %5085  ;;  %3685 = vst [vmem:[%s5943_s16 + $0xe50] sm:$0xff] %v2608_v17  ;;  %v2612_v25 = vmul.f32 0.6931472, %v5084_v20  ;;  %5111 = vlog2.f32 %v1397_v10  ;;  %v1413_v10 = vmax.f32 %v645_v63, 1e-08  ;;  %v654_v35 = vld [vmem:[%s5912_s3 + $0xf98] sm:$0xff] }
 0x21e   : > { %v5088_v28 = vpop.eup %5087  ;;  %3686 = vst [vmem:[%s5943_s16 + $0xe58] sm:$0xff] %v2610_v21  ;;  %v2614_v29 = vmul.f32 0.6931472, %v5086_v24  ;;  %5113 = vlog2.f32 %v1398_v14  ;;  %v1414_v14 = vmax.f32 %v646_v3, 1e-08  ;;  %v655_v39 = vld [vmem:[%s5912_s3 + $0xfa0] sm:$0xff] }
 0x21f   : > { %v5090_v32 = vpop.eup %5089  ;;  %3687 = vst [vmem:[%s5943_s16 + $0xe60] sm:$0xff] %v2612_v25  ;;  %v2616_v33 = vmul.f32 0.6931472, %v5088_v28  ;;  %5115 = vlog2.f32 %v1399_v18  ;;  %v1415_v18 = vmax.f32 %v647_v7, 1e-08  ;;  %v656_v43 = vld [vmem:[%s5912_s3 + $0xfa8] sm:$0xff] }
 0x220   : > { %v5092_v36 = vpop.eup %5091  ;;  %3688 = vst [vmem:[%s5943_s16 + $0xe68] sm:$0xff] %v2614_v29  ;;  %v2618_v37 = vmul.f32 0.6931472, %v5090_v32  ;;  %5117 = vlog2.f32 %v1400_v22  ;;  %v1416_v22 = vmax.f32 %v648_v11, 1e-08  ;;  %v657_v47 = vld [vmem:[%s5912_s3 + $0xfb0] sm:$0xff] }
 0x221   : > { %v5094_v40 = vpop.eup %5093  ;;  %3689 = vst [vmem:[%s5943_s16 + $0xe70] sm:$0xff] %v2616_v33  ;;  %v2620_v41 = vmul.f32 0.6931472, %v5092_v36  ;;  %5119 = vlog2.f32 %v1401_v26  ;;  %v1417_v26 = vmax.f32 %v649_v15, 1e-08  ;;  %v658_v51 = vld [vmem:[%s5912_s3 + $0xfb8] sm:$0xff] }
 0x222   : > { %v5096_v44 = vpop.eup %5095  ;;  %3690 = vst [vmem:[%s5943_s16 + $0xe78] sm:$0xff] %v2618_v37  ;;  %v2622_v45 = vmul.f32 0.6931472, %v5094_v40  ;;  %5121 = vlog2.f32 %v1402_v30  ;;  %v1418_v30 = vmax.f32 %v650_v19, 1e-08  ;;  %v659_v55 = vld [vmem:[%s5912_s3 + $0xfc0] sm:$0xff] }
 0x223   : > { %v5098_v48 = vpop.eup %5097  ;;  %3691 = vst [vmem:[%s5943_s16 + $0xe80] sm:$0xff] %v2620_v41  ;;  %v2624_v49 = vmul.f32 0.6931472, %v5096_v44  ;;  %5123 = vlog2.f32 %v1403_v34  ;;  %v1419_v34 = vmax.f32 %v651_v23, 1e-08  ;;  %v660_v59 = vld [vmem:[%s5912_s3 + $0xfc8] sm:$0xff] }
 0x224   : > { %v5100_v52 = vpop.eup %5099  ;;  %3692 = vst [vmem:[%s5943_s16 + $0xe88] sm:$0xff] %v2622_v45  ;;  %v2626_v53 = vmul.f32 0.6931472, %v5098_v48  ;;  %5125 = vlog2.f32 %v1404_v38  ;;  %v1420_v38 = vmax.f32 %v652_v27, 1e-08  ;;  %v661_v63 = vld [vmem:[%s5912_s3 + $0xfd0] sm:$0xff] }
 0x225   : > { %v5102_v56 = vpop.eup %5101  ;;  %3693 = vst [vmem:[%s5943_s16 + $0xe90] sm:$0xff] %v2624_v49  ;;  %v2628_v57 = vmul.f32 0.6931472, %v5100_v52  ;;  %5127 = vlog2.f32 %v1405_v42  ;;  %v1421_v42 = vmax.f32 %v653_v31, 1e-08  ;;  %v662_v3 = vld [vmem:[%s5912_s3 + $0xfd8] sm:$0xff] }
 0x226   : > { %v5104_v60 = vpop.eup %5103  ;;  %3694 = vst [vmem:[%s5943_s16 + $0xe98] sm:$0xff] %v2626_v53  ;;  %v2630_v61 = vmul.f32 0.6931472, %v5102_v56  ;;  %5129 = vlog2.f32 %v1406_v46  ;;  %v1422_v46 = vmax.f32 %v654_v35, 1e-08  ;;  %v663_v7 = vld [vmem:[%s5912_s3 + $0xfe0] sm:$0xff] }
 0x227   : > { %v5106_v0 = vpop.eup %5105  ;;  %3695 = vst [vmem:[%s5943_s16 + $0xea0] sm:$0xff] %v2628_v57  ;;  %v2632_v1 = vmul.f32 0.6931472, %v5104_v60  ;;  %5131 = vlog2.f32 %v1407_v50  ;;  %v1423_v50 = vmax.f32 %v655_v39, 1e-08  ;;  %v664_v11 = vld [vmem:[%s5912_s3 + $0xfe8] sm:$0xff] }
 0x228   : > { %v5108_v4 = vpop.eup %5107  ;;  %3696 = vst [vmem:[%s5943_s16 + $0xea8] sm:$0xff] %v2630_v61  ;;  %v2634_v5 = vmul.f32 0.6931472, %v5106_v0  ;;  %5133 = vlog2.f32 %v1408_v54  ;;  %v1424_v54 = vmax.f32 %v656_v43, 1e-08  ;;  %v665_v15 = vld [vmem:[%s5912_s3 + $0xff0] sm:$0xff] }
 0x229   : > { %v5110_v8 = vpop.eup %5109  ;;  %3697 = vst [vmem:[%s5943_s16 + $0xeb0] sm:$0xff] %v2632_v1  ;;  %v2636_v9 = vmul.f32 0.6931472, %v5108_v4  ;;  %5135 = vlog2.f32 %v1409_v58  ;;  %v1425_v58 = vmax.f32 %v657_v47, 1e-08  ;;  %v666_v19 = vld [vmem:[%s5912_s3 + $0xff8] sm:$0xff] }
 0x22a   : > { %v5112_v12 = vpop.eup %5111  ;;  %3698 = vst [vmem:[%s5943_s16 + $0xeb8] sm:$0xff] %v2634_v5  ;;  %v2638_v13 = vmul.f32 0.6931472, %v5110_v8  ;;  %5137 = vlog2.f32 %v1410_v62  ;;  %v1426_v62 = vmax.f32 %v658_v51, 1e-08  ;;  %v667_v23 = vld [vmem:[%s5912_s3 + $0x1000] sm:$0xff] }
 0x22b   : > { %v5114_v16 = vpop.eup %5113  ;;  %3699 = vst [vmem:[%s5943_s16 + $0xec0] sm:$0xff] %v2636_v9  ;;  %v2640_v17 = vmul.f32 0.6931472, %v5112_v12  ;;  %5139 = vlog2.f32 %v1411_v2  ;;  %v1427_v2 = vmax.f32 %v659_v55, 1e-08  ;;  %v668_v27 = vld [vmem:[%s5912_s3 + $0x1008] sm:$0xff] }
 0x22c   : > { %v5116_v20 = vpop.eup %5115  ;;  %3700 = vst [vmem:[%s5943_s16 + $0xec8] sm:$0xff] %v2638_v13  ;;  %v2642_v21 = vmul.f32 0.6931472, %v5114_v16  ;;  %5141 = vlog2.f32 %v1412_v6  ;;  %v1428_v6 = vmax.f32 %v660_v59, 1e-08  ;;  %v669_v31 = vld [vmem:[%s5912_s3 + $0x1010] sm:$0xff] }
 0x22d   : > { %v5118_v24 = vpop.eup %5117  ;;  %3701 = vst [vmem:[%s5943_s16 + $0xed0] sm:$0xff] %v2640_v17  ;;  %v2644_v25 = vmul.f32 0.6931472, %v5116_v20  ;;  %5143 = vlog2.f32 %v1413_v10  ;;  %v1429_v10 = vmax.f32 %v661_v63, 1e-08  ;;  %v670_v35 = vld [vmem:[%s5912_s3 + $0x1018] sm:$0xff] }
 0x22e   : > { %v5120_v28 = vpop.eup %5119  ;;  %3702 = vst [vmem:[%s5943_s16 + $0xed8] sm:$0xff] %v2642_v21  ;;  %v2646_v29 = vmul.f32 0.6931472, %v5118_v24  ;;  %5145 = vlog2.f32 %v1414_v14  ;;  %v1430_v14 = vmax.f32 %v662_v3, 1e-08  ;;  %v671_v39 = vld [vmem:[%s5912_s3 + $0x1020] sm:$0xff] }
 0x22f   : > { %v5122_v32 = vpop.eup %5121  ;;  %3703 = vst [vmem:[%s5943_s16 + $0xee0] sm:$0xff] %v2644_v25  ;;  %v2648_v33 = vmul.f32 0.6931472, %v5120_v28  ;;  %5147 = vlog2.f32 %v1415_v18  ;;  %v1431_v18 = vmax.f32 %v663_v7, 1e-08  ;;  %v672_v43 = vld [vmem:[%s5912_s3 + $0x1028] sm:$0xff] }
 0x230   : > { %v5124_v36 = vpop.eup %5123  ;;  %3704 = vst [vmem:[%s5943_s16 + $0xee8] sm:$0xff] %v2646_v29  ;;  %v2650_v37 = vmul.f32 0.6931472, %v5122_v32  ;;  %5149 = vlog2.f32 %v1416_v22  ;;  %v1432_v22 = vmax.f32 %v664_v11, 1e-08  ;;  %v673_v47 = vld [vmem:[%s5912_s3 + $0x1030] sm:$0xff] }
 0x231   : > { %v5126_v40 = vpop.eup %5125  ;;  %3705 = vst [vmem:[%s5943_s16 + $0xef0] sm:$0xff] %v2648_v33  ;;  %v2652_v41 = vmul.f32 0.6931472, %v5124_v36  ;;  %5151 = vlog2.f32 %v1417_v26  ;;  %v1433_v26 = vmax.f32 %v665_v15, 1e-08  ;;  %v674_v51 = vld [vmem:[%s5912_s3 + $0x1038] sm:$0xff] }
 0x232   : > { %v5128_v44 = vpop.eup %5127  ;;  %3706 = vst [vmem:[%s5943_s16 + $0xef8] sm:$0xff] %v2650_v37  ;;  %v2654_v45 = vmul.f32 0.6931472, %v5126_v40  ;;  %5153 = vlog2.f32 %v1418_v30  ;;  %v1434_v30 = vmax.f32 %v666_v19, 1e-08  ;;  %v675_v55 = vld [vmem:[%s5912_s3 + $0x1040] sm:$0xff] }
 0x233   : > { %v5130_v48 = vpop.eup %5129  ;;  %3707 = vst [vmem:[%s5943_s16 + $0xf00] sm:$0xff] %v2652_v41  ;;  %v2656_v49 = vmul.f32 0.6931472, %v5128_v44  ;;  %5155 = vlog2.f32 %v1419_v34  ;;  %v1435_v34 = vmax.f32 %v667_v23, 1e-08  ;;  %v676_v59 = vld [vmem:[%s5912_s3 + $0x1048] sm:$0xff] }
 0x234   : > { %v5132_v52 = vpop.eup %5131  ;;  %3708 = vst [vmem:[%s5943_s16 + $0xf08] sm:$0xff] %v2654_v45  ;;  %v2658_v53 = vmul.f32 0.6931472, %v5130_v48  ;;  %5157 = vlog2.f32 %v1420_v38  ;;  %v1436_v38 = vmax.f32 %v668_v27, 1e-08  ;;  %v677_v63 = vld [vmem:[%s5912_s3 + $0x1050] sm:$0xff] }
 0x235   : > { %v5134_v56 = vpop.eup %5133  ;;  %3709 = vst [vmem:[%s5943_s16 + $0xf10] sm:$0xff] %v2656_v49  ;;  %v2660_v57 = vmul.f32 0.6931472, %v5132_v52  ;;  %5159 = vlog2.f32 %v1421_v42  ;;  %v1437_v42 = vmax.f32 %v669_v31, 1e-08  ;;  %v678_v3 = vld [vmem:[%s5912_s3 + $0x1058] sm:$0xff] }
 0x236   : > { %v5136_v60 = vpop.eup %5135  ;;  %3710 = vst [vmem:[%s5943_s16 + $0xf18] sm:$0xff] %v2658_v53  ;;  %v2662_v61 = vmul.f32 0.6931472, %v5134_v56  ;;  %5161 = vlog2.f32 %v1422_v46  ;;  %v1438_v46 = vmax.f32 %v670_v35, 1e-08  ;;  %v679_v7 = vld [vmem:[%s5912_s3 + $0x1060] sm:$0xff] }
 0x237   : > { %v5138_v0 = vpop.eup %5137  ;;  %3711 = vst [vmem:[%s5943_s16 + $0xf20] sm:$0xff] %v2660_v57  ;;  %v2664_v1 = vmul.f32 0.6931472, %v5136_v60  ;;  %5163 = vlog2.f32 %v1423_v50  ;;  %v1439_v50 = vmax.f32 %v671_v39, 1e-08  ;;  %v680_v11 = vld [vmem:[%s5912_s3 + $0x1068] sm:$0xff] }
 0x238   : > { %v5140_v4 = vpop.eup %5139  ;;  %3712 = vst [vmem:[%s5943_s16 + $0xf28] sm:$0xff] %v2662_v61  ;;  %v2666_v5 = vmul.f32 0.6931472, %v5138_v0  ;;  %5165 = vlog2.f32 %v1424_v54  ;;  %v1440_v54 = vmax.f32 %v672_v43, 1e-08  ;;  %v681_v15 = vld [vmem:[%s5912_s3 + $0x1070] sm:$0xff] }
 0x239   : > { %v5142_v8 = vpop.eup %5141  ;;  %3713 = vst [vmem:[%s5943_s16 + $0xf30] sm:$0xff] %v2664_v1  ;;  %v2668_v9 = vmul.f32 0.6931472, %v5140_v4  ;;  %5167 = vlog2.f32 %v1425_v58  ;;  %v1441_v58 = vmax.f32 %v673_v47, 1e-08  ;;  %v682_v19 = vld [vmem:[%s5912_s3 + $0x1078] sm:$0xff] }
 0x23a   : > { %v5144_v12 = vpop.eup %5143  ;;  %3714 = vst [vmem:[%s5943_s16 + $0xf38] sm:$0xff] %v2666_v5  ;;  %v2670_v13 = vmul.f32 0.6931472, %v5142_v8  ;;  %5169 = vlog2.f32 %v1426_v62  ;;  %v1442_v62 = vmax.f32 %v674_v51, 1e-08  ;;  %v683_v23 = vld [vmem:[%s5912_s3 + $0x1080] sm:$0xff] }
 0x23b   : > { %v5146_v16 = vpop.eup %5145  ;;  %3715 = vst [vmem:[%s5943_s16 + $0xf40] sm:$0xff] %v2668_v9  ;;  %v2672_v17 = vmul.f32 0.6931472, %v5144_v12  ;;  %5171 = vlog2.f32 %v1427_v2  ;;  %v1443_v2 = vmax.f32 %v675_v55, 1e-08  ;;  %v684_v27 = vld [vmem:[%s5912_s3 + $0x1088] sm:$0xff] }
 0x23c   : > { %v5148_v20 = vpop.eup %5147  ;;  %3716 = vst [vmem:[%s5943_s16 + $0xf48] sm:$0xff] %v2670_v13  ;;  %v2674_v21 = vmul.f32 0.6931472, %v5146_v16  ;;  %5173 = vlog2.f32 %v1428_v6  ;;  %v1444_v6 = vmax.f32 %v676_v59, 1e-08  ;;  %v685_v31 = vld [vmem:[%s5912_s3 + $0x1090] sm:$0xff] }
 0x23d   : > { %v5150_v24 = vpop.eup %5149  ;;  %3717 = vst [vmem:[%s5943_s16 + $0xf50] sm:$0xff] %v2672_v17  ;;  %v2676_v25 = vmul.f32 0.6931472, %v5148_v20  ;;  %5175 = vlog2.f32 %v1429_v10  ;;  %v1445_v10 = vmax.f32 %v677_v63, 1e-08  ;;  %v686_v35 = vld [vmem:[%s5912_s3 + $0x1098] sm:$0xff] }
 0x23e   : > { %v5152_v28 = vpop.eup %5151  ;;  %3718 = vst [vmem:[%s5943_s16 + $0xf58] sm:$0xff] %v2674_v21  ;;  %v2678_v29 = vmul.f32 0.6931472, %v5150_v24  ;;  %5177 = vlog2.f32 %v1430_v14  ;;  %v1446_v14 = vmax.f32 %v678_v3, 1e-08  ;;  %v687_v39 = vld [vmem:[%s5912_s3 + $0x10a0] sm:$0xff] }
 0x23f   : > { %v5154_v32 = vpop.eup %5153  ;;  %3719 = vst [vmem:[%s5943_s16 + $0xf60] sm:$0xff] %v2676_v25  ;;  %v2680_v33 = vmul.f32 0.6931472, %v5152_v28  ;;  %5179 = vlog2.f32 %v1431_v18  ;;  %v1447_v18 = vmax.f32 %v679_v7, 1e-08  ;;  %v688_v43 = vld [vmem:[%s5912_s3 + $0x10a8] sm:$0xff] }
 0x240   : > { %v5156_v36 = vpop.eup %5155  ;;  %3720 = vst [vmem:[%s5943_s16 + $0xf68] sm:$0xff] %v2678_v29  ;;  %v2682_v37 = vmul.f32 0.6931472, %v5154_v32  ;;  %5181 = vlog2.f32 %v1432_v22  ;;  %v1448_v22 = vmax.f32 %v680_v11, 1e-08  ;;  %v689_v47 = vld [vmem:[%s5912_s3 + $0x10b0] sm:$0xff] }
 0x241   : > { %v5158_v40 = vpop.eup %5157  ;;  %3721 = vst [vmem:[%s5943_s16 + $0xf70] sm:$0xff] %v2680_v33  ;;  %v2684_v41 = vmul.f32 0.6931472, %v5156_v36  ;;  %5183 = vlog2.f32 %v1433_v26  ;;  %v1449_v26 = vmax.f32 %v681_v15, 1e-08  ;;  %v690_v51 = vld [vmem:[%s5912_s3 + $0x10b8] sm:$0xff] }
 0x242   : > { %v5160_v44 = vpop.eup %5159  ;;  %3722 = vst [vmem:[%s5943_s16 + $0xf78] sm:$0xff] %v2682_v37  ;;  %v2686_v45 = vmul.f32 0.6931472, %v5158_v40  ;;  %5185 = vlog2.f32 %v1434_v30  ;;  %v1450_v30 = vmax.f32 %v682_v19, 1e-08  ;;  %v691_v55 = vld [vmem:[%s5912_s3 + $0x10c0] sm:$0xff] }
 0x243   : > { %v5162_v48 = vpop.eup %5161  ;;  %3723 = vst [vmem:[%s5943_s16 + $0xf80] sm:$0xff] %v2684_v41  ;;  %v2688_v49 = vmul.f32 0.6931472, %v5160_v44  ;;  %5187 = vlog2.f32 %v1435_v34  ;;  %v1451_v34 = vmax.f32 %v683_v23, 1e-08  ;;  %v692_v59 = vld [vmem:[%s5912_s3 + $0x10c8] sm:$0xff] }
 0x244   : > { %v5164_v52 = vpop.eup %5163  ;;  %3724 = vst [vmem:[%s5943_s16 + $0xf88] sm:$0xff] %v2686_v45  ;;  %v2690_v53 = vmul.f32 0.6931472, %v5162_v48  ;;  %5189 = vlog2.f32 %v1436_v38  ;;  %v1452_v38 = vmax.f32 %v684_v27, 1e-08  ;;  %v693_v63 = vld [vmem:[%s5912_s3 + $0x10d0] sm:$0xff] }
 0x245   : > { %v5166_v56 = vpop.eup %5165  ;;  %3725 = vst [vmem:[%s5943_s16 + $0xf90] sm:$0xff] %v2688_v49  ;;  %v2692_v57 = vmul.f32 0.6931472, %v5164_v52  ;;  %5191 = vlog2.f32 %v1437_v42  ;;  %v1453_v42 = vmax.f32 %v685_v31, 1e-08  ;;  %v694_v3 = vld [vmem:[%s5912_s3 + $0x10d8] sm:$0xff] }
 0x246   : > { %v5168_v60 = vpop.eup %5167  ;;  %3726 = vst [vmem:[%s5943_s16 + $0xf98] sm:$0xff] %v2690_v53  ;;  %v2694_v61 = vmul.f32 0.6931472, %v5166_v56  ;;  %5193 = vlog2.f32 %v1438_v46  ;;  %v1454_v46 = vmax.f32 %v686_v35, 1e-08  ;;  %v695_v7 = vld [vmem:[%s5912_s3 + $0x10e0] sm:$0xff] }
 0x247   : > { %v5170_v0 = vpop.eup %5169  ;;  %3727 = vst [vmem:[%s5943_s16 + $0xfa0] sm:$0xff] %v2692_v57  ;;  %v2696_v1 = vmul.f32 0.6931472, %v5168_v60  ;;  %5195 = vlog2.f32 %v1439_v50  ;;  %v1455_v50 = vmax.f32 %v687_v39, 1e-08  ;;  %v696_v11 = vld [vmem:[%s5912_s3 + $0x10e8] sm:$0xff] }
 0x248   : > { %v5172_v4 = vpop.eup %5171  ;;  %3728 = vst [vmem:[%s5943_s16 + $0xfa8] sm:$0xff] %v2694_v61  ;;  %v2698_v5 = vmul.f32 0.6931472, %v5170_v0  ;;  %5197 = vlog2.f32 %v1440_v54  ;;  %v1456_v54 = vmax.f32 %v688_v43, 1e-08  ;;  %v697_v15 = vld [vmem:[%s5912_s3 + $0x10f0] sm:$0xff] }
 0x249   : > { %v5174_v8 = vpop.eup %5173  ;;  %3729 = vst [vmem:[%s5943_s16 + $0xfb0] sm:$0xff] %v2696_v1  ;;  %v2700_v9 = vmul.f32 0.6931472, %v5172_v4  ;;  %5199 = vlog2.f32 %v1441_v58  ;;  %v1457_v58 = vmax.f32 %v689_v47, 1e-08  ;;  %v698_v19 = vld [vmem:[%s5912_s3 + $0x10f8] sm:$0xff] }
 0x24a   : > { %v5176_v12 = vpop.eup %5175  ;;  %3730 = vst [vmem:[%s5943_s16 + $0xfb8] sm:$0xff] %v2698_v5  ;;  %v2702_v13 = vmul.f32 0.6931472, %v5174_v8  ;;  %5201 = vlog2.f32 %v1442_v62  ;;  %v1458_v62 = vmax.f32 %v690_v51, 1e-08  ;;  %v699_v23 = vld [vmem:[%s5912_s3 + $0x1100] sm:$0xff] }
 0x24b   : > { %v5178_v16 = vpop.eup %5177  ;;  %3731 = vst [vmem:[%s5943_s16 + $0xfc0] sm:$0xff] %v2700_v9  ;;  %v2704_v17 = vmul.f32 0.6931472, %v5176_v12  ;;  %5203 = vlog2.f32 %v1443_v2  ;;  %v1459_v2 = vmax.f32 %v691_v55, 1e-08  ;;  %v700_v27 = vld [vmem:[%s5912_s3 + $0x1108] sm:$0xff] }
 0x24c   : > { %v5180_v20 = vpop.eup %5179  ;;  %3732 = vst [vmem:[%s5943_s16 + $0xfc8] sm:$0xff] %v2702_v13  ;;  %v2706_v21 = vmul.f32 0.6931472, %v5178_v16  ;;  %5205 = vlog2.f32 %v1444_v6  ;;  %v1460_v6 = vmax.f32 %v692_v59, 1e-08  ;;  %v701_v31 = vld [vmem:[%s5912_s3 + $0x1110] sm:$0xff] }
 0x24d   : > { %v5182_v24 = vpop.eup %5181  ;;  %3733 = vst [vmem:[%s5943_s16 + $0xfd0] sm:$0xff] %v2704_v17  ;;  %v2708_v25 = vmul.f32 0.6931472, %v5180_v20  ;;  %5207 = vlog2.f32 %v1445_v10  ;;  %v1461_v10 = vmax.f32 %v693_v63, 1e-08  ;;  %v702_v35 = vld [vmem:[%s5912_s3 + $0x1118] sm:$0xff] }
 0x24e   : > { %v5184_v28 = vpop.eup %5183  ;;  %3734 = vst [vmem:[%s5943_s16 + $0xfd8] sm:$0xff] %v2706_v21  ;;  %v2710_v29 = vmul.f32 0.6931472, %v5182_v24  ;;  %5209 = vlog2.f32 %v1446_v14  ;;  %v1462_v14 = vmax.f32 %v694_v3, 1e-08  ;;  %v703_v39 = vld [vmem:[%s5912_s3 + $0x1120] sm:$0xff] }
 0x24f   : > { %v5186_v32 = vpop.eup %5185  ;;  %3735 = vst [vmem:[%s5943_s16 + $0xfe0] sm:$0xff] %v2708_v25  ;;  %v2712_v33 = vmul.f32 0.6931472, %v5184_v28  ;;  %5211 = vlog2.f32 %v1447_v18  ;;  %v1463_v18 = vmax.f32 %v695_v7, 1e-08  ;;  %v704_v43 = vld [vmem:[%s5912_s3 + $0x1128] sm:$0xff] }
 0x250   : > { %v5188_v36 = vpop.eup %5187  ;;  %3736 = vst [vmem:[%s5943_s16 + $0xfe8] sm:$0xff] %v2710_v29  ;;  %v2714_v37 = vmul.f32 0.6931472, %v5186_v32  ;;  %5213 = vlog2.f32 %v1448_v22  ;;  %v1464_v22 = vmax.f32 %v696_v11, 1e-08  ;;  %v705_v47 = vld [vmem:[%s5912_s3 + $0x1130] sm:$0xff] }
 0x251   : > { %v5190_v40 = vpop.eup %5189  ;;  %3737 = vst [vmem:[%s5943_s16 + $0xff0] sm:$0xff] %v2712_v33  ;;  %v2716_v41 = vmul.f32 0.6931472, %v5188_v36  ;;  %5215 = vlog2.f32 %v1449_v26  ;;  %v1465_v26 = vmax.f32 %v697_v15, 1e-08  ;;  %v706_v51 = vld [vmem:[%s5912_s3 + $0x1138] sm:$0xff] }
 0x252   : > { %v5192_v44 = vpop.eup %5191  ;;  %3738 = vst [vmem:[%s5943_s16 + $0xff8] sm:$0xff] %v2714_v37  ;;  %v2718_v45 = vmul.f32 0.6931472, %v5190_v40  ;;  %5217 = vlog2.f32 %v1450_v30  ;;  %v1466_v30 = vmax.f32 %v698_v19, 1e-08  ;;  %v707_v55 = vld [vmem:[%s5912_s3 + $0x1140] sm:$0xff] }
 0x253   : > { %v5194_v48 = vpop.eup %5193  ;;  %3739 = vst [vmem:[%s5943_s16 + $0x1000] sm:$0xff] %v2716_v41  ;;  %v2720_v49 = vmul.f32 0.6931472, %v5192_v44  ;;  %5219 = vlog2.f32 %v1451_v34  ;;  %v1467_v34 = vmax.f32 %v699_v23, 1e-08  ;;  %v708_v59 = vld [vmem:[%s5912_s3 + $0x1148] sm:$0xff] }
 0x254   : > { %v5196_v52 = vpop.eup %5195  ;;  %3740 = vst [vmem:[%s5943_s16 + $0x1008] sm:$0xff] %v2718_v45  ;;  %v2722_v53 = vmul.f32 0.6931472, %v5194_v48  ;;  %5221 = vlog2.f32 %v1452_v38  ;;  %v1468_v38 = vmax.f32 %v700_v27, 1e-08  ;;  %v709_v63 = vld [vmem:[%s5912_s3 + $0x1150] sm:$0xff] }
 0x255   : > { %v5198_v56 = vpop.eup %5197  ;;  %3741 = vst [vmem:[%s5943_s16 + $0x1010] sm:$0xff] %v2720_v49  ;;  %v2724_v57 = vmul.f32 0.6931472, %v5196_v52  ;;  %5223 = vlog2.f32 %v1453_v42  ;;  %v1469_v42 = vmax.f32 %v701_v31, 1e-08  ;;  %v710_v3 = vld [vmem:[%s5912_s3 + $0x1158] sm:$0xff] }
 0x256   : > { %v5200_v60 = vpop.eup %5199  ;;  %3742 = vst [vmem:[%s5943_s16 + $0x1018] sm:$0xff] %v2722_v53  ;;  %v2726_v61 = vmul.f32 0.6931472, %v5198_v56  ;;  %5225 = vlog2.f32 %v1454_v46  ;;  %v1470_v46 = vmax.f32 %v702_v35, 1e-08  ;;  %v711_v7 = vld [vmem:[%s5912_s3 + $0x1160] sm:$0xff] }
 0x257   : > { %v5202_v0 = vpop.eup %5201  ;;  %3743 = vst [vmem:[%s5943_s16 + $0x1020] sm:$0xff] %v2724_v57  ;;  %v2728_v1 = vmul.f32 0.6931472, %v5200_v60  ;;  %5227 = vlog2.f32 %v1455_v50  ;;  %v1471_v50 = vmax.f32 %v703_v39, 1e-08  ;;  %v712_v11 = vld [vmem:[%s5912_s3 + $0x1168] sm:$0xff] }
 0x258   : > { %v5204_v4 = vpop.eup %5203  ;;  %3744 = vst [vmem:[%s5943_s16 + $0x1028] sm:$0xff] %v2726_v61  ;;  %v2730_v5 = vmul.f32 0.6931472, %v5202_v0  ;;  %5229 = vlog2.f32 %v1456_v54  ;;  %v1472_v54 = vmax.f32 %v704_v43, 1e-08  ;;  %v713_v15 = vld [vmem:[%s5912_s3 + $0x1170] sm:$0xff] }
 0x259   : > { %v5206_v8 = vpop.eup %5205  ;;  %3745 = vst [vmem:[%s5943_s16 + $0x1030] sm:$0xff] %v2728_v1  ;;  %v2732_v9 = vmul.f32 0.6931472, %v5204_v4  ;;  %5231 = vlog2.f32 %v1457_v58  ;;  %v1473_v58 = vmax.f32 %v705_v47, 1e-08  ;;  %v714_v19 = vld [vmem:[%s5912_s3 + $0x1178] sm:$0xff] }
 0x25a   : > { %v5208_v12 = vpop.eup %5207  ;;  %3746 = vst [vmem:[%s5943_s16 + $0x1038] sm:$0xff] %v2730_v5  ;;  %v2734_v13 = vmul.f32 0.6931472, %v5206_v8  ;;  %5233 = vlog2.f32 %v1458_v62  ;;  %v1474_v62 = vmax.f32 %v706_v51, 1e-08  ;;  %v715_v23 = vld [vmem:[%s5912_s3 + $0x1180] sm:$0xff] }
 0x25b   : > { %v5210_v16 = vpop.eup %5209  ;;  %3747 = vst [vmem:[%s5943_s16 + $0x1040] sm:$0xff] %v2732_v9  ;;  %v2736_v17 = vmul.f32 0.6931472, %v5208_v12  ;;  %5235 = vlog2.f32 %v1459_v2  ;;  %v1475_v2 = vmax.f32 %v707_v55, 1e-08  ;;  %v716_v27 = vld [vmem:[%s5912_s3 + $0x1188] sm:$0xff] }
 0x25c   : > { %v5212_v20 = vpop.eup %5211  ;;  %3748 = vst [vmem:[%s5943_s16 + $0x1048] sm:$0xff] %v2734_v13  ;;  %v2738_v21 = vmul.f32 0.6931472, %v5210_v16  ;;  %5237 = vlog2.f32 %v1460_v6  ;;  %v1476_v6 = vmax.f32 %v708_v59, 1e-08  ;;  %v717_v31 = vld [vmem:[%s5912_s3 + $0x1190] sm:$0xff] }
 0x25d   : > { %v5214_v24 = vpop.eup %5213  ;;  %3749 = vst [vmem:[%s5943_s16 + $0x1050] sm:$0xff] %v2736_v17  ;;  %v2740_v25 = vmul.f32 0.6931472, %v5212_v20  ;;  %5239 = vlog2.f32 %v1461_v10  ;;  %v1477_v10 = vmax.f32 %v709_v63, 1e-08  ;;  %v718_v35 = vld [vmem:[%s5912_s3 + $0x1198] sm:$0xff] }
 0x25e   : > { %v5216_v28 = vpop.eup %5215  ;;  %3750 = vst [vmem:[%s5943_s16 + $0x1058] sm:$0xff] %v2738_v21  ;;  %v2742_v29 = vmul.f32 0.6931472, %v5214_v24  ;;  %5241 = vlog2.f32 %v1462_v14  ;;  %v1478_v14 = vmax.f32 %v710_v3, 1e-08  ;;  %v719_v39 = vld [vmem:[%s5912_s3 + $0x11a0] sm:$0xff] }
 0x25f   : > { %v5218_v32 = vpop.eup %5217  ;;  %3751 = vst [vmem:[%s5943_s16 + $0x1060] sm:$0xff] %v2740_v25  ;;  %v2744_v33 = vmul.f32 0.6931472, %v5216_v28  ;;  %5243 = vlog2.f32 %v1463_v18  ;;  %v1479_v18 = vmax.f32 %v711_v7, 1e-08  ;;  %v720_v43 = vld [vmem:[%s5912_s3 + $0x11a8] sm:$0xff] }
 0x260   : > { %v5220_v36 = vpop.eup %5219  ;;  %3752 = vst [vmem:[%s5943_s16 + $0x1068] sm:$0xff] %v2742_v29  ;;  %v2746_v37 = vmul.f32 0.6931472, %v5218_v32  ;;  %5245 = vlog2.f32 %v1464_v22  ;;  %v1480_v22 = vmax.f32 %v712_v11, 1e-08  ;;  %v721_v47 = vld [vmem:[%s5912_s3 + $0x11b0] sm:$0xff] }
 0x261   : > { %v5222_v40 = vpop.eup %5221  ;;  %3753 = vst [vmem:[%s5943_s16 + $0x1070] sm:$0xff] %v2744_v33  ;;  %v2748_v41 = vmul.f32 0.6931472, %v5220_v36  ;;  %5247 = vlog2.f32 %v1465_v26  ;;  %v1481_v26 = vmax.f32 %v713_v15, 1e-08  ;;  %v722_v51 = vld [vmem:[%s5912_s3 + $0x11b8] sm:$0xff] }
 0x262   : > { %v5224_v44 = vpop.eup %5223  ;;  %3754 = vst [vmem:[%s5943_s16 + $0x1078] sm:$0xff] %v2746_v37  ;;  %v2750_v45 = vmul.f32 0.6931472, %v5222_v40  ;;  %5249 = vlog2.f32 %v1466_v30  ;;  %v1482_v30 = vmax.f32 %v714_v19, 1e-08  ;;  %v723_v55 = vld [vmem:[%s5912_s3 + $0x11c0] sm:$0xff] }
 0x263   : > { %v5226_v48 = vpop.eup %5225  ;;  %3755 = vst [vmem:[%s5943_s16 + $0x1080] sm:$0xff] %v2748_v41  ;;  %v2752_v49 = vmul.f32 0.6931472, %v5224_v44  ;;  %5251 = vlog2.f32 %v1467_v34  ;;  %v1483_v34 = vmax.f32 %v715_v23, 1e-08  ;;  %v724_v59 = vld [vmem:[%s5912_s3 + $0x11c8] sm:$0xff] }
 0x264   : > { %v5228_v52 = vpop.eup %5227  ;;  %3756 = vst [vmem:[%s5943_s16 + $0x1088] sm:$0xff] %v2750_v45  ;;  %v2754_v53 = vmul.f32 0.6931472, %v5226_v48  ;;  %5253 = vlog2.f32 %v1468_v38  ;;  %v1484_v38 = vmax.f32 %v716_v27, 1e-08  ;;  %v725_v63 = vld [vmem:[%s5912_s3 + $0x11d0] sm:$0xff] }
 0x265   : > { %v5230_v56 = vpop.eup %5229  ;;  %3757 = vst [vmem:[%s5943_s16 + $0x1090] sm:$0xff] %v2752_v49  ;;  %v2756_v57 = vmul.f32 0.6931472, %v5228_v52  ;;  %5255 = vlog2.f32 %v1469_v42  ;;  %v1485_v42 = vmax.f32 %v717_v31, 1e-08  ;;  %v726_v3 = vld [vmem:[%s5912_s3 + $0x11d8] sm:$0xff] }
 0x266   : > { %v5232_v60 = vpop.eup %5231  ;;  %3758 = vst [vmem:[%s5943_s16 + $0x1098] sm:$0xff] %v2754_v53  ;;  %v2758_v61 = vmul.f32 0.6931472, %v5230_v56  ;;  %5257 = vlog2.f32 %v1470_v46  ;;  %v1486_v46 = vmax.f32 %v718_v35, 1e-08  ;;  %v727_v7 = vld [vmem:[%s5912_s3 + $0x11e0] sm:$0xff] }
 0x267   : > { %v5234_v0 = vpop.eup %5233  ;;  %3759 = vst [vmem:[%s5943_s16 + $0x10a0] sm:$0xff] %v2756_v57  ;;  %v2760_v1 = vmul.f32 0.6931472, %v5232_v60  ;;  %5259 = vlog2.f32 %v1471_v50  ;;  %v1487_v50 = vmax.f32 %v719_v39, 1e-08  ;;  %v728_v11 = vld [vmem:[%s5912_s3 + $0x11e8] sm:$0xff] }
 0x268   : > { %v5236_v4 = vpop.eup %5235  ;;  %3760 = vst [vmem:[%s5943_s16 + $0x10a8] sm:$0xff] %v2758_v61  ;;  %v2762_v5 = vmul.f32 0.6931472, %v5234_v0  ;;  %5261 = vlog2.f32 %v1472_v54  ;;  %v1488_v54 = vmax.f32 %v720_v43, 1e-08  ;;  %v729_v15 = vld [vmem:[%s5912_s3 + $0x11f0] sm:$0xff] }
 0x269   : > { %v5238_v8 = vpop.eup %5237  ;;  %3761 = vst [vmem:[%s5943_s16 + $0x10b0] sm:$0xff] %v2760_v1  ;;  %v2764_v9 = vmul.f32 0.6931472, %v5236_v4  ;;  %5263 = vlog2.f32 %v1473_v58  ;;  %v1489_v58 = vmax.f32 %v721_v47, 1e-08  ;;  %v730_v19 = vld [vmem:[%s5912_s3 + $0x11f8] sm:$0xff] }
 0x26a   : > { %v5240_v12 = vpop.eup %5239  ;;  %3762 = vst [vmem:[%s5943_s16 + $0x10b8] sm:$0xff] %v2762_v5  ;;  %v2766_v13 = vmul.f32 0.6931472, %v5238_v8  ;;  %5265 = vlog2.f32 %v1474_v62  ;;  %v1490_v62 = vmax.f32 %v722_v51, 1e-08  ;;  %v731_v23 = vld [vmem:[%s5912_s3 + $0x1200] sm:$0xff] }
 0x26b   : > { %v5242_v16 = vpop.eup %5241  ;;  %3763 = vst [vmem:[%s5943_s16 + $0x10c0] sm:$0xff] %v2764_v9  ;;  %v2768_v17 = vmul.f32 0.6931472, %v5240_v12  ;;  %5267 = vlog2.f32 %v1475_v2  ;;  %v1491_v2 = vmax.f32 %v723_v55, 1e-08  ;;  %v732_v27 = vld [vmem:[%s5912_s3 + $0x1208] sm:$0xff] }
 0x26c   : > { %v5244_v20 = vpop.eup %5243  ;;  %3764 = vst [vmem:[%s5943_s16 + $0x10c8] sm:$0xff] %v2766_v13  ;;  %v2770_v21 = vmul.f32 0.6931472, %v5242_v16  ;;  %5269 = vlog2.f32 %v1476_v6  ;;  %v1492_v6 = vmax.f32 %v724_v59, 1e-08  ;;  %v733_v31 = vld [vmem:[%s5912_s3 + $0x1210] sm:$0xff] }
 0x26d   : > { %v5246_v24 = vpop.eup %5245  ;;  %3765 = vst [vmem:[%s5943_s16 + $0x10d0] sm:$0xff] %v2768_v17  ;;  %v2772_v25 = vmul.f32 0.6931472, %v5244_v20  ;;  %5271 = vlog2.f32 %v1477_v10  ;;  %v1493_v10 = vmax.f32 %v725_v63, 1e-08  ;;  %v734_v35 = vld [vmem:[%s5912_s3 + $0x1218] sm:$0xff] }
 0x26e   : > { %v5248_v28 = vpop.eup %5247  ;;  %3766 = vst [vmem:[%s5943_s16 + $0x10d8] sm:$0xff] %v2770_v21  ;;  %v2774_v29 = vmul.f32 0.6931472, %v5246_v24  ;;  %5273 = vlog2.f32 %v1478_v14  ;;  %v1494_v14 = vmax.f32 %v726_v3, 1e-08  ;;  %v735_v39 = vld [vmem:[%s5912_s3 + $0x1220] sm:$0xff] }
 0x26f   : > { %v5250_v32 = vpop.eup %5249  ;;  %3767 = vst [vmem:[%s5943_s16 + $0x10e0] sm:$0xff] %v2772_v25  ;;  %v2776_v33 = vmul.f32 0.6931472, %v5248_v28  ;;  %5275 = vlog2.f32 %v1479_v18  ;;  %v1495_v18 = vmax.f32 %v727_v7, 1e-08  ;;  %v736_v43 = vld [vmem:[%s5912_s3 + $0x1228] sm:$0xff] }
 0x270   : > { %v5252_v36 = vpop.eup %5251  ;;  %3768 = vst [vmem:[%s5943_s16 + $0x10e8] sm:$0xff] %v2774_v29  ;;  %v2778_v37 = vmul.f32 0.6931472, %v5250_v32  ;;  %5277 = vlog2.f32 %v1480_v22  ;;  %v1496_v22 = vmax.f32 %v728_v11, 1e-08  ;;  %v737_v47 = vld [vmem:[%s5912_s3 + $0x1230] sm:$0xff] }
 0x271   : > { %v5254_v40 = vpop.eup %5253  ;;  %3769 = vst [vmem:[%s5943_s16 + $0x10f0] sm:$0xff] %v2776_v33  ;;  %v2780_v41 = vmul.f32 0.6931472, %v5252_v36  ;;  %5279 = vlog2.f32 %v1481_v26  ;;  %v1497_v26 = vmax.f32 %v729_v15, 1e-08  ;;  %v738_v51 = vld [vmem:[%s5912_s3 + $0x1238] sm:$0xff] }
 0x272   : > { %v5256_v44 = vpop.eup %5255  ;;  %3770 = vst [vmem:[%s5943_s16 + $0x10f8] sm:$0xff] %v2778_v37  ;;  %v2782_v45 = vmul.f32 0.6931472, %v5254_v40  ;;  %5281 = vlog2.f32 %v1482_v30  ;;  %v1498_v30 = vmax.f32 %v730_v19, 1e-08  ;;  %v739_v55 = vld [vmem:[%s5912_s3 + $0x1240] sm:$0xff] }
 0x273   : > { %v5258_v48 = vpop.eup %5257  ;;  %3771 = vst [vmem:[%s5943_s16 + $0x1100] sm:$0xff] %v2780_v41  ;;  %v2784_v49 = vmul.f32 0.6931472, %v5256_v44  ;;  %5283 = vlog2.f32 %v1483_v34  ;;  %v1499_v34 = vmax.f32 %v731_v23, 1e-08  ;;  %v740_v59 = vld [vmem:[%s5912_s3 + $0x1248] sm:$0xff] }
 0x274   : > { %v5260_v52 = vpop.eup %5259  ;;  %3772 = vst [vmem:[%s5943_s16 + $0x1108] sm:$0xff] %v2782_v45  ;;  %v2786_v53 = vmul.f32 0.6931472, %v5258_v48  ;;  %5285 = vlog2.f32 %v1484_v38  ;;  %v1500_v38 = vmax.f32 %v732_v27, 1e-08  ;;  %v741_v63 = vld [vmem:[%s5912_s3 + $0x1250] sm:$0xff] }
 0x275   : > { %v5262_v56 = vpop.eup %5261  ;;  %3773 = vst [vmem:[%s5943_s16 + $0x1110] sm:$0xff] %v2784_v49  ;;  %v2788_v57 = vmul.f32 0.6931472, %v5260_v52  ;;  %5287 = vlog2.f32 %v1485_v42  ;;  %v1501_v42 = vmax.f32 %v733_v31, 1e-08  ;;  %v742_v3 = vld [vmem:[%s5912_s3 + $0x1258] sm:$0xff] }
 0x276   : > { %v5264_v60 = vpop.eup %5263  ;;  %3774 = vst [vmem:[%s5943_s16 + $0x1118] sm:$0xff] %v2786_v53  ;;  %v2790_v61 = vmul.f32 0.6931472, %v5262_v56  ;;  %5289 = vlog2.f32 %v1486_v46  ;;  %v1502_v46 = vmax.f32 %v734_v35, 1e-08  ;;  %v743_v7 = vld [vmem:[%s5912_s3 + $0x1260] sm:$0xff] }
 0x277   : > { %v5266_v0 = vpop.eup %5265  ;;  %3775 = vst [vmem:[%s5943_s16 + $0x1120] sm:$0xff] %v2788_v57  ;;  %v2792_v1 = vmul.f32 0.6931472, %v5264_v60  ;;  %5291 = vlog2.f32 %v1487_v50  ;;  %v1503_v50 = vmax.f32 %v735_v39, 1e-08  ;;  %v744_v11 = vld [vmem:[%s5912_s3 + $0x1268] sm:$0xff] }
 0x278   : > { %v5268_v4 = vpop.eup %5267  ;;  %3776 = vst [vmem:[%s5943_s16 + $0x1128] sm:$0xff] %v2790_v61  ;;  %v2794_v5 = vmul.f32 0.6931472, %v5266_v0  ;;  %5293 = vlog2.f32 %v1488_v54  ;;  %v1504_v54 = vmax.f32 %v736_v43, 1e-08  ;;  %v745_v15 = vld [vmem:[%s5912_s3 + $0x1270] sm:$0xff] }
 0x279   : > { %v5270_v8 = vpop.eup %5269  ;;  %3777 = vst [vmem:[%s5943_s16 + $0x1130] sm:$0xff] %v2792_v1  ;;  %v2796_v9 = vmul.f32 0.6931472, %v5268_v4  ;;  %5295 = vlog2.f32 %v1489_v58  ;;  %v1505_v58 = vmax.f32 %v737_v47, 1e-08  ;;  %v746_v19 = vld [vmem:[%s5912_s3 + $0x1278] sm:$0xff] }
 0x27a   : > { %v5272_v12 = vpop.eup %5271  ;;  %3778 = vst [vmem:[%s5943_s16 + $0x1138] sm:$0xff] %v2794_v5  ;;  %v2798_v13 = vmul.f32 0.6931472, %v5270_v8  ;;  %5297 = vlog2.f32 %v1490_v62  ;;  %v1506_v62 = vmax.f32 %v738_v51, 1e-08  ;;  %v747_v23 = vld [vmem:[%s5912_s3 + $0x1280] sm:$0xff] }
 0x27b   : > { %v5274_v16 = vpop.eup %5273  ;;  %3779 = vst [vmem:[%s5943_s16 + $0x1140] sm:$0xff] %v2796_v9  ;;  %v2800_v17 = vmul.f32 0.6931472, %v5272_v12  ;;  %5299 = vlog2.f32 %v1491_v2  ;;  %v1507_v2 = vmax.f32 %v739_v55, 1e-08  ;;  %v748_v27 = vld [vmem:[%s5912_s3 + $0x1288] sm:$0xff] }
 0x27c   : > { %v5276_v20 = vpop.eup %5275  ;;  %3780 = vst [vmem:[%s5943_s16 + $0x1148] sm:$0xff] %v2798_v13  ;;  %v2802_v21 = vmul.f32 0.6931472, %v5274_v16  ;;  %5301 = vlog2.f32 %v1492_v6  ;;  %v1508_v6 = vmax.f32 %v740_v59, 1e-08  ;;  %v749_v31 = vld [vmem:[%s5912_s3 + $0x1290] sm:$0xff] }
 0x27d   : > { %v5278_v24 = vpop.eup %5277  ;;  %3781 = vst [vmem:[%s5943_s16 + $0x1150] sm:$0xff] %v2800_v17  ;;  %v2804_v25 = vmul.f32 0.6931472, %v5276_v20  ;;  %5303 = vlog2.f32 %v1493_v10  ;;  %v1509_v10 = vmax.f32 %v741_v63, 1e-08  ;;  %v750_v35 = vld [vmem:[%s5912_s3 + $0x1298] sm:$0xff] }
 0x27e   : > { %v5280_v28 = vpop.eup %5279  ;;  %3782 = vst [vmem:[%s5943_s16 + $0x1158] sm:$0xff] %v2802_v21  ;;  %v2806_v29 = vmul.f32 0.6931472, %v5278_v24  ;;  %5305 = vlog2.f32 %v1494_v14  ;;  %v1510_v14 = vmax.f32 %v742_v3, 1e-08  ;;  %v751_v39 = vld [vmem:[%s5912_s3 + $0x12a0] sm:$0xff] }
 0x27f   : > { %v5282_v32 = vpop.eup %5281  ;;  %3783 = vst [vmem:[%s5943_s16 + $0x1160] sm:$0xff] %v2804_v25  ;;  %v2808_v33 = vmul.f32 0.6931472, %v5280_v28  ;;  %5307 = vlog2.f32 %v1495_v18  ;;  %v1511_v18 = vmax.f32 %v743_v7, 1e-08  ;;  %v752_v43 = vld [vmem:[%s5912_s3 + $0x12a8] sm:$0xff] }
 0x280   : > { %v5284_v36 = vpop.eup %5283  ;;  %3784 = vst [vmem:[%s5943_s16 + $0x1168] sm:$0xff] %v2806_v29  ;;  %v2810_v37 = vmul.f32 0.6931472, %v5282_v32  ;;  %5309 = vlog2.f32 %v1496_v22  ;;  %v1512_v22 = vmax.f32 %v744_v11, 1e-08  ;;  %v753_v47 = vld [vmem:[%s5912_s3 + $0x12b0] sm:$0xff] }
 0x281   : > { %v5286_v40 = vpop.eup %5285  ;;  %3785 = vst [vmem:[%s5943_s16 + $0x1170] sm:$0xff] %v2808_v33  ;;  %v2812_v41 = vmul.f32 0.6931472, %v5284_v36  ;;  %5311 = vlog2.f32 %v1497_v26  ;;  %v1513_v26 = vmax.f32 %v745_v15, 1e-08  ;;  %v754_v51 = vld [vmem:[%s5912_s3 + $0x12b8] sm:$0xff] }
 0x282   : > { %v5288_v44 = vpop.eup %5287  ;;  %3786 = vst [vmem:[%s5943_s16 + $0x1178] sm:$0xff] %v2810_v37  ;;  %v2814_v45 = vmul.f32 0.6931472, %v5286_v40  ;;  %5313 = vlog2.f32 %v1498_v30  ;;  %v1514_v30 = vmax.f32 %v746_v19, 1e-08  ;;  %v755_v55 = vld [vmem:[%s5912_s3 + $0x12c0] sm:$0xff] }
 0x283   : > { %v5290_v48 = vpop.eup %5289  ;;  %3787 = vst [vmem:[%s5943_s16 + $0x1180] sm:$0xff] %v2812_v41  ;;  %v2816_v49 = vmul.f32 0.6931472, %v5288_v44  ;;  %5315 = vlog2.f32 %v1499_v34  ;;  %v1515_v34 = vmax.f32 %v747_v23, 1e-08  ;;  %v756_v59 = vld [vmem:[%s5912_s3 + $0x12c8] sm:$0xff] }
 0x284   : > { %v5292_v52 = vpop.eup %5291  ;;  %3788 = vst [vmem:[%s5943_s16 + $0x1188] sm:$0xff] %v2814_v45  ;;  %v2818_v53 = vmul.f32 0.6931472, %v5290_v48  ;;  %5317 = vlog2.f32 %v1500_v38  ;;  %v1516_v38 = vmax.f32 %v748_v27, 1e-08  ;;  %v757_v63 = vld [vmem:[%s5912_s3 + $0x12d0] sm:$0xff] }
 0x285   : > { %v5294_v56 = vpop.eup %5293  ;;  %3789 = vst [vmem:[%s5943_s16 + $0x1190] sm:$0xff] %v2816_v49  ;;  %v2820_v57 = vmul.f32 0.6931472, %v5292_v52  ;;  %5319 = vlog2.f32 %v1501_v42  ;;  %v1517_v42 = vmax.f32 %v749_v31, 1e-08  ;;  %v758_v3 = vld [vmem:[%s5912_s3 + $0x12d8] sm:$0xff] }
 0x286   : > { %v5296_v60 = vpop.eup %5295  ;;  %3790 = vst [vmem:[%s5943_s16 + $0x1198] sm:$0xff] %v2818_v53  ;;  %v2822_v61 = vmul.f32 0.6931472, %v5294_v56  ;;  %5321 = vlog2.f32 %v1502_v46  ;;  %v1518_v46 = vmax.f32 %v750_v35, 1e-08  ;;  %v759_v7 = vld [vmem:[%s5912_s3 + $0x12e0] sm:$0xff] }
 0x287   : > { %v5298_v0 = vpop.eup %5297  ;;  %3791 = vst [vmem:[%s5943_s16 + $0x11a0] sm:$0xff] %v2820_v57  ;;  %v2824_v1 = vmul.f32 0.6931472, %v5296_v60  ;;  %5323 = vlog2.f32 %v1503_v50  ;;  %v1519_v50 = vmax.f32 %v751_v39, 1e-08  ;;  %v760_v11 = vld [vmem:[%s5912_s3 + $0x12e8] sm:$0xff] }
 0x288   : > { %v5300_v4 = vpop.eup %5299  ;;  %3792 = vst [vmem:[%s5943_s16 + $0x11a8] sm:$0xff] %v2822_v61  ;;  %v2826_v5 = vmul.f32 0.6931472, %v5298_v0  ;;  %5325 = vlog2.f32 %v1504_v54  ;;  %v1520_v54 = vmax.f32 %v752_v43, 1e-08  ;;  %v761_v15 = vld [vmem:[%s5912_s3 + $0x12f0] sm:$0xff] }
 0x289   : > { %v5302_v8 = vpop.eup %5301  ;;  %3793 = vst [vmem:[%s5943_s16 + $0x11b0] sm:$0xff] %v2824_v1  ;;  %v2828_v9 = vmul.f32 0.6931472, %v5300_v4  ;;  %5327 = vlog2.f32 %v1505_v58  ;;  %v1521_v58 = vmax.f32 %v753_v47, 1e-08  ;;  %v762_v19 = vld [vmem:[%s5912_s3 + $0x12f8] sm:$0xff] }
 0x28a   : > { %v5304_v12 = vpop.eup %5303  ;;  %3794 = vst [vmem:[%s5943_s16 + $0x11b8] sm:$0xff] %v2826_v5  ;;  %v2830_v13 = vmul.f32 0.6931472, %v5302_v8  ;;  %5329 = vlog2.f32 %v1506_v62  ;;  %v1522_v62 = vmax.f32 %v754_v51, 1e-08  ;;  %v763_v23 = vld [vmem:[%s5912_s3 + $0x1300] sm:$0xff] }
 0x28b   : > { %v5306_v16 = vpop.eup %5305  ;;  %3795 = vst [vmem:[%s5943_s16 + $0x11c0] sm:$0xff] %v2828_v9  ;;  %v2832_v17 = vmul.f32 0.6931472, %v5304_v12  ;;  %5331 = vlog2.f32 %v1507_v2  ;;  %v1523_v2 = vmax.f32 %v755_v55, 1e-08  ;;  %v764_v27 = vld [vmem:[%s5912_s3 + $0x1308] sm:$0xff] }
 0x28c   : > { %v5308_v20 = vpop.eup %5307  ;;  %3796 = vst [vmem:[%s5943_s16 + $0x11c8] sm:$0xff] %v2830_v13  ;;  %v2834_v21 = vmul.f32 0.6931472, %v5306_v16  ;;  %5333 = vlog2.f32 %v1508_v6  ;;  %v1524_v6 = vmax.f32 %v756_v59, 1e-08  ;;  %v765_v31 = vld [vmem:[%s5912_s3 + $0x1310] sm:$0xff] }
 0x28d   : > { %v5310_v24 = vpop.eup %5309  ;;  %3797 = vst [vmem:[%s5943_s16 + $0x11d0] sm:$0xff] %v2832_v17  ;;  %v2836_v25 = vmul.f32 0.6931472, %v5308_v20  ;;  %5335 = vlog2.f32 %v1509_v10  ;;  %v1525_v10 = vmax.f32 %v757_v63, 1e-08  ;;  %v766_v35 = vld [vmem:[%s5912_s3 + $0x1318] sm:$0xff] }
 0x28e   : > { %v5312_v28 = vpop.eup %5311  ;;  %3798 = vst [vmem:[%s5943_s16 + $0x11d8] sm:$0xff] %v2834_v21  ;;  %v2838_v29 = vmul.f32 0.6931472, %v5310_v24  ;;  %5337 = vlog2.f32 %v1510_v14  ;;  %v1526_v14 = vmax.f32 %v758_v3, 1e-08  ;;  %v767_v39 = vld [vmem:[%s5912_s3 + $0x1320] sm:$0xff] }
 0x28f   : > { %v5314_v32 = vpop.eup %5313  ;;  %3799 = vst [vmem:[%s5943_s16 + $0x11e0] sm:$0xff] %v2836_v25  ;;  %v2840_v33 = vmul.f32 0.6931472, %v5312_v28  ;;  %5339 = vlog2.f32 %v1511_v18  ;;  %v1527_v18 = vmax.f32 %v759_v7, 1e-08  ;;  %v768_v43 = vld [vmem:[%s5912_s3 + $0x1328] sm:$0xff] }
 0x290   : > { %v5316_v36 = vpop.eup %5315  ;;  %3800 = vst [vmem:[%s5943_s16 + $0x11e8] sm:$0xff] %v2838_v29  ;;  %v2842_v37 = vmul.f32 0.6931472, %v5314_v32  ;;  %5341 = vlog2.f32 %v1512_v22  ;;  %v1528_v22 = vmax.f32 %v760_v11, 1e-08  ;;  %v769_v47 = vld [vmem:[%s5912_s3 + $0x1330] sm:$0xff] }
 0x291   : > { %v5318_v40 = vpop.eup %5317  ;;  %3801 = vst [vmem:[%s5943_s16 + $0x11f0] sm:$0xff] %v2840_v33  ;;  %v2844_v41 = vmul.f32 0.6931472, %v5316_v36  ;;  %5343 = vlog2.f32 %v1513_v26  ;;  %v1529_v26 = vmax.f32 %v761_v15, 1e-08  ;;  %v770_v51 = vld [vmem:[%s5912_s3 + $0x1338] sm:$0xff] }
 0x292   : > { %v5320_v44 = vpop.eup %5319  ;;  %3802 = vst [vmem:[%s5943_s16 + $0x11f8] sm:$0xff] %v2842_v37  ;;  %v2846_v45 = vmul.f32 0.6931472, %v5318_v40  ;;  %5345 = vlog2.f32 %v1514_v30  ;;  %v1530_v30 = vmax.f32 %v762_v19, 1e-08  ;;  %v771_v55 = vld [vmem:[%s5912_s3 + $0x1340] sm:$0xff] }
 0x293   : > { %v5322_v48 = vpop.eup %5321  ;;  %3803 = vst [vmem:[%s5943_s16 + $0x1200] sm:$0xff] %v2844_v41  ;;  %v2848_v49 = vmul.f32 0.6931472, %v5320_v44  ;;  %5347 = vlog2.f32 %v1515_v34  ;;  %v1531_v34 = vmax.f32 %v763_v23, 1e-08  ;;  %v772_v59 = vld [vmem:[%s5912_s3 + $0x1348] sm:$0xff] }
 0x294   : > { %v5324_v52 = vpop.eup %5323  ;;  %3804 = vst [vmem:[%s5943_s16 + $0x1208] sm:$0xff] %v2846_v45  ;;  %v2850_v53 = vmul.f32 0.6931472, %v5322_v48  ;;  %5349 = vlog2.f32 %v1516_v38  ;;  %v1532_v38 = vmax.f32 %v764_v27, 1e-08  ;;  %v773_v63 = vld [vmem:[%s5912_s3 + $0x1350] sm:$0xff] }
 0x295   : > { %v5326_v56 = vpop.eup %5325  ;;  %3805 = vst [vmem:[%s5943_s16 + $0x1210] sm:$0xff] %v2848_v49  ;;  %v2852_v57 = vmul.f32 0.6931472, %v5324_v52  ;;  %5351 = vlog2.f32 %v1517_v42  ;;  %v1533_v42 = vmax.f32 %v765_v31, 1e-08  ;;  %v774_v3 = vld [vmem:[%s5912_s3 + $0x1358] sm:$0xff] }
 0x296   : > { %v5328_v60 = vpop.eup %5327  ;;  %3806 = vst [vmem:[%s5943_s16 + $0x1218] sm:$0xff] %v2850_v53  ;;  %v2854_v61 = vmul.f32 0.6931472, %v5326_v56  ;;  %5353 = vlog2.f32 %v1518_v46  ;;  %v1534_v46 = vmax.f32 %v766_v35, 1e-08  ;;  %v775_v7 = vld [vmem:[%s5912_s3 + $0x1360] sm:$0xff] }
 0x297   : > { %v5330_v0 = vpop.eup %5329  ;;  %3807 = vst [vmem:[%s5943_s16 + $0x1220] sm:$0xff] %v2852_v57  ;;  %v2856_v1 = vmul.f32 0.6931472, %v5328_v60  ;;  %5355 = vlog2.f32 %v1519_v50  ;;  %v1535_v50 = vmax.f32 %v767_v39, 1e-08  ;;  %v776_v11 = vld [vmem:[%s5912_s3 + $0x1368] sm:$0xff] }
 0x298   : > { %v5332_v4 = vpop.eup %5331  ;;  %3808 = vst [vmem:[%s5943_s16 + $0x1228] sm:$0xff] %v2854_v61  ;;  %v2858_v5 = vmul.f32 0.6931472, %v5330_v0  ;;  %5357 = vlog2.f32 %v1520_v54  ;;  %v1536_v54 = vmax.f32 %v768_v43, 1e-08  ;;  %v777_v15 = vld [vmem:[%s5912_s3 + $0x1370] sm:$0xff] }
 0x299   : > { %v5334_v8 = vpop.eup %5333  ;;  %3809 = vst [vmem:[%s5943_s16 + $0x1230] sm:$0xff] %v2856_v1  ;;  %v2860_v9 = vmul.f32 0.6931472, %v5332_v4  ;;  %5359 = vlog2.f32 %v1521_v58  ;;  %v1537_v58 = vmax.f32 %v769_v47, 1e-08  ;;  %v778_v19 = vld [vmem:[%s5912_s3 + $0x1378] sm:$0xff] }
 0x29a   : > { %v5336_v12 = vpop.eup %5335  ;;  %3810 = vst [vmem:[%s5943_s16 + $0x1238] sm:$0xff] %v2858_v5  ;;  %v2862_v13 = vmul.f32 0.6931472, %v5334_v8  ;;  %5361 = vlog2.f32 %v1522_v62  ;;  %v1538_v62 = vmax.f32 %v770_v51, 1e-08  ;;  %v779_v23 = vld [vmem:[%s5912_s3 + $0x1380] sm:$0xff] }
 0x29b   : > { %v5338_v16 = vpop.eup %5337  ;;  %3811 = vst [vmem:[%s5943_s16 + $0x1240] sm:$0xff] %v2860_v9  ;;  %v2864_v17 = vmul.f32 0.6931472, %v5336_v12  ;;  %5363 = vlog2.f32 %v1523_v2  ;;  %v1539_v2 = vmax.f32 %v771_v55, 1e-08  ;;  %v780_v27 = vld [vmem:[%s5912_s3 + $0x1388] sm:$0xff] }
 0x29c   : > { %v5340_v20 = vpop.eup %5339  ;;  %3812 = vst [vmem:[%s5943_s16 + $0x1248] sm:$0xff] %v2862_v13  ;;  %v2866_v21 = vmul.f32 0.6931472, %v5338_v16  ;;  %5365 = vlog2.f32 %v1524_v6  ;;  %v1540_v6 = vmax.f32 %v772_v59, 1e-08  ;;  %v781_v31 = vld [vmem:[%s5912_s3 + $0x1390] sm:$0xff] }
 0x29d   : > { %v5342_v24 = vpop.eup %5341  ;;  %3813 = vst [vmem:[%s5943_s16 + $0x1250] sm:$0xff] %v2864_v17  ;;  %v2868_v25 = vmul.f32 0.6931472, %v5340_v20  ;;  %5367 = vlog2.f32 %v1525_v10  ;;  %v1541_v10 = vmax.f32 %v773_v63, 1e-08  ;;  %v782_v35 = vld [vmem:[%s5912_s3 + $0x1398] sm:$0xff] }
 0x29e   : > { %v5344_v28 = vpop.eup %5343  ;;  %3814 = vst [vmem:[%s5943_s16 + $0x1258] sm:$0xff] %v2866_v21  ;;  %v2870_v29 = vmul.f32 0.6931472, %v5342_v24  ;;  %5369 = vlog2.f32 %v1526_v14  ;;  %v1542_v14 = vmax.f32 %v774_v3, 1e-08  ;;  %v783_v39 = vld [vmem:[%s5912_s3 + $0x13a0] sm:$0xff] }
 0x29f   : > { %v5346_v32 = vpop.eup %5345  ;;  %3815 = vst [vmem:[%s5943_s16 + $0x1260] sm:$0xff] %v2868_v25  ;;  %v2872_v33 = vmul.f32 0.6931472, %v5344_v28  ;;  %5371 = vlog2.f32 %v1527_v18  ;;  %v1543_v18 = vmax.f32 %v775_v7, 1e-08  ;;  %v784_v43 = vld [vmem:[%s5912_s3 + $0x13a8] sm:$0xff] }
 0x2a0   : > { %v5348_v36 = vpop.eup %5347  ;;  %3816 = vst [vmem:[%s5943_s16 + $0x1268] sm:$0xff] %v2870_v29  ;;  %v2874_v37 = vmul.f32 0.6931472, %v5346_v32  ;;  %5373 = vlog2.f32 %v1528_v22  ;;  %v1544_v22 = vmax.f32 %v776_v11, 1e-08  ;;  %v785_v47 = vld [vmem:[%s5912_s3 + $0x13b0] sm:$0xff] }
 0x2a1   : > { %v5350_v40 = vpop.eup %5349  ;;  %3817 = vst [vmem:[%s5943_s16 + $0x1270] sm:$0xff] %v2872_v33  ;;  %v2876_v41 = vmul.f32 0.6931472, %v5348_v36  ;;  %5375 = vlog2.f32 %v1529_v26  ;;  %v1545_v26 = vmax.f32 %v777_v15, 1e-08  ;;  %v786_v51 = vld [vmem:[%s5912_s3 + $0x13b8] sm:$0xff] }
 0x2a2   : > { %v5352_v44 = vpop.eup %5351  ;;  %3818 = vst [vmem:[%s5943_s16 + $0x1278] sm:$0xff] %v2874_v37  ;;  %v2878_v45 = vmul.f32 0.6931472, %v5350_v40  ;;  %5377 = vlog2.f32 %v1530_v30  ;;  %v1546_v30 = vmax.f32 %v778_v19, 1e-08  ;;  %v787_v55 = vld [vmem:[%s5912_s3 + $0x13c0] sm:$0xff] }
 0x2a3   : > { %v5354_v48 = vpop.eup %5353  ;;  %3819 = vst [vmem:[%s5943_s16 + $0x1280] sm:$0xff] %v2876_v41  ;;  %v2880_v49 = vmul.f32 0.6931472, %v5352_v44  ;;  %5379 = vlog2.f32 %v1531_v34  ;;  %v1547_v34 = vmax.f32 %v779_v23, 1e-08  ;;  %v788_v59 = vld [vmem:[%s5912_s3 + $0x13c8] sm:$0xff] }
 0x2a4   : > { %v5356_v52 = vpop.eup %5355  ;;  %3820 = vst [vmem:[%s5943_s16 + $0x1288] sm:$0xff] %v2878_v45  ;;  %v2882_v53 = vmul.f32 0.6931472, %v5354_v48  ;;  %5381 = vlog2.f32 %v1532_v38  ;;  %v1548_v38 = vmax.f32 %v780_v27, 1e-08  ;;  %v789_v63 = vld [vmem:[%s5912_s3 + $0x13d0] sm:$0xff] }
 0x2a5   : > { %v5358_v56 = vpop.eup %5357  ;;  %3821 = vst [vmem:[%s5943_s16 + $0x1290] sm:$0xff] %v2880_v49  ;;  %v2884_v57 = vmul.f32 0.6931472, %v5356_v52  ;;  %5383 = vlog2.f32 %v1533_v42  ;;  %v1549_v42 = vmax.f32 %v781_v31, 1e-08  ;;  %v790_v3 = vld [vmem:[%s5912_s3 + $0x13d8] sm:$0xff] }
 0x2a6   : > { %v5360_v60 = vpop.eup %5359  ;;  %3822 = vst [vmem:[%s5943_s16 + $0x1298] sm:$0xff] %v2882_v53  ;;  %v2886_v61 = vmul.f32 0.6931472, %v5358_v56  ;;  %5385 = vlog2.f32 %v1534_v46  ;;  %v1550_v46 = vmax.f32 %v782_v35, 1e-08  ;;  %v791_v7 = vld [vmem:[%s5912_s3 + $0x13e0] sm:$0xff] }
 0x2a7   : > { %v5362_v0 = vpop.eup %5361  ;;  %3823 = vst [vmem:[%s5943_s16 + $0x12a0] sm:$0xff] %v2884_v57  ;;  %v2888_v1 = vmul.f32 0.6931472, %v5360_v60  ;;  %5387 = vlog2.f32 %v1535_v50  ;;  %v1551_v50 = vmax.f32 %v783_v39, 1e-08  ;;  %v792_v11 = vld [vmem:[%s5912_s3 + $0x13e8] sm:$0xff] }
 0x2a8   : > { %v5364_v4 = vpop.eup %5363  ;;  %3824 = vst [vmem:[%s5943_s16 + $0x12a8] sm:$0xff] %v2886_v61  ;;  %v2890_v5 = vmul.f32 0.6931472, %v5362_v0  ;;  %5389 = vlog2.f32 %v1536_v54  ;;  %v1552_v54 = vmax.f32 %v784_v43, 1e-08  ;;  %v793_v15 = vld [vmem:[%s5912_s3 + $0x13f0] sm:$0xff] }
 0x2a9   : > { %v5366_v8 = vpop.eup %5365  ;;  %3825 = vst [vmem:[%s5943_s16 + $0x12b0] sm:$0xff] %v2888_v1  ;;  %v2892_v9 = vmul.f32 0.6931472, %v5364_v4  ;;  %5391 = vlog2.f32 %v1537_v58  ;;  %v1553_v58 = vmax.f32 %v785_v47, 1e-08  ;;  %v794_v19 = vld [vmem:[%s5912_s3 + $0x13f8] sm:$0xff] }
 0x2aa   : > { %v5368_v12 = vpop.eup %5367  ;;  %3826 = vst [vmem:[%s5943_s16 + $0x12b8] sm:$0xff] %v2890_v5  ;;  %v2894_v13 = vmul.f32 0.6931472, %v5366_v8  ;;  %5393 = vlog2.f32 %v1538_v62  ;;  %v1554_v62 = vmax.f32 %v786_v51, 1e-08  ;;  %v795_v23 = vld [vmem:[%s5912_s3 + $0x1400] sm:$0xff] }
 0x2ab   : > { %v5370_v16 = vpop.eup %5369  ;;  %3827 = vst [vmem:[%s5943_s16 + $0x12c0] sm:$0xff] %v2892_v9  ;;  %v2896_v17 = vmul.f32 0.6931472, %v5368_v12  ;;  %5395 = vlog2.f32 %v1539_v2  ;;  %v1555_v2 = vmax.f32 %v787_v55, 1e-08  ;;  %v796_v27 = vld [vmem:[%s5912_s3 + $0x1408] sm:$0xff] }
 0x2ac   : > { %v5372_v20 = vpop.eup %5371  ;;  %3828 = vst [vmem:[%s5943_s16 + $0x12c8] sm:$0xff] %v2894_v13  ;;  %v2898_v21 = vmul.f32 0.6931472, %v5370_v16  ;;  %5397 = vlog2.f32 %v1540_v6  ;;  %v1556_v6 = vmax.f32 %v788_v59, 1e-08  ;;  %v797_v31 = vld [vmem:[%s5912_s3 + $0x1410] sm:$0xff] }
 0x2ad   : > { %v5374_v24 = vpop.eup %5373  ;;  %3829 = vst [vmem:[%s5943_s16 + $0x12d0] sm:$0xff] %v2896_v17  ;;  %v2900_v25 = vmul.f32 0.6931472, %v5372_v20  ;;  %5399 = vlog2.f32 %v1541_v10  ;;  %v1557_v10 = vmax.f32 %v789_v63, 1e-08  ;;  %v798_v35 = vld [vmem:[%s5912_s3 + $0x1418] sm:$0xff] }
 0x2ae   : > { %v5376_v28 = vpop.eup %5375  ;;  %3830 = vst [vmem:[%s5943_s16 + $0x12d8] sm:$0xff] %v2898_v21  ;;  %v2902_v29 = vmul.f32 0.6931472, %v5374_v24  ;;  %5401 = vlog2.f32 %v1542_v14  ;;  %v1558_v14 = vmax.f32 %v790_v3, 1e-08  ;;  %v799_v39 = vld [vmem:[%s5912_s3 + $0x1420] sm:$0xff] }
 0x2af   : > { %v5378_v32 = vpop.eup %5377  ;;  %3831 = vst [vmem:[%s5943_s16 + $0x12e0] sm:$0xff] %v2900_v25  ;;  %v2904_v33 = vmul.f32 0.6931472, %v5376_v28  ;;  %5403 = vlog2.f32 %v1543_v18  ;;  %v1559_v18 = vmax.f32 %v791_v7, 1e-08  ;;  %v800_v43 = vld [vmem:[%s5912_s3 + $0x1428] sm:$0xff] }
 0x2b0   : > { %v5380_v36 = vpop.eup %5379  ;;  %3832 = vst [vmem:[%s5943_s16 + $0x12e8] sm:$0xff] %v2902_v29  ;;  %v2906_v37 = vmul.f32 0.6931472, %v5378_v32  ;;  %5405 = vlog2.f32 %v1544_v22  ;;  %v1560_v22 = vmax.f32 %v792_v11, 1e-08  ;;  %v801_v47 = vld [vmem:[%s5912_s3 + $0x1430] sm:$0xff] }
 0x2b1   : > { %v5382_v40 = vpop.eup %5381  ;;  %3833 = vst [vmem:[%s5943_s16 + $0x12f0] sm:$0xff] %v2904_v33  ;;  %v2908_v41 = vmul.f32 0.6931472, %v5380_v36  ;;  %5407 = vlog2.f32 %v1545_v26  ;;  %v1561_v26 = vmax.f32 %v793_v15, 1e-08  ;;  %v802_v51 = vld [vmem:[%s5912_s3 + $0x1438] sm:$0xff] }
 0x2b2   : > { %v5384_v44 = vpop.eup %5383  ;;  %3834 = vst [vmem:[%s5943_s16 + $0x12f8] sm:$0xff] %v2906_v37  ;;  %v2910_v45 = vmul.f32 0.6931472, %v5382_v40  ;;  %5409 = vlog2.f32 %v1546_v30  ;;  %v1562_v30 = vmax.f32 %v794_v19, 1e-08  ;;  %v803_v55 = vld [vmem:[%s5912_s3 + $0x1440] sm:$0xff] }
 0x2b3   : > { %v5386_v48 = vpop.eup %5385  ;;  %3835 = vst [vmem:[%s5943_s16 + $0x1300] sm:$0xff] %v2908_v41  ;;  %v2912_v49 = vmul.f32 0.6931472, %v5384_v44  ;;  %5411 = vlog2.f32 %v1547_v34  ;;  %v1563_v34 = vmax.f32 %v795_v23, 1e-08  ;;  %v804_v59 = vld [vmem:[%s5912_s3 + $0x1448] sm:$0xff] }
 0x2b4   : > { %v5388_v52 = vpop.eup %5387  ;;  %3836 = vst [vmem:[%s5943_s16 + $0x1308] sm:$0xff] %v2910_v45  ;;  %v2914_v53 = vmul.f32 0.6931472, %v5386_v48  ;;  %5413 = vlog2.f32 %v1548_v38  ;;  %v1564_v38 = vmax.f32 %v796_v27, 1e-08  ;;  %v805_v63 = vld [vmem:[%s5912_s3 + $0x1450] sm:$0xff] }
 0x2b5   : > { %v5390_v56 = vpop.eup %5389  ;;  %3837 = vst [vmem:[%s5943_s16 + $0x1310] sm:$0xff] %v2912_v49  ;;  %v2916_v57 = vmul.f32 0.6931472, %v5388_v52  ;;  %5415 = vlog2.f32 %v1549_v42  ;;  %v1565_v42 = vmax.f32 %v797_v31, 1e-08  ;;  %v806_v3 = vld [vmem:[%s5912_s3 + $0x1458] sm:$0xff] }
 0x2b6   : > { %v5392_v60 = vpop.eup %5391  ;;  %3838 = vst [vmem:[%s5943_s16 + $0x1318] sm:$0xff] %v2914_v53  ;;  %v2918_v61 = vmul.f32 0.6931472, %v5390_v56  ;;  %5417 = vlog2.f32 %v1550_v46  ;;  %v1566_v46 = vmax.f32 %v798_v35, 1e-08  ;;  %v807_v7 = vld [vmem:[%s5912_s3 + $0x1460] sm:$0xff] }
 0x2b7   : > { %v5394_v0 = vpop.eup %5393  ;;  %3839 = vst [vmem:[%s5943_s16 + $0x1320] sm:$0xff] %v2916_v57  ;;  %v2920_v1 = vmul.f32 0.6931472, %v5392_v60  ;;  %5419 = vlog2.f32 %v1551_v50  ;;  %v1567_v50 = vmax.f32 %v799_v39, 1e-08  ;;  %v808_v11 = vld [vmem:[%s5912_s3 + $0x1468] sm:$0xff] }
 0x2b8   : > { %v5396_v4 = vpop.eup %5395  ;;  %3840 = vst [vmem:[%s5943_s16 + $0x1328] sm:$0xff] %v2918_v61  ;;  %v2922_v5 = vmul.f32 0.6931472, %v5394_v0  ;;  %5421 = vlog2.f32 %v1552_v54  ;;  %v1568_v54 = vmax.f32 %v800_v43, 1e-08  ;;  %v809_v15 = vld [vmem:[%s5912_s3 + $0x1470] sm:$0xff] }
 0x2b9   : > { %v5398_v8 = vpop.eup %5397  ;;  %3841 = vst [vmem:[%s5943_s16 + $0x1330] sm:$0xff] %v2920_v1  ;;  %v2924_v9 = vmul.f32 0.6931472, %v5396_v4  ;;  %5423 = vlog2.f32 %v1553_v58  ;;  %v1569_v58 = vmax.f32 %v801_v47, 1e-08  ;;  %v810_v19 = vld [vmem:[%s5912_s3 + $0x1478] sm:$0xff] }
 0x2ba   : > { %v5400_v12 = vpop.eup %5399  ;;  %3842 = vst [vmem:[%s5943_s16 + $0x1338] sm:$0xff] %v2922_v5  ;;  %v2926_v13 = vmul.f32 0.6931472, %v5398_v8  ;;  %5425 = vlog2.f32 %v1554_v62  ;;  %v1570_v62 = vmax.f32 %v802_v51, 1e-08  ;;  %v811_v23 = vld [vmem:[%s5912_s3 + $0x1480] sm:$0xff] }
 0x2bb   : > { %v5402_v16 = vpop.eup %5401  ;;  %3843 = vst [vmem:[%s5943_s16 + $0x1340] sm:$0xff] %v2924_v9  ;;  %v2928_v17 = vmul.f32 0.6931472, %v5400_v12  ;;  %5427 = vlog2.f32 %v1555_v2  ;;  %v1571_v2 = vmax.f32 %v803_v55, 1e-08  ;;  %v812_v27 = vld [vmem:[%s5912_s3 + $0x1488] sm:$0xff] }
 0x2bc   : > { %v5404_v20 = vpop.eup %5403  ;;  %3844 = vst [vmem:[%s5943_s16 + $0x1348] sm:$0xff] %v2926_v13  ;;  %v2930_v21 = vmul.f32 0.6931472, %v5402_v16  ;;  %5429 = vlog2.f32 %v1556_v6  ;;  %v1572_v6 = vmax.f32 %v804_v59, 1e-08  ;;  %v813_v31 = vld [vmem:[%s5912_s3 + $0x1490] sm:$0xff] }
 0x2bd   : > { %v5406_v24 = vpop.eup %5405  ;;  %3845 = vst [vmem:[%s5943_s16 + $0x1350] sm:$0xff] %v2928_v17  ;;  %v2932_v25 = vmul.f32 0.6931472, %v5404_v20  ;;  %5431 = vlog2.f32 %v1557_v10  ;;  %v1573_v10 = vmax.f32 %v805_v63, 1e-08  ;;  %v814_v35 = vld [vmem:[%s5912_s3 + $0x1498] sm:$0xff] }
 0x2be   : > { %v5408_v28 = vpop.eup %5407  ;;  %3846 = vst [vmem:[%s5943_s16 + $0x1358] sm:$0xff] %v2930_v21  ;;  %v2934_v29 = vmul.f32 0.6931472, %v5406_v24  ;;  %5433 = vlog2.f32 %v1558_v14  ;;  %v1574_v14 = vmax.f32 %v806_v3, 1e-08  ;;  %v815_v39 = vld [vmem:[%s5912_s3 + $0x14a0] sm:$0xff] }
 0x2bf   : > { %v5410_v32 = vpop.eup %5409  ;;  %3847 = vst [vmem:[%s5943_s16 + $0x1360] sm:$0xff] %v2932_v25  ;;  %v2936_v33 = vmul.f32 0.6931472, %v5408_v28  ;;  %5435 = vlog2.f32 %v1559_v18  ;;  %v1575_v18 = vmax.f32 %v807_v7, 1e-08  ;;  %v816_v43 = vld [vmem:[%s5912_s3 + $0x14a8] sm:$0xff] }
 0x2c0   : > { %v5412_v36 = vpop.eup %5411  ;;  %3848 = vst [vmem:[%s5943_s16 + $0x1368] sm:$0xff] %v2934_v29  ;;  %v2938_v37 = vmul.f32 0.6931472, %v5410_v32  ;;  %5437 = vlog2.f32 %v1560_v22  ;;  %v1576_v22 = vmax.f32 %v808_v11, 1e-08  ;;  %v817_v47 = vld [vmem:[%s5912_s3 + $0x14b0] sm:$0xff] }
 0x2c1   : > { %v5414_v40 = vpop.eup %5413  ;;  %3849 = vst [vmem:[%s5943_s16 + $0x1370] sm:$0xff] %v2936_v33  ;;  %v2940_v41 = vmul.f32 0.6931472, %v5412_v36  ;;  %5439 = vlog2.f32 %v1561_v26  ;;  %v1577_v26 = vmax.f32 %v809_v15, 1e-08  ;;  %v818_v51 = vld [vmem:[%s5912_s3 + $0x14b8] sm:$0xff] }
 0x2c2   : > { %v5416_v44 = vpop.eup %5415  ;;  %3850 = vst [vmem:[%s5943_s16 + $0x1378] sm:$0xff] %v2938_v37  ;;  %v2942_v45 = vmul.f32 0.6931472, %v5414_v40  ;;  %5441 = vlog2.f32 %v1562_v30  ;;  %v1578_v30 = vmax.f32 %v810_v19, 1e-08  ;;  %v819_v55 = vld [vmem:[%s5912_s3 + $0x14c0] sm:$0xff] }
 0x2c3   : > { %v5418_v48 = vpop.eup %5417  ;;  %3851 = vst [vmem:[%s5943_s16 + $0x1380] sm:$0xff] %v2940_v41  ;;  %v2944_v49 = vmul.f32 0.6931472, %v5416_v44  ;;  %5443 = vlog2.f32 %v1563_v34  ;;  %v1579_v34 = vmax.f32 %v811_v23, 1e-08  ;;  %v820_v59 = vld [vmem:[%s5912_s3 + $0x14c8] sm:$0xff] }
 0x2c4   : > { %v5420_v52 = vpop.eup %5419  ;;  %3852 = vst [vmem:[%s5943_s16 + $0x1388] sm:$0xff] %v2942_v45  ;;  %v2946_v53 = vmul.f32 0.6931472, %v5418_v48  ;;  %5445 = vlog2.f32 %v1564_v38  ;;  %v1580_v38 = vmax.f32 %v812_v27, 1e-08  ;;  %v821_v63 = vld [vmem:[%s5912_s3 + $0x14d0] sm:$0xff] }
 0x2c5   : > { %v5422_v56 = vpop.eup %5421  ;;  %3853 = vst [vmem:[%s5943_s16 + $0x1390] sm:$0xff] %v2944_v49  ;;  %v2948_v57 = vmul.f32 0.6931472, %v5420_v52  ;;  %5447 = vlog2.f32 %v1565_v42  ;;  %v1581_v42 = vmax.f32 %v813_v31, 1e-08  ;;  %v822_v3 = vld [vmem:[%s5912_s3 + $0x14d8] sm:$0xff] }
 0x2c6   : > { %v5424_v60 = vpop.eup %5423  ;;  %3854 = vst [vmem:[%s5943_s16 + $0x1398] sm:$0xff] %v2946_v53  ;;  %v2950_v61 = vmul.f32 0.6931472, %v5422_v56  ;;  %5449 = vlog2.f32 %v1566_v46  ;;  %v1582_v46 = vmax.f32 %v814_v35, 1e-08  ;;  %v823_v7 = vld [vmem:[%s5912_s3 + $0x14e0] sm:$0xff] }
 0x2c7   : > { %v5426_v0 = vpop.eup %5425  ;;  %3855 = vst [vmem:[%s5943_s16 + $0x13a0] sm:$0xff] %v2948_v57  ;;  %v2952_v1 = vmul.f32 0.6931472, %v5424_v60  ;;  %5451 = vlog2.f32 %v1567_v50  ;;  %v1583_v50 = vmax.f32 %v815_v39, 1e-08  ;;  %v824_v11 = vld [vmem:[%s5912_s3 + $0x14e8] sm:$0xff] }
 0x2c8   : > { %v5428_v4 = vpop.eup %5427  ;;  %3856 = vst [vmem:[%s5943_s16 + $0x13a8] sm:$0xff] %v2950_v61  ;;  %v2954_v5 = vmul.f32 0.6931472, %v5426_v0  ;;  %5453 = vlog2.f32 %v1568_v54  ;;  %v1584_v54 = vmax.f32 %v816_v43, 1e-08  ;;  %v825_v15 = vld [vmem:[%s5912_s3 + $0x14f0] sm:$0xff] }
 0x2c9   : > { %v5430_v8 = vpop.eup %5429  ;;  %3857 = vst [vmem:[%s5943_s16 + $0x13b0] sm:$0xff] %v2952_v1  ;;  %v2956_v9 = vmul.f32 0.6931472, %v5428_v4  ;;  %5455 = vlog2.f32 %v1569_v58  ;;  %v1585_v58 = vmax.f32 %v817_v47, 1e-08  ;;  %v826_v19 = vld [vmem:[%s5912_s3 + $0x14f8] sm:$0xff] }
 0x2ca   : > { %v5432_v12 = vpop.eup %5431  ;;  %3858 = vst [vmem:[%s5943_s16 + $0x13b8] sm:$0xff] %v2954_v5  ;;  %v2958_v13 = vmul.f32 0.6931472, %v5430_v8  ;;  %5457 = vlog2.f32 %v1570_v62  ;;  %v1586_v62 = vmax.f32 %v818_v51, 1e-08  ;;  %v827_v23 = vld [vmem:[%s5912_s3 + $0x1500] sm:$0xff] }
 0x2cb   : > { %v5434_v16 = vpop.eup %5433  ;;  %3859 = vst [vmem:[%s5943_s16 + $0x13c0] sm:$0xff] %v2956_v9  ;;  %v2960_v17 = vmul.f32 0.6931472, %v5432_v12  ;;  %5459 = vlog2.f32 %v1571_v2  ;;  %v1587_v2 = vmax.f32 %v819_v55, 1e-08  ;;  %v828_v27 = vld [vmem:[%s5912_s3 + $0x1508] sm:$0xff] }
 0x2cc   : > { %v5436_v20 = vpop.eup %5435  ;;  %3860 = vst [vmem:[%s5943_s16 + $0x13c8] sm:$0xff] %v2958_v13  ;;  %v2962_v21 = vmul.f32 0.6931472, %v5434_v16  ;;  %5461 = vlog2.f32 %v1572_v6  ;;  %v1588_v6 = vmax.f32 %v820_v59, 1e-08  ;;  %v829_v31 = vld [vmem:[%s5912_s3 + $0x1510] sm:$0xff] }
 0x2cd   : > { %v5438_v24 = vpop.eup %5437  ;;  %3861 = vst [vmem:[%s5943_s16 + $0x13d0] sm:$0xff] %v2960_v17  ;;  %v2964_v25 = vmul.f32 0.6931472, %v5436_v20  ;;  %5463 = vlog2.f32 %v1573_v10  ;;  %v1589_v10 = vmax.f32 %v821_v63, 1e-08  ;;  %v830_v35 = vld [vmem:[%s5912_s3 + $0x1518] sm:$0xff] }
 0x2ce   : > { %v5440_v28 = vpop.eup %5439  ;;  %3862 = vst [vmem:[%s5943_s16 + $0x13d8] sm:$0xff] %v2962_v21  ;;  %v2966_v29 = vmul.f32 0.6931472, %v5438_v24  ;;  %5465 = vlog2.f32 %v1574_v14  ;;  %v1590_v14 = vmax.f32 %v822_v3, 1e-08  ;;  %v831_v39 = vld [vmem:[%s5912_s3 + $0x1520] sm:$0xff] }
 0x2cf   : > { %v5442_v32 = vpop.eup %5441  ;;  %3863 = vst [vmem:[%s5943_s16 + $0x13e0] sm:$0xff] %v2964_v25  ;;  %v2968_v33 = vmul.f32 0.6931472, %v5440_v28  ;;  %5467 = vlog2.f32 %v1575_v18  ;;  %v1591_v18 = vmax.f32 %v823_v7, 1e-08  ;;  %v832_v43 = vld [vmem:[%s5912_s3 + $0x1528] sm:$0xff] }
 0x2d0   : > { %v5444_v36 = vpop.eup %5443  ;;  %3864 = vst [vmem:[%s5943_s16 + $0x13e8] sm:$0xff] %v2966_v29  ;;  %v2970_v37 = vmul.f32 0.6931472, %v5442_v32  ;;  %5469 = vlog2.f32 %v1576_v22  ;;  %v1592_v22 = vmax.f32 %v824_v11, 1e-08  ;;  %v833_v47 = vld [vmem:[%s5912_s3 + $0x1530] sm:$0xff] }
 0x2d1   : > { %v5446_v40 = vpop.eup %5445  ;;  %3865 = vst [vmem:[%s5943_s16 + $0x13f0] sm:$0xff] %v2968_v33  ;;  %v2972_v41 = vmul.f32 0.6931472, %v5444_v36  ;;  %5471 = vlog2.f32 %v1577_v26  ;;  %v1593_v26 = vmax.f32 %v825_v15, 1e-08  ;;  %v834_v51 = vld [vmem:[%s5912_s3 + $0x1538] sm:$0xff] }
 0x2d2   : > { %v5448_v44 = vpop.eup %5447  ;;  %3866 = vst [vmem:[%s5943_s16 + $0x13f8] sm:$0xff] %v2970_v37  ;;  %v2974_v45 = vmul.f32 0.6931472, %v5446_v40  ;;  %5473 = vlog2.f32 %v1578_v30  ;;  %v1594_v30 = vmax.f32 %v826_v19, 1e-08  ;;  %v835_v55 = vld [vmem:[%s5912_s3 + $0x1540] sm:$0xff] }
 0x2d3   : > { %v5450_v48 = vpop.eup %5449  ;;  %3867 = vst [vmem:[%s5943_s16 + $0x1400] sm:$0xff] %v2972_v41  ;;  %v2976_v49 = vmul.f32 0.6931472, %v5448_v44  ;;  %5475 = vlog2.f32 %v1579_v34  ;;  %v1595_v34 = vmax.f32 %v827_v23, 1e-08  ;;  %v836_v59 = vld [vmem:[%s5912_s3 + $0x1548] sm:$0xff] }
 0x2d4   : > { %v5452_v52 = vpop.eup %5451  ;;  %3868 = vst [vmem:[%s5943_s16 + $0x1408] sm:$0xff] %v2974_v45  ;;  %v2978_v53 = vmul.f32 0.6931472, %v5450_v48  ;;  %5477 = vlog2.f32 %v1580_v38  ;;  %v1596_v38 = vmax.f32 %v828_v27, 1e-08  ;;  %v837_v63 = vld [vmem:[%s5912_s3 + $0x1550] sm:$0xff] }
 0x2d5   : > { %v5454_v56 = vpop.eup %5453  ;;  %3869 = vst [vmem:[%s5943_s16 + $0x1410] sm:$0xff] %v2976_v49  ;;  %v2980_v57 = vmul.f32 0.6931472, %v5452_v52  ;;  %5479 = vlog2.f32 %v1581_v42  ;;  %v1597_v42 = vmax.f32 %v829_v31, 1e-08  ;;  %v838_v3 = vld [vmem:[%s5912_s3 + $0x1558] sm:$0xff] }
 0x2d6   : > { %v5456_v60 = vpop.eup %5455  ;;  %3870 = vst [vmem:[%s5943_s16 + $0x1418] sm:$0xff] %v2978_v53  ;;  %v2982_v61 = vmul.f32 0.6931472, %v5454_v56  ;;  %5481 = vlog2.f32 %v1582_v46  ;;  %v1598_v46 = vmax.f32 %v830_v35, 1e-08  ;;  %v839_v7 = vld [vmem:[%s5912_s3 + $0x1560] sm:$0xff] }
 0x2d7   : > { %v5458_v0 = vpop.eup %5457  ;;  %3871 = vst [vmem:[%s5943_s16 + $0x1420] sm:$0xff] %v2980_v57  ;;  %v2984_v1 = vmul.f32 0.6931472, %v5456_v60  ;;  %5483 = vlog2.f32 %v1583_v50  ;;  %v1599_v50 = vmax.f32 %v831_v39, 1e-08  ;;  %v840_v11 = vld [vmem:[%s5912_s3 + $0x1568] sm:$0xff] }
 0x2d8   : > { %v5460_v4 = vpop.eup %5459  ;;  %3872 = vst [vmem:[%s5943_s16 + $0x1428] sm:$0xff] %v2982_v61  ;;  %v2986_v5 = vmul.f32 0.6931472, %v5458_v0  ;;  %5485 = vlog2.f32 %v1584_v54  ;;  %v1600_v54 = vmax.f32 %v832_v43, 1e-08  ;;  %v841_v15 = vld [vmem:[%s5912_s3 + $0x1570] sm:$0xff] }
 0x2d9   : > { %v5462_v8 = vpop.eup %5461  ;;  %3873 = vst [vmem:[%s5943_s16 + $0x1430] sm:$0xff] %v2984_v1  ;;  %v2988_v9 = vmul.f32 0.6931472, %v5460_v4  ;;  %5487 = vlog2.f32 %v1585_v58  ;;  %v1601_v58 = vmax.f32 %v833_v47, 1e-08  ;;  %v842_v19 = vld [vmem:[%s5912_s3 + $0x1578] sm:$0xff] }
 0x2da   : > { %v5464_v12 = vpop.eup %5463  ;;  %3874 = vst [vmem:[%s5943_s16 + $0x1438] sm:$0xff] %v2986_v5  ;;  %v2990_v13 = vmul.f32 0.6931472, %v5462_v8  ;;  %5489 = vlog2.f32 %v1586_v62  ;;  %v1602_v62 = vmax.f32 %v834_v51, 1e-08  ;;  %v843_v23 = vld [vmem:[%s5912_s3 + $0x1580] sm:$0xff] }
 0x2db   : > { %v5466_v16 = vpop.eup %5465  ;;  %3875 = vst [vmem:[%s5943_s16 + $0x1440] sm:$0xff] %v2988_v9  ;;  %v2992_v17 = vmul.f32 0.6931472, %v5464_v12  ;;  %5491 = vlog2.f32 %v1587_v2  ;;  %v1603_v2 = vmax.f32 %v835_v55, 1e-08  ;;  %v844_v27 = vld [vmem:[%s5912_s3 + $0x1588] sm:$0xff] }
 0x2dc   : > { %v5468_v20 = vpop.eup %5467  ;;  %3876 = vst [vmem:[%s5943_s16 + $0x1448] sm:$0xff] %v2990_v13  ;;  %v2994_v21 = vmul.f32 0.6931472, %v5466_v16  ;;  %5493 = vlog2.f32 %v1588_v6  ;;  %v1604_v6 = vmax.f32 %v836_v59, 1e-08  ;;  %v845_v31 = vld [vmem:[%s5912_s3 + $0x1590] sm:$0xff] }
 0x2dd   : > { %v5470_v24 = vpop.eup %5469  ;;  %3877 = vst [vmem:[%s5943_s16 + $0x1450] sm:$0xff] %v2992_v17  ;;  %v2996_v25 = vmul.f32 0.6931472, %v5468_v20  ;;  %5495 = vlog2.f32 %v1589_v10  ;;  %v1605_v10 = vmax.f32 %v837_v63, 1e-08  ;;  %v846_v35 = vld [vmem:[%s5912_s3 + $0x1598] sm:$0xff] }
 0x2de   : > { %v5472_v28 = vpop.eup %5471  ;;  %3878 = vst [vmem:[%s5943_s16 + $0x1458] sm:$0xff] %v2994_v21  ;;  %v2998_v29 = vmul.f32 0.6931472, %v5470_v24  ;;  %5497 = vlog2.f32 %v1590_v14  ;;  %v1606_v14 = vmax.f32 %v838_v3, 1e-08  ;;  %v847_v39 = vld [vmem:[%s5912_s3 + $0x15a0] sm:$0xff] }
 0x2df   : > { %v5474_v32 = vpop.eup %5473  ;;  %3879 = vst [vmem:[%s5943_s16 + $0x1460] sm:$0xff] %v2996_v25  ;;  %v3000_v33 = vmul.f32 0.6931472, %v5472_v28  ;;  %5499 = vlog2.f32 %v1591_v18  ;;  %v1607_v18 = vmax.f32 %v839_v7, 1e-08  ;;  %v848_v43 = vld [vmem:[%s5912_s3 + $0x15a8] sm:$0xff] }
 0x2e0   : > { %v5476_v36 = vpop.eup %5475  ;;  %3880 = vst [vmem:[%s5943_s16 + $0x1468] sm:$0xff] %v2998_v29  ;;  %v3002_v37 = vmul.f32 0.6931472, %v5474_v32  ;;  %5501 = vlog2.f32 %v1592_v22  ;;  %v1608_v22 = vmax.f32 %v840_v11, 1e-08  ;;  %v849_v47 = vld [vmem:[%s5912_s3 + $0x15b0] sm:$0xff] }
 0x2e1   : > { %v5478_v40 = vpop.eup %5477  ;;  %3881 = vst [vmem:[%s5943_s16 + $0x1470] sm:$0xff] %v3000_v33  ;;  %v3004_v41 = vmul.f32 0.6931472, %v5476_v36  ;;  %5503 = vlog2.f32 %v1593_v26  ;;  %v1609_v26 = vmax.f32 %v841_v15, 1e-08  ;;  %v850_v51 = vld [vmem:[%s5912_s3 + $0x15b8] sm:$0xff] }
 0x2e2   : > { %v5480_v44 = vpop.eup %5479  ;;  %3882 = vst [vmem:[%s5943_s16 + $0x1478] sm:$0xff] %v3002_v37  ;;  %v3006_v45 = vmul.f32 0.6931472, %v5478_v40  ;;  %5505 = vlog2.f32 %v1594_v30  ;;  %v1610_v30 = vmax.f32 %v842_v19, 1e-08  ;;  %v851_v55 = vld [vmem:[%s5912_s3 + $0x15c0] sm:$0xff] }
 0x2e3   : > { %v5482_v48 = vpop.eup %5481  ;;  %3883 = vst [vmem:[%s5943_s16 + $0x1480] sm:$0xff] %v3004_v41  ;;  %v3008_v49 = vmul.f32 0.6931472, %v5480_v44  ;;  %5507 = vlog2.f32 %v1595_v34  ;;  %v1611_v34 = vmax.f32 %v843_v23, 1e-08  ;;  %v852_v59 = vld [vmem:[%s5912_s3 + $0x15c8] sm:$0xff] }
 0x2e4   : > { %v5484_v52 = vpop.eup %5483  ;;  %3884 = vst [vmem:[%s5943_s16 + $0x1488] sm:$0xff] %v3006_v45  ;;  %v3010_v53 = vmul.f32 0.6931472, %v5482_v48  ;;  %5509 = vlog2.f32 %v1596_v38  ;;  %v1612_v38 = vmax.f32 %v844_v27, 1e-08  ;;  %v853_v63 = vld [vmem:[%s5912_s3 + $0x15d0] sm:$0xff] }
 0x2e5   : > { %v5486_v56 = vpop.eup %5485  ;;  %3885 = vst [vmem:[%s5943_s16 + $0x1490] sm:$0xff] %v3008_v49  ;;  %v3012_v57 = vmul.f32 0.6931472, %v5484_v52  ;;  %5511 = vlog2.f32 %v1597_v42  ;;  %v1613_v42 = vmax.f32 %v845_v31, 1e-08  ;;  %v854_v3 = vld [vmem:[%s5912_s3 + $0x15d8] sm:$0xff] }
 0x2e6   : > { %v5488_v60 = vpop.eup %5487  ;;  %3886 = vst [vmem:[%s5943_s16 + $0x1498] sm:$0xff] %v3010_v53  ;;  %v3014_v61 = vmul.f32 0.6931472, %v5486_v56  ;;  %5513 = vlog2.f32 %v1598_v46  ;;  %v1614_v46 = vmax.f32 %v846_v35, 1e-08  ;;  %v855_v7 = vld [vmem:[%s5912_s3 + $0x15e0] sm:$0xff] }
 0x2e7   : > { %v5490_v0 = vpop.eup %5489  ;;  %3887 = vst [vmem:[%s5943_s16 + $0x14a0] sm:$0xff] %v3012_v57  ;;  %v3016_v1 = vmul.f32 0.6931472, %v5488_v60  ;;  %5515 = vlog2.f32 %v1599_v50  ;;  %v1615_v50 = vmax.f32 %v847_v39, 1e-08  ;;  %v856_v11 = vld [vmem:[%s5912_s3 + $0x15e8] sm:$0xff] }
 0x2e8   : > { %v5492_v4 = vpop.eup %5491  ;;  %3888 = vst [vmem:[%s5943_s16 + $0x14a8] sm:$0xff] %v3014_v61  ;;  %v3018_v5 = vmul.f32 0.6931472, %v5490_v0  ;;  %5517 = vlog2.f32 %v1600_v54  ;;  %v1616_v54 = vmax.f32 %v848_v43, 1e-08  ;;  %v857_v15 = vld [vmem:[%s5912_s3 + $0x15f0] sm:$0xff] }
 0x2e9   : > { %v5494_v8 = vpop.eup %5493  ;;  %3889 = vst [vmem:[%s5943_s16 + $0x14b0] sm:$0xff] %v3016_v1  ;;  %v3020_v9 = vmul.f32 0.6931472, %v5492_v4  ;;  %5519 = vlog2.f32 %v1601_v58  ;;  %v1617_v58 = vmax.f32 %v849_v47, 1e-08  ;;  %v858_v19 = vld [vmem:[%s5912_s3 + $0x15f8] sm:$0xff] }
 0x2ea   : > { %v5496_v12 = vpop.eup %5495  ;;  %3890 = vst [vmem:[%s5943_s16 + $0x14b8] sm:$0xff] %v3018_v5  ;;  %v3022_v13 = vmul.f32 0.6931472, %v5494_v8  ;;  %5521 = vlog2.f32 %v1602_v62  ;;  %v1618_v62 = vmax.f32 %v850_v51, 1e-08  ;;  %v859_v23 = vld [vmem:[%s5912_s3 + $0x1600] sm:$0xff] }
 0x2eb   : > { %v5498_v16 = vpop.eup %5497  ;;  %3891 = vst [vmem:[%s5943_s16 + $0x14c0] sm:$0xff] %v3020_v9  ;;  %v3024_v17 = vmul.f32 0.6931472, %v5496_v12  ;;  %5523 = vlog2.f32 %v1603_v2  ;;  %v1619_v2 = vmax.f32 %v851_v55, 1e-08  ;;  %v860_v27 = vld [vmem:[%s5912_s3 + $0x1608] sm:$0xff] }
 0x2ec   : > { %v5500_v20 = vpop.eup %5499  ;;  %3892 = vst [vmem:[%s5943_s16 + $0x14c8] sm:$0xff] %v3022_v13  ;;  %v3026_v21 = vmul.f32 0.6931472, %v5498_v16  ;;  %5525 = vlog2.f32 %v1604_v6  ;;  %v1620_v6 = vmax.f32 %v852_v59, 1e-08  ;;  %v861_v31 = vld [vmem:[%s5912_s3 + $0x1610] sm:$0xff] }
 0x2ed   : > { %v5502_v24 = vpop.eup %5501  ;;  %3893 = vst [vmem:[%s5943_s16 + $0x14d0] sm:$0xff] %v3024_v17  ;;  %v3028_v25 = vmul.f32 0.6931472, %v5500_v20  ;;  %5527 = vlog2.f32 %v1605_v10  ;;  %v1621_v10 = vmax.f32 %v853_v63, 1e-08  ;;  %v862_v35 = vld [vmem:[%s5912_s3 + $0x1618] sm:$0xff] }
 0x2ee   : > { %v5504_v28 = vpop.eup %5503  ;;  %3894 = vst [vmem:[%s5943_s16 + $0x14d8] sm:$0xff] %v3026_v21  ;;  %v3030_v29 = vmul.f32 0.6931472, %v5502_v24  ;;  %5529 = vlog2.f32 %v1606_v14  ;;  %v1622_v14 = vmax.f32 %v854_v3, 1e-08  ;;  %v863_v39 = vld [vmem:[%s5912_s3 + $0x1620] sm:$0xff] }
 0x2ef   : > { %v5506_v32 = vpop.eup %5505  ;;  %3895 = vst [vmem:[%s5943_s16 + $0x14e0] sm:$0xff] %v3028_v25  ;;  %v3032_v33 = vmul.f32 0.6931472, %v5504_v28  ;;  %5531 = vlog2.f32 %v1607_v18  ;;  %v1623_v18 = vmax.f32 %v855_v7, 1e-08  ;;  %v864_v43 = vld [vmem:[%s5912_s3 + $0x1628] sm:$0xff] }
 0x2f0   : > { %v5508_v36 = vpop.eup %5507  ;;  %3896 = vst [vmem:[%s5943_s16 + $0x14e8] sm:$0xff] %v3030_v29  ;;  %v3034_v37 = vmul.f32 0.6931472, %v5506_v32  ;;  %5533 = vlog2.f32 %v1608_v22  ;;  %v1624_v22 = vmax.f32 %v856_v11, 1e-08  ;;  %v865_v47 = vld [vmem:[%s5912_s3 + $0x1630] sm:$0xff] }
 0x2f1   : > { %v5510_v40 = vpop.eup %5509  ;;  %3897 = vst [vmem:[%s5943_s16 + $0x14f0] sm:$0xff] %v3032_v33  ;;  %v3036_v41 = vmul.f32 0.6931472, %v5508_v36  ;;  %5535 = vlog2.f32 %v1609_v26  ;;  %v1625_v26 = vmax.f32 %v857_v15, 1e-08  ;;  %v866_v51 = vld [vmem:[%s5912_s3 + $0x1638] sm:$0xff] }
 0x2f2   : > { %v5512_v44 = vpop.eup %5511  ;;  %3898 = vst [vmem:[%s5943_s16 + $0x14f8] sm:$0xff] %v3034_v37  ;;  %v3038_v45 = vmul.f32 0.6931472, %v5510_v40  ;;  %5537 = vlog2.f32 %v1610_v30  ;;  %v1626_v30 = vmax.f32 %v858_v19, 1e-08  ;;  %v867_v55 = vld [vmem:[%s5912_s3 + $0x1640] sm:$0xff] }
 0x2f3   : > { %v5514_v48 = vpop.eup %5513  ;;  %3899 = vst [vmem:[%s5943_s16 + $0x1500] sm:$0xff] %v3036_v41  ;;  %v3040_v49 = vmul.f32 0.6931472, %v5512_v44  ;;  %5539 = vlog2.f32 %v1611_v34  ;;  %v1627_v34 = vmax.f32 %v859_v23, 1e-08  ;;  %v868_v59 = vld [vmem:[%s5912_s3 + $0x1648] sm:$0xff] }
 0x2f4   : > { %v5516_v52 = vpop.eup %5515  ;;  %3900 = vst [vmem:[%s5943_s16 + $0x1508] sm:$0xff] %v3038_v45  ;;  %v3042_v53 = vmul.f32 0.6931472, %v5514_v48  ;;  %5541 = vlog2.f32 %v1612_v38  ;;  %v1628_v38 = vmax.f32 %v860_v27, 1e-08  ;;  %v869_v63 = vld [vmem:[%s5912_s3 + $0x1650] sm:$0xff] }
 0x2f5   : > { %v5518_v56 = vpop.eup %5517  ;;  %3901 = vst [vmem:[%s5943_s16 + $0x1510] sm:$0xff] %v3040_v49  ;;  %v3044_v57 = vmul.f32 0.6931472, %v5516_v52  ;;  %5543 = vlog2.f32 %v1613_v42  ;;  %v1629_v42 = vmax.f32 %v861_v31, 1e-08  ;;  %v870_v3 = vld [vmem:[%s5912_s3 + $0x1658] sm:$0xff] }
 0x2f6   : > { %v5520_v60 = vpop.eup %5519  ;;  %3902 = vst [vmem:[%s5943_s16 + $0x1518] sm:$0xff] %v3042_v53  ;;  %v3046_v61 = vmul.f32 0.6931472, %v5518_v56  ;;  %5545 = vlog2.f32 %v1614_v46  ;;  %v1630_v46 = vmax.f32 %v862_v35, 1e-08  ;;  %v871_v7 = vld [vmem:[%s5912_s3 + $0x1660] sm:$0xff] }
 0x2f7   : > { %v5522_v0 = vpop.eup %5521  ;;  %3903 = vst [vmem:[%s5943_s16 + $0x1520] sm:$0xff] %v3044_v57  ;;  %v3048_v1 = vmul.f32 0.6931472, %v5520_v60  ;;  %5547 = vlog2.f32 %v1615_v50  ;;  %v1631_v50 = vmax.f32 %v863_v39, 1e-08  ;;  %v872_v11 = vld [vmem:[%s5912_s3 + $0x1668] sm:$0xff] }
 0x2f8   : > { %v5524_v4 = vpop.eup %5523  ;;  %3904 = vst [vmem:[%s5943_s16 + $0x1528] sm:$0xff] %v3046_v61  ;;  %v3050_v5 = vmul.f32 0.6931472, %v5522_v0  ;;  %5549 = vlog2.f32 %v1616_v54  ;;  %v1632_v54 = vmax.f32 %v864_v43, 1e-08  ;;  %v873_v15 = vld [vmem:[%s5912_s3 + $0x1670] sm:$0xff] }
 0x2f9   : > { %v5526_v8 = vpop.eup %5525  ;;  %3905 = vst [vmem:[%s5943_s16 + $0x1530] sm:$0xff] %v3048_v1  ;;  %v3052_v9 = vmul.f32 0.6931472, %v5524_v4  ;;  %5551 = vlog2.f32 %v1617_v58  ;;  %v1633_v58 = vmax.f32 %v865_v47, 1e-08  ;;  %v874_v19 = vld [vmem:[%s5912_s3 + $0x1678] sm:$0xff] }
 0x2fa   : > { %v5528_v12 = vpop.eup %5527  ;;  %3906 = vst [vmem:[%s5943_s16 + $0x1538] sm:$0xff] %v3050_v5  ;;  %v3054_v13 = vmul.f32 0.6931472, %v5526_v8  ;;  %5553 = vlog2.f32 %v1618_v62  ;;  %v1634_v62 = vmax.f32 %v866_v51, 1e-08  ;;  %v875_v23 = vld [vmem:[%s5912_s3 + $0x1680] sm:$0xff] }
 0x2fb   : > { %v5530_v16 = vpop.eup %5529  ;;  %3907 = vst [vmem:[%s5943_s16 + $0x1540] sm:$0xff] %v3052_v9  ;;  %v3056_v17 = vmul.f32 0.6931472, %v5528_v12  ;;  %5555 = vlog2.f32 %v1619_v2  ;;  %v1635_v2 = vmax.f32 %v867_v55, 1e-08  ;;  %v876_v27 = vld [vmem:[%s5912_s3 + $0x1688] sm:$0xff] }
 0x2fc   : > { %v5532_v20 = vpop.eup %5531  ;;  %3908 = vst [vmem:[%s5943_s16 + $0x1548] sm:$0xff] %v3054_v13  ;;  %v3058_v21 = vmul.f32 0.6931472, %v5530_v16  ;;  %5557 = vlog2.f32 %v1620_v6  ;;  %v1636_v6 = vmax.f32 %v868_v59, 1e-08  ;;  %v877_v31 = vld [vmem:[%s5912_s3 + $0x1690] sm:$0xff] }
 0x2fd   : > { %v5534_v24 = vpop.eup %5533  ;;  %3909 = vst [vmem:[%s5943_s16 + $0x1550] sm:$0xff] %v3056_v17  ;;  %v3060_v25 = vmul.f32 0.6931472, %v5532_v20  ;;  %5559 = vlog2.f32 %v1621_v10  ;;  %v1637_v10 = vmax.f32 %v869_v63, 1e-08  ;;  %v878_v35 = vld [vmem:[%s5912_s3 + $0x1698] sm:$0xff] }
 0x2fe   : > { %v5536_v28 = vpop.eup %5535  ;;  %3910 = vst [vmem:[%s5943_s16 + $0x1558] sm:$0xff] %v3058_v21  ;;  %v3062_v29 = vmul.f32 0.6931472, %v5534_v24  ;;  %5561 = vlog2.f32 %v1622_v14  ;;  %v1638_v14 = vmax.f32 %v870_v3, 1e-08  ;;  %v879_v39 = vld [vmem:[%s5912_s3 + $0x16a0] sm:$0xff] }
 0x2ff   : > { %v5538_v32 = vpop.eup %5537  ;;  %3911 = vst [vmem:[%s5943_s16 + $0x1560] sm:$0xff] %v3060_v25  ;;  %v3064_v33 = vmul.f32 0.6931472, %v5536_v28  ;;  %5563 = vlog2.f32 %v1623_v18  ;;  %v1639_v18 = vmax.f32 %v871_v7, 1e-08  ;;  %v880_v43 = vld [vmem:[%s5912_s3 + $0x16a8] sm:$0xff] }
 0x300   : > { %v5540_v36 = vpop.eup %5539  ;;  %3912 = vst [vmem:[%s5943_s16 + $0x1568] sm:$0xff] %v3062_v29  ;;  %v3066_v37 = vmul.f32 0.6931472, %v5538_v32  ;;  %5565 = vlog2.f32 %v1624_v22  ;;  %v1640_v22 = vmax.f32 %v872_v11, 1e-08  ;;  %v881_v47 = vld [vmem:[%s5912_s3 + $0x16b0] sm:$0xff] }
 0x301   : > { %v5542_v40 = vpop.eup %5541  ;;  %3913 = vst [vmem:[%s5943_s16 + $0x1570] sm:$0xff] %v3064_v33  ;;  %v3068_v41 = vmul.f32 0.6931472, %v5540_v36  ;;  %5567 = vlog2.f32 %v1625_v26  ;;  %v1641_v26 = vmax.f32 %v873_v15, 1e-08  ;;  %v882_v51 = vld [vmem:[%s5912_s3 + $0x16b8] sm:$0xff] }
 0x302   : > { %v5544_v44 = vpop.eup %5543  ;;  %3914 = vst [vmem:[%s5943_s16 + $0x1578] sm:$0xff] %v3066_v37  ;;  %v3070_v45 = vmul.f32 0.6931472, %v5542_v40  ;;  %5569 = vlog2.f32 %v1626_v30  ;;  %v1642_v30 = vmax.f32 %v874_v19, 1e-08  ;;  %v883_v55 = vld [vmem:[%s5912_s3 + $0x16c0] sm:$0xff] }
 0x303   : > { %v5546_v48 = vpop.eup %5545  ;;  %3915 = vst [vmem:[%s5943_s16 + $0x1580] sm:$0xff] %v3068_v41  ;;  %v3072_v49 = vmul.f32 0.6931472, %v5544_v44  ;;  %5571 = vlog2.f32 %v1627_v34  ;;  %v1643_v34 = vmax.f32 %v875_v23, 1e-08  ;;  %v884_v59 = vld [vmem:[%s5912_s3 + $0x16c8] sm:$0xff] }
 0x304   : > { %v5548_v52 = vpop.eup %5547  ;;  %3916 = vst [vmem:[%s5943_s16 + $0x1588] sm:$0xff] %v3070_v45  ;;  %v3074_v53 = vmul.f32 0.6931472, %v5546_v48  ;;  %5573 = vlog2.f32 %v1628_v38  ;;  %v1644_v38 = vmax.f32 %v876_v27, 1e-08  ;;  %v885_v63 = vld [vmem:[%s5912_s3 + $0x16d0] sm:$0xff] }
 0x305   : > { %v5550_v56 = vpop.eup %5549  ;;  %3917 = vst [vmem:[%s5943_s16 + $0x1590] sm:$0xff] %v3072_v49  ;;  %v3076_v57 = vmul.f32 0.6931472, %v5548_v52  ;;  %5575 = vlog2.f32 %v1629_v42  ;;  %v1645_v42 = vmax.f32 %v877_v31, 1e-08  ;;  %v886_v3 = vld [vmem:[%s5912_s3 + $0x16d8] sm:$0xff] }
 0x306   : > { %v5552_v60 = vpop.eup %5551  ;;  %3918 = vst [vmem:[%s5943_s16 + $0x1598] sm:$0xff] %v3074_v53  ;;  %v3078_v61 = vmul.f32 0.6931472, %v5550_v56  ;;  %5577 = vlog2.f32 %v1630_v46  ;;  %v1646_v46 = vmax.f32 %v878_v35, 1e-08  ;;  %v887_v7 = vld [vmem:[%s5912_s3 + $0x16e0] sm:$0xff] }
 0x307   : > { %v5554_v0 = vpop.eup %5553  ;;  %3919 = vst [vmem:[%s5943_s16 + $0x15a0] sm:$0xff] %v3076_v57  ;;  %v3080_v1 = vmul.f32 0.6931472, %v5552_v60  ;;  %5579 = vlog2.f32 %v1631_v50  ;;  %v1647_v50 = vmax.f32 %v879_v39, 1e-08  ;;  %v888_v11 = vld [vmem:[%s5912_s3 + $0x16e8] sm:$0xff] }
 0x308   : > { %v5556_v4 = vpop.eup %5555  ;;  %3920 = vst [vmem:[%s5943_s16 + $0x15a8] sm:$0xff] %v3078_v61  ;;  %v3082_v5 = vmul.f32 0.6931472, %v5554_v0  ;;  %5581 = vlog2.f32 %v1632_v54  ;;  %v1648_v54 = vmax.f32 %v880_v43, 1e-08  ;;  %v889_v15 = vld [vmem:[%s5912_s3 + $0x16f0] sm:$0xff] }
 0x309   : > { %v5558_v8 = vpop.eup %5557  ;;  %3921 = vst [vmem:[%s5943_s16 + $0x15b0] sm:$0xff] %v3080_v1  ;;  %v3084_v9 = vmul.f32 0.6931472, %v5556_v4  ;;  %5583 = vlog2.f32 %v1633_v58  ;;  %v1649_v58 = vmax.f32 %v881_v47, 1e-08  ;;  %v890_v19 = vld [vmem:[%s5912_s3 + $0x16f8] sm:$0xff] }
 0x30a   : > { %v5560_v12 = vpop.eup %5559  ;;  %3922 = vst [vmem:[%s5943_s16 + $0x15b8] sm:$0xff] %v3082_v5  ;;  %v3086_v13 = vmul.f32 0.6931472, %v5558_v8  ;;  %5585 = vlog2.f32 %v1634_v62  ;;  %v1650_v62 = vmax.f32 %v882_v51, 1e-08  ;;  %v891_v23 = vld [vmem:[%s5912_s3 + $0x1700] sm:$0xff] }
 0x30b   : > { %v5562_v16 = vpop.eup %5561  ;;  %3923 = vst [vmem:[%s5943_s16 + $0x15c0] sm:$0xff] %v3084_v9  ;;  %v3088_v17 = vmul.f32 0.6931472, %v5560_v12  ;;  %5587 = vlog2.f32 %v1635_v2  ;;  %v1651_v2 = vmax.f32 %v883_v55, 1e-08  ;;  %v892_v27 = vld [vmem:[%s5912_s3 + $0x1708] sm:$0xff] }
 0x30c   : > { %v5564_v20 = vpop.eup %5563  ;;  %3924 = vst [vmem:[%s5943_s16 + $0x15c8] sm:$0xff] %v3086_v13  ;;  %v3090_v21 = vmul.f32 0.6931472, %v5562_v16  ;;  %5589 = vlog2.f32 %v1636_v6  ;;  %v1652_v6 = vmax.f32 %v884_v59, 1e-08  ;;  %v893_v31 = vld [vmem:[%s5912_s3 + $0x1710] sm:$0xff] }
 0x30d   : > { %v5566_v24 = vpop.eup %5565  ;;  %3925 = vst [vmem:[%s5943_s16 + $0x15d0] sm:$0xff] %v3088_v17  ;;  %v3092_v25 = vmul.f32 0.6931472, %v5564_v20  ;;  %5591 = vlog2.f32 %v1637_v10  ;;  %v1653_v10 = vmax.f32 %v885_v63, 1e-08  ;;  %v894_v35 = vld [vmem:[%s5912_s3 + $0x1718] sm:$0xff] }
 0x30e   : > { %v5568_v28 = vpop.eup %5567  ;;  %3926 = vst [vmem:[%s5943_s16 + $0x15d8] sm:$0xff] %v3090_v21  ;;  %v3094_v29 = vmul.f32 0.6931472, %v5566_v24  ;;  %5593 = vlog2.f32 %v1638_v14  ;;  %v1654_v14 = vmax.f32 %v886_v3, 1e-08  ;;  %v895_v39 = vld [vmem:[%s5912_s3 + $0x1720] sm:$0xff] }
 0x30f   : > { %v5570_v32 = vpop.eup %5569  ;;  %3927 = vst [vmem:[%s5943_s16 + $0x15e0] sm:$0xff] %v3092_v25  ;;  %v3096_v33 = vmul.f32 0.6931472, %v5568_v28  ;;  %5595 = vlog2.f32 %v1639_v18  ;;  %v1655_v18 = vmax.f32 %v887_v7, 1e-08  ;;  %v896_v43 = vld [vmem:[%s5912_s3 + $0x1728] sm:$0xff] }
 0x310   : > { %v5572_v36 = vpop.eup %5571  ;;  %3928 = vst [vmem:[%s5943_s16 + $0x15e8] sm:$0xff] %v3094_v29  ;;  %v3098_v37 = vmul.f32 0.6931472, %v5570_v32  ;;  %5597 = vlog2.f32 %v1640_v22  ;;  %v1656_v22 = vmax.f32 %v888_v11, 1e-08  ;;  %v897_v47 = vld [vmem:[%s5912_s3 + $0x1730] sm:$0xff] }
 0x311   : > { %v5574_v40 = vpop.eup %5573  ;;  %3929 = vst [vmem:[%s5943_s16 + $0x15f0] sm:$0xff] %v3096_v33  ;;  %v3100_v41 = vmul.f32 0.6931472, %v5572_v36  ;;  %5599 = vlog2.f32 %v1641_v26  ;;  %v1657_v26 = vmax.f32 %v889_v15, 1e-08  ;;  %v898_v51 = vld [vmem:[%s5912_s3 + $0x1738] sm:$0xff] }
 0x312   : > { %v5576_v44 = vpop.eup %5575  ;;  %3930 = vst [vmem:[%s5943_s16 + $0x15f8] sm:$0xff] %v3098_v37  ;;  %v3102_v45 = vmul.f32 0.6931472, %v5574_v40  ;;  %5601 = vlog2.f32 %v1642_v30  ;;  %v1658_v30 = vmax.f32 %v890_v19, 1e-08  ;;  %v899_v55 = vld [vmem:[%s5912_s3 + $0x1740] sm:$0xff] }
 0x313   : > { %v5578_v48 = vpop.eup %5577  ;;  %3931 = vst [vmem:[%s5943_s16 + $0x1600] sm:$0xff] %v3100_v41  ;;  %v3104_v49 = vmul.f32 0.6931472, %v5576_v44  ;;  %5603 = vlog2.f32 %v1643_v34  ;;  %v1659_v34 = vmax.f32 %v891_v23, 1e-08  ;;  %v900_v59 = vld [vmem:[%s5912_s3 + $0x1748] sm:$0xff] }
 0x314   : > { %v5580_v52 = vpop.eup %5579  ;;  %3932 = vst [vmem:[%s5943_s16 + $0x1608] sm:$0xff] %v3102_v45  ;;  %v3106_v53 = vmul.f32 0.6931472, %v5578_v48  ;;  %5605 = vlog2.f32 %v1644_v38  ;;  %v1660_v38 = vmax.f32 %v892_v27, 1e-08  ;;  %v901_v63 = vld [vmem:[%s5912_s3 + $0x1750] sm:$0xff] }
 0x315   : > { %v5582_v56 = vpop.eup %5581  ;;  %3933 = vst [vmem:[%s5943_s16 + $0x1610] sm:$0xff] %v3104_v49  ;;  %v3108_v57 = vmul.f32 0.6931472, %v5580_v52  ;;  %5607 = vlog2.f32 %v1645_v42  ;;  %v1661_v42 = vmax.f32 %v893_v31, 1e-08  ;;  %v902_v3 = vld [vmem:[%s5912_s3 + $0x1758] sm:$0xff] }
 0x316   : > { %v5584_v60 = vpop.eup %5583  ;;  %3934 = vst [vmem:[%s5943_s16 + $0x1618] sm:$0xff] %v3106_v53  ;;  %v3110_v61 = vmul.f32 0.6931472, %v5582_v56  ;;  %5609 = vlog2.f32 %v1646_v46  ;;  %v1662_v46 = vmax.f32 %v894_v35, 1e-08  ;;  %v903_v7 = vld [vmem:[%s5912_s3 + $0x1760] sm:$0xff] }
 0x317   : > { %v5586_v0 = vpop.eup %5585  ;;  %3935 = vst [vmem:[%s5943_s16 + $0x1620] sm:$0xff] %v3108_v57  ;;  %v3112_v1 = vmul.f32 0.6931472, %v5584_v60  ;;  %5611 = vlog2.f32 %v1647_v50  ;;  %v1663_v50 = vmax.f32 %v895_v39, 1e-08  ;;  %v904_v11 = vld [vmem:[%s5912_s3 + $0x1768] sm:$0xff] }
 0x318   : > { %v5588_v4 = vpop.eup %5587  ;;  %3936 = vst [vmem:[%s5943_s16 + $0x1628] sm:$0xff] %v3110_v61  ;;  %v3114_v5 = vmul.f32 0.6931472, %v5586_v0  ;;  %5613 = vlog2.f32 %v1648_v54  ;;  %v1664_v54 = vmax.f32 %v896_v43, 1e-08  ;;  %v905_v15 = vld [vmem:[%s5912_s3 + $0x1770] sm:$0xff] }
 0x319   : > { %v5590_v8 = vpop.eup %5589  ;;  %3937 = vst [vmem:[%s5943_s16 + $0x1630] sm:$0xff] %v3112_v1  ;;  %v3116_v9 = vmul.f32 0.6931472, %v5588_v4  ;;  %5615 = vlog2.f32 %v1649_v58  ;;  %v1665_v58 = vmax.f32 %v897_v47, 1e-08  ;;  %v906_v19 = vld [vmem:[%s5912_s3 + $0x1778] sm:$0xff] }
 0x31a   : > { %v5592_v12 = vpop.eup %5591  ;;  %3938 = vst [vmem:[%s5943_s16 + $0x1638] sm:$0xff] %v3114_v5  ;;  %v3118_v13 = vmul.f32 0.6931472, %v5590_v8  ;;  %5617 = vlog2.f32 %v1650_v62  ;;  %v1666_v62 = vmax.f32 %v898_v51, 1e-08  ;;  %v907_v23 = vld [vmem:[%s5912_s3 + $0x1780] sm:$0xff] }
 0x31b   : > { %v5594_v16 = vpop.eup %5593  ;;  %3939 = vst [vmem:[%s5943_s16 + $0x1640] sm:$0xff] %v3116_v9  ;;  %v3120_v17 = vmul.f32 0.6931472, %v5592_v12  ;;  %5619 = vlog2.f32 %v1651_v2  ;;  %v1667_v2 = vmax.f32 %v899_v55, 1e-08  ;;  %v908_v27 = vld [vmem:[%s5912_s3 + $0x1788] sm:$0xff] }
 0x31c   : > { %v5596_v20 = vpop.eup %5595  ;;  %3940 = vst [vmem:[%s5943_s16 + $0x1648] sm:$0xff] %v3118_v13  ;;  %v3122_v21 = vmul.f32 0.6931472, %v5594_v16  ;;  %5621 = vlog2.f32 %v1652_v6  ;;  %v1668_v6 = vmax.f32 %v900_v59, 1e-08  ;;  %v909_v31 = vld [vmem:[%s5912_s3 + $0x1790] sm:$0xff] }
 0x31d   : > { %v5598_v24 = vpop.eup %5597  ;;  %3941 = vst [vmem:[%s5943_s16 + $0x1650] sm:$0xff] %v3120_v17  ;;  %v3124_v25 = vmul.f32 0.6931472, %v5596_v20  ;;  %5623 = vlog2.f32 %v1653_v10  ;;  %v1669_v10 = vmax.f32 %v901_v63, 1e-08  ;;  %v910_v35 = vld [vmem:[%s5912_s3 + $0x1798] sm:$0xff] }
 0x31e   : > { %v5600_v28 = vpop.eup %5599  ;;  %3942 = vst [vmem:[%s5943_s16 + $0x1658] sm:$0xff] %v3122_v21  ;;  %v3126_v29 = vmul.f32 0.6931472, %v5598_v24  ;;  %5625 = vlog2.f32 %v1654_v14  ;;  %v1670_v14 = vmax.f32 %v902_v3, 1e-08  ;;  %v911_v39 = vld [vmem:[%s5912_s3 + $0x17a0] sm:$0xff] }
 0x31f   : > { %v5602_v32 = vpop.eup %5601  ;;  %3943 = vst [vmem:[%s5943_s16 + $0x1660] sm:$0xff] %v3124_v25  ;;  %v3128_v33 = vmul.f32 0.6931472, %v5600_v28  ;;  %5627 = vlog2.f32 %v1655_v18  ;;  %v1671_v18 = vmax.f32 %v903_v7, 1e-08  ;;  %v912_v43 = vld [vmem:[%s5912_s3 + $0x17a8] sm:$0xff] }
 0x320   : > { %v5604_v36 = vpop.eup %5603  ;;  %3944 = vst [vmem:[%s5943_s16 + $0x1668] sm:$0xff] %v3126_v29  ;;  %v3130_v37 = vmul.f32 0.6931472, %v5602_v32  ;;  %5629 = vlog2.f32 %v1656_v22  ;;  %v1672_v22 = vmax.f32 %v904_v11, 1e-08  ;;  %v913_v47 = vld [vmem:[%s5912_s3 + $0x17b0] sm:$0xff] }
 0x321   : > { %v5606_v40 = vpop.eup %5605  ;;  %3945 = vst [vmem:[%s5943_s16 + $0x1670] sm:$0xff] %v3128_v33  ;;  %v3132_v41 = vmul.f32 0.6931472, %v5604_v36  ;;  %5631 = vlog2.f32 %v1657_v26  ;;  %v1673_v26 = vmax.f32 %v905_v15, 1e-08  ;;  %v914_v51 = vld [vmem:[%s5912_s3 + $0x17b8] sm:$0xff] }
 0x322   : > { %v5608_v44 = vpop.eup %5607  ;;  %3946 = vst [vmem:[%s5943_s16 + $0x1678] sm:$0xff] %v3130_v37  ;;  %v3134_v45 = vmul.f32 0.6931472, %v5606_v40  ;;  %5633 = vlog2.f32 %v1658_v30  ;;  %v1674_v30 = vmax.f32 %v906_v19, 1e-08  ;;  %v915_v55 = vld [vmem:[%s5912_s3 + $0x17c0] sm:$0xff] }
 0x323   : > { %v5610_v48 = vpop.eup %5609  ;;  %3947 = vst [vmem:[%s5943_s16 + $0x1680] sm:$0xff] %v3132_v41  ;;  %v3136_v49 = vmul.f32 0.6931472, %v5608_v44  ;;  %5635 = vlog2.f32 %v1659_v34  ;;  %v1675_v34 = vmax.f32 %v907_v23, 1e-08  ;;  %v916_v59 = vld [vmem:[%s5912_s3 + $0x17c8] sm:$0xff] }
 0x324   : > { %v5612_v52 = vpop.eup %5611  ;;  %3948 = vst [vmem:[%s5943_s16 + $0x1688] sm:$0xff] %v3134_v45  ;;  %v3138_v53 = vmul.f32 0.6931472, %v5610_v48  ;;  %5637 = vlog2.f32 %v1660_v38  ;;  %v1676_v38 = vmax.f32 %v908_v27, 1e-08  ;;  %v917_v63 = vld [vmem:[%s5912_s3 + $0x17d0] sm:$0xff] }
 0x325   : > { %v5614_v56 = vpop.eup %5613  ;;  %3949 = vst [vmem:[%s5943_s16 + $0x1690] sm:$0xff] %v3136_v49  ;;  %v3140_v57 = vmul.f32 0.6931472, %v5612_v52  ;;  %5639 = vlog2.f32 %v1661_v42  ;;  %v1677_v42 = vmax.f32 %v909_v31, 1e-08  ;;  %v918_v3 = vld [vmem:[%s5912_s3 + $0x17d8] sm:$0xff] }
 0x326   : > { %v5616_v60 = vpop.eup %5615  ;;  %3950 = vst [vmem:[%s5943_s16 + $0x1698] sm:$0xff] %v3138_v53  ;;  %v3142_v61 = vmul.f32 0.6931472, %v5614_v56  ;;  %5641 = vlog2.f32 %v1662_v46  ;;  %v1678_v46 = vmax.f32 %v910_v35, 1e-08  ;;  %v919_v7 = vld [vmem:[%s5912_s3 + $0x17e0] sm:$0xff] }
 0x327   : > { %v5618_v0 = vpop.eup %5617  ;;  %3951 = vst [vmem:[%s5943_s16 + $0x16a0] sm:$0xff] %v3140_v57  ;;  %v3144_v1 = vmul.f32 0.6931472, %v5616_v60  ;;  %5643 = vlog2.f32 %v1663_v50  ;;  %v1679_v50 = vmax.f32 %v911_v39, 1e-08  ;;  %v920_v11 = vld [vmem:[%s5912_s3 + $0x17e8] sm:$0xff] }
 0x328   : > { %v5620_v4 = vpop.eup %5619  ;;  %3952 = vst [vmem:[%s5943_s16 + $0x16a8] sm:$0xff] %v3142_v61  ;;  %v3146_v5 = vmul.f32 0.6931472, %v5618_v0  ;;  %5645 = vlog2.f32 %v1664_v54  ;;  %v1680_v54 = vmax.f32 %v912_v43, 1e-08  ;;  %v921_v15 = vld [vmem:[%s5912_s3 + $0x17f0] sm:$0xff] }
 0x329   : > { %v5622_v8 = vpop.eup %5621  ;;  %3953 = vst [vmem:[%s5943_s16 + $0x16b0] sm:$0xff] %v3144_v1  ;;  %v3148_v9 = vmul.f32 0.6931472, %v5620_v4  ;;  %5647 = vlog2.f32 %v1665_v58  ;;  %v1681_v58 = vmax.f32 %v913_v47, 1e-08  ;;  %v922_v19 = vld [vmem:[%s5912_s3 + $0x17f8] sm:$0xff] }
 0x32a   : > { %v5624_v12 = vpop.eup %5623  ;;  %3954 = vst [vmem:[%s5943_s16 + $0x16b8] sm:$0xff] %v3146_v5  ;;  %v3150_v13 = vmul.f32 0.6931472, %v5622_v8  ;;  %5649 = vlog2.f32 %v1666_v62  ;;  %v1682_v62 = vmax.f32 %v914_v51, 1e-08  ;;  %s4004_s28 = ssub.s32 (%p5851_p9), 144, %s4003_s25 }
 0x32b   : > { %v5626_v16 = vpop.eup %5625  ;;  %3955 = vst [vmem:[%s5943_s16 + $0x16c0] sm:$0xff] %v3148_v9  ;;  %v3152_v17 = vmul.f32 0.6931472, %v5624_v12  ;;  %5651 = vlog2.f32 %v1667_v2  ;;  %v1683_v2 = vmax.f32 %v915_v55, 1e-08  ;;  %p4005_p6 = scmp.lt.s32.totalorder (%p5851_p9), %s4004_s28, 96 }
 0x32c   : > { %v5628_v20 = vpop.eup %5627  ;;  %3956 = vst [vmem:[%s5943_s16 + $0x16c8] sm:$0xff] %v3150_v13  ;;  %v3154_v21 = vmul.f32 0.6931472, %v5626_v16  ;;  %5653 = vlog2.f32 %v1668_v6  ;;  %v1684_v6 = vmax.f32 %v916_v59, 1e-08 }
 0x32d   : > { %v5630_v24 = vpop.eup %5629  ;;  %3957 = vst [vmem:[%s5943_s16 + $0x16d0] sm:$0xff] %v3152_v17  ;;  %v3156_v25 = vmul.f32 0.6931472, %v5628_v20  ;;  %5655 = vlog2.f32 %v1669_v10  ;;  %v1685_v10 = vmax.f32 %v917_v63, 1e-08 }
 0x32e   : > { %v5632_v28 = vpop.eup %5631  ;;  %3958 = vst [vmem:[%s5943_s16 + $0x16d8] sm:$0xff] %v3154_v21  ;;  %v3158_v29 = vmul.f32 0.6931472, %v5630_v24  ;;  %5657 = vlog2.f32 %v1670_v14  ;;  %v1686_v14 = vmax.f32 %v918_v3, 1e-08 }
 0x32f   : > { %v5634_v32 = vpop.eup %5633  ;;  %3959 = vst [vmem:[%s5943_s16 + $0x16e0] sm:$0xff] %v3156_v25  ;;  %v3160_v33 = vmul.f32 0.6931472, %v5632_v28  ;;  %5659 = vlog2.f32 %v1671_v18  ;;  %v1687_v18 = vmax.f32 %v919_v7, 1e-08 }
 0x330   : > { %v5636_v36 = vpop.eup %5635  ;;  %3960 = vst [vmem:[%s5943_s16 + $0x16e8] sm:$0xff] %v3158_v29  ;;  %v3162_v37 = vmul.f32 0.6931472, %v5634_v32  ;;  %5661 = vlog2.f32 %v1672_v22  ;;  %v1688_v22 = vmax.f32 %v920_v11, 1e-08 }
 0x331   : > { %v5638_v40 = vpop.eup %5637  ;;  %3961 = vst [vmem:[%s5943_s16 + $0x16f0] sm:$0xff] %v3160_v33  ;;  %v3164_v41 = vmul.f32 0.6931472, %v5636_v36  ;;  %5663 = vlog2.f32 %v1673_v26  ;;  %v1689_v25 = vmax.f32 %v921_v15, 1e-08 }
 0x332   : > { %v5640_v44 = vpop.eup %5639  ;;  %3962 = vst [vmem:[%s5943_s16 + $0x16f8] sm:$0xff] %v3162_v37  ;;  %v3166_v45 = vmul.f32 0.6931472, %v5638_v40  ;;  %5665 = vlog2.f32 %v1674_v30  ;;  %v1690_v28 = vmax.f32 %v922_v19, 1e-08 }
 0x333   : > { %v5642_v48 = vpop.eup %5641  ;;  %3963 = vst [vmem:[%s5943_s16 + $0x1700] sm:$0xff] %v3164_v41  ;;  %v3168_v49 = vmul.f32 0.6931472, %v5640_v44  ;;  %5667 = vlog2.f32 %v1675_v34 }
 0x334   : > { %v5644_v52 = vpop.eup %5643  ;;  %3964 = vst [vmem:[%s5943_s16 + $0x1708] sm:$0xff] %v3166_v45  ;;  %v3170_v53 = vmul.f32 0.6931472, %v5642_v48  ;;  %5669 = vlog2.f32 %v1676_v38 }
 0x335   : > { %v5646_v56 = vpop.eup %5645  ;;  %3965 = vst [vmem:[%s5943_s16 + $0x1710] sm:$0xff] %v3168_v49  ;;  %v3172_v57 = vmul.f32 0.6931472, %v5644_v52  ;;  %5671 = vlog2.f32 %v1677_v42 }
 0x336   : > { %v5648_v60 = vpop.eup %5647  ;;  %3966 = vst [vmem:[%s5943_s16 + $0x1718] sm:$0xff] %v3170_v53  ;;  %v3174_v61 = vmul.f32 0.6931472, %v5646_v56  ;;  %5673 = vlog2.f32 %v1678_v46 }
 0x337   : > { %v5650_v0 = vpop.eup %5649  ;;  %3967 = vst [vmem:[%s5943_s16 + $0x1720] sm:$0xff] %v3172_v57  ;;  %v3176_v1 = vmul.f32 0.6931472, %v5648_v60  ;;  %5675 = vlog2.f32 %v1679_v50 }
 0x338   : > { %v5652_v4 = vpop.eup %5651  ;;  %3968 = vst [vmem:[%s5943_s16 + $0x1728] sm:$0xff] %v3174_v61  ;;  %v3178_v5 = vmul.f32 0.6931472, %v5650_v0  ;;  %5677 = vlog2.f32 %v1680_v54 }
 0x339   : > { %v5654_v8 = vpop.eup %5653  ;;  %3969 = vst [vmem:[%s5943_s16 + $0x1730] sm:$0xff] %v3176_v1  ;;  %v3180_v9 = vmul.f32 0.6931472, %v5652_v4  ;;  %5679 = vlog2.f32 %v1681_v58 }
 0x33a   : > { %v5656_v12 = vpop.eup %5655  ;;  %3970 = vst [vmem:[%s5943_s16 + $0x1738] sm:$0xff] %v3178_v5  ;;  %v3182_v13 = vmul.f32 0.6931472, %v5654_v8  ;;  %5681 = vlog2.f32 %v1682_v62 }
 0x33b   : > { %v5658_v16 = vpop.eup %5657  ;;  %3971 = vst [vmem:[%s5943_s16 + $0x1740] sm:$0xff] %v3180_v9  ;;  %v3184_v17 = vmul.f32 0.6931472, %v5656_v12  ;;  %5683 = vlog2.f32 %v1683_v2 }
 0x33c   : > { %v5660_v20 = vpop.eup %5659  ;;  %3972 = vst [vmem:[%s5943_s16 + $0x1748] sm:$0xff] %v3182_v13  ;;  %v3186_v21 = vmul.f32 0.6931472, %v5658_v16  ;;  %5685 = vlog2.f32 %v1684_v6 }
 0x33d   : > { %v5662_v23 = vpop.eup %5661  ;;  %3973 = vst [vmem:[%s5943_s16 + $0x1750] sm:$0xff] %v3184_v17  ;;  %v3188_v24 = vmul.f32 0.6931472, %v5660_v20  ;;  %5687 = vlog2.f32 %v1685_v10 }
 0x33e   : > { %v5664_v26 = vpop.eup %5663  ;;  %3974 = vst [vmem:[%s5943_s16 + $0x1758] sm:$0xff] %v3186_v21  ;;  %v3190_v27 = vmul.f32 0.6931472, %v5662_v23  ;;  %5689 = vlog2.f32 %v1686_v14 }
 0x33f   : > { %v5666_v29 = vpop.eup %5665  ;;  %3975 = vst [vmem:[%s5943_s16 + $0x1760] sm:$0xff] %v3188_v24  ;;  %v3192_v30 = vmul.f32 0.6931472, %v5664_v26  ;;  %5691 = vlog2.f32 %v1687_v18 }
 0x340   : > { %v5668_v31 = vpop.eup %5667  ;;  %3976 = vst [vmem:[%s5943_s16 + $0x1768] sm:$0xff] %v3190_v27  ;;  %v3194_v32 = vmul.f32 0.6931472, %v5666_v29  ;;  %5693 = vlog2.f32 %v1688_v22 }
 0x341   : > { %v5670_v33 = vpop.eup %5669  ;;  %3977 = vst [vmem:[%s5943_s16 + $0x1770] sm:$0xff] %v3192_v30  ;;  %v3196_v34 = vmul.f32 0.6931472, %v5668_v31  ;;  %5695 = vlog2.f32 %v1689_v25 }
 0x342   : > { %v5672_v35 = vpop.eup %5671  ;;  %3978 = vst [vmem:[%s5943_s16 + $0x1778] sm:$0xff] %v3194_v32  ;;  %v3198_v36 = vmul.f32 0.6931472, %v5670_v33  ;;  %5697 = vlog2.f32 %v1690_v28 }
 0x343   : > { %v5674_v37 = vpop.eup %5673  ;;  %3979 = vst [vmem:[%s5943_s16 + $0x1780] sm:$0xff] %v3196_v34  ;;  %v3200_v38 = vmul.f32 0.6931472, %v5672_v35 }
 0x344   : > { %v5676_v39 = vpop.eup %5675  ;;  %3980 = vst [vmem:[%s5943_s16 + $0x1788] sm:$0xff] %v3198_v36  ;;  %v3202_v40 = vmul.f32 0.6931472, %v5674_v37 }
 0x345   : > { %v5678_v41 = vpop.eup %5677  ;;  %3981 = vst [vmem:[%s5943_s16 + $0x1790] sm:$0xff] %v3200_v38  ;;  %v3204_v42 = vmul.f32 0.6931472, %v5676_v39 }
 0x346   : > { %v5680_v43 = vpop.eup %5679  ;;  %3982 = vst [vmem:[%s5943_s16 + $0x1798] sm:$0xff] %v3202_v40  ;;  %v3206_v44 = vmul.f32 0.6931472, %v5678_v41 }
 0x347   : > { %v5682_v45 = vpop.eup %5681  ;;  %3983 = vst [vmem:[%s5943_s16 + $0x17a0] sm:$0xff] %v3204_v42  ;;  %v3208_v46 = vmul.f32 0.6931472, %v5680_v43 }
 0x348   : > { %v5684_v47 = vpop.eup %5683  ;;  %3984 = vst [vmem:[%s5943_s16 + $0x17a8] sm:$0xff] %v3206_v44  ;;  %v3210_v48 = vmul.f32 0.6931472, %v5682_v45 }
 0x349   : > { %v5686_v49 = vpop.eup %5685  ;;  %3985 = vst [vmem:[%s5943_s16 + $0x17b0] sm:$0xff] %v3208_v46  ;;  %v3212_v50 = vmul.f32 0.6931472, %v5684_v47 }
 0x34a   : > { %v5688_v51 = vpop.eup %5687  ;;  %3986 = vst [vmem:[%s5943_s16 + $0x17b8] sm:$0xff] %v3210_v48  ;;  %v3214_v52 = vmul.f32 0.6931472, %v5686_v49 }
 0x34b   : > { %v5690_v53 = vpop.eup %5689  ;;  %3987 = vst [vmem:[%s5943_s16 + $0x17c0] sm:$0xff] %v3212_v50  ;;  %v3216_v54 = vmul.f32 0.6931472, %v5688_v51 }
 0x34c   : > { %v5692_v55 = vpop.eup %5691  ;;  %3988 = vst [vmem:[%s5943_s16 + $0x17c8] sm:$0xff] %v3214_v52  ;;  %v3218_v56 = vmul.f32 0.6931472, %v5690_v53 }
 0x34d   : > { %v5694_v57 = vpop.eup %5693  ;;  %3989 = vst [vmem:[%s5943_s16 + $0x17d0] sm:$0xff] %v3216_v54  ;;  %v3220_v58 = vmul.f32 0.6931472, %v5692_v55 }
 0x34e   : > { %v5696_v59 = vpop.eup %5695  ;;  %3990 = vst [vmem:[%s5943_s16 + $0x17d8] sm:$0xff] %v3218_v56  ;;  %v3222_v60 = vmul.f32 0.6931472, %v5694_v57  ;;  %4002 = sbr.rel (!%p5851_p9) target bundleno = 878 (0x36e), region = 32 }
 0x34f   : > { %v5698_v61 = vpop.eup %5697  ;;  %3991 = vst [vmem:[%s5943_s16 + $0x17e0] sm:$0xff] %v3220_v58  ;;  %v3224_v62 = vmul.f32 0.6931472, %v5696_v59 }
 0x350   : > { %3992 = vst [vmem:[%s5943_s16 + $0x17e8] sm:$0xff] %v3222_v60  ;;  %v3226_v63 = vmul.f32 0.6931472, %v5698_v61 }
 0x351   : > { %3993 = vst [vmem:[%s5943_s16 + $0x17f0] sm:$0xff] %v3224_v62 }
 0x352   : > { %3994 = vst [vmem:[%s5943_s16 + $0x17f8] sm:$0xff] %v3226_v63 }
 0x353   : > { %s7535_s28 = smov (!%p4005_p6, %s4004_s28), 96 }
 0x354   : > { %s7462_s2 = sshll.u32 %s7535_s28, 10 }
 0x355   : > { %s4010_s4 = ssub.s32 98304, %s7462_s2 }
 0x356   : > { %4011 = vsyncadd %s3996_s23, %s4010_s4  ;;  %p4103_p10 = scmp.ne.s32.totalorder %s7462_s2, 0  ;;  %s4117_s17 = smul.u32 98304, %s5828_s10 }
 0x357   : > { %s4017_s5 = sshll.u32 %s5943_s16, 4  ;;  %s5794_s20 = smov [#allocation5]   ;;  %s7475_s5 = int_to_ptr.vmem [resolvable:$true] %s4017_s5 }
 0x358   : > { %s7473_s14 = scalar_lea.hbm %s7521_s1, %s4117_s17  ;;  %s5725_s19 = scalar_lea.vmem %s7475_s5, %s7462_s2 }
 0x359   : > { %p5726_p9 = scmp.ne.s32.totalorder %s7475_s5, %s5725_s19  ;;  %s5729_s21 = sshll.u32 %s5794_s20, 4  ;;  %s5730_s21 = int_to_ptr.vmem [resolvable:$false] %s5729_s21 }
 0x35a   : > { %s5731_s10 = scalar_lea.vmem %s5730_s21, 196608  ;;  %p5732_p7 = scmp.lt.s32.totalorder %s7475_s5, %s5730_s21 }
 0x35b   : > { %p5727_p11 = pnand %p5726_p9, %p4103_p10  ;;  %p5733_p8 = scmp.lt.s32.totalorder %s5731_s10, %s5725_s19 }
 0x35d   : > { %p5728_p13 = pneg %p5727_p11  ;;  %p5734_p12 = por %p5733_p8, %p5732_p7 }
 0x35f   : > { %p5735_p0 = pnand %p5734_p12, %p5728_p13 }
 0x361   : > { %5738 = shalt.err (!%p5735_p0)
}
 0x362   : > { %s5739_s22 = scalar_lea.hbm %s7473_s14, %s7462_s2  ;;  %s5743_s29 = scalar_lea.hbm %s7521_s1, 147456 }
 0x363   : > { %p5740_p1 = scmp.ne.s32.totalorder %s7473_s14, %s5739_s22  ;;  %p5744_p4 = scmp.lt.s32.totalorder %s7473_s14, %s7521_s1 }
 0x364   : > { %p5745_p5 = scmp.lt.s32.totalorder %s5743_s29, %s5739_s22 }
 0x365   : > { %p5741_p3 = pnand %p5740_p1, %p4103_p10 }
 0x366   : > { %p5746_p6 = por %p5745_p5, %p5744_p4 }
 0x367   : > { %p5742_p2 = pneg %p5741_p3 }
 0x369   : > { %p5747_p9 = pnand %p5746_p6, %p5742_p2 }
 0x36b   : > { %5750 = shalt.err (!%p5747_p9)
}
 0x36c   : > { %s5795_s16 = smov 1024   ;;  %s5796_s25 = smov 64  }
 0x36d   : > { %4023 = dma.vmem_to_hbm [thread:$0]  (%p4103_p10), %s7475_s5, %s7462_s2, %s7473_s14, %s3996_s23, %s5795_s16, %s5795_s16, %s5796_s25  }
 0x36e PF: > { %s4032_s28 = sand.u32 1, %s5777_s6   ;;  %p7526_p11 = scmp.ne.s32.totalorder %s7525_s18, 0 }
 0x36f   : > { %p7527_p13 = scmp.ge.s32.totalorder %s5789_s9, 2  ;;  %s4033_s4 = scalar_lea.sflag [#allocation4], %s4032_s28 }
 0x371   : > { %p4123_p7 = pnand %p7527_p13, %p7526_p11 }
 0x373   : > { %p4124_p8 = pneg %p4123_p7 }
 0x375   : > { %5772 = dma.done.wait (%p4124_p8), %s4033_s4, 98304  }
 0x376   : > { %5774 = vsyncadd (%p4124_p8), %s4033_s4, 4294868992  ;;  %p14_p12 = scmp.ge.s32.totalorder %s5832_s12, 4   ;;  %s7528_s6 = smov %s5781_s7 }
 0x377   : > { %s7529_s7 = smov %s5785_s8  ;;  %s7530_s8 = smov %s5844_s15 }
 0x378   : > { %s7531_s9 = smov %s5832_s12  ;;  %16 = sbr.rel (!%p14_p12) target bundleno = 5 (0x5), region = 69 }
 0x37d   :  { %4038 = vsyncpa [#allocation3], 1 }
 0x37e   :  { %4040 = vsyncpa [#allocation3 + $0x1], 1 }
 0x37f   :  { %4041 = vsyncpa [#allocation4], 1 }
 0x380   :  { %4043 = vsyncpa [#allocation4 + $0x1], 1 }

</bundles_post_ra>
